<compile_context>
chip_gen: v7x
topology: tpu7x:2x2x1
jax: 0.10.0
libtpu: 0.0.40
codegen_flags: <defaults>
</compile_context>

<pallas_src>
import jax
import jax.numpy as jnp
import numpy as np
from jax import lax
from jax.experimental import pallas as pl
from jax.experimental.pallas import tpu as pltpu

# ---------------------------------------------------------------------------
# Problem sizes (small, deterministic)
# ---------------------------------------------------------------------------
B = 2             # batch
T = 8             # fused sequence length (number of NTM.forward steps)
NUM_INPUTS = 8    # external input size
NUM_OUTPUTS = 8   # external output size
N = 16            # memory rows
M = 16            # memory word size
H = 32            # controller (LSTM) hidden size

READ_LEN = M + 6          # k(M), beta(1), g(1), s(3), gamma(1)
WRITE_LEN = 3 * M + 6     # k(M), beta(1), g(1), s(3), gamma(1), e(M), a(M)
ADDR_LEN = M + 6          # addressing-parameter length (shared by both heads)
WR_OFF = 32               # lane offset of write-head params inside the fused projection
HEADS_COLS = 128          # lane-padded fused head-projection width
FC_COLS = 128             # lane-padded final fc width


# ----------------------- pure-JAX reference helpers -------------------------
def _sigmoid(x):
    return 1.0 / (1.0 + jnp.exp(-x))


def _softplus(x):
    return jnp.maximum(x, 0.0) + jnp.log(1.0 + jnp.exp(-jnp.abs(x)))


def _softmax(x, axis):
    x = x - jnp.max(x, axis=axis, keepdims=True)
    e = jnp.exp(x)
    return e / jnp.sum(e, axis=axis, keepdims=True)


def _pow(w, gamma):
    # w >= 0, gamma >= 1; exp/log form (pow lowering-safe).
    return jnp.exp(gamma * jnp.log(jnp.maximum(w, 1e-30)))


# ------------------------------ Pallas kernel -------------------------------
def _ntm_seq_kernel(
    # inputs (all fully resident in VMEM)
    xg_ref, r0_ref, h0_ref, c0_ref, wrw0_ref, mem0_ref,
    w_r_ref, w_hh_ref, w_heads_ref, b_heads_ref,
    w_fc_h_ref, w_fc_r_ref, b_fc_ref, p_shift_ref,
    # outputs
    o_ref, r_out_ref, h_out_ref, c_out_ref, wread_out_ref, wwrite_out_ref, mem_out_ref,
    # scratch: small staging buffer used to stack read/write addressing params
    p_sc,
):
    f32 = jnp.float32
    bf16 = jnp.bfloat16

    def sig(z):
        # sigmoid via tanh: one EUP op instead of exp + reciprocal.
        return 0.5 * (1.0 + jnp.tanh(0.5 * z))

    def softplus(z):
        return jnp.maximum(z, 0.0) + jnp.log(1.0 + jnp.exp(-jnp.abs(z)))

    # Weights: loaded once, live in vregs/VMEM for all T unrolled steps.
    w_r = w_r_ref[...]          # (M, 4H)   bf16
    w_hh = w_hh_ref[...]        # (H, 4H)   bf16
    w_heads = w_heads_ref[...]  # (H, 128)  bf16
    b_heads = b_heads_ref[...]  # (1, 128)  f32
    w_fc_h = w_fc_h_ref[...]    # (H, 128)  bf16
    w_fc_r = w_fc_r_ref[...]    # (M, 128)  bf16
    b_fc = b_fc_ref[...]        # (1, 128)  f32
    p_shift = p_shift_ref[...]  # (N, 2N)   f32  = [P(+1) | P(-1)]

    # Recurrent state carried in vregs.
    h_prev = h0_ref[...]        # (B, H)
    c_prev = c0_ref[...]        # (B, H)
    r_prev = r0_ref[...]        # (B, M)
    w_rw_prev = wrw0_ref[...]   # (2B, N)  rows [0:B]=read head, [B:2B]=write head
    mem = mem0_ref[...]         # (B, N, M)

    # Fully-unrolled recurrence (T small & static).  Straight-line code gives the
    # scheduler full visibility to overlap independent work across steps
    # (equivalent to lax.fori_loop(0, T, ..., unroll=True)).
    for t in range(T):
        # ----------------------- controller (LSTM cell) ---------------------
        xg = xg_ref[t * B:(t + 1) * B, :]                  # precomputed x@Wx + b_lstm
        gates = (xg
                 + jnp.dot(r_prev.astype(bf16), w_r, preferred_element_type=f32)
                 + jnp.dot(h_prev.astype(bf16), w_hh, preferred_element_type=f32))
        gs = sig(gates)                                    # one tanh on the full vreg
        gt = jnp.tanh(gates)
        i_g = gs[:, 0 * H:1 * H]
        f_g = gs[:, 1 * H:2 * H]
        g_g = gt[:, 2 * H:3 * H]
        o_g = gs[:, 3 * H:4 * H]
        c_new = f_g * c_prev + i_g * g_g
        h_new = o_g * jnp.tanh(c_new)
        h_bf = h_new.astype(bf16)

        # -------------- fused read+write head projection (one matmul) -------
        hp = jnp.dot(h_bf, w_heads, preferred_element_type=f32) + b_heads   # (B, 128)

        # Stack both heads' addressing params along the row axis -> the whole
        # addressing pipeline (softplus/softmax/cosine/shift/sharpen) runs once.
        p_sc[0:B, :] = hp[:, 0:ADDR_LEN]                       # read-head params
        p_sc[B:2 * B, :] = hp[:, WR_OFF:WR_OFF + ADDR_LEN]     # write-head params
        p = p_sc[...]                                          # (2B, M+6)

        k = p[:, :M]                                           # (2B, M)
        sp = softplus(p[:, M:M + 6])      # beta..gamma slice in one EUP pass
        beta = sp[:, 0:1]
        gamma = 1.0 + sp[:, 5:6]
        g = sig(p[:, M + 1:M + 2])
        s_logits = p[:, M + 2:M + 5]
        s_e = jnp.exp(s_logits - jnp.max(s_logits, axis=1, keepdims=True))
        s = s_e / jnp.sum(s_e, axis=1, keepdims=True)          # (2B, 3)

        # -------------------- content addressing (both heads) ---------------
        mm = mem + 1e-16
        inv_m = lax.rsqrt(jnp.maximum(jnp.sum(mm * mm, axis=-1), 1e-16))     # (B, N)
        mmn = mm * inv_m[:, :, None]                                         # unit rows
        mmn2 = jnp.concatenate([mmn, mmn], axis=0)                           # (2B, N, M)
        kk = k + 1e-16
        inv_k = lax.rsqrt(
            jnp.maximum(jnp.sum(kk * kk, axis=-1, keepdims=True), 1e-16))    # (2B, 1)
        cos = jnp.sum(mmn2 * kk[:, None, :], axis=-1) * inv_k                # (2B, N)
        z = beta * cos
        e_z = jnp.exp(z - jnp.max(z, axis=1, keepdims=True))
        wc = e_z / jnp.sum(e_z, axis=1, keepdims=True)    # exact div (recurrent state)

        # interpolation with the previous (stacked) weightings
        wg = g * wc + (1.0 - g) * w_rw_prev                                  # (2B, N)

        # circular 3-tap shift: one matmul against [P(+1) | P(-1)]
        w2 = jnp.dot(wg, p_shift, preferred_element_type=f32)               # (2B, 2N)
        w_sh = w2[:, :N] * s[:, 0:1] + wg * s[:, 1:2] + w2[:, N:] * s[:, 2:3]

        # sharpen (exact normalization; feeds the recurrent state)
        w_pow = jnp.exp(gamma * jnp.log(jnp.maximum(w_sh, 1e-30)))
        w_rw = w_pow / (jnp.sum(w_pow, axis=1, keepdims=True) + 1e-16)       # (2B, N)

        # ------------------------ memory read / write -----------------------
        w_col = w_rw[:, :, None]      # single lane->sublane relayout for both heads
        r_new = jnp.sum(w_col[:B] * mem, axis=1)                             # (B, M)
        e_vec = sig(hp[:, WR_OFF + M + 6:WR_OFF + 2 * M + 6])                # (B, M)
        a_vec = hp[:, WR_OFF + 2 * M + 6:WR_OFF + 3 * M + 6]                 # (B, M)
        wwc = w_col[B:]                                                      # (B, N, 1)
        mem_new = mem * (1.0 - wwc * e_vec[:, None, :]) + wwc * a_vec[:, None, :]

        # ------------------------ output fc + sigmoid -----------------------
        o_full = sig(jnp.dot(h_bf, w_fc_h, preferred_element_type=f32)
                     + jnp.dot(r_new.astype(bf16), w_fc_r, preferred_element_type=f32)
                     + b_fc)                                                 # (B, 128)
        o_ref[t * B:(t + 1) * B, :] = o_full        # lane-dense resident output store

        # carry the state in vregs
        h_prev, c_prev, r_prev, w_rw_prev, mem = h_new, c_new, r_new, w_rw, mem_new

    # -------------------- write the final state once ------------------------
    h_out_ref[...] = h_prev
    c_out_ref[...] = c_prev
    r_out_ref[...] = r_prev
    wread_out_ref[...] = w_rw_prev[:B]
    wwrite_out_ref[...] = w_rw_prev[B:]
    mem_out_ref[...] = mem


# ------------------------------ JAX wrapper ---------------------------------
def ntm_unroll(params, xs, state0):
    """Runs T fused NTM forward steps. xs: (T, B, NUM_INPUTS).

    state = (read, (h, c), (w_read, w_write), memory).
    Returns (o of shape (T, B, NUM_OUTPUTS), final state).
    """
    r0, (h0, c0), (w_read0, w_write0), mem0 = state0
    f32 = jnp.float32
    bf16 = jnp.bfloat16

    # ---- weight layout plumbing (outside the kernel) ----
    w_x = params['w_ih_t'][:NUM_INPUTS]            # (In, 4H)
    w_r = params['w_ih_t'][NUM_INPUTS:]            # (M, 4H)

    # Non-recurrent input projection (+ LSTM bias) for all T steps in one matmul.
    xg = (jnp.dot(xs.reshape(T * B, NUM_INPUTS), w_x,
                  precision=lax.Precision.HIGHEST)
          + params['b_lstm']).astype(f32)          # (T*B, 4H)

    w_heads = jnp.zeros((H, HEADS_COLS), f32)
    w_heads = w_heads.at[:, :READ_LEN].set(params['w_read_t'])
    w_heads = w_heads.at[:, WR_OFF:WR_OFF + WRITE_LEN].set(params['w_write_t'])
    b_heads = jnp.zeros((1, HEADS_COLS), f32)
    b_heads = b_heads.at[:, :READ_LEN].set(params['b_read'])
    b_heads = b_heads.at[:, WR_OFF:WR_OFF + WRITE_LEN].set(params['b_write'])
    w_fc_h = jnp.zeros((H, FC_COLS), f32).at[:, :NUM_OUTPUTS].set(params['w_fc_t'][:H])
    w_fc_r = jnp.zeros((M, FC_COLS), f32).at[:, :NUM_OUTPUTS].set(params['w_fc_t'][H:])
    b_fc = jnp.zeros((1, FC_COLS), f32).at[:, :NUM_OUTPUTS].set(params['b_fc'])

    # Merged circular-shift permutation matrix: columns [0:N] give w[(j-1)%N],
    # columns [N:2N] give w[(j+1)%N].
    p_plus = np.roll(np.eye(N, dtype=np.float32), 1, axis=1)
    p_minus = np.roll(np.eye(N, dtype=np.float32), -1, axis=1)
    p_shift = jnp.asarray(np.concatenate([p_plus, p_minus], axis=1))   # (N, 2N)

    # Read/write weightings carried stacked along the row axis (built outside kernel).
    w_rw0 = jnp.concatenate([w_read0, w_write0], axis=0)               # (2B, N)

    inputs = (xg, r0, h0, c0, w_rw0, mem0,
              w_r.astype(bf16), params['w_hh_t'].astype(bf16),
              w_heads.astype(bf16), b_heads,
              w_fc_h.astype(bf16), w_fc_r.astype(bf16), b_fc,
              p_shift)

    out_shape = (
        jax.ShapeDtypeStruct((T * B, FC_COLS), f32),  # per-step outputs (lane-padded)
        jax.ShapeDtypeStruct((B, M), f32),            # final read vector
        jax.ShapeDtypeStruct((B, H), f32),            # final h
        jax.ShapeDtypeStruct((B, H), f32),            # final c
        jax.ShapeDtypeStruct((B, N), f32),            # final w_read
        jax.ShapeDtypeStruct((B, N), f32),            # final w_write
        jax.ShapeDtypeStruct((B, N, M), f32),         # final memory
    )

    o_pad, r_f, h_f, c_f, wr_f, ww_f, mem_f = pl.pallas_call(
        _ntm_seq_kernel,
        out_shape=out_shape,
        scratch_shapes=[pltpu.VMEM((2 * B, ADDR_LEN), f32)],
    )(*inputs)

    o = o_pad.reshape(T, B, FC_COLS)[:, :, :NUM_OUTPUTS]
    return o, (r_f, (h_f, c_f), (wr_f, ww_f), mem_f)


# --------------------------- pure-JAX reference -----------------------------
def ntm_step_ref(params, x, state):
    r_prev, (h_prev, c_prev), (w_read_prev, w_write_prev), mem = state
    inp = jnp.concatenate([x, r_prev], axis=1)
    gates = inp @ params['w_ih_t'] + h_prev @ params['w_hh_t'] + params['b_lstm']
    i_g = _sigmoid(gates[:, :H]); f_g = _sigmoid(gates[:, H:2 * H])
    g_g = jnp.tanh(gates[:, 2 * H:3 * H]); o_g = _sigmoid(gates[:, 3 * H:])
    c_new = f_g * c_prev + i_g * g_g
    h_new = o_g * jnp.tanh(c_new)

    def address(p, w_prev):
        k = p[:, :M]; beta = _softplus(p[:, M:M + 1])
        g = _sigmoid(p[:, M + 1:M + 2]); s = _softmax(p[:, M + 2:M + 5], axis=1)
        gamma = 1.0 + _softplus(p[:, M + 5:M + 6])
        kk = k + 1e-16; mm = mem + 1e-16
        dot = jnp.sum(mm * kk[:, None, :], axis=-1)
        kn = jnp.sqrt(jnp.sum(kk * kk, axis=-1, keepdims=True))
        mn = jnp.sqrt(jnp.sum(mm * mm, axis=-1))
        cos = dot / (jnp.maximum(mn, 1e-8) * jnp.maximum(kn, 1e-8))
        wc = _softmax(beta * cos, axis=1)
        wg = g * wc + (1.0 - g) * w_prev
        t = jnp.concatenate([wg[:, N - 1:], wg, wg[:, :1]], axis=1)
        w_sh = t[:, :N] * s[:, :1] + t[:, 1:N + 1] * s[:, 1:2] + t[:, 2:] * s[:, 2:3]
        wp = _pow(jnp.maximum(w_sh, 0.0), gamma)
        return wp / (jnp.sum(wp, axis=1, keepdims=True) + 1e-16)

    rd = h_new @ params['w_read_t'] + params['b_read']
    w_read = address(rd, w_read_prev)
    r_new = jnp.sum(w_read[:, :, None] * mem, axis=1)

    wr = h_new @ params['w_write_t'] + params['b_write']
    w_write = address(wr[:, :M + 6], w_write_prev)
    e = _sigmoid(wr[:, M + 6:2 * M + 6]); a = wr[:, 2 * M + 6:]
    mem_new = mem * (1.0 - w_write[:, :, None] * e[:, None, :]) \
        + w_write[:, :, None] * a[:, None, :]

    inp2 = jnp.concatenate([h_new, r_new], axis=1)
    o = _sigmoid(inp2 @ params['w_fc_t'] + params['b_fc'])
    return o, (r_new, (h_new, c_new), (w_read, w_write), mem_new)


def ntm_unroll_ref(params, xs, state0):
    def step(state, x):
        o, new_state = ntm_step_ref(params, x, state)
        return new_state, o
    state_f, os = jax.lax.scan(step, state0, xs)
    return os, state_f


# ---------------------------------- main ------------------------------------
if __name__ == "__main__":
    key = jax.random.PRNGKey(0)
    ks = jax.random.split(key, 16)

    def rand(k, shape, scale=0.1):
        return scale * jax.random.normal(k, shape, dtype=jnp.float32)

    # Deterministic synthetic parameters (weights pre-transposed for matmuls).
    params = {
        'w_ih_t':   rand(ks[0], (NUM_INPUTS + M, 4 * H)),      # LSTM input weights
        'w_hh_t':   rand(ks[1], (H, 4 * H)),                   # LSTM hidden weights
        'b_lstm':   rand(ks[2], (1, 4 * H), 0.01),             # b_ih + b_hh combined
        'w_read_t': rand(ks[3], (H, READ_LEN)),                # read-head fc
        'b_read':   rand(ks[4], (1, READ_LEN), 0.01),
        'w_write_t': rand(ks[5], (H, WRITE_LEN)),              # write-head fc
        'b_write':  rand(ks[6], (1, WRITE_LEN), 0.01),
        'w_fc_t':   rand(ks[7], (H + M, NUM_OUTPUTS)),         # final fc
        'b_fc':     rand(ks[8], (1, NUM_OUTPUTS), 0.01),
    }

    # Inputs and initial state (mirrors create_new_state + memory.reset).
    xs = rand(ks[9], (T, B, NUM_INPUTS), 1.0)
    r0 = jnp.tile(0.01 * jax.random.normal(ks[10], (1, M), jnp.float32), (B, 1))
    h0 = jnp.tile(0.05 * jax.random.normal(ks[11], (1, H), jnp.float32), (B, 1))
    c0 = jnp.tile(0.05 * jax.random.normal(ks[12], (1, H), jnp.float32), (B, 1))
    w_read0 = jnp.zeros((B, N), jnp.float32)
    w_write0 = jnp.zeros((B, N), jnp.float32)
    stdev = 1.0 / np.sqrt(N + M)
    mem0 = jax.random.uniform(ks[13], (1, N, M), jnp.float32, -stdev, stdev)
    mem0 = jnp.tile(mem0, (B, 1, 1))
    state0 = (r0, (h0, c0), (w_read0, w_write0), mem0)

    # Run the fused Pallas kernel once over the whole sequence.
    o, state1 = jax.jit(ntm_unroll)(params, xs, state0)
    jax.block_until_ready(o)
    jax.block_until_ready(state1)

    # Sanity check against the pure-JAX per-step reference unrolled with scan.
    o_ref, state1_ref = jax.jit(ntm_unroll_ref)(params, xs, state0)
    np.testing.assert_allclose(np.asarray(o), np.asarray(o_ref), rtol=2e-2, atol=2e-2)
    np.testing.assert_allclose(np.asarray(state1[3]), np.asarray(state1_ref[3]),
                               rtol=2e-2, atol=2e-2)
    np.testing.assert_allclose(np.asarray(state1[1][0]), np.asarray(state1_ref[1][0]),
                               rtol=2e-2, atol=2e-2)
    assert o.shape == (T, B, NUM_OUTPUTS) and state1[3].shape == (B, N, M)

    print("KERNEL_OK")
</pallas_src>

<mosaic_0001>
module attributes {stable_mosaic.version = 11 : i64} {
  func.func @_ntm_seq_kernel(%arg0: memref<16x128xf32, #tpu.memory_space<vmem>>, %arg1: memref<2x16xf32, #tpu.memory_space<vmem>>, %arg2: memref<2x32xf32, #tpu.memory_space<vmem>>, %arg3: memref<2x32xf32, #tpu.memory_space<vmem>>, %arg4: memref<4x16xf32, #tpu.memory_space<vmem>>, %arg5: memref<2x16x16xf32, #tpu.memory_space<vmem>>, %arg6: memref<16x128xbf16, #tpu.memory_space<vmem>>, %arg7: memref<32x128xbf16, #tpu.memory_space<vmem>>, %arg8: memref<32x128xbf16, #tpu.memory_space<vmem>>, %arg9: memref<1x128xf32, #tpu.memory_space<vmem>>, %arg10: memref<32x128xbf16, #tpu.memory_space<vmem>>, %arg11: memref<16x128xbf16, #tpu.memory_space<vmem>>, %arg12: memref<1x128xf32, #tpu.memory_space<vmem>>, %arg13: memref<16x32xf32, #tpu.memory_space<vmem>>, %arg14: memref<16x128xf32, #tpu.memory_space<vmem>>, %arg15: memref<2x16xf32, #tpu.memory_space<vmem>>, %arg16: memref<2x32xf32, #tpu.memory_space<vmem>>, %arg17: memref<2x32xf32, #tpu.memory_space<vmem>>, %arg18: memref<2x16xf32, #tpu.memory_space<vmem>>, %arg19: memref<2x16xf32, #tpu.memory_space<vmem>>, %arg20: memref<2x16x16xf32, #tpu.memory_space<vmem>>, %arg21: memref<4x22xf32, #tpu.memory_space<vmem>>) attributes {dimension_semantics = [], scalar_prefetch = 0 : i64, scratch_operands = 1 : i64, tpu.core_type = #tpu.core_type<tc>} {
    %c0 = arith.constant 0 : index
    %c0_0 = arith.constant 0 : index
    %0 = vector.load %arg6[%c0, %c0_0] : memref<16x128xbf16, #tpu.memory_space<vmem>>, vector<16x128xbf16>
    %c0_1 = arith.constant 0 : index
    %c0_2 = arith.constant 0 : index
    %1 = vector.load %arg7[%c0_1, %c0_2] : memref<32x128xbf16, #tpu.memory_space<vmem>>, vector<32x128xbf16>
    %c0_3 = arith.constant 0 : index
    %c0_4 = arith.constant 0 : index
    %2 = vector.load %arg8[%c0_3, %c0_4] : memref<32x128xbf16, #tpu.memory_space<vmem>>, vector<32x128xbf16>
    %c0_5 = arith.constant 0 : index
    %c0_6 = arith.constant 0 : index
    %3 = vector.load %arg9[%c0_5, %c0_6] : memref<1x128xf32, #tpu.memory_space<vmem>>, vector<1x128xf32>
    %c0_7 = arith.constant 0 : index
    %c0_8 = arith.constant 0 : index
    %4 = vector.load %arg10[%c0_7, %c0_8] : memref<32x128xbf16, #tpu.memory_space<vmem>>, vector<32x128xbf16>
    %c0_9 = arith.constant 0 : index
    %c0_10 = arith.constant 0 : index
    %5 = vector.load %arg11[%c0_9, %c0_10] : memref<16x128xbf16, #tpu.memory_space<vmem>>, vector<16x128xbf16>
    %c0_11 = arith.constant 0 : index
    %c0_12 = arith.constant 0 : index
    %6 = vector.load %arg12[%c0_11, %c0_12] : memref<1x128xf32, #tpu.memory_space<vmem>>, vector<1x128xf32>
    %c0_13 = arith.constant 0 : index
    %c0_14 = arith.constant 0 : index
    %7 = vector.load %arg13[%c0_13, %c0_14] : memref<16x32xf32, #tpu.memory_space<vmem>>, vector<16x32xf32>
    %c0_15 = arith.constant 0 : index
    %c0_16 = arith.constant 0 : index
    %8 = vector.load %arg2[%c0_15, %c0_16] : memref<2x32xf32, #tpu.memory_space<vmem>>, vector<2x32xf32>
    %c0_17 = arith.constant 0 : index
    %c0_18 = arith.constant 0 : index
    %9 = vector.load %arg3[%c0_17, %c0_18] : memref<2x32xf32, #tpu.memory_space<vmem>>, vector<2x32xf32>
    %c0_19 = arith.constant 0 : index
    %c0_20 = arith.constant 0 : index
    %10 = vector.load %arg1[%c0_19, %c0_20] : memref<2x16xf32, #tpu.memory_space<vmem>>, vector<2x16xf32>
    %c0_21 = arith.constant 0 : index
    %c0_22 = arith.constant 0 : index
    %11 = vector.load %arg4[%c0_21, %c0_22] : memref<4x16xf32, #tpu.memory_space<vmem>>, vector<4x16xf32>
    %c0_23 = arith.constant 0 : index
    %c0_24 = arith.constant 0 : index
    %c0_25 = arith.constant 0 : index
    %12 = vector.load %arg5[%c0_23, %c0_24, %c0_25] : memref<2x16x16xf32, #tpu.memory_space<vmem>>, vector<2x16x16xf32>
    %c0_26 = arith.constant 0 : index
    %c0_27 = arith.constant 0 : index
    %13 = vector.load %arg0[%c0_26, %c0_27] : memref<16x128xf32, #tpu.memory_space<vmem>>, vector<2x128xf32>
    %14 = arith.truncf %10 : vector<2x16xf32> to vector<2x16xbf16>
    %cst = arith.constant dense<0.000000e+00> : vector<2x128xf32>
    %15 = tpu.matmul %14, %0, %cst {dimension_numbers = #tpu.dot_dimension_numbers<[1], [0], [0], [1], [0, 0, 1, 1], [], []>} : vector<2x16xbf16>, vector<16x128xbf16>, vector<2x128xf32> -> vector<2x128xf32>
    %16 = arith.addf %13, %15 : vector<2x128xf32>
    %17 = arith.truncf %8 : vector<2x32xf32> to vector<2x32xbf16>
    %cst_28 = arith.constant dense<0.000000e+00> : vector<2x128xf32>
    %18 = tpu.matmul %17, %1, %cst_28 {dimension_numbers = #tpu.dot_dimension_numbers<[1], [0], [0], [1], [0, 0, 1, 1], [], []>} : vector<2x32xbf16>, vector<32x128xbf16>, vector<2x128xf32> -> vector<2x128xf32>
    %19 = arith.addf %16, %18 : vector<2x128xf32>
    %cst_29 = arith.constant 5.000000e-01 : f32
    %20 = vector.broadcast %cst_29 : f32 to vector<2x128xf32>
    %21 = arith.mulf %20, %19 : vector<2x128xf32>
    %22 = math.tanh %21 : vector<2x128xf32>
    %cst_30 = arith.constant 1.000000e+00 : f32
    %23 = vector.broadcast %cst_30 : f32 to vector<2x128xf32>
    %24 = arith.addf %23, %22 : vector<2x128xf32>
    %cst_31 = arith.constant 5.000000e-01 : f32
    %25 = vector.broadcast %cst_31 : f32 to vector<2x128xf32>
    %26 = arith.mulf %25, %24 : vector<2x128xf32>
    %27 = math.tanh %19 : vector<2x128xf32>
    %28 = vector.extract_strided_slice %26 {offsets = [0, 0], sizes = [2, 32], strides = [1, 1]} : vector<2x128xf32> to vector<2x32xf32>
    %29 = vector.extract_strided_slice %26 {offsets = [0, 32], sizes = [2, 32], strides = [1, 1]} : vector<2x128xf32> to vector<2x32xf32>
    %30 = vector.extract_strided_slice %27 {offsets = [0, 64], sizes = [2, 32], strides = [1, 1]} : vector<2x128xf32> to vector<2x32xf32>
    %31 = vector.extract_strided_slice %26 {offsets = [0, 96], sizes = [2, 32], strides = [1, 1]} : vector<2x128xf32> to vector<2x32xf32>
    %32 = arith.mulf %29, %9 : vector<2x32xf32>
    %33 = arith.mulf %28, %30 : vector<2x32xf32>
    %34 = arith.addf %32, %33 : vector<2x32xf32>
    %35 = math.tanh %34 : vector<2x32xf32>
    %36 = arith.mulf %31, %35 : vector<2x32xf32>
    %37 = arith.truncf %36 : vector<2x32xf32> to vector<2x32xbf16>
    %cst_32 = arith.constant dense<0.000000e+00> : vector<2x128xf32>
    %38 = tpu.matmul %37, %2, %cst_32 {dimension_numbers = #tpu.dot_dimension_numbers<[1], [0], [0], [1], [0, 0, 1, 1], [], []>} : vector<2x32xbf16>, vector<32x128xbf16>, vector<2x128xf32> -> vector<2x128xf32>
    %39 = vector.broadcast %3 : vector<1x128xf32> to vector<2x128xf32>
    %40 = arith.addf %38, %39 : vector<2x128xf32>
    %41 = vector.extract_strided_slice %40 {offsets = [0, 0], sizes = [2, 22], strides = [1, 1]} : vector<2x128xf32> to vector<2x22xf32>
    %c0_33 = arith.constant 0 : index
    %c0_34 = arith.constant 0 : index
    %42 = vector.load %arg21[%c0_33, %c0_34] : memref<4x22xf32, #tpu.memory_space<vmem>>, vector<2x22xf32>
    tpu.vector_store %arg21[%c0_33, %c0_34], %41 {strides = array<i32>} : memref<4x22xf32, #tpu.memory_space<vmem>>, vector<2x22xf32>,
    %43 = vector.extract_strided_slice %40 {offsets = [0, 32], sizes = [2, 22], strides = [1, 1]} : vector<2x128xf32> to vector<2x22xf32>
    %c2 = arith.constant 2 : index
    %c0_35 = arith.constant 0 : index
    %44 = vector.load %arg21[%c2, %c0_35] : memref<4x22xf32, #tpu.memory_space<vmem>>, vector<2x22xf32>
    tpu.vector_store %arg21[%c2, %c0_35], %43 {strides = array<i32>} : memref<4x22xf32, #tpu.memory_space<vmem>>, vector<2x22xf32>,
    %c0_36 = arith.constant 0 : index
    %c0_37 = arith.constant 0 : index
    %45 = vector.load %arg21[%c0_36, %c0_37] : memref<4x22xf32, #tpu.memory_space<vmem>>, vector<4x22xf32>
    %46 = vector.extract_strided_slice %45 {offsets = [0, 0], sizes = [4, 16], strides = [1, 1]} : vector<4x22xf32> to vector<4x16xf32>
    %47 = vector.extract_strided_slice %45 {offsets = [0, 16], sizes = [4, 6], strides = [1, 1]} : vector<4x22xf32> to vector<4x6xf32>
    %cst_38 = arith.constant 0.000000e+00 : f32
    %48 = vector.broadcast %cst_38 : f32 to vector<4x6xf32>
    %49 = arith.maximumf %47, %48 : vector<4x6xf32>
    %50 = math.absf %47 : vector<4x6xf32>
    %cst_39 = arith.constant 0.000000e+00 : f32
    %51 = vector.broadcast %cst_39 : f32 to vector<4x6xf32>
    %52 = arith.subf %51, %50 : vector<4x6xf32>
    %53 = math.exp %52 : vector<4x6xf32>
    %cst_40 = arith.constant 1.000000e+00 : f32
    %54 = vector.broadcast %cst_40 : f32 to vector<4x6xf32>
    %55 = arith.addf %54, %53 : vector<4x6xf32>
    %56 = math.log %55 : vector<4x6xf32>
    %57 = arith.addf %49, %56 : vector<4x6xf32>
    %58 = vector.extract_strided_slice %57 {offsets = [0, 0], sizes = [4, 1], strides = [1, 1]} : vector<4x6xf32> to vector<4x1xf32>
    %59 = vector.extract_strided_slice %57 {offsets = [0, 5], sizes = [4, 1], strides = [1, 1]} : vector<4x6xf32> to vector<4x1xf32>
    %cst_41 = arith.constant 1.000000e+00 : f32
    %60 = vector.broadcast %cst_41 : f32 to vector<4x1xf32>
    %61 = arith.addf %60, %59 : vector<4x1xf32>
    %62 = vector.extract_strided_slice %45 {offsets = [0, 17], sizes = [4, 1], strides = [1, 1]} : vector<4x22xf32> to vector<4x1xf32>
    %cst_42 = arith.constant 5.000000e-01 : f32
    %63 = vector.broadcast %cst_42 : f32 to vector<4x1xf32>
    %64 = arith.mulf %63, %62 : vector<4x1xf32>
    %65 = math.tanh %64 : vector<4x1xf32>
    %cst_43 = arith.constant 1.000000e+00 : f32
    %66 = vector.broadcast %cst_43 : f32 to vector<4x1xf32>
    %67 = arith.addf %66, %65 : vector<4x1xf32>
    %cst_44 = arith.constant 5.000000e-01 : f32
    %68 = vector.broadcast %cst_44 : f32 to vector<4x1xf32>
    %69 = arith.mulf %68, %67 : vector<4x1xf32>
    %70 = vector.extract_strided_slice %45 {offsets = [0, 18], sizes = [4, 3], strides = [1, 1]} : vector<4x22xf32> to vector<4x3xf32>
    %cst_45 = arith.constant dense<0xFF800000> : vector<4xf32>
    %71 = vector.multi_reduction <maximumf>, %70, %cst_45 [1] : vector<4x3xf32> to vector<4xf32>
    %72 = vector.shape_cast %71 : vector<4xf32> to vector<4x1xf32>
    %73 = vector.broadcast %72 : vector<4x1xf32> to vector<4x3xf32>
    %74 = arith.subf %70, %73 : vector<4x3xf32>
    %75 = math.exp %74 : vector<4x3xf32>
    %cst_46 = arith.constant dense<0.000000e+00> : vector<4xf32>
    %76 = vector.multi_reduction <add>, %75, %cst_46 [1] : vector<4x3xf32> to vector<4xf32>
    %77 = vector.shape_cast %76 : vector<4xf32> to vector<4x1xf32>
    %78 = vector.broadcast %77 : vector<4x1xf32> to vector<4x3xf32>
    %79 = arith.divf %75, %78 : vector<4x3xf32>
    %cst_47 = arith.constant 1.000000e-16 : f32
    %80 = vector.broadcast %cst_47 : f32 to vector<2x16x16xf32>
    %81 = arith.addf %12, %80 : vector<2x16x16xf32>
    %82 = arith.mulf %81, %81 : vector<2x16x16xf32>
    %cst_48 = arith.constant dense<0.000000e+00> : vector<2x16xf32>
    %83 = vector.multi_reduction <add>, %82, %cst_48 [2] : vector<2x16x16xf32> to vector<2x16xf32>
    %cst_49 = arith.constant 1.000000e-16 : f32
    %84 = vector.broadcast %cst_49 : f32 to vector<2x16xf32>
    %85 = arith.maximumf %83, %84 : vector<2x16xf32>
    %86 = math.rsqrt %85 : vector<2x16xf32>
    %87 = vector.shape_cast %86 : vector<2x16xf32> to vector<2x16x1xf32>
    %88 = vector.broadcast %87 : vector<2x16x1xf32> to vector<2x16x16xf32>
    %89 = arith.mulf %81, %88 : vector<2x16x16xf32>
    %90 = tpu.concatenate %89, %89 in 0 : vector<2x16x16xf32>, vector<2x16x16xf32> -> vector<4x16x16xf32>
    %cst_50 = arith.constant 1.000000e-16 : f32
    %91 = vector.broadcast %cst_50 : f32 to vector<4x16xf32>
    %92 = arith.addf %46, %91 : vector<4x16xf32>
    %93 = arith.mulf %92, %92 : vector<4x16xf32>
    %cst_51 = arith.constant dense<0.000000e+00> : vector<4xf32>
    %94 = vector.multi_reduction <add>, %93, %cst_51 [1] : vector<4x16xf32> to vector<4xf32>
    %95 = vector.shape_cast %94 : vector<4xf32> to vector<4x1xf32>
    %cst_52 = arith.constant 1.000000e-16 : f32
    %96 = vector.broadcast %cst_52 : f32 to vector<4x1xf32>
    %97 = arith.maximumf %95, %96 : vector<4x1xf32>
    %98 = math.rsqrt %97 : vector<4x1xf32>
    %99 = vector.shape_cast %92 : vector<4x16xf32> to vector<4x1x16xf32>
    %100 = vector.broadcast %99 : vector<4x1x16xf32> to vector<4x16x16xf32>
    %101 = arith.mulf %90, %100 : vector<4x16x16xf32>
    %cst_53 = arith.constant dense<0.000000e+00> : vector<4x16xf32>
    %102 = vector.multi_reduction <add>, %101, %cst_53 [2] : vector<4x16x16xf32> to vector<4x16xf32>
    %103 = vector.broadcast %98 : vector<4x1xf32> to vector<4x16xf32>
    %104 = arith.mulf %102, %103 : vector<4x16xf32>
    %105 = vector.broadcast %58 : vector<4x1xf32> to vector<4x16xf32>
    %106 = arith.mulf %105, %104 : vector<4x16xf32>
    %cst_54 = arith.constant dense<0xFF800000> : vector<4xf32>
    %107 = vector.multi_reduction <maximumf>, %106, %cst_54 [1] : vector<4x16xf32> to vector<4xf32>
    %108 = vector.shape_cast %107 : vector<4xf32> to vector<4x1xf32>
    %109 = vector.broadcast %108 : vector<4x1xf32> to vector<4x16xf32>
    %110 = arith.subf %106, %109 : vector<4x16xf32>
    %111 = math.exp %110 : vector<4x16xf32>
    %cst_55 = arith.constant dense<0.000000e+00> : vector<4xf32>
    %112 = vector.multi_reduction <add>, %111, %cst_55 [1] : vector<4x16xf32> to vector<4xf32>
    %113 = vector.shape_cast %112 : vector<4xf32> to vector<4x1xf32>
    %114 = vector.broadcast %113 : vector<4x1xf32> to vector<4x16xf32>
    %115 = arith.divf %111, %114 : vector<4x16xf32>
    %116 = vector.broadcast %69 : vector<4x1xf32> to vector<4x16xf32>
    %117 = arith.mulf %116, %115 : vector<4x16xf32>
    %cst_56 = arith.constant 1.000000e+00 : f32
    %118 = vector.broadcast %cst_56 : f32 to vector<4x1xf32>
    %119 = arith.subf %118, %69 : vector<4x1xf32>
    %120 = vector.broadcast %119 : vector<4x1xf32> to vector<4x16xf32>
    %121 = arith.mulf %120, %11 : vector<4x16xf32>
    %122 = arith.addf %117, %121 : vector<4x16xf32>
    %cst_57 = arith.constant dense<0.000000e+00> : vector<4x32xf32>
    %123 = tpu.matmul %122, %7, %cst_57 {dimension_numbers = #tpu.dot_dimension_numbers<[1], [0], [0], [1], [0, 0, 1, 1], [], []>} : vector<4x16xf32>, vector<16x32xf32>, vector<4x32xf32> -> vector<4x32xf32>
    %124 = vector.extract_strided_slice %123 {offsets = [0, 0], sizes = [4, 16], strides = [1, 1]} : vector<4x32xf32> to vector<4x16xf32>
    %125 = vector.extract_strided_slice %79 {offsets = [0, 0], sizes = [4, 1], strides = [1, 1]} : vector<4x3xf32> to vector<4x1xf32>
    %126 = vector.broadcast %125 : vector<4x1xf32> to vector<4x16xf32>
    %127 = arith.mulf %124, %126 : vector<4x16xf32>
    %128 = vector.extract_strided_slice %79 {offsets = [0, 1], sizes = [4, 1], strides = [1, 1]} : vector<4x3xf32> to vector<4x1xf32>
    %129 = vector.broadcast %128 : vector<4x1xf32> to vector<4x16xf32>
    %130 = arith.mulf %122, %129 : vector<4x16xf32>
    %131 = arith.addf %127, %130 : vector<4x16xf32>
    %132 = vector.extract_strided_slice %123 {offsets = [0, 16], sizes = [4, 16], strides = [1, 1]} : vector<4x32xf32> to vector<4x16xf32>
    %133 = vector.extract_strided_slice %79 {offsets = [0, 2], sizes = [4, 1], strides = [1, 1]} : vector<4x3xf32> to vector<4x1xf32>
    %134 = vector.broadcast %133 : vector<4x1xf32> to vector<4x16xf32>
    %135 = arith.mulf %132, %134 : vector<4x16xf32>
    %136 = arith.addf %131, %135 : vector<4x16xf32>
    %cst_58 = arith.constant 1.000000e-30 : f32
    %137 = vector.broadcast %cst_58 : f32 to vector<4x16xf32>
    %138 = arith.maximumf %136, %137 : vector<4x16xf32>
    %139 = math.log %138 : vector<4x16xf32>
    %140 = vector.broadcast %61 : vector<4x1xf32> to vector<4x16xf32>
    %141 = arith.mulf %140, %139 : vector<4x16xf32>
    %142 = math.exp %141 : vector<4x16xf32>
    %cst_59 = arith.constant dense<0.000000e+00> : vector<4xf32>
    %143 = vector.multi_reduction <add>, %142, %cst_59 [1] : vector<4x16xf32> to vector<4xf32>
    %144 = vector.shape_cast %143 : vector<4xf32> to vector<4x1xf32>
    %cst_60 = arith.constant 1.000000e-16 : f32
    %145 = vector.broadcast %cst_60 : f32 to vector<4x1xf32>
    %146 = arith.addf %144, %145 : vector<4x1xf32>
    %147 = vector.broadcast %146 : vector<4x1xf32> to vector<4x16xf32>
    %148 = arith.divf %142, %147 : vector<4x16xf32>
    %149 = vector.shape_cast %148 : vector<4x16xf32> to vector<4x16x1xf32>
    %150 = vector.extract_strided_slice %149 {offsets = [0, 0, 0], sizes = [2, 16, 1], strides = [1, 1, 1]} : vector<4x16x1xf32> to vector<2x16x1xf32>
    %151 = vector.broadcast %150 : vector<2x16x1xf32> to vector<2x16x16xf32>
    %152 = arith.mulf %151, %12 : vector<2x16x16xf32>
    %cst_61 = arith.constant dense<0.000000e+00> : vector<2x16xf32>
    %153 = vector.multi_reduction <add>, %152, %cst_61 [1] : vector<2x16x16xf32> to vector<2x16xf32>
    %154 = vector.extract_strided_slice %40 {offsets = [0, 54], sizes = [2, 16], strides = [1, 1]} : vector<2x128xf32> to vector<2x16xf32>
    %cst_62 = arith.constant 5.000000e-01 : f32
    %155 = vector.broadcast %cst_62 : f32 to vector<2x16xf32>
    %156 = arith.mulf %155, %154 : vector<2x16xf32>
    %157 = math.tanh %156 : vector<2x16xf32>
    %cst_63 = arith.constant 1.000000e+00 : f32
    %158 = vector.broadcast %cst_63 : f32 to vector<2x16xf32>
    %159 = arith.addf %158, %157 : vector<2x16xf32>
    %cst_64 = arith.constant 5.000000e-01 : f32
    %160 = vector.broadcast %cst_64 : f32 to vector<2x16xf32>
    %161 = arith.mulf %160, %159 : vector<2x16xf32>
    %162 = vector.extract_strided_slice %40 {offsets = [0, 70], sizes = [2, 16], strides = [1, 1]} : vector<2x128xf32> to vector<2x16xf32>
    %163 = vector.extract_strided_slice %149 {offsets = [2, 0, 0], sizes = [2, 16, 1], strides = [1, 1, 1]} : vector<4x16x1xf32> to vector<2x16x1xf32>
    %164 = vector.shape_cast %161 : vector<2x16xf32> to vector<2x1x16xf32>
    %165 = vector.broadcast %163 : vector<2x16x1xf32> to vector<2x16x16xf32>
    %166 = vector.broadcast %164 : vector<2x1x16xf32> to vector<2x16x16xf32>
    %167 = arith.mulf %165, %166 : vector<2x16x16xf32>
    %cst_65 = arith.constant 1.000000e+00 : f32
    %168 = vector.broadcast %cst_65 : f32 to vector<2x16x16xf32>
    %169 = arith.subf %168, %167 : vector<2x16x16xf32>
    %170 = arith.mulf %12, %169 : vector<2x16x16xf32>
    %171 = vector.shape_cast %162 : vector<2x16xf32> to vector<2x1x16xf32>
    %172 = vector.broadcast %163 : vector<2x16x1xf32> to vector<2x16x16xf32>
    %173 = vector.broadcast %171 : vector<2x1x16xf32> to vector<2x16x16xf32>
    %174 = arith.mulf %172, %173 : vector<2x16x16xf32>
    %175 = arith.addf %170, %174 : vector<2x16x16xf32>
    %cst_66 = arith.constant dense<0.000000e+00> : vector<2x128xf32>
    %176 = tpu.matmul %37, %4, %cst_66 {dimension_numbers = #tpu.dot_dimension_numbers<[1], [0], [0], [1], [0, 0, 1, 1], [], []>} : vector<2x32xbf16>, vector<32x128xbf16>, vector<2x128xf32> -> vector<2x128xf32>
    %177 = arith.truncf %153 : vector<2x16xf32> to vector<2x16xbf16>
    %cst_67 = arith.constant dense<0.000000e+00> : vector<2x128xf32>
    %178 = tpu.matmul %177, %5, %cst_67 {dimension_numbers = #tpu.dot_dimension_numbers<[1], [0], [0], [1], [0, 0, 1, 1], [], []>} : vector<2x16xbf16>, vector<16x128xbf16>, vector<2x128xf32> -> vector<2x128xf32>
    %179 = arith.addf %176, %178 : vector<2x128xf32>
    %180 = vector.broadcast %6 : vector<1x128xf32> to vector<2x128xf32>
    %181 = arith.addf %179, %180 : vector<2x128xf32>
    %cst_68 = arith.constant 5.000000e-01 : f32
    %182 = vector.broadcast %cst_68 : f32 to vector<2x128xf32>
    %183 = arith.mulf %182, %181 : vector<2x128xf32>
    %184 = math.tanh %183 : vector<2x128xf32>
    %cst_69 = arith.constant 1.000000e+00 : f32
    %185 = vector.broadcast %cst_69 : f32 to vector<2x128xf32>
    %186 = arith.addf %185, %184 : vector<2x128xf32>
    %cst_70 = arith.constant 5.000000e-01 : f32
    %187 = vector.broadcast %cst_70 : f32 to vector<2x128xf32>
    %188 = arith.mulf %187, %186 : vector<2x128xf32>
    %c0_71 = arith.constant 0 : index
    %c0_72 = arith.constant 0 : index
    %189 = vector.load %arg14[%c0_71, %c0_72] : memref<16x128xf32, #tpu.memory_space<vmem>>, vector<2x128xf32>
    tpu.vector_store %arg14[%c0_71, %c0_72], %188 {strides = array<i32>} : memref<16x128xf32, #tpu.memory_space<vmem>>, vector<2x128xf32>,
    %c2_73 = arith.constant 2 : index
    %c0_74 = arith.constant 0 : index
    %190 = vector.load %arg0[%c2_73, %c0_74] : memref<16x128xf32, #tpu.memory_space<vmem>>, vector<2x128xf32>
    %191 = arith.truncf %153 : vector<2x16xf32> to vector<2x16xbf16>
    %cst_75 = arith.constant dense<0.000000e+00> : vector<2x128xf32>
    %192 = tpu.matmul %191, %0, %cst_75 {dimension_numbers = #tpu.dot_dimension_numbers<[1], [0], [0], [1], [0, 0, 1, 1], [], []>} : vector<2x16xbf16>, vector<16x128xbf16>, vector<2x128xf32> -> vector<2x128xf32>
    %193 = arith.addf %190, %192 : vector<2x128xf32>
    %194 = arith.truncf %36 : vector<2x32xf32> to vector<2x32xbf16>
    %cst_76 = arith.constant dense<0.000000e+00> : vector<2x128xf32>
    %195 = tpu.matmul %194, %1, %cst_76 {dimension_numbers = #tpu.dot_dimension_numbers<[1], [0], [0], [1], [0, 0, 1, 1], [], []>} : vector<2x32xbf16>, vector<32x128xbf16>, vector<2x128xf32> -> vector<2x128xf32>
    %196 = arith.addf %193, %195 : vector<2x128xf32>
    %cst_77 = arith.constant 5.000000e-01 : f32
    %197 = vector.broadcast %cst_77 : f32 to vector<2x128xf32>
    %198 = arith.mulf %197, %196 : vector<2x128xf32>
    %199 = math.tanh %198 : vector<2x128xf32>
    %cst_78 = arith.constant 1.000000e+00 : f32
    %200 = vector.broadcast %cst_78 : f32 to vector<2x128xf32>
    %201 = arith.addf %200, %199 : vector<2x128xf32>
    %cst_79 = arith.constant 5.000000e-01 : f32
    %202 = vector.broadcast %cst_79 : f32 to vector<2x128xf32>
    %203 = arith.mulf %202, %201 : vector<2x128xf32>
    %204 = math.tanh %196 : vector<2x128xf32>
    %205 = vector.extract_strided_slice %203 {offsets = [0, 0], sizes = [2, 32], strides = [1, 1]} : vector<2x128xf32> to vector<2x32xf32>
    %206 = vector.extract_strided_slice %203 {offsets = [0, 32], sizes = [2, 32], strides = [1, 1]} : vector<2x128xf32> to vector<2x32xf32>
    %207 = vector.extract_strided_slice %204 {offsets = [0, 64], sizes = [2, 32], strides = [1, 1]} : vector<2x128xf32> to vector<2x32xf32>
    %208 = vector.extract_strided_slice %203 {offsets = [0, 96], sizes = [2, 32], strides = [1, 1]} : vector<2x128xf32> to vector<2x32xf32>
    %209 = arith.mulf %206, %34 : vector<2x32xf32>
    %210 = arith.mulf %205, %207 : vector<2x32xf32>
    %211 = arith.addf %209, %210 : vector<2x32xf32>
    %212 = math.tanh %211 : vector<2x32xf32>
    %213 = arith.mulf %208, %212 : vector<2x32xf32>
    %214 = arith.truncf %213 : vector<2x32xf32> to vector<2x32xbf16>
    %cst_80 = arith.constant dense<0.000000e+00> : vector<2x128xf32>
    %215 = tpu.matmul %214, %2, %cst_80 {dimension_numbers = #tpu.dot_dimension_numbers<[1], [0], [0], [1], [0, 0, 1, 1], [], []>} : vector<2x32xbf16>, vector<32x128xbf16>, vector<2x128xf32> -> vector<2x128xf32>
    %216 = vector.broadcast %3 : vector<1x128xf32> to vector<2x128xf32>
    %217 = arith.addf %215, %216 : vector<2x128xf32>
    %218 = vector.extract_strided_slice %217 {offsets = [0, 0], sizes = [2, 22], strides = [1, 1]} : vector<2x128xf32> to vector<2x22xf32>
    %c0_81 = arith.constant 0 : index
    %c0_82 = arith.constant 0 : index
    %219 = vector.load %arg21[%c0_81, %c0_82] : memref<4x22xf32, #tpu.memory_space<vmem>>, vector<2x22xf32>
    tpu.vector_store %arg21[%c0_81, %c0_82], %218 {strides = array<i32>} : memref<4x22xf32, #tpu.memory_space<vmem>>, vector<2x22xf32>,
    %220 = vector.extract_strided_slice %217 {offsets = [0, 32], sizes = [2, 22], strides = [1, 1]} : vector<2x128xf32> to vector<2x22xf32>
    %c2_83 = arith.constant 2 : index
    %c0_84 = arith.constant 0 : index
    %221 = vector.load %arg21[%c2_83, %c0_84] : memref<4x22xf32, #tpu.memory_space<vmem>>, vector<2x22xf32>
    tpu.vector_store %arg21[%c2_83, %c0_84], %220 {strides = array<i32>} : memref<4x22xf32, #tpu.memory_space<vmem>>, vector<2x22xf32>,
    %c0_85 = arith.constant 0 : index
    %c0_86 = arith.constant 0 : index
    %222 = vector.load %arg21[%c0_85, %c0_86] : memref<4x22xf32, #tpu.memory_space<vmem>>, vector<4x22xf32>
    %223 = vector.extract_strided_slice %222 {offsets = [0, 0], sizes = [4, 16], strides = [1, 1]} : vector<4x22xf32> to vector<4x16xf32>
    %224 = vector.extract_strided_slice %222 {offsets = [0, 16], sizes = [4, 6], strides = [1, 1]} : vector<4x22xf32> to vector<4x6xf32>
    %cst_87 = arith.constant 0.000000e+00 : f32
    %225 = vector.broadcast %cst_87 : f32 to vector<4x6xf32>
    %226 = arith.maximumf %224, %225 : vector<4x6xf32>
    %227 = math.absf %224 : vector<4x6xf32>
    %cst_88 = arith.constant 0.000000e+00 : f32
    %228 = vector.broadcast %cst_88 : f32 to vector<4x6xf32>
    %229 = arith.subf %228, %227 : vector<4x6xf32>
    %230 = math.exp %229 : vector<4x6xf32>
    %cst_89 = arith.constant 1.000000e+00 : f32
    %231 = vector.broadcast %cst_89 : f32 to vector<4x6xf32>
    %232 = arith.addf %231, %230 : vector<4x6xf32>
    %233 = math.log %232 : vector<4x6xf32>
    %234 = arith.addf %226, %233 : vector<4x6xf32>
    %235 = vector.extract_strided_slice %234 {offsets = [0, 0], sizes = [4, 1], strides = [1, 1]} : vector<4x6xf32> to vector<4x1xf32>
    %236 = vector.extract_strided_slice %234 {offsets = [0, 5], sizes = [4, 1], strides = [1, 1]} : vector<4x6xf32> to vector<4x1xf32>
    %cst_90 = arith.constant 1.000000e+00 : f32
    %237 = vector.broadcast %cst_90 : f32 to vector<4x1xf32>
    %238 = arith.addf %237, %236 : vector<4x1xf32>
    %239 = vector.extract_strided_slice %222 {offsets = [0, 17], sizes = [4, 1], strides = [1, 1]} : vector<4x22xf32> to vector<4x1xf32>
    %cst_91 = arith.constant 5.000000e-01 : f32
    %240 = vector.broadcast %cst_91 : f32 to vector<4x1xf32>
    %241 = arith.mulf %240, %239 : vector<4x1xf32>
    %242 = math.tanh %241 : vector<4x1xf32>
    %cst_92 = arith.constant 1.000000e+00 : f32
    %243 = vector.broadcast %cst_92 : f32 to vector<4x1xf32>
    %244 = arith.addf %243, %242 : vector<4x1xf32>
    %cst_93 = arith.constant 5.000000e-01 : f32
    %245 = vector.broadcast %cst_93 : f32 to vector<4x1xf32>
    %246 = arith.mulf %245, %244 : vector<4x1xf32>
    %247 = vector.extract_strided_slice %222 {offsets = [0, 18], sizes = [4, 3], strides = [1, 1]} : vector<4x22xf32> to vector<4x3xf32>
    %cst_94 = arith.constant dense<0xFF800000> : vector<4xf32>
    %248 = vector.multi_reduction <maximumf>, %247, %cst_94 [1] : vector<4x3xf32> to vector<4xf32>
    %249 = vector.shape_cast %248 : vector<4xf32> to vector<4x1xf32>
    %250 = vector.broadcast %249 : vector<4x1xf32> to vector<4x3xf32>
    %251 = arith.subf %247, %250 : vector<4x3xf32>
    %252 = math.exp %251 : vector<4x3xf32>
    %cst_95 = arith.constant dense<0.000000e+00> : vector<4xf32>
    %253 = vector.multi_reduction <add>, %252, %cst_95 [1] : vector<4x3xf32> to vector<4xf32>
    %254 = vector.shape_cast %253 : vector<4xf32> to vector<4x1xf32>
    %255 = vector.broadcast %254 : vector<4x1xf32> to vector<4x3xf32>
    %256 = arith.divf %252, %255 : vector<4x3xf32>
    %cst_96 = arith.constant 1.000000e-16 : f32
    %257 = vector.broadcast %cst_96 : f32 to vector<2x16x16xf32>
    %258 = arith.addf %175, %257 : vector<2x16x16xf32>
    %259 = arith.mulf %258, %258 : vector<2x16x16xf32>
    %cst_97 = arith.constant dense<0.000000e+00> : vector<2x16xf32>
    %260 = vector.multi_reduction <add>, %259, %cst_97 [2] : vector<2x16x16xf32> to vector<2x16xf32>
    %cst_98 = arith.constant 1.000000e-16 : f32
    %261 = vector.broadcast %cst_98 : f32 to vector<2x16xf32>
    %262 = arith.maximumf %260, %261 : vector<2x16xf32>
    %263 = math.rsqrt %262 : vector<2x16xf32>
    %264 = vector.shape_cast %263 : vector<2x16xf32> to vector<2x16x1xf32>
    %265 = vector.broadcast %264 : vector<2x16x1xf32> to vector<2x16x16xf32>
    %266 = arith.mulf %258, %265 : vector<2x16x16xf32>
    %267 = tpu.concatenate %266, %266 in 0 : vector<2x16x16xf32>, vector<2x16x16xf32> -> vector<4x16x16xf32>
    %cst_99 = arith.constant 1.000000e-16 : f32
    %268 = vector.broadcast %cst_99 : f32 to vector<4x16xf32>
    %269 = arith.addf %223, %268 : vector<4x16xf32>
    %270 = arith.mulf %269, %269 : vector<4x16xf32>
    %cst_100 = arith.constant dense<0.000000e+00> : vector<4xf32>
    %271 = vector.multi_reduction <add>, %270, %cst_100 [1] : vector<4x16xf32> to vector<4xf32>
    %272 = vector.shape_cast %271 : vector<4xf32> to vector<4x1xf32>
    %cst_101 = arith.constant 1.000000e-16 : f32
    %273 = vector.broadcast %cst_101 : f32 to vector<4x1xf32>
    %274 = arith.maximumf %272, %273 : vector<4x1xf32>
    %275 = math.rsqrt %274 : vector<4x1xf32>
    %276 = vector.shape_cast %269 : vector<4x16xf32> to vector<4x1x16xf32>
    %277 = vector.broadcast %276 : vector<4x1x16xf32> to vector<4x16x16xf32>
    %278 = arith.mulf %267, %277 : vector<4x16x16xf32>
    %cst_102 = arith.constant dense<0.000000e+00> : vector<4x16xf32>
    %279 = vector.multi_reduction <add>, %278, %cst_102 [2] : vector<4x16x16xf32> to vector<4x16xf32>
    %280 = vector.broadcast %275 : vector<4x1xf32> to vector<4x16xf32>
    %281 = arith.mulf %279, %280 : vector<4x16xf32>
    %282 = vector.broadcast %235 : vector<4x1xf32> to vector<4x16xf32>
    %283 = arith.mulf %282, %281 : vector<4x16xf32>
    %cst_103 = arith.constant dense<0xFF800000> : vector<4xf32>
    %284 = vector.multi_reduction <maximumf>, %283, %cst_103 [1] : vector<4x16xf32> to vector<4xf32>
    %285 = vector.shape_cast %284 : vector<4xf32> to vector<4x1xf32>
    %286 = vector.broadcast %285 : vector<4x1xf32> to vector<4x16xf32>
    %287 = arith.subf %283, %286 : vector<4x16xf32>
    %288 = math.exp %287 : vector<4x16xf32>
    %cst_104 = arith.constant dense<0.000000e+00> : vector<4xf32>
    %289 = vector.multi_reduction <add>, %288, %cst_104 [1] : vector<4x16xf32> to vector<4xf32>
    %290 = vector.shape_cast %289 : vector<4xf32> to vector<4x1xf32>
    %291 = vector.broadcast %290 : vector<4x1xf32> to vector<4x16xf32>
    %292 = arith.divf %288, %291 : vector<4x16xf32>
    %293 = vector.broadcast %246 : vector<4x1xf32> to vector<4x16xf32>
    %294 = arith.mulf %293, %292 : vector<4x16xf32>
    %cst_105 = arith.constant 1.000000e+00 : f32
    %295 = vector.broadcast %cst_105 : f32 to vector<4x1xf32>
    %296 = arith.subf %295, %246 : vector<4x1xf32>
    %297 = vector.broadcast %296 : vector<4x1xf32> to vector<4x16xf32>
    %298 = arith.mulf %297, %148 : vector<4x16xf32>
    %299 = arith.addf %294, %298 : vector<4x16xf32>
    %cst_106 = arith.constant dense<0.000000e+00> : vector<4x32xf32>
    %300 = tpu.matmul %299, %7, %cst_106 {dimension_numbers = #tpu.dot_dimension_numbers<[1], [0], [0], [1], [0, 0, 1, 1], [], []>} : vector<4x16xf32>, vector<16x32xf32>, vector<4x32xf32> -> vector<4x32xf32>
    %301 = vector.extract_strided_slice %300 {offsets = [0, 0], sizes = [4, 16], strides = [1, 1]} : vector<4x32xf32> to vector<4x16xf32>
    %302 = vector.extract_strided_slice %256 {offsets = [0, 0], sizes = [4, 1], strides = [1, 1]} : vector<4x3xf32> to vector<4x1xf32>
    %303 = vector.broadcast %302 : vector<4x1xf32> to vector<4x16xf32>
    %304 = arith.mulf %301, %303 : vector<4x16xf32>
    %305 = vector.extract_strided_slice %256 {offsets = [0, 1], sizes = [4, 1], strides = [1, 1]} : vector<4x3xf32> to vector<4x1xf32>
    %306 = vector.broadcast %305 : vector<4x1xf32> to vector<4x16xf32>
    %307 = arith.mulf %299, %306 : vector<4x16xf32>
    %308 = arith.addf %304, %307 : vector<4x16xf32>
    %309 = vector.extract_strided_slice %300 {offsets = [0, 16], sizes = [4, 16], strides = [1, 1]} : vector<4x32xf32> to vector<4x16xf32>
    %310 = vector.extract_strided_slice %256 {offsets = [0, 2], sizes = [4, 1], strides = [1, 1]} : vector<4x3xf32> to vector<4x1xf32>
    %311 = vector.broadcast %310 : vector<4x1xf32> to vector<4x16xf32>
    %312 = arith.mulf %309, %311 : vector<4x16xf32>
    %313 = arith.addf %308, %312 : vector<4x16xf32>
    %cst_107 = arith.constant 1.000000e-30 : f32
    %314 = vector.broadcast %cst_107 : f32 to vector<4x16xf32>
    %315 = arith.maximumf %313, %314 : vector<4x16xf32>
    %316 = math.log %315 : vector<4x16xf32>
    %317 = vector.broadcast %238 : vector<4x1xf32> to vector<4x16xf32>
    %318 = arith.mulf %317, %316 : vector<4x16xf32>
    %319 = math.exp %318 : vector<4x16xf32>
    %cst_108 = arith.constant dense<0.000000e+00> : vector<4xf32>
    %320 = vector.multi_reduction <add>, %319, %cst_108 [1] : vector<4x16xf32> to vector<4xf32>
    %321 = vector.shape_cast %320 : vector<4xf32> to vector<4x1xf32>
    %cst_109 = arith.constant 1.000000e-16 : f32
    %322 = vector.broadcast %cst_109 : f32 to vector<4x1xf32>
    %323 = arith.addf %321, %322 : vector<4x1xf32>
    %324 = vector.broadcast %323 : vector<4x1xf32> to vector<4x16xf32>
    %325 = arith.divf %319, %324 : vector<4x16xf32>
    %326 = vector.shape_cast %325 : vector<4x16xf32> to vector<4x16x1xf32>
    %327 = vector.extract_strided_slice %326 {offsets = [0, 0, 0], sizes = [2, 16, 1], strides = [1, 1, 1]} : vector<4x16x1xf32> to vector<2x16x1xf32>
    %328 = vector.broadcast %327 : vector<2x16x1xf32> to vector<2x16x16xf32>
    %329 = arith.mulf %328, %175 : vector<2x16x16xf32>
    %cst_110 = arith.constant dense<0.000000e+00> : vector<2x16xf32>
    %330 = vector.multi_reduction <add>, %329, %cst_110 [1] : vector<2x16x16xf32> to vector<2x16xf32>
    %331 = vector.extract_strided_slice %217 {offsets = [0, 54], sizes = [2, 16], strides = [1, 1]} : vector<2x128xf32> to vector<2x16xf32>
    %cst_111 = arith.constant 5.000000e-01 : f32
    %332 = vector.broadcast %cst_111 : f32 to vector<2x16xf32>
    %333 = arith.mulf %332, %331 : vector<2x16xf32>
    %334 = math.tanh %333 : vector<2x16xf32>
    %cst_112 = arith.constant 1.000000e+00 : f32
    %335 = vector.broadcast %cst_112 : f32 to vector<2x16xf32>
    %336 = arith.addf %335, %334 : vector<2x16xf32>
    %cst_113 = arith.constant 5.000000e-01 : f32
    %337 = vector.broadcast %cst_113 : f32 to vector<2x16xf32>
    %338 = arith.mulf %337, %336 : vector<2x16xf32>
    %339 = vector.extract_strided_slice %217 {offsets = [0, 70], sizes = [2, 16], strides = [1, 1]} : vector<2x128xf32> to vector<2x16xf32>
    %340 = vector.extract_strided_slice %326 {offsets = [2, 0, 0], sizes = [2, 16, 1], strides = [1, 1, 1]} : vector<4x16x1xf32> to vector<2x16x1xf32>
    %341 = vector.shape_cast %338 : vector<2x16xf32> to vector<2x1x16xf32>
    %342 = vector.broadcast %340 : vector<2x16x1xf32> to vector<2x16x16xf32>
    %343 = vector.broadcast %341 : vector<2x1x16xf32> to vector<2x16x16xf32>
    %344 = arith.mulf %342, %343 : vector<2x16x16xf32>
    %cst_114 = arith.constant 1.000000e+00 : f32
    %345 = vector.broadcast %cst_114 : f32 to vector<2x16x16xf32>
    %346 = arith.subf %345, %344 : vector<2x16x16xf32>
    %347 = arith.mulf %175, %346 : vector<2x16x16xf32>
    %348 = vector.shape_cast %339 : vector<2x16xf32> to vector<2x1x16xf32>
    %349 = vector.broadcast %340 : vector<2x16x1xf32> to vector<2x16x16xf32>
    %350 = vector.broadcast %348 : vector<2x1x16xf32> to vector<2x16x16xf32>
    %351 = arith.mulf %349, %350 : vector<2x16x16xf32>
    %352 = arith.addf %347, %351 : vector<2x16x16xf32>
    %cst_115 = arith.constant dense<0.000000e+00> : vector<2x128xf32>
    %353 = tpu.matmul %214, %4, %cst_115 {dimension_numbers = #tpu.dot_dimension_numbers<[1], [0], [0], [1], [0, 0, 1, 1], [], []>} : vector<2x32xbf16>, vector<32x128xbf16>, vector<2x128xf32> -> vector<2x128xf32>
    %354 = arith.truncf %330 : vector<2x16xf32> to vector<2x16xbf16>
    %cst_116 = arith.constant dense<0.000000e+00> : vector<2x128xf32>
    %355 = tpu.matmul %354, %5, %cst_116 {dimension_numbers = #tpu.dot_dimension_numbers<[1], [0], [0], [1], [0, 0, 1, 1], [], []>} : vector<2x16xbf16>, vector<16x128xbf16>, vector<2x128xf32> -> vector<2x128xf32>
    %356 = arith.addf %353, %355 : vector<2x128xf32>
    %357 = vector.broadcast %6 : vector<1x128xf32> to vector<2x128xf32>
    %358 = arith.addf %356, %357 : vector<2x128xf32>
    %cst_117 = arith.constant 5.000000e-01 : f32
    %359 = vector.broadcast %cst_117 : f32 to vector<2x128xf32>
    %360 = arith.mulf %359, %358 : vector<2x128xf32>
    %361 = math.tanh %360 : vector<2x128xf32>
    %cst_118 = arith.constant 1.000000e+00 : f32
    %362 = vector.broadcast %cst_118 : f32 to vector<2x128xf32>
    %363 = arith.addf %362, %361 : vector<2x128xf32>
    %cst_119 = arith.constant 5.000000e-01 : f32
    %364 = vector.broadcast %cst_119 : f32 to vector<2x128xf32>
    %365 = arith.mulf %364, %363 : vector<2x128xf32>
    %c2_120 = arith.constant 2 : index
    %c0_121 = arith.constant 0 : index
    %366 = vector.load %arg14[%c2_120, %c0_121] : memref<16x128xf32, #tpu.memory_space<vmem>>, vector<2x128xf32>
    tpu.vector_store %arg14[%c2_120, %c0_121], %365 {strides = array<i32>} : memref<16x128xf32, #tpu.memory_space<vmem>>, vector<2x128xf32>,
    %c4 = arith.constant 4 : index
    %c0_122 = arith.constant 0 : index
    %367 = vector.load %arg0[%c4, %c0_122] : memref<16x128xf32, #tpu.memory_space<vmem>>, vector<2x128xf32>
    %368 = arith.truncf %330 : vector<2x16xf32> to vector<2x16xbf16>
    %cst_123 = arith.constant dense<0.000000e+00> : vector<2x128xf32>
    %369 = tpu.matmul %368, %0, %cst_123 {dimension_numbers = #tpu.dot_dimension_numbers<[1], [0], [0], [1], [0, 0, 1, 1], [], []>} : vector<2x16xbf16>, vector<16x128xbf16>, vector<2x128xf32> -> vector<2x128xf32>
    %370 = arith.addf %367, %369 : vector<2x128xf32>
    %371 = arith.truncf %213 : vector<2x32xf32> to vector<2x32xbf16>
    %cst_124 = arith.constant dense<0.000000e+00> : vector<2x128xf32>
    %372 = tpu.matmul %371, %1, %cst_124 {dimension_numbers = #tpu.dot_dimension_numbers<[1], [0], [0], [1], [0, 0, 1, 1], [], []>} : vector<2x32xbf16>, vector<32x128xbf16>, vector<2x128xf32> -> vector<2x128xf32>
    %373 = arith.addf %370, %372 : vector<2x128xf32>
    %cst_125 = arith.constant 5.000000e-01 : f32
    %374 = vector.broadcast %cst_125 : f32 to vector<2x128xf32>
    %375 = arith.mulf %374, %373 : vector<2x128xf32>
    %376 = math.tanh %375 : vector<2x128xf32>
    %cst_126 = arith.constant 1.000000e+00 : f32
    %377 = vector.broadcast %cst_126 : f32 to vector<2x128xf32>
    %378 = arith.addf %377, %376 : vector<2x128xf32>
    %cst_127 = arith.constant 5.000000e-01 : f32
    %379 = vector.broadcast %cst_127 : f32 to vector<2x128xf32>
    %380 = arith.mulf %379, %378 : vector<2x128xf32>
    %381 = math.tanh %373 : vector<2x128xf32>
    %382 = vector.extract_strided_slice %380 {offsets = [0, 0], sizes = [2, 32], strides = [1, 1]} : vector<2x128xf32> to vector<2x32xf32>
    %383 = vector.extract_strided_slice %380 {offsets = [0, 32], sizes = [2, 32], strides = [1, 1]} : vector<2x128xf32> to vector<2x32xf32>
    %384 = vector.extract_strided_slice %381 {offsets = [0, 64], sizes = [2, 32], strides = [1, 1]} : vector<2x128xf32> to vector<2x32xf32>
    %385 = vector.extract_strided_slice %380 {offsets = [0, 96], sizes = [2, 32], strides = [1, 1]} : vector<2x128xf32> to vector<2x32xf32>
    %386 = arith.mulf %383, %211 : vector<2x32xf32>
    %387 = arith.mulf %382, %384 : vector<2x32xf32>
    %388 = arith.addf %386, %387 : vector<2x32xf32>
    %389 = math.tanh %388 : vector<2x32xf32>
    %390 = arith.mulf %385, %389 : vector<2x32xf32>
    %391 = arith.truncf %390 : vector<2x32xf32> to vector<2x32xbf16>
    %cst_128 = arith.constant dense<0.000000e+00> : vector<2x128xf32>
    %392 = tpu.matmul %391, %2, %cst_128 {dimension_numbers = #tpu.dot_dimension_numbers<[1], [0], [0], [1], [0, 0, 1, 1], [], []>} : vector<2x32xbf16>, vector<32x128xbf16>, vector<2x128xf32> -> vector<2x128xf32>
    %393 = vector.broadcast %3 : vector<1x128xf32> to vector<2x128xf32>
    %394 = arith.addf %392, %393 : vector<2x128xf32>
    %395 = vector.extract_strided_slice %394 {offsets = [0, 0], sizes = [2, 22], strides = [1, 1]} : vector<2x128xf32> to vector<2x22xf32>
    %c0_129 = arith.constant 0 : index
    %c0_130 = arith.constant 0 : index
    %396 = vector.load %arg21[%c0_129, %c0_130] : memref<4x22xf32, #tpu.memory_space<vmem>>, vector<2x22xf32>
    tpu.vector_store %arg21[%c0_129, %c0_130], %395 {strides = array<i32>} : memref<4x22xf32, #tpu.memory_space<vmem>>, vector<2x22xf32>,
    %397 = vector.extract_strided_slice %394 {offsets = [0, 32], sizes = [2, 22], strides = [1, 1]} : vector<2x128xf32> to vector<2x22xf32>
    %c2_131 = arith.constant 2 : index
    %c0_132 = arith.constant 0 : index
    %398 = vector.load %arg21[%c2_131, %c0_132] : memref<4x22xf32, #tpu.memory_space<vmem>>, vector<2x22xf32>
    tpu.vector_store %arg21[%c2_131, %c0_132], %397 {strides = array<i32>} : memref<4x22xf32, #tpu.memory_space<vmem>>, vector<2x22xf32>,
    %c0_133 = arith.constant 0 : index
    %c0_134 = arith.constant 0 : index
    %399 = vector.load %arg21[%c0_133, %c0_134] : memref<4x22xf32, #tpu.memory_space<vmem>>, vector<4x22xf32>
    %400 = vector.extract_strided_slice %399 {offsets = [0, 0], sizes = [4, 16], strides = [1, 1]} : vector<4x22xf32> to vector<4x16xf32>
    %401 = vector.extract_strided_slice %399 {offsets = [0, 16], sizes = [4, 6], strides = [1, 1]} : vector<4x22xf32> to vector<4x6xf32>
    %cst_135 = arith.constant 0.000000e+00 : f32
    %402 = vector.broadcast %cst_135 : f32 to vector<4x6xf32>
    %403 = arith.maximumf %401, %402 : vector<4x6xf32>
    %404 = math.absf %401 : vector<4x6xf32>
    %cst_136 = arith.constant 0.000000e+00 : f32
    %405 = vector.broadcast %cst_136 : f32 to vector<4x6xf32>
    %406 = arith.subf %405, %404 : vector<4x6xf32>
    %407 = math.exp %406 : vector<4x6xf32>
    %cst_137 = arith.constant 1.000000e+00 : f32
    %408 = vector.broadcast %cst_137 : f32 to vector<4x6xf32>
    %409 = arith.addf %408, %407 : vector<4x6xf32>
    %410 = math.log %409 : vector<4x6xf32>
    %411 = arith.addf %403, %410 : vector<4x6xf32>
    %412 = vector.extract_strided_slice %411 {offsets = [0, 0], sizes = [4, 1], strides = [1, 1]} : vector<4x6xf32> to vector<4x1xf32>
    %413 = vector.extract_strided_slice %411 {offsets = [0, 5], sizes = [4, 1], strides = [1, 1]} : vector<4x6xf32> to vector<4x1xf32>
    %cst_138 = arith.constant 1.000000e+00 : f32
    %414 = vector.broadcast %cst_138 : f32 to vector<4x1xf32>
    %415 = arith.addf %414, %413 : vector<4x1xf32>
    %416 = vector.extract_strided_slice %399 {offsets = [0, 17], sizes = [4, 1], strides = [1, 1]} : vector<4x22xf32> to vector<4x1xf32>
    %cst_139 = arith.constant 5.000000e-01 : f32
    %417 = vector.broadcast %cst_139 : f32 to vector<4x1xf32>
    %418 = arith.mulf %417, %416 : vector<4x1xf32>
    %419 = math.tanh %418 : vector<4x1xf32>
    %cst_140 = arith.constant 1.000000e+00 : f32
    %420 = vector.broadcast %cst_140 : f32 to vector<4x1xf32>
    %421 = arith.addf %420, %419 : vector<4x1xf32>
    %cst_141 = arith.constant 5.000000e-01 : f32
    %422 = vector.broadcast %cst_141 : f32 to vector<4x1xf32>
    %423 = arith.mulf %422, %421 : vector<4x1xf32>
    %424 = vector.extract_strided_slice %399 {offsets = [0, 18], sizes = [4, 3], strides = [1, 1]} : vector<4x22xf32> to vector<4x3xf32>
    %cst_142 = arith.constant dense<0xFF800000> : vector<4xf32>
    %425 = vector.multi_reduction <maximumf>, %424, %cst_142 [1] : vector<4x3xf32> to vector<4xf32>
    %426 = vector.shape_cast %425 : vector<4xf32> to vector<4x1xf32>
    %427 = vector.broadcast %426 : vector<4x1xf32> to vector<4x3xf32>
    %428 = arith.subf %424, %427 : vector<4x3xf32>
    %429 = math.exp %428 : vector<4x3xf32>
    %cst_143 = arith.constant dense<0.000000e+00> : vector<4xf32>
    %430 = vector.multi_reduction <add>, %429, %cst_143 [1] : vector<4x3xf32> to vector<4xf32>
    %431 = vector.shape_cast %430 : vector<4xf32> to vector<4x1xf32>
    %432 = vector.broadcast %431 : vector<4x1xf32> to vector<4x3xf32>
    %433 = arith.divf %429, %432 : vector<4x3xf32>
    %cst_144 = arith.constant 1.000000e-16 : f32
    %434 = vector.broadcast %cst_144 : f32 to vector<2x16x16xf32>
    %435 = arith.addf %352, %434 : vector<2x16x16xf32>
    %436 = arith.mulf %435, %435 : vector<2x16x16xf32>
    %cst_145 = arith.constant dense<0.000000e+00> : vector<2x16xf32>
    %437 = vector.multi_reduction <add>, %436, %cst_145 [2] : vector<2x16x16xf32> to vector<2x16xf32>
    %cst_146 = arith.constant 1.000000e-16 : f32
    %438 = vector.broadcast %cst_146 : f32 to vector<2x16xf32>
    %439 = arith.maximumf %437, %438 : vector<2x16xf32>
    %440 = math.rsqrt %439 : vector<2x16xf32>
    %441 = vector.shape_cast %440 : vector<2x16xf32> to vector<2x16x1xf32>
    %442 = vector.broadcast %441 : vector<2x16x1xf32> to vector<2x16x16xf32>
    %443 = arith.mulf %435, %442 : vector<2x16x16xf32>
    %444 = tpu.concatenate %443, %443 in 0 : vector<2x16x16xf32>, vector<2x16x16xf32> -> vector<4x16x16xf32>
    %cst_147 = arith.constant 1.000000e-16 : f32
    %445 = vector.broadcast %cst_147 : f32 to vector<4x16xf32>
    %446 = arith.addf %400, %445 : vector<4x16xf32>
    %447 = arith.mulf %446, %446 : vector<4x16xf32>
    %cst_148 = arith.constant dense<0.000000e+00> : vector<4xf32>
    %448 = vector.multi_reduction <add>, %447, %cst_148 [1] : vector<4x16xf32> to vector<4xf32>
    %449 = vector.shape_cast %448 : vector<4xf32> to vector<4x1xf32>
    %cst_149 = arith.constant 1.000000e-16 : f32
    %450 = vector.broadcast %cst_149 : f32 to vector<4x1xf32>
    %451 = arith.maximumf %449, %450 : vector<4x1xf32>
    %452 = math.rsqrt %451 : vector<4x1xf32>
    %453 = vector.shape_cast %446 : vector<4x16xf32> to vector<4x1x16xf32>
    %454 = vector.broadcast %453 : vector<4x1x16xf32> to vector<4x16x16xf32>
    %455 = arith.mulf %444, %454 : vector<4x16x16xf32>
    %cst_150 = arith.constant dense<0.000000e+00> : vector<4x16xf32>
    %456 = vector.multi_reduction <add>, %455, %cst_150 [2] : vector<4x16x16xf32> to vector<4x16xf32>
    %457 = vector.broadcast %452 : vector<4x1xf32> to vector<4x16xf32>
    %458 = arith.mulf %456, %457 : vector<4x16xf32>
    %459 = vector.broadcast %412 : vector<4x1xf32> to vector<4x16xf32>
    %460 = arith.mulf %459, %458 : vector<4x16xf32>
    %cst_151 = arith.constant dense<0xFF800000> : vector<4xf32>
    %461 = vector.multi_reduction <maximumf>, %460, %cst_151 [1] : vector<4x16xf32> to vector<4xf32>
    %462 = vector.shape_cast %461 : vector<4xf32> to vector<4x1xf32>
    %463 = vector.broadcast %462 : vector<4x1xf32> to vector<4x16xf32>
    %464 = arith.subf %460, %463 : vector<4x16xf32>
    %465 = math.exp %464 : vector<4x16xf32>
    %cst_152 = arith.constant dense<0.000000e+00> : vector<4xf32>
    %466 = vector.multi_reduction <add>, %465, %cst_152 [1] : vector<4x16xf32> to vector<4xf32>
    %467 = vector.shape_cast %466 : vector<4xf32> to vector<4x1xf32>
    %468 = vector.broadcast %467 : vector<4x1xf32> to vector<4x16xf32>
    %469 = arith.divf %465, %468 : vector<4x16xf32>
    %470 = vector.broadcast %423 : vector<4x1xf32> to vector<4x16xf32>
    %471 = arith.mulf %470, %469 : vector<4x16xf32>
    %cst_153 = arith.constant 1.000000e+00 : f32
    %472 = vector.broadcast %cst_153 : f32 to vector<4x1xf32>
    %473 = arith.subf %472, %423 : vector<4x1xf32>
    %474 = vector.broadcast %473 : vector<4x1xf32> to vector<4x16xf32>
    %475 = arith.mulf %474, %325 : vector<4x16xf32>
    %476 = arith.addf %471, %475 : vector<4x16xf32>
    %cst_154 = arith.constant dense<0.000000e+00> : vector<4x32xf32>
    %477 = tpu.matmul %476, %7, %cst_154 {dimension_numbers = #tpu.dot_dimension_numbers<[1], [0], [0], [1], [0, 0, 1, 1], [], []>} : vector<4x16xf32>, vector<16x32xf32>, vector<4x32xf32> -> vector<4x32xf32>
    %478 = vector.extract_strided_slice %477 {offsets = [0, 0], sizes = [4, 16], strides = [1, 1]} : vector<4x32xf32> to vector<4x16xf32>
    %479 = vector.extract_strided_slice %433 {offsets = [0, 0], sizes = [4, 1], strides = [1, 1]} : vector<4x3xf32> to vector<4x1xf32>
    %480 = vector.broadcast %479 : vector<4x1xf32> to vector<4x16xf32>
    %481 = arith.mulf %478, %480 : vector<4x16xf32>
    %482 = vector.extract_strided_slice %433 {offsets = [0, 1], sizes = [4, 1], strides = [1, 1]} : vector<4x3xf32> to vector<4x1xf32>
    %483 = vector.broadcast %482 : vector<4x1xf32> to vector<4x16xf32>
    %484 = arith.mulf %476, %483 : vector<4x16xf32>
    %485 = arith.addf %481, %484 : vector<4x16xf32>
    %486 = vector.extract_strided_slice %477 {offsets = [0, 16], sizes = [4, 16], strides = [1, 1]} : vector<4x32xf32> to vector<4x16xf32>
    %487 = vector.extract_strided_slice %433 {offsets = [0, 2], sizes = [4, 1], strides = [1, 1]} : vector<4x3xf32> to vector<4x1xf32>
    %488 = vector.broadcast %487 : vector<4x1xf32> to vector<4x16xf32>
    %489 = arith.mulf %486, %488 : vector<4x16xf32>
    %490 = arith.addf %485, %489 : vector<4x16xf32>
    %cst_155 = arith.constant 1.000000e-30 : f32
    %491 = vector.broadcast %cst_155 : f32 to vector<4x16xf32>
    %492 = arith.maximumf %490, %491 : vector<4x16xf32>
    %493 = math.log %492 : vector<4x16xf32>
    %494 = vector.broadcast %415 : vector<4x1xf32> to vector<4x16xf32>
    %495 = arith.mulf %494, %493 : vector<4x16xf32>
    %496 = math.exp %495 : vector<4x16xf32>
    %cst_156 = arith.constant dense<0.000000e+00> : vector<4xf32>
    %497 = vector.multi_reduction <add>, %496, %cst_156 [1] : vector<4x16xf32> to vector<4xf32>
    %498 = vector.shape_cast %497 : vector<4xf32> to vector<4x1xf32>
    %cst_157 = arith.constant 1.000000e-16 : f32
    %499 = vector.broadcast %cst_157 : f32 to vector<4x1xf32>
    %500 = arith.addf %498, %499 : vector<4x1xf32>
    %501 = vector.broadcast %500 : vector<4x1xf32> to vector<4x16xf32>
    %502 = arith.divf %496, %501 : vector<4x16xf32>
    %503 = vector.shape_cast %502 : vector<4x16xf32> to vector<4x16x1xf32>
    %504 = vector.extract_strided_slice %503 {offsets = [0, 0, 0], sizes = [2, 16, 1], strides = [1, 1, 1]} : vector<4x16x1xf32> to vector<2x16x1xf32>
    %505 = vector.broadcast %504 : vector<2x16x1xf32> to vector<2x16x16xf32>
    %506 = arith.mulf %505, %352 : vector<2x16x16xf32>
    %cst_158 = arith.constant dense<0.000000e+00> : vector<2x16xf32>
    %507 = vector.multi_reduction <add>, %506, %cst_158 [1] : vector<2x16x16xf32> to vector<2x16xf32>
    %508 = vector.extract_strided_slice %394 {offsets = [0, 54], sizes = [2, 16], strides = [1, 1]} : vector<2x128xf32> to vector<2x16xf32>
    %cst_159 = arith.constant 5.000000e-01 : f32
    %509 = vector.broadcast %cst_159 : f32 to vector<2x16xf32>
    %510 = arith.mulf %509, %508 : vector<2x16xf32>
    %511 = math.tanh %510 : vector<2x16xf32>
    %cst_160 = arith.constant 1.000000e+00 : f32
    %512 = vector.broadcast %cst_160 : f32 to vector<2x16xf32>
    %513 = arith.addf %512, %511 : vector<2x16xf32>
    %cst_161 = arith.constant 5.000000e-01 : f32
    %514 = vector.broadcast %cst_161 : f32 to vector<2x16xf32>
    %515 = arith.mulf %514, %513 : vector<2x16xf32>
    %516 = vector.extract_strided_slice %394 {offsets = [0, 70], sizes = [2, 16], strides = [1, 1]} : vector<2x128xf32> to vector<2x16xf32>
    %517 = vector.extract_strided_slice %503 {offsets = [2, 0, 0], sizes = [2, 16, 1], strides = [1, 1, 1]} : vector<4x16x1xf32> to vector<2x16x1xf32>
    %518 = vector.shape_cast %515 : vector<2x16xf32> to vector<2x1x16xf32>
    %519 = vector.broadcast %517 : vector<2x16x1xf32> to vector<2x16x16xf32>
    %520 = vector.broadcast %518 : vector<2x1x16xf32> to vector<2x16x16xf32>
    %521 = arith.mulf %519, %520 : vector<2x16x16xf32>
    %cst_162 = arith.constant 1.000000e+00 : f32
    %522 = vector.broadcast %cst_162 : f32 to vector<2x16x16xf32>
    %523 = arith.subf %522, %521 : vector<2x16x16xf32>
    %524 = arith.mulf %352, %523 : vector<2x16x16xf32>
    %525 = vector.shape_cast %516 : vector<2x16xf32> to vector<2x1x16xf32>
    %526 = vector.broadcast %517 : vector<2x16x1xf32> to vector<2x16x16xf32>
    %527 = vector.broadcast %525 : vector<2x1x16xf32> to vector<2x16x16xf32>
    %528 = arith.mulf %526, %527 : vector<2x16x16xf32>
    %529 = arith.addf %524, %528 : vector<2x16x16xf32>
    %cst_163 = arith.constant dense<0.000000e+00> : vector<2x128xf32>
    %530 = tpu.matmul %391, %4, %cst_163 {dimension_numbers = #tpu.dot_dimension_numbers<[1], [0], [0], [1], [0, 0, 1, 1], [], []>} : vector<2x32xbf16>, vector<32x128xbf16>, vector<2x128xf32> -> vector<2x128xf32>
    %531 = arith.truncf %507 : vector<2x16xf32> to vector<2x16xbf16>
    %cst_164 = arith.constant dense<0.000000e+00> : vector<2x128xf32>
    %532 = tpu.matmul %531, %5, %cst_164 {dimension_numbers = #tpu.dot_dimension_numbers<[1], [0], [0], [1], [0, 0, 1, 1], [], []>} : vector<2x16xbf16>, vector<16x128xbf16>, vector<2x128xf32> -> vector<2x128xf32>
    %533 = arith.addf %530, %532 : vector<2x128xf32>
    %534 = vector.broadcast %6 : vector<1x128xf32> to vector<2x128xf32>
    %535 = arith.addf %533, %534 : vector<2x128xf32>
    %cst_165 = arith.constant 5.000000e-01 : f32
    %536 = vector.broadcast %cst_165 : f32 to vector<2x128xf32>
    %537 = arith.mulf %536, %535 : vector<2x128xf32>
    %538 = math.tanh %537 : vector<2x128xf32>
    %cst_166 = arith.constant 1.000000e+00 : f32
    %539 = vector.broadcast %cst_166 : f32 to vector<2x128xf32>
    %540 = arith.addf %539, %538 : vector<2x128xf32>
    %cst_167 = arith.constant 5.000000e-01 : f32
    %541 = vector.broadcast %cst_167 : f32 to vector<2x128xf32>
    %542 = arith.mulf %541, %540 : vector<2x128xf32>
    %c4_168 = arith.constant 4 : index
    %c0_169 = arith.constant 0 : index
    %543 = vector.load %arg14[%c4_168, %c0_169] : memref<16x128xf32, #tpu.memory_space<vmem>>, vector<2x128xf32>
    tpu.vector_store %arg14[%c4_168, %c0_169], %542 {strides = array<i32>} : memref<16x128xf32, #tpu.memory_space<vmem>>, vector<2x128xf32>,
    %c6 = arith.constant 6 : index
    %c0_170 = arith.constant 0 : index
    %544 = vector.load %arg0[%c6, %c0_170] : memref<16x128xf32, #tpu.memory_space<vmem>>, vector<2x128xf32>
    %545 = arith.truncf %507 : vector<2x16xf32> to vector<2x16xbf16>
    %cst_171 = arith.constant dense<0.000000e+00> : vector<2x128xf32>
    %546 = tpu.matmul %545, %0, %cst_171 {dimension_numbers = #tpu.dot_dimension_numbers<[1], [0], [0], [1], [0, 0, 1, 1], [], []>} : vector<2x16xbf16>, vector<16x128xbf16>, vector<2x128xf32> -> vector<2x128xf32>
    %547 = arith.addf %544, %546 : vector<2x128xf32>
    %548 = arith.truncf %390 : vector<2x32xf32> to vector<2x32xbf16>
    %cst_172 = arith.constant dense<0.000000e+00> : vector<2x128xf32>
    %549 = tpu.matmul %548, %1, %cst_172 {dimension_numbers = #tpu.dot_dimension_numbers<[1], [0], [0], [1], [0, 0, 1, 1], [], []>} : vector<2x32xbf16>, vector<32x128xbf16>, vector<2x128xf32> -> vector<2x128xf32>
    %550 = arith.addf %547, %549 : vector<2x128xf32>
    %cst_173 = arith.constant 5.000000e-01 : f32
    %551 = vector.broadcast %cst_173 : f32 to vector<2x128xf32>
    %552 = arith.mulf %551, %550 : vector<2x128xf32>
    %553 = math.tanh %552 : vector<2x128xf32>
    %cst_174 = arith.constant 1.000000e+00 : f32
    %554 = vector.broadcast %cst_174 : f32 to vector<2x128xf32>
    %555 = arith.addf %554, %553 : vector<2x128xf32>
    %cst_175 = arith.constant 5.000000e-01 : f32
    %556 = vector.broadcast %cst_175 : f32 to vector<2x128xf32>
    %557 = arith.mulf %556, %555 : vector<2x128xf32>
    %558 = math.tanh %550 : vector<2x128xf32>
    %559 = vector.extract_strided_slice %557 {offsets = [0, 0], sizes = [2, 32], strides = [1, 1]} : vector<2x128xf32> to vector<2x32xf32>
    %560 = vector.extract_strided_slice %557 {offsets = [0, 32], sizes = [2, 32], strides = [1, 1]} : vector<2x128xf32> to vector<2x32xf32>
    %561 = vector.extract_strided_slice %558 {offsets = [0, 64], sizes = [2, 32], strides = [1, 1]} : vector<2x128xf32> to vector<2x32xf32>
    %562 = vector.extract_strided_slice %557 {offsets = [0, 96], sizes = [2, 32], strides = [1, 1]} : vector<2x128xf32> to vector<2x32xf32>
    %563 = arith.mulf %560, %388 : vector<2x32xf32>
    %564 = arith.mulf %559, %561 : vector<2x32xf32>
    %565 = arith.addf %563, %564 : vector<2x32xf32>
    %566 = math.tanh %565 : vector<2x32xf32>
    %567 = arith.mulf %562, %566 : vector<2x32xf32>
    %568 = arith.truncf %567 : vector<2x32xf32> to vector<2x32xbf16>
    %cst_176 = arith.constant dense<0.000000e+00> : vector<2x128xf32>
    %569 = tpu.matmul %568, %2, %cst_176 {dimension_numbers = #tpu.dot_dimension_numbers<[1], [0], [0], [1], [0, 0, 1, 1], [], []>} : vector<2x32xbf16>, vector<32x128xbf16>, vector<2x128xf32> -> vector<2x128xf32>
    %570 = vector.broadcast %3 : vector<1x128xf32> to vector<2x128xf32>
    %571 = arith.addf %569, %570 : vector<2x128xf32>
    %572 = vector.extract_strided_slice %571 {offsets = [0, 0], sizes = [2, 22], strides = [1, 1]} : vector<2x128xf32> to vector<2x22xf32>
    %c0_177 = arith.constant 0 : index
    %c0_178 = arith.constant 0 : index
    %573 = vector.load %arg21[%c0_177, %c0_178] : memref<4x22xf32, #tpu.memory_space<vmem>>, vector<2x22xf32>
    tpu.vector_store %arg21[%c0_177, %c0_178], %572 {strides = array<i32>} : memref<4x22xf32, #tpu.memory_space<vmem>>, vector<2x22xf32>,
    %574 = vector.extract_strided_slice %571 {offsets = [0, 32], sizes = [2, 22], strides = [1, 1]} : vector<2x128xf32> to vector<2x22xf32>
    %c2_179 = arith.constant 2 : index
    %c0_180 = arith.constant 0 : index
    %575 = vector.load %arg21[%c2_179, %c0_180] : memref<4x22xf32, #tpu.memory_space<vmem>>, vector<2x22xf32>
    tpu.vector_store %arg21[%c2_179, %c0_180], %574 {strides = array<i32>} : memref<4x22xf32, #tpu.memory_space<vmem>>, vector<2x22xf32>,
    %c0_181 = arith.constant 0 : index
    %c0_182 = arith.constant 0 : index
    %576 = vector.load %arg21[%c0_181, %c0_182] : memref<4x22xf32, #tpu.memory_space<vmem>>, vector<4x22xf32>
    %577 = vector.extract_strided_slice %576 {offsets = [0, 0], sizes = [4, 16], strides = [1, 1]} : vector<4x22xf32> to vector<4x16xf32>
    %578 = vector.extract_strided_slice %576 {offsets = [0, 16], sizes = [4, 6], strides = [1, 1]} : vector<4x22xf32> to vector<4x6xf32>
    %cst_183 = arith.constant 0.000000e+00 : f32
    %579 = vector.broadcast %cst_183 : f32 to vector<4x6xf32>
    %580 = arith.maximumf %578, %579 : vector<4x6xf32>
    %581 = math.absf %578 : vector<4x6xf32>
    %cst_184 = arith.constant 0.000000e+00 : f32
    %582 = vector.broadcast %cst_184 : f32 to vector<4x6xf32>
    %583 = arith.subf %582, %581 : vector<4x6xf32>
    %584 = math.exp %583 : vector<4x6xf32>
    %cst_185 = arith.constant 1.000000e+00 : f32
    %585 = vector.broadcast %cst_185 : f32 to vector<4x6xf32>
    %586 = arith.addf %585, %584 : vector<4x6xf32>
    %587 = math.log %586 : vector<4x6xf32>
    %588 = arith.addf %580, %587 : vector<4x6xf32>
    %589 = vector.extract_strided_slice %588 {offsets = [0, 0], sizes = [4, 1], strides = [1, 1]} : vector<4x6xf32> to vector<4x1xf32>
    %590 = vector.extract_strided_slice %588 {offsets = [0, 5], sizes = [4, 1], strides = [1, 1]} : vector<4x6xf32> to vector<4x1xf32>
    %cst_186 = arith.constant 1.000000e+00 : f32
    %591 = vector.broadcast %cst_186 : f32 to vector<4x1xf32>
    %592 = arith.addf %591, %590 : vector<4x1xf32>
    %593 = vector.extract_strided_slice %576 {offsets = [0, 17], sizes = [4, 1], strides = [1, 1]} : vector<4x22xf32> to vector<4x1xf32>
    %cst_187 = arith.constant 5.000000e-01 : f32
    %594 = vector.broadcast %cst_187 : f32 to vector<4x1xf32>
    %595 = arith.mulf %594, %593 : vector<4x1xf32>
    %596 = math.tanh %595 : vector<4x1xf32>
    %cst_188 = arith.constant 1.000000e+00 : f32
    %597 = vector.broadcast %cst_188 : f32 to vector<4x1xf32>
    %598 = arith.addf %597, %596 : vector<4x1xf32>
    %cst_189 = arith.constant 5.000000e-01 : f32
    %599 = vector.broadcast %cst_189 : f32 to vector<4x1xf32>
    %600 = arith.mulf %599, %598 : vector<4x1xf32>
    %601 = vector.extract_strided_slice %576 {offsets = [0, 18], sizes = [4, 3], strides = [1, 1]} : vector<4x22xf32> to vector<4x3xf32>
    %cst_190 = arith.constant dense<0xFF800000> : vector<4xf32>
    %602 = vector.multi_reduction <maximumf>, %601, %cst_190 [1] : vector<4x3xf32> to vector<4xf32>
    %603 = vector.shape_cast %602 : vector<4xf32> to vector<4x1xf32>
    %604 = vector.broadcast %603 : vector<4x1xf32> to vector<4x3xf32>
    %605 = arith.subf %601, %604 : vector<4x3xf32>
    %606 = math.exp %605 : vector<4x3xf32>
    %cst_191 = arith.constant dense<0.000000e+00> : vector<4xf32>
    %607 = vector.multi_reduction <add>, %606, %cst_191 [1] : vector<4x3xf32> to vector<4xf32>
    %608 = vector.shape_cast %607 : vector<4xf32> to vector<4x1xf32>
    %609 = vector.broadcast %608 : vector<4x1xf32> to vector<4x3xf32>
    %610 = arith.divf %606, %609 : vector<4x3xf32>
    %cst_192 = arith.constant 1.000000e-16 : f32
    %611 = vector.broadcast %cst_192 : f32 to vector<2x16x16xf32>
    %612 = arith.addf %529, %611 : vector<2x16x16xf32>
    %613 = arith.mulf %612, %612 : vector<2x16x16xf32>
    %cst_193 = arith.constant dense<0.000000e+00> : vector<2x16xf32>
    %614 = vector.multi_reduction <add>, %613, %cst_193 [2] : vector<2x16x16xf32> to vector<2x16xf32>
    %cst_194 = arith.constant 1.000000e-16 : f32
    %615 = vector.broadcast %cst_194 : f32 to vector<2x16xf32>
    %616 = arith.maximumf %614, %615 : vector<2x16xf32>
    %617 = math.rsqrt %616 : vector<2x16xf32>
    %618 = vector.shape_cast %617 : vector<2x16xf32> to vector<2x16x1xf32>
    %619 = vector.broadcast %618 : vector<2x16x1xf32> to vector<2x16x16xf32>
    %620 = arith.mulf %612, %619 : vector<2x16x16xf32>
    %621 = tpu.concatenate %620, %620 in 0 : vector<2x16x16xf32>, vector<2x16x16xf32> -> vector<4x16x16xf32>
    %cst_195 = arith.constant 1.000000e-16 : f32
    %622 = vector.broadcast %cst_195 : f32 to vector<4x16xf32>
    %623 = arith.addf %577, %622 : vector<4x16xf32>
    %624 = arith.mulf %623, %623 : vector<4x16xf32>
    %cst_196 = arith.constant dense<0.000000e+00> : vector<4xf32>
    %625 = vector.multi_reduction <add>, %624, %cst_196 [1] : vector<4x16xf32> to vector<4xf32>
    %626 = vector.shape_cast %625 : vector<4xf32> to vector<4x1xf32>
    %cst_197 = arith.constant 1.000000e-16 : f32
    %627 = vector.broadcast %cst_197 : f32 to vector<4x1xf32>
    %628 = arith.maximumf %626, %627 : vector<4x1xf32>
    %629 = math.rsqrt %628 : vector<4x1xf32>
    %630 = vector.shape_cast %623 : vector<4x16xf32> to vector<4x1x16xf32>
    %631 = vector.broadcast %630 : vector<4x1x16xf32> to vector<4x16x16xf32>
    %632 = arith.mulf %621, %631 : vector<4x16x16xf32>
    %cst_198 = arith.constant dense<0.000000e+00> : vector<4x16xf32>
    %633 = vector.multi_reduction <add>, %632, %cst_198 [2] : vector<4x16x16xf32> to vector<4x16xf32>
    %634 = vector.broadcast %629 : vector<4x1xf32> to vector<4x16xf32>
    %635 = arith.mulf %633, %634 : vector<4x16xf32>
    %636 = vector.broadcast %589 : vector<4x1xf32> to vector<4x16xf32>
    %637 = arith.mulf %636, %635 : vector<4x16xf32>
    %cst_199 = arith.constant dense<0xFF800000> : vector<4xf32>
    %638 = vector.multi_reduction <maximumf>, %637, %cst_199 [1] : vector<4x16xf32> to vector<4xf32>
    %639 = vector.shape_cast %638 : vector<4xf32> to vector<4x1xf32>
    %640 = vector.broadcast %639 : vector<4x1xf32> to vector<4x16xf32>
    %641 = arith.subf %637, %640 : vector<4x16xf32>
    %642 = math.exp %641 : vector<4x16xf32>
    %cst_200 = arith.constant dense<0.000000e+00> : vector<4xf32>
    %643 = vector.multi_reduction <add>, %642, %cst_200 [1] : vector<4x16xf32> to vector<4xf32>
    %644 = vector.shape_cast %643 : vector<4xf32> to vector<4x1xf32>
    %645 = vector.broadcast %644 : vector<4x1xf32> to vector<4x16xf32>
    %646 = arith.divf %642, %645 : vector<4x16xf32>
    %647 = vector.broadcast %600 : vector<4x1xf32> to vector<4x16xf32>
    %648 = arith.mulf %647, %646 : vector<4x16xf32>
    %cst_201 = arith.constant 1.000000e+00 : f32
    %649 = vector.broadcast %cst_201 : f32 to vector<4x1xf32>
    %650 = arith.subf %649, %600 : vector<4x1xf32>
    %651 = vector.broadcast %650 : vector<4x1xf32> to vector<4x16xf32>
    %652 = arith.mulf %651, %502 : vector<4x16xf32>
    %653 = arith.addf %648, %652 : vector<4x16xf32>
    %cst_202 = arith.constant dense<0.000000e+00> : vector<4x32xf32>
    %654 = tpu.matmul %653, %7, %cst_202 {dimension_numbers = #tpu.dot_dimension_numbers<[1], [0], [0], [1], [0, 0, 1, 1], [], []>} : vector<4x16xf32>, vector<16x32xf32>, vector<4x32xf32> -> vector<4x32xf32>
    %655 = vector.extract_strided_slice %654 {offsets = [0, 0], sizes = [4, 16], strides = [1, 1]} : vector<4x32xf32> to vector<4x16xf32>
    %656 = vector.extract_strided_slice %610 {offsets = [0, 0], sizes = [4, 1], strides = [1, 1]} : vector<4x3xf32> to vector<4x1xf32>
    %657 = vector.broadcast %656 : vector<4x1xf32> to vector<4x16xf32>
    %658 = arith.mulf %655, %657 : vector<4x16xf32>
    %659 = vector.extract_strided_slice %610 {offsets = [0, 1], sizes = [4, 1], strides = [1, 1]} : vector<4x3xf32> to vector<4x1xf32>
    %660 = vector.broadcast %659 : vector<4x1xf32> to vector<4x16xf32>
    %661 = arith.mulf %653, %660 : vector<4x16xf32>
    %662 = arith.addf %658, %661 : vector<4x16xf32>
    %663 = vector.extract_strided_slice %654 {offsets = [0, 16], sizes = [4, 16], strides = [1, 1]} : vector<4x32xf32> to vector<4x16xf32>
    %664 = vector.extract_strided_slice %610 {offsets = [0, 2], sizes = [4, 1], strides = [1, 1]} : vector<4x3xf32> to vector<4x1xf32>
    %665 = vector.broadcast %664 : vector<4x1xf32> to vector<4x16xf32>
    %666 = arith.mulf %663, %665 : vector<4x16xf32>
    %667 = arith.addf %662, %666 : vector<4x16xf32>
    %cst_203 = arith.constant 1.000000e-30 : f32
    %668 = vector.broadcast %cst_203 : f32 to vector<4x16xf32>
    %669 = arith.maximumf %667, %668 : vector<4x16xf32>
    %670 = math.log %669 : vector<4x16xf32>
    %671 = vector.broadcast %592 : vector<4x1xf32> to vector<4x16xf32>
    %672 = arith.mulf %671, %670 : vector<4x16xf32>
    %673 = math.exp %672 : vector<4x16xf32>
    %cst_204 = arith.constant dense<0.000000e+00> : vector<4xf32>
    %674 = vector.multi_reduction <add>, %673, %cst_204 [1] : vector<4x16xf32> to vector<4xf32>
    %675 = vector.shape_cast %674 : vector<4xf32> to vector<4x1xf32>
    %cst_205 = arith.constant 1.000000e-16 : f32
    %676 = vector.broadcast %cst_205 : f32 to vector<4x1xf32>
    %677 = arith.addf %675, %676 : vector<4x1xf32>
    %678 = vector.broadcast %677 : vector<4x1xf32> to vector<4x16xf32>
    %679 = arith.divf %673, %678 : vector<4x16xf32>
    %680 = vector.shape_cast %679 : vector<4x16xf32> to vector<4x16x1xf32>
    %681 = vector.extract_strided_slice %680 {offsets = [0, 0, 0], sizes = [2, 16, 1], strides = [1, 1, 1]} : vector<4x16x1xf32> to vector<2x16x1xf32>
    %682 = vector.broadcast %681 : vector<2x16x1xf32> to vector<2x16x16xf32>
    %683 = arith.mulf %682, %529 : vector<2x16x16xf32>
    %cst_206 = arith.constant dense<0.000000e+00> : vector<2x16xf32>
    %684 = vector.multi_reduction <add>, %683, %cst_206 [1] : vector<2x16x16xf32> to vector<2x16xf32>
    %685 = vector.extract_strided_slice %571 {offsets = [0, 54], sizes = [2, 16], strides = [1, 1]} : vector<2x128xf32> to vector<2x16xf32>
    %cst_207 = arith.constant 5.000000e-01 : f32
    %686 = vector.broadcast %cst_207 : f32 to vector<2x16xf32>
    %687 = arith.mulf %686, %685 : vector<2x16xf32>
    %688 = math.tanh %687 : vector<2x16xf32>
    %cst_208 = arith.constant 1.000000e+00 : f32
    %689 = vector.broadcast %cst_208 : f32 to vector<2x16xf32>
    %690 = arith.addf %689, %688 : vector<2x16xf32>
    %cst_209 = arith.constant 5.000000e-01 : f32
    %691 = vector.broadcast %cst_209 : f32 to vector<2x16xf32>
    %692 = arith.mulf %691, %690 : vector<2x16xf32>
    %693 = vector.extract_strided_slice %571 {offsets = [0, 70], sizes = [2, 16], strides = [1, 1]} : vector<2x128xf32> to vector<2x16xf32>
    %694 = vector.extract_strided_slice %680 {offsets = [2, 0, 0], sizes = [2, 16, 1], strides = [1, 1, 1]} : vector<4x16x1xf32> to vector<2x16x1xf32>
    %695 = vector.shape_cast %692 : vector<2x16xf32> to vector<2x1x16xf32>
    %696 = vector.broadcast %694 : vector<2x16x1xf32> to vector<2x16x16xf32>
    %697 = vector.broadcast %695 : vector<2x1x16xf32> to vector<2x16x16xf32>
    %698 = arith.mulf %696, %697 : vector<2x16x16xf32>
    %cst_210 = arith.constant 1.000000e+00 : f32
    %699 = vector.broadcast %cst_210 : f32 to vector<2x16x16xf32>
    %700 = arith.subf %699, %698 : vector<2x16x16xf32>
    %701 = arith.mulf %529, %700 : vector<2x16x16xf32>
    %702 = vector.shape_cast %693 : vector<2x16xf32> to vector<2x1x16xf32>
    %703 = vector.broadcast %694 : vector<2x16x1xf32> to vector<2x16x16xf32>
    %704 = vector.broadcast %702 : vector<2x1x16xf32> to vector<2x16x16xf32>
    %705 = arith.mulf %703, %704 : vector<2x16x16xf32>
    %706 = arith.addf %701, %705 : vector<2x16x16xf32>
    %cst_211 = arith.constant dense<0.000000e+00> : vector<2x128xf32>
    %707 = tpu.matmul %568, %4, %cst_211 {dimension_numbers = #tpu.dot_dimension_numbers<[1], [0], [0], [1], [0, 0, 1, 1], [], []>} : vector<2x32xbf16>, vector<32x128xbf16>, vector<2x128xf32> -> vector<2x128xf32>
    %708 = arith.truncf %684 : vector<2x16xf32> to vector<2x16xbf16>
    %cst_212 = arith.constant dense<0.000000e+00> : vector<2x128xf32>
    %709 = tpu.matmul %708, %5, %cst_212 {dimension_numbers = #tpu.dot_dimension_numbers<[1], [0], [0], [1], [0, 0, 1, 1], [], []>} : vector<2x16xbf16>, vector<16x128xbf16>, vector<2x128xf32> -> vector<2x128xf32>
    %710 = arith.addf %707, %709 : vector<2x128xf32>
    %711 = vector.broadcast %6 : vector<1x128xf32> to vector<2x128xf32>
    %712 = arith.addf %710, %711 : vector<2x128xf32>
    %cst_213 = arith.constant 5.000000e-01 : f32
    %713 = vector.broadcast %cst_213 : f32 to vector<2x128xf32>
    %714 = arith.mulf %713, %712 : vector<2x128xf32>
    %715 = math.tanh %714 : vector<2x128xf32>
    %cst_214 = arith.constant 1.000000e+00 : f32
    %716 = vector.broadcast %cst_214 : f32 to vector<2x128xf32>
    %717 = arith.addf %716, %715 : vector<2x128xf32>
    %cst_215 = arith.constant 5.000000e-01 : f32
    %718 = vector.broadcast %cst_215 : f32 to vector<2x128xf32>
    %719 = arith.mulf %718, %717 : vector<2x128xf32>
    %c6_216 = arith.constant 6 : index
    %c0_217 = arith.constant 0 : index
    %720 = vector.load %arg14[%c6_216, %c0_217] : memref<16x128xf32, #tpu.memory_space<vmem>>, vector<2x128xf32>
    tpu.vector_store %arg14[%c6_216, %c0_217], %719 {strides = array<i32>} : memref<16x128xf32, #tpu.memory_space<vmem>>, vector<2x128xf32>,
    %c8 = arith.constant 8 : index
    %c0_218 = arith.constant 0 : index
    %721 = vector.load %arg0[%c8, %c0_218] : memref<16x128xf32, #tpu.memory_space<vmem>>, vector<2x128xf32>
    %722 = arith.truncf %684 : vector<2x16xf32> to vector<2x16xbf16>
    %cst_219 = arith.constant dense<0.000000e+00> : vector<2x128xf32>
    %723 = tpu.matmul %722, %0, %cst_219 {dimension_numbers = #tpu.dot_dimension_numbers<[1], [0], [0], [1], [0, 0, 1, 1], [], []>} : vector<2x16xbf16>, vector<16x128xbf16>, vector<2x128xf32> -> vector<2x128xf32>
    %724 = arith.addf %721, %723 : vector<2x128xf32>
    %725 = arith.truncf %567 : vector<2x32xf32> to vector<2x32xbf16>
    %cst_220 = arith.constant dense<0.000000e+00> : vector<2x128xf32>
    %726 = tpu.matmul %725, %1, %cst_220 {dimension_numbers = #tpu.dot_dimension_numbers<[1], [0], [0], [1], [0, 0, 1, 1], [], []>} : vector<2x32xbf16>, vector<32x128xbf16>, vector<2x128xf32> -> vector<2x128xf32>
    %727 = arith.addf %724, %726 : vector<2x128xf32>
    %cst_221 = arith.constant 5.000000e-01 : f32
    %728 = vector.broadcast %cst_221 : f32 to vector<2x128xf32>
    %729 = arith.mulf %728, %727 : vector<2x128xf32>
    %730 = math.tanh %729 : vector<2x128xf32>
    %cst_222 = arith.constant 1.000000e+00 : f32
    %731 = vector.broadcast %cst_222 : f32 to vector<2x128xf32>
    %732 = arith.addf %731, %730 : vector<2x128xf32>
    %cst_223 = arith.constant 5.000000e-01 : f32
    %733 = vector.broadcast %cst_223 : f32 to vector<2x128xf32>
    %734 = arith.mulf %733, %732 : vector<2x128xf32>
    %735 = math.tanh %727 : vector<2x128xf32>
    %736 = vector.extract_strided_slice %734 {offsets = [0, 0], sizes = [2, 32], strides = [1, 1]} : vector<2x128xf32> to vector<2x32xf32>
    %737 = vector.extract_strided_slice %734 {offsets = [0, 32], sizes = [2, 32], strides = [1, 1]} : vector<2x128xf32> to vector<2x32xf32>
    %738 = vector.extract_strided_slice %735 {offsets = [0, 64], sizes = [2, 32], strides = [1, 1]} : vector<2x128xf32> to vector<2x32xf32>
    %739 = vector.extract_strided_slice %734 {offsets = [0, 96], sizes = [2, 32], strides = [1, 1]} : vector<2x128xf32> to vector<2x32xf32>
    %740 = arith.mulf %737, %565 : vector<2x32xf32>
    %741 = arith.mulf %736, %738 : vector<2x32xf32>
    %742 = arith.addf %740, %741 : vector<2x32xf32>
    %743 = math.tanh %742 : vector<2x32xf32>
    %744 = arith.mulf %739, %743 : vector<2x32xf32>
    %745 = arith.truncf %744 : vector<2x32xf32> to vector<2x32xbf16>
    %cst_224 = arith.constant dense<0.000000e+00> : vector<2x128xf32>
    %746 = tpu.matmul %745, %2, %cst_224 {dimension_numbers = #tpu.dot_dimension_numbers<[1], [0], [0], [1], [0, 0, 1, 1], [], []>} : vector<2x32xbf16>, vector<32x128xbf16>, vector<2x128xf32> -> vector<2x128xf32>
    %747 = vector.broadcast %3 : vector<1x128xf32> to vector<2x128xf32>
    %748 = arith.addf %746, %747 : vector<2x128xf32>
    %749 = vector.extract_strided_slice %748 {offsets = [0, 0], sizes = [2, 22], strides = [1, 1]} : vector<2x128xf32> to vector<2x22xf32>
    %c0_225 = arith.constant 0 : index
    %c0_226 = arith.constant 0 : index
    %750 = vector.load %arg21[%c0_225, %c0_226] : memref<4x22xf32, #tpu.memory_space<vmem>>, vector<2x22xf32>
    tpu.vector_store %arg21[%c0_225, %c0_226], %749 {strides = array<i32>} : memref<4x22xf32, #tpu.memory_space<vmem>>, vector<2x22xf32>,
    %751 = vector.extract_strided_slice %748 {offsets = [0, 32], sizes = [2, 22], strides = [1, 1]} : vector<2x128xf32> to vector<2x22xf32>
    %c2_227 = arith.constant 2 : index
    %c0_228 = arith.constant 0 : index
    %752 = vector.load %arg21[%c2_227, %c0_228] : memref<4x22xf32, #tpu.memory_space<vmem>>, vector<2x22xf32>
    tpu.vector_store %arg21[%c2_227, %c0_228], %751 {strides = array<i32>} : memref<4x22xf32, #tpu.memory_space<vmem>>, vector<2x22xf32>,
    %c0_229 = arith.constant 0 : index
    %c0_230 = arith.constant 0 : index
    %753 = vector.load %arg21[%c0_229, %c0_230] : memref<4x22xf32, #tpu.memory_space<vmem>>, vector<4x22xf32>
    %754 = vector.extract_strided_slice %753 {offsets = [0, 0], sizes = [4, 16], strides = [1, 1]} : vector<4x22xf32> to vector<4x16xf32>
    %755 = vector.extract_strided_slice %753 {offsets = [0, 16], sizes = [4, 6], strides = [1, 1]} : vector<4x22xf32> to vector<4x6xf32>
    %cst_231 = arith.constant 0.000000e+00 : f32
    %756 = vector.broadcast %cst_231 : f32 to vector<4x6xf32>
    %757 = arith.maximumf %755, %756 : vector<4x6xf32>
    %758 = math.absf %755 : vector<4x6xf32>
    %cst_232 = arith.constant 0.000000e+00 : f32
    %759 = vector.broadcast %cst_232 : f32 to vector<4x6xf32>
    %760 = arith.subf %759, %758 : vector<4x6xf32>
    %761 = math.exp %760 : vector<4x6xf32>
    %cst_233 = arith.constant 1.000000e+00 : f32
    %762 = vector.broadcast %cst_233 : f32 to vector<4x6xf32>
    %763 = arith.addf %762, %761 : vector<4x6xf32>
    %764 = math.log %763 : vector<4x6xf32>
    %765 = arith.addf %757, %764 : vector<4x6xf32>
    %766 = vector.extract_strided_slice %765 {offsets = [0, 0], sizes = [4, 1], strides = [1, 1]} : vector<4x6xf32> to vector<4x1xf32>
    %767 = vector.extract_strided_slice %765 {offsets = [0, 5], sizes = [4, 1], strides = [1, 1]} : vector<4x6xf32> to vector<4x1xf32>
    %cst_234 = arith.constant 1.000000e+00 : f32
    %768 = vector.broadcast %cst_234 : f32 to vector<4x1xf32>
    %769 = arith.addf %768, %767 : vector<4x1xf32>
    %770 = vector.extract_strided_slice %753 {offsets = [0, 17], sizes = [4, 1], strides = [1, 1]} : vector<4x22xf32> to vector<4x1xf32>
    %cst_235 = arith.constant 5.000000e-01 : f32
    %771 = vector.broadcast %cst_235 : f32 to vector<4x1xf32>
    %772 = arith.mulf %771, %770 : vector<4x1xf32>
    %773 = math.tanh %772 : vector<4x1xf32>
    %cst_236 = arith.constant 1.000000e+00 : f32
    %774 = vector.broadcast %cst_236 : f32 to vector<4x1xf32>
    %775 = arith.addf %774, %773 : vector<4x1xf32>
    %cst_237 = arith.constant 5.000000e-01 : f32
    %776 = vector.broadcast %cst_237 : f32 to vector<4x1xf32>
    %777 = arith.mulf %776, %775 : vector<4x1xf32>
    %778 = vector.extract_strided_slice %753 {offsets = [0, 18], sizes = [4, 3], strides = [1, 1]} : vector<4x22xf32> to vector<4x3xf32>
    %cst_238 = arith.constant dense<0xFF800000> : vector<4xf32>
    %779 = vector.multi_reduction <maximumf>, %778, %cst_238 [1] : vector<4x3xf32> to vector<4xf32>
    %780 = vector.shape_cast %779 : vector<4xf32> to vector<4x1xf32>
    %781 = vector.broadcast %780 : vector<4x1xf32> to vector<4x3xf32>
    %782 = arith.subf %778, %781 : vector<4x3xf32>
    %783 = math.exp %782 : vector<4x3xf32>
    %cst_239 = arith.constant dense<0.000000e+00> : vector<4xf32>
    %784 = vector.multi_reduction <add>, %783, %cst_239 [1] : vector<4x3xf32> to vector<4xf32>
    %785 = vector.shape_cast %784 : vector<4xf32> to vector<4x1xf32>
    %786 = vector.broadcast %785 : vector<4x1xf32> to vector<4x3xf32>
    %787 = arith.divf %783, %786 : vector<4x3xf32>
    %cst_240 = arith.constant 1.000000e-16 : f32
    %788 = vector.broadcast %cst_240 : f32 to vector<2x16x16xf32>
    %789 = arith.addf %706, %788 : vector<2x16x16xf32>
    %790 = arith.mulf %789, %789 : vector<2x16x16xf32>
    %cst_241 = arith.constant dense<0.000000e+00> : vector<2x16xf32>
    %791 = vector.multi_reduction <add>, %790, %cst_241 [2] : vector<2x16x16xf32> to vector<2x16xf32>
    %cst_242 = arith.constant 1.000000e-16 : f32
    %792 = vector.broadcast %cst_242 : f32 to vector<2x16xf32>
    %793 = arith.maximumf %791, %792 : vector<2x16xf32>
    %794 = math.rsqrt %793 : vector<2x16xf32>
    %795 = vector.shape_cast %794 : vector<2x16xf32> to vector<2x16x1xf32>
    %796 = vector.broadcast %795 : vector<2x16x1xf32> to vector<2x16x16xf32>
    %797 = arith.mulf %789, %796 : vector<2x16x16xf32>
    %798 = tpu.concatenate %797, %797 in 0 : vector<2x16x16xf32>, vector<2x16x16xf32> -> vector<4x16x16xf32>
    %cst_243 = arith.constant 1.000000e-16 : f32
    %799 = vector.broadcast %cst_243 : f32 to vector<4x16xf32>
    %800 = arith.addf %754, %799 : vector<4x16xf32>
    %801 = arith.mulf %800, %800 : vector<4x16xf32>
    %cst_244 = arith.constant dense<0.000000e+00> : vector<4xf32>
    %802 = vector.multi_reduction <add>, %801, %cst_244 [1] : vector<4x16xf32> to vector<4xf32>
    %803 = vector.shape_cast %802 : vector<4xf32> to vector<4x1xf32>
    %cst_245 = arith.constant 1.000000e-16 : f32
    %804 = vector.broadcast %cst_245 : f32 to vector<4x1xf32>
    %805 = arith.maximumf %803, %804 : vector<4x1xf32>
    %806 = math.rsqrt %805 : vector<4x1xf32>
    %807 = vector.shape_cast %800 : vector<4x16xf32> to vector<4x1x16xf32>
    %808 = vector.broadcast %807 : vector<4x1x16xf32> to vector<4x16x16xf32>
    %809 = arith.mulf %798, %808 : vector<4x16x16xf32>
    %cst_246 = arith.constant dense<0.000000e+00> : vector<4x16xf32>
    %810 = vector.multi_reduction <add>, %809, %cst_246 [2] : vector<4x16x16xf32> to vector<4x16xf32>
    %811 = vector.broadcast %806 : vector<4x1xf32> to vector<4x16xf32>
    %812 = arith.mulf %810, %811 : vector<4x16xf32>
    %813 = vector.broadcast %766 : vector<4x1xf32> to vector<4x16xf32>
    %814 = arith.mulf %813, %812 : vector<4x16xf32>
    %cst_247 = arith.constant dense<0xFF800000> : vector<4xf32>
    %815 = vector.multi_reduction <maximumf>, %814, %cst_247 [1] : vector<4x16xf32> to vector<4xf32>
    %816 = vector.shape_cast %815 : vector<4xf32> to vector<4x1xf32>
    %817 = vector.broadcast %816 : vector<4x1xf32> to vector<4x16xf32>
    %818 = arith.subf %814, %817 : vector<4x16xf32>
    %819 = math.exp %818 : vector<4x16xf32>
    %cst_248 = arith.constant dense<0.000000e+00> : vector<4xf32>
    %820 = vector.multi_reduction <add>, %819, %cst_248 [1] : vector<4x16xf32> to vector<4xf32>
    %821 = vector.shape_cast %820 : vector<4xf32> to vector<4x1xf32>
    %822 = vector.broadcast %821 : vector<4x1xf32> to vector<4x16xf32>
    %823 = arith.divf %819, %822 : vector<4x16xf32>
    %824 = vector.broadcast %777 : vector<4x1xf32> to vector<4x16xf32>
    %825 = arith.mulf %824, %823 : vector<4x16xf32>
    %cst_249 = arith.constant 1.000000e+00 : f32
    %826 = vector.broadcast %cst_249 : f32 to vector<4x1xf32>
    %827 = arith.subf %826, %777 : vector<4x1xf32>
    %828 = vector.broadcast %827 : vector<4x1xf32> to vector<4x16xf32>
    %829 = arith.mulf %828, %679 : vector<4x16xf32>
    %830 = arith.addf %825, %829 : vector<4x16xf32>
    %cst_250 = arith.constant dense<0.000000e+00> : vector<4x32xf32>
    %831 = tpu.matmul %830, %7, %cst_250 {dimension_numbers = #tpu.dot_dimension_numbers<[1], [0], [0], [1], [0, 0, 1, 1], [], []>} : vector<4x16xf32>, vector<16x32xf32>, vector<4x32xf32> -> vector<4x32xf32>
    %832 = vector.extract_strided_slice %831 {offsets = [0, 0], sizes = [4, 16], strides = [1, 1]} : vector<4x32xf32> to vector<4x16xf32>
    %833 = vector.extract_strided_slice %787 {offsets = [0, 0], sizes = [4, 1], strides = [1, 1]} : vector<4x3xf32> to vector<4x1xf32>
    %834 = vector.broadcast %833 : vector<4x1xf32> to vector<4x16xf32>
    %835 = arith.mulf %832, %834 : vector<4x16xf32>
    %836 = vector.extract_strided_slice %787 {offsets = [0, 1], sizes = [4, 1], strides = [1, 1]} : vector<4x3xf32> to vector<4x1xf32>
    %837 = vector.broadcast %836 : vector<4x1xf32> to vector<4x16xf32>
    %838 = arith.mulf %830, %837 : vector<4x16xf32>
    %839 = arith.addf %835, %838 : vector<4x16xf32>
    %840 = vector.extract_strided_slice %831 {offsets = [0, 16], sizes = [4, 16], strides = [1, 1]} : vector<4x32xf32> to vector<4x16xf32>
    %841 = vector.extract_strided_slice %787 {offsets = [0, 2], sizes = [4, 1], strides = [1, 1]} : vector<4x3xf32> to vector<4x1xf32>
    %842 = vector.broadcast %841 : vector<4x1xf32> to vector<4x16xf32>
    %843 = arith.mulf %840, %842 : vector<4x16xf32>
    %844 = arith.addf %839, %843 : vector<4x16xf32>
    %cst_251 = arith.constant 1.000000e-30 : f32
    %845 = vector.broadcast %cst_251 : f32 to vector<4x16xf32>
    %846 = arith.maximumf %844, %845 : vector<4x16xf32>
    %847 = math.log %846 : vector<4x16xf32>
    %848 = vector.broadcast %769 : vector<4x1xf32> to vector<4x16xf32>
    %849 = arith.mulf %848, %847 : vector<4x16xf32>
    %850 = math.exp %849 : vector<4x16xf32>
    %cst_252 = arith.constant dense<0.000000e+00> : vector<4xf32>
    %851 = vector.multi_reduction <add>, %850, %cst_252 [1] : vector<4x16xf32> to vector<4xf32>
    %852 = vector.shape_cast %851 : vector<4xf32> to vector<4x1xf32>
    %cst_253 = arith.constant 1.000000e-16 : f32
    %853 = vector.broadcast %cst_253 : f32 to vector<4x1xf32>
    %854 = arith.addf %852, %853 : vector<4x1xf32>
    %855 = vector.broadcast %854 : vector<4x1xf32> to vector<4x16xf32>
    %856 = arith.divf %850, %855 : vector<4x16xf32>
    %857 = vector.shape_cast %856 : vector<4x16xf32> to vector<4x16x1xf32>
    %858 = vector.extract_strided_slice %857 {offsets = [0, 0, 0], sizes = [2, 16, 1], strides = [1, 1, 1]} : vector<4x16x1xf32> to vector<2x16x1xf32>
    %859 = vector.broadcast %858 : vector<2x16x1xf32> to vector<2x16x16xf32>
    %860 = arith.mulf %859, %706 : vector<2x16x16xf32>
    %cst_254 = arith.constant dense<0.000000e+00> : vector<2x16xf32>
    %861 = vector.multi_reduction <add>, %860, %cst_254 [1] : vector<2x16x16xf32> to vector<2x16xf32>
    %862 = vector.extract_strided_slice %748 {offsets = [0, 54], sizes = [2, 16], strides = [1, 1]} : vector<2x128xf32> to vector<2x16xf32>
    %cst_255 = arith.constant 5.000000e-01 : f32
    %863 = vector.broadcast %cst_255 : f32 to vector<2x16xf32>
    %864 = arith.mulf %863, %862 : vector<2x16xf32>
    %865 = math.tanh %864 : vector<2x16xf32>
    %cst_256 = arith.constant 1.000000e+00 : f32
    %866 = vector.broadcast %cst_256 : f32 to vector<2x16xf32>
    %867 = arith.addf %866, %865 : vector<2x16xf32>
    %cst_257 = arith.constant 5.000000e-01 : f32
    %868 = vector.broadcast %cst_257 : f32 to vector<2x16xf32>
    %869 = arith.mulf %868, %867 : vector<2x16xf32>
    %870 = vector.extract_strided_slice %748 {offsets = [0, 70], sizes = [2, 16], strides = [1, 1]} : vector<2x128xf32> to vector<2x16xf32>
    %871 = vector.extract_strided_slice %857 {offsets = [2, 0, 0], sizes = [2, 16, 1], strides = [1, 1, 1]} : vector<4x16x1xf32> to vector<2x16x1xf32>
    %872 = vector.shape_cast %869 : vector<2x16xf32> to vector<2x1x16xf32>
    %873 = vector.broadcast %871 : vector<2x16x1xf32> to vector<2x16x16xf32>
    %874 = vector.broadcast %872 : vector<2x1x16xf32> to vector<2x16x16xf32>
    %875 = arith.mulf %873, %874 : vector<2x16x16xf32>
    %cst_258 = arith.constant 1.000000e+00 : f32
    %876 = vector.broadcast %cst_258 : f32 to vector<2x16x16xf32>
    %877 = arith.subf %876, %875 : vector<2x16x16xf32>
    %878 = arith.mulf %706, %877 : vector<2x16x16xf32>
    %879 = vector.shape_cast %870 : vector<2x16xf32> to vector<2x1x16xf32>
    %880 = vector.broadcast %871 : vector<2x16x1xf32> to vector<2x16x16xf32>
    %881 = vector.broadcast %879 : vector<2x1x16xf32> to vector<2x16x16xf32>
    %882 = arith.mulf %880, %881 : vector<2x16x16xf32>
    %883 = arith.addf %878, %882 : vector<2x16x16xf32>
    %cst_259 = arith.constant dense<0.000000e+00> : vector<2x128xf32>
    %884 = tpu.matmul %745, %4, %cst_259 {dimension_numbers = #tpu.dot_dimension_numbers<[1], [0], [0], [1], [0, 0, 1, 1], [], []>} : vector<2x32xbf16>, vector<32x128xbf16>, vector<2x128xf32> -> vector<2x128xf32>
    %885 = arith.truncf %861 : vector<2x16xf32> to vector<2x16xbf16>
    %cst_260 = arith.constant dense<0.000000e+00> : vector<2x128xf32>
    %886 = tpu.matmul %885, %5, %cst_260 {dimension_numbers = #tpu.dot_dimension_numbers<[1], [0], [0], [1], [0, 0, 1, 1], [], []>} : vector<2x16xbf16>, vector<16x128xbf16>, vector<2x128xf32> -> vector<2x128xf32>
    %887 = arith.addf %884, %886 : vector<2x128xf32>
    %888 = vector.broadcast %6 : vector<1x128xf32> to vector<2x128xf32>
    %889 = arith.addf %887, %888 : vector<2x128xf32>
    %cst_261 = arith.constant 5.000000e-01 : f32
    %890 = vector.broadcast %cst_261 : f32 to vector<2x128xf32>
    %891 = arith.mulf %890, %889 : vector<2x128xf32>
    %892 = math.tanh %891 : vector<2x128xf32>
    %cst_262 = arith.constant 1.000000e+00 : f32
    %893 = vector.broadcast %cst_262 : f32 to vector<2x128xf32>
    %894 = arith.addf %893, %892 : vector<2x128xf32>
    %cst_263 = arith.constant 5.000000e-01 : f32
    %895 = vector.broadcast %cst_263 : f32 to vector<2x128xf32>
    %896 = arith.mulf %895, %894 : vector<2x128xf32>
    %c8_264 = arith.constant 8 : index
    %c0_265 = arith.constant 0 : index
    %897 = vector.load %arg14[%c8_264, %c0_265] : memref<16x128xf32, #tpu.memory_space<vmem>>, vector<2x128xf32>
    tpu.vector_store %arg14[%c8_264, %c0_265], %896 {strides = array<i32>} : memref<16x128xf32, #tpu.memory_space<vmem>>, vector<2x128xf32>,
    %c10 = arith.constant 10 : index
    %c0_266 = arith.constant 0 : index
    %898 = vector.load %arg0[%c10, %c0_266] : memref<16x128xf32, #tpu.memory_space<vmem>>, vector<2x128xf32>
    %899 = arith.truncf %861 : vector<2x16xf32> to vector<2x16xbf16>
    %cst_267 = arith.constant dense<0.000000e+00> : vector<2x128xf32>
    %900 = tpu.matmul %899, %0, %cst_267 {dimension_numbers = #tpu.dot_dimension_numbers<[1], [0], [0], [1], [0, 0, 1, 1], [], []>} : vector<2x16xbf16>, vector<16x128xbf16>, vector<2x128xf32> -> vector<2x128xf32>
    %901 = arith.addf %898, %900 : vector<2x128xf32>
    %902 = arith.truncf %744 : vector<2x32xf32> to vector<2x32xbf16>
    %cst_268 = arith.constant dense<0.000000e+00> : vector<2x128xf32>
    %903 = tpu.matmul %902, %1, %cst_268 {dimension_numbers = #tpu.dot_dimension_numbers<[1], [0], [0], [1], [0, 0, 1, 1], [], []>} : vector<2x32xbf16>, vector<32x128xbf16>, vector<2x128xf32> -> vector<2x128xf32>
    %904 = arith.addf %901, %903 : vector<2x128xf32>
    %cst_269 = arith.constant 5.000000e-01 : f32
    %905 = vector.broadcast %cst_269 : f32 to vector<2x128xf32>
    %906 = arith.mulf %905, %904 : vector<2x128xf32>
    %907 = math.tanh %906 : vector<2x128xf32>
    %cst_270 = arith.constant 1.000000e+00 : f32
    %908 = vector.broadcast %cst_270 : f32 to vector<2x128xf32>
    %909 = arith.addf %908, %907 : vector<2x128xf32>
    %cst_271 = arith.constant 5.000000e-01 : f32
    %910 = vector.broadcast %cst_271 : f32 to vector<2x128xf32>
    %911 = arith.mulf %910, %909 : vector<2x128xf32>
    %912 = math.tanh %904 : vector<2x128xf32>
    %913 = vector.extract_strided_slice %911 {offsets = [0, 0], sizes = [2, 32], strides = [1, 1]} : vector<2x128xf32> to vector<2x32xf32>
    %914 = vector.extract_strided_slice %911 {offsets = [0, 32], sizes = [2, 32], strides = [1, 1]} : vector<2x128xf32> to vector<2x32xf32>
    %915 = vector.extract_strided_slice %912 {offsets = [0, 64], sizes = [2, 32], strides = [1, 1]} : vector<2x128xf32> to vector<2x32xf32>
    %916 = vector.extract_strided_slice %911 {offsets = [0, 96], sizes = [2, 32], strides = [1, 1]} : vector<2x128xf32> to vector<2x32xf32>
    %917 = arith.mulf %914, %742 : vector<2x32xf32>
    %918 = arith.mulf %913, %915 : vector<2x32xf32>
    %919 = arith.addf %917, %918 : vector<2x32xf32>
    %920 = math.tanh %919 : vector<2x32xf32>
    %921 = arith.mulf %916, %920 : vector<2x32xf32>
    %922 = arith.truncf %921 : vector<2x32xf32> to vector<2x32xbf16>
    %cst_272 = arith.constant dense<0.000000e+00> : vector<2x128xf32>
    %923 = tpu.matmul %922, %2, %cst_272 {dimension_numbers = #tpu.dot_dimension_numbers<[1], [0], [0], [1], [0, 0, 1, 1], [], []>} : vector<2x32xbf16>, vector<32x128xbf16>, vector<2x128xf32> -> vector<2x128xf32>
    %924 = vector.broadcast %3 : vector<1x128xf32> to vector<2x128xf32>
    %925 = arith.addf %923, %924 : vector<2x128xf32>
    %926 = vector.extract_strided_slice %925 {offsets = [0, 0], sizes = [2, 22], strides = [1, 1]} : vector<2x128xf32> to vector<2x22xf32>
    %c0_273 = arith.constant 0 : index
    %c0_274 = arith.constant 0 : index
    %927 = vector.load %arg21[%c0_273, %c0_274] : memref<4x22xf32, #tpu.memory_space<vmem>>, vector<2x22xf32>
    tpu.vector_store %arg21[%c0_273, %c0_274], %926 {strides = array<i32>} : memref<4x22xf32, #tpu.memory_space<vmem>>, vector<2x22xf32>,
    %928 = vector.extract_strided_slice %925 {offsets = [0, 32], sizes = [2, 22], strides = [1, 1]} : vector<2x128xf32> to vector<2x22xf32>
    %c2_275 = arith.constant 2 : index
    %c0_276 = arith.constant 0 : index
    %929 = vector.load %arg21[%c2_275, %c0_276] : memref<4x22xf32, #tpu.memory_space<vmem>>, vector<2x22xf32>
    tpu.vector_store %arg21[%c2_275, %c0_276], %928 {strides = array<i32>} : memref<4x22xf32, #tpu.memory_space<vmem>>, vector<2x22xf32>,
    %c0_277 = arith.constant 0 : index
    %c0_278 = arith.constant 0 : index
    %930 = vector.load %arg21[%c0_277, %c0_278] : memref<4x22xf32, #tpu.memory_space<vmem>>, vector<4x22xf32>
    %931 = vector.extract_strided_slice %930 {offsets = [0, 0], sizes = [4, 16], strides = [1, 1]} : vector<4x22xf32> to vector<4x16xf32>
    %932 = vector.extract_strided_slice %930 {offsets = [0, 16], sizes = [4, 6], strides = [1, 1]} : vector<4x22xf32> to vector<4x6xf32>
    %cst_279 = arith.constant 0.000000e+00 : f32
    %933 = vector.broadcast %cst_279 : f32 to vector<4x6xf32>
    %934 = arith.maximumf %932, %933 : vector<4x6xf32>
    %935 = math.absf %932 : vector<4x6xf32>
    %cst_280 = arith.constant 0.000000e+00 : f32
    %936 = vector.broadcast %cst_280 : f32 to vector<4x6xf32>
    %937 = arith.subf %936, %935 : vector<4x6xf32>
    %938 = math.exp %937 : vector<4x6xf32>
    %cst_281 = arith.constant 1.000000e+00 : f32
    %939 = vector.broadcast %cst_281 : f32 to vector<4x6xf32>
    %940 = arith.addf %939, %938 : vector<4x6xf32>
    %941 = math.log %940 : vector<4x6xf32>
    %942 = arith.addf %934, %941 : vector<4x6xf32>
    %943 = vector.extract_strided_slice %942 {offsets = [0, 0], sizes = [4, 1], strides = [1, 1]} : vector<4x6xf32> to vector<4x1xf32>
    %944 = vector.extract_strided_slice %942 {offsets = [0, 5], sizes = [4, 1], strides = [1, 1]} : vector<4x6xf32> to vector<4x1xf32>
    %cst_282 = arith.constant 1.000000e+00 : f32
    %945 = vector.broadcast %cst_282 : f32 to vector<4x1xf32>
    %946 = arith.addf %945, %944 : vector<4x1xf32>
    %947 = vector.extract_strided_slice %930 {offsets = [0, 17], sizes = [4, 1], strides = [1, 1]} : vector<4x22xf32> to vector<4x1xf32>
    %cst_283 = arith.constant 5.000000e-01 : f32
    %948 = vector.broadcast %cst_283 : f32 to vector<4x1xf32>
    %949 = arith.mulf %948, %947 : vector<4x1xf32>
    %950 = math.tanh %949 : vector<4x1xf32>
    %cst_284 = arith.constant 1.000000e+00 : f32
    %951 = vector.broadcast %cst_284 : f32 to vector<4x1xf32>
    %952 = arith.addf %951, %950 : vector<4x1xf32>
    %cst_285 = arith.constant 5.000000e-01 : f32
    %953 = vector.broadcast %cst_285 : f32 to vector<4x1xf32>
    %954 = arith.mulf %953, %952 : vector<4x1xf32>
    %955 = vector.extract_strided_slice %930 {offsets = [0, 18], sizes = [4, 3], strides = [1, 1]} : vector<4x22xf32> to vector<4x3xf32>
    %cst_286 = arith.constant dense<0xFF800000> : vector<4xf32>
    %956 = vector.multi_reduction <maximumf>, %955, %cst_286 [1] : vector<4x3xf32> to vector<4xf32>
    %957 = vector.shape_cast %956 : vector<4xf32> to vector<4x1xf32>
    %958 = vector.broadcast %957 : vector<4x1xf32> to vector<4x3xf32>
    %959 = arith.subf %955, %958 : vector<4x3xf32>
    %960 = math.exp %959 : vector<4x3xf32>
    %cst_287 = arith.constant dense<0.000000e+00> : vector<4xf32>
    %961 = vector.multi_reduction <add>, %960, %cst_287 [1] : vector<4x3xf32> to vector<4xf32>
    %962 = vector.shape_cast %961 : vector<4xf32> to vector<4x1xf32>
    %963 = vector.broadcast %962 : vector<4x1xf32> to vector<4x3xf32>
    %964 = arith.divf %960, %963 : vector<4x3xf32>
    %cst_288 = arith.constant 1.000000e-16 : f32
    %965 = vector.broadcast %cst_288 : f32 to vector<2x16x16xf32>
    %966 = arith.addf %883, %965 : vector<2x16x16xf32>
    %967 = arith.mulf %966, %966 : vector<2x16x16xf32>
    %cst_289 = arith.constant dense<0.000000e+00> : vector<2x16xf32>
    %968 = vector.multi_reduction <add>, %967, %cst_289 [2] : vector<2x16x16xf32> to vector<2x16xf32>
    %cst_290 = arith.constant 1.000000e-16 : f32
    %969 = vector.broadcast %cst_290 : f32 to vector<2x16xf32>
    %970 = arith.maximumf %968, %969 : vector<2x16xf32>
    %971 = math.rsqrt %970 : vector<2x16xf32>
    %972 = vector.shape_cast %971 : vector<2x16xf32> to vector<2x16x1xf32>
    %973 = vector.broadcast %972 : vector<2x16x1xf32> to vector<2x16x16xf32>
    %974 = arith.mulf %966, %973 : vector<2x16x16xf32>
    %975 = tpu.concatenate %974, %974 in 0 : vector<2x16x16xf32>, vector<2x16x16xf32> -> vector<4x16x16xf32>
    %cst_291 = arith.constant 1.000000e-16 : f32
    %976 = vector.broadcast %cst_291 : f32 to vector<4x16xf32>
    %977 = arith.addf %931, %976 : vector<4x16xf32>
    %978 = arith.mulf %977, %977 : vector<4x16xf32>
    %cst_292 = arith.constant dense<0.000000e+00> : vector<4xf32>
    %979 = vector.multi_reduction <add>, %978, %cst_292 [1] : vector<4x16xf32> to vector<4xf32>
    %980 = vector.shape_cast %979 : vector<4xf32> to vector<4x1xf32>
    %cst_293 = arith.constant 1.000000e-16 : f32
    %981 = vector.broadcast %cst_293 : f32 to vector<4x1xf32>
    %982 = arith.maximumf %980, %981 : vector<4x1xf32>
    %983 = math.rsqrt %982 : vector<4x1xf32>
    %984 = vector.shape_cast %977 : vector<4x16xf32> to vector<4x1x16xf32>
    %985 = vector.broadcast %984 : vector<4x1x16xf32> to vector<4x16x16xf32>
    %986 = arith.mulf %975, %985 : vector<4x16x16xf32>
    %cst_294 = arith.constant dense<0.000000e+00> : vector<4x16xf32>
    %987 = vector.multi_reduction <add>, %986, %cst_294 [2] : vector<4x16x16xf32> to vector<4x16xf32>
    %988 = vector.broadcast %983 : vector<4x1xf32> to vector<4x16xf32>
    %989 = arith.mulf %987, %988 : vector<4x16xf32>
    %990 = vector.broadcast %943 : vector<4x1xf32> to vector<4x16xf32>
    %991 = arith.mulf %990, %989 : vector<4x16xf32>
    %cst_295 = arith.constant dense<0xFF800000> : vector<4xf32>
    %992 = vector.multi_reduction <maximumf>, %991, %cst_295 [1] : vector<4x16xf32> to vector<4xf32>
    %993 = vector.shape_cast %992 : vector<4xf32> to vector<4x1xf32>
    %994 = vector.broadcast %993 : vector<4x1xf32> to vector<4x16xf32>
    %995 = arith.subf %991, %994 : vector<4x16xf32>
    %996 = math.exp %995 : vector<4x16xf32>
    %cst_296 = arith.constant dense<0.000000e+00> : vector<4xf32>
    %997 = vector.multi_reduction <add>, %996, %cst_296 [1] : vector<4x16xf32> to vector<4xf32>
    %998 = vector.shape_cast %997 : vector<4xf32> to vector<4x1xf32>
    %999 = vector.broadcast %998 : vector<4x1xf32> to vector<4x16xf32>
    %1000 = arith.divf %996, %999 : vector<4x16xf32>
    %1001 = vector.broadcast %954 : vector<4x1xf32> to vector<4x16xf32>
    %1002 = arith.mulf %1001, %1000 : vector<4x16xf32>
    %cst_297 = arith.constant 1.000000e+00 : f32
    %1003 = vector.broadcast %cst_297 : f32 to vector<4x1xf32>
    %1004 = arith.subf %1003, %954 : vector<4x1xf32>
    %1005 = vector.broadcast %1004 : vector<4x1xf32> to vector<4x16xf32>
    %1006 = arith.mulf %1005, %856 : vector<4x16xf32>
    %1007 = arith.addf %1002, %1006 : vector<4x16xf32>
    %cst_298 = arith.constant dense<0.000000e+00> : vector<4x32xf32>
    %1008 = tpu.matmul %1007, %7, %cst_298 {dimension_numbers = #tpu.dot_dimension_numbers<[1], [0], [0], [1], [0, 0, 1, 1], [], []>} : vector<4x16xf32>, vector<16x32xf32>, vector<4x32xf32> -> vector<4x32xf32>
    %1009 = vector.extract_strided_slice %1008 {offsets = [0, 0], sizes = [4, 16], strides = [1, 1]} : vector<4x32xf32> to vector<4x16xf32>
    %1010 = vector.extract_strided_slice %964 {offsets = [0, 0], sizes = [4, 1], strides = [1, 1]} : vector<4x3xf32> to vector<4x1xf32>
    %1011 = vector.broadcast %1010 : vector<4x1xf32> to vector<4x16xf32>
    %1012 = arith.mulf %1009, %1011 : vector<4x16xf32>
    %1013 = vector.extract_strided_slice %964 {offsets = [0, 1], sizes = [4, 1], strides = [1, 1]} : vector<4x3xf32> to vector<4x1xf32>
    %1014 = vector.broadcast %1013 : vector<4x1xf32> to vector<4x16xf32>
    %1015 = arith.mulf %1007, %1014 : vector<4x16xf32>
    %1016 = arith.addf %1012, %1015 : vector<4x16xf32>
    %1017 = vector.extract_strided_slice %1008 {offsets = [0, 16], sizes = [4, 16], strides = [1, 1]} : vector<4x32xf32> to vector<4x16xf32>
    %1018 = vector.extract_strided_slice %964 {offsets = [0, 2], sizes = [4, 1], strides = [1, 1]} : vector<4x3xf32> to vector<4x1xf32>
    %1019 = vector.broadcast %1018 : vector<4x1xf32> to vector<4x16xf32>
    %1020 = arith.mulf %1017, %1019 : vector<4x16xf32>
    %1021 = arith.addf %1016, %1020 : vector<4x16xf32>
    %cst_299 = arith.constant 1.000000e-30 : f32
    %1022 = vector.broadcast %cst_299 : f32 to vector<4x16xf32>
    %1023 = arith.maximumf %1021, %1022 : vector<4x16xf32>
    %1024 = math.log %1023 : vector<4x16xf32>
    %1025 = vector.broadcast %946 : vector<4x1xf32> to vector<4x16xf32>
    %1026 = arith.mulf %1025, %1024 : vector<4x16xf32>
    %1027 = math.exp %1026 : vector<4x16xf32>
    %cst_300 = arith.constant dense<0.000000e+00> : vector<4xf32>
    %1028 = vector.multi_reduction <add>, %1027, %cst_300 [1] : vector<4x16xf32> to vector<4xf32>
    %1029 = vector.shape_cast %1028 : vector<4xf32> to vector<4x1xf32>
    %cst_301 = arith.constant 1.000000e-16 : f32
    %1030 = vector.broadcast %cst_301 : f32 to vector<4x1xf32>
    %1031 = arith.addf %1029, %1030 : vector<4x1xf32>
    %1032 = vector.broadcast %1031 : vector<4x1xf32> to vector<4x16xf32>
    %1033 = arith.divf %1027, %1032 : vector<4x16xf32>
    %1034 = vector.shape_cast %1033 : vector<4x16xf32> to vector<4x16x1xf32>
    %1035 = vector.extract_strided_slice %1034 {offsets = [0, 0, 0], sizes = [2, 16, 1], strides = [1, 1, 1]} : vector<4x16x1xf32> to vector<2x16x1xf32>
    %1036 = vector.broadcast %1035 : vector<2x16x1xf32> to vector<2x16x16xf32>
    %1037 = arith.mulf %1036, %883 : vector<2x16x16xf32>
    %cst_302 = arith.constant dense<0.000000e+00> : vector<2x16xf32>
    %1038 = vector.multi_reduction <add>, %1037, %cst_302 [1] : vector<2x16x16xf32> to vector<2x16xf32>
    %1039 = vector.extract_strided_slice %925 {offsets = [0, 54], sizes = [2, 16], strides = [1, 1]} : vector<2x128xf32> to vector<2x16xf32>
    %cst_303 = arith.constant 5.000000e-01 : f32
    %1040 = vector.broadcast %cst_303 : f32 to vector<2x16xf32>
    %1041 = arith.mulf %1040, %1039 : vector<2x16xf32>
    %1042 = math.tanh %1041 : vector<2x16xf32>
    %cst_304 = arith.constant 1.000000e+00 : f32
    %1043 = vector.broadcast %cst_304 : f32 to vector<2x16xf32>
    %1044 = arith.addf %1043, %1042 : vector<2x16xf32>
    %cst_305 = arith.constant 5.000000e-01 : f32
    %1045 = vector.broadcast %cst_305 : f32 to vector<2x16xf32>
    %1046 = arith.mulf %1045, %1044 : vector<2x16xf32>
    %1047 = vector.extract_strided_slice %925 {offsets = [0, 70], sizes = [2, 16], strides = [1, 1]} : vector<2x128xf32> to vector<2x16xf32>
    %1048 = vector.extract_strided_slice %1034 {offsets = [2, 0, 0], sizes = [2, 16, 1], strides = [1, 1, 1]} : vector<4x16x1xf32> to vector<2x16x1xf32>
    %1049 = vector.shape_cast %1046 : vector<2x16xf32> to vector<2x1x16xf32>
    %1050 = vector.broadcast %1048 : vector<2x16x1xf32> to vector<2x16x16xf32>
    %1051 = vector.broadcast %1049 : vector<2x1x16xf32> to vector<2x16x16xf32>
    %1052 = arith.mulf %1050, %1051 : vector<2x16x16xf32>
    %cst_306 = arith.constant 1.000000e+00 : f32
    %1053 = vector.broadcast %cst_306 : f32 to vector<2x16x16xf32>
    %1054 = arith.subf %1053, %1052 : vector<2x16x16xf32>
    %1055 = arith.mulf %883, %1054 : vector<2x16x16xf32>
    %1056 = vector.shape_cast %1047 : vector<2x16xf32> to vector<2x1x16xf32>
    %1057 = vector.broadcast %1048 : vector<2x16x1xf32> to vector<2x16x16xf32>
    %1058 = vector.broadcast %1056 : vector<2x1x16xf32> to vector<2x16x16xf32>
    %1059 = arith.mulf %1057, %1058 : vector<2x16x16xf32>
    %1060 = arith.addf %1055, %1059 : vector<2x16x16xf32>
    %cst_307 = arith.constant dense<0.000000e+00> : vector<2x128xf32>
    %1061 = tpu.matmul %922, %4, %cst_307 {dimension_numbers = #tpu.dot_dimension_numbers<[1], [0], [0], [1], [0, 0, 1, 1], [], []>} : vector<2x32xbf16>, vector<32x128xbf16>, vector<2x128xf32> -> vector<2x128xf32>
    %1062 = arith.truncf %1038 : vector<2x16xf32> to vector<2x16xbf16>
    %cst_308 = arith.constant dense<0.000000e+00> : vector<2x128xf32>
    %1063 = tpu.matmul %1062, %5, %cst_308 {dimension_numbers = #tpu.dot_dimension_numbers<[1], [0], [0], [1], [0, 0, 1, 1], [], []>} : vector<2x16xbf16>, vector<16x128xbf16>, vector<2x128xf32> -> vector<2x128xf32>
    %1064 = arith.addf %1061, %1063 : vector<2x128xf32>
    %1065 = vector.broadcast %6 : vector<1x128xf32> to vector<2x128xf32>
    %1066 = arith.addf %1064, %1065 : vector<2x128xf32>
    %cst_309 = arith.constant 5.000000e-01 : f32
    %1067 = vector.broadcast %cst_309 : f32 to vector<2x128xf32>
    %1068 = arith.mulf %1067, %1066 : vector<2x128xf32>
    %1069 = math.tanh %1068 : vector<2x128xf32>
    %cst_310 = arith.constant 1.000000e+00 : f32
    %1070 = vector.broadcast %cst_310 : f32 to vector<2x128xf32>
    %1071 = arith.addf %1070, %1069 : vector<2x128xf32>
    %cst_311 = arith.constant 5.000000e-01 : f32
    %1072 = vector.broadcast %cst_311 : f32 to vector<2x128xf32>
    %1073 = arith.mulf %1072, %1071 : vector<2x128xf32>
    %c10_312 = arith.constant 10 : index
    %c0_313 = arith.constant 0 : index
    %1074 = vector.load %arg14[%c10_312, %c0_313] : memref<16x128xf32, #tpu.memory_space<vmem>>, vector<2x128xf32>
    tpu.vector_store %arg14[%c10_312, %c0_313], %1073 {strides = array<i32>} : memref<16x128xf32, #tpu.memory_space<vmem>>, vector<2x128xf32>,
    %c12 = arith.constant 12 : index
    %c0_314 = arith.constant 0 : index
    %1075 = vector.load %arg0[%c12, %c0_314] : memref<16x128xf32, #tpu.memory_space<vmem>>, vector<2x128xf32>
    %1076 = arith.truncf %1038 : vector<2x16xf32> to vector<2x16xbf16>
    %cst_315 = arith.constant dense<0.000000e+00> : vector<2x128xf32>
    %1077 = tpu.matmul %1076, %0, %cst_315 {dimension_numbers = #tpu.dot_dimension_numbers<[1], [0], [0], [1], [0, 0, 1, 1], [], []>} : vector<2x16xbf16>, vector<16x128xbf16>, vector<2x128xf32> -> vector<2x128xf32>
    %1078 = arith.addf %1075, %1077 : vector<2x128xf32>
    %1079 = arith.truncf %921 : vector<2x32xf32> to vector<2x32xbf16>
    %cst_316 = arith.constant dense<0.000000e+00> : vector<2x128xf32>
    %1080 = tpu.matmul %1079, %1, %cst_316 {dimension_numbers = #tpu.dot_dimension_numbers<[1], [0], [0], [1], [0, 0, 1, 1], [], []>} : vector<2x32xbf16>, vector<32x128xbf16>, vector<2x128xf32> -> vector<2x128xf32>
    %1081 = arith.addf %1078, %1080 : vector<2x128xf32>
    %cst_317 = arith.constant 5.000000e-01 : f32
    %1082 = vector.broadcast %cst_317 : f32 to vector<2x128xf32>
    %1083 = arith.mulf %1082, %1081 : vector<2x128xf32>
    %1084 = math.tanh %1083 : vector<2x128xf32>
    %cst_318 = arith.constant 1.000000e+00 : f32
    %1085 = vector.broadcast %cst_318 : f32 to vector<2x128xf32>
    %1086 = arith.addf %1085, %1084 : vector<2x128xf32>
    %cst_319 = arith.constant 5.000000e-01 : f32
    %1087 = vector.broadcast %cst_319 : f32 to vector<2x128xf32>
    %1088 = arith.mulf %1087, %1086 : vector<2x128xf32>
    %1089 = math.tanh %1081 : vector<2x128xf32>
    %1090 = vector.extract_strided_slice %1088 {offsets = [0, 0], sizes = [2, 32], strides = [1, 1]} : vector<2x128xf32> to vector<2x32xf32>
    %1091 = vector.extract_strided_slice %1088 {offsets = [0, 32], sizes = [2, 32], strides = [1, 1]} : vector<2x128xf32> to vector<2x32xf32>
    %1092 = vector.extract_strided_slice %1089 {offsets = [0, 64], sizes = [2, 32], strides = [1, 1]} : vector<2x128xf32> to vector<2x32xf32>
    %1093 = vector.extract_strided_slice %1088 {offsets = [0, 96], sizes = [2, 32], strides = [1, 1]} : vector<2x128xf32> to vector<2x32xf32>
    %1094 = arith.mulf %1091, %919 : vector<2x32xf32>
    %1095 = arith.mulf %1090, %1092 : vector<2x32xf32>
    %1096 = arith.addf %1094, %1095 : vector<2x32xf32>
    %1097 = math.tanh %1096 : vector<2x32xf32>
    %1098 = arith.mulf %1093, %1097 : vector<2x32xf32>
    %1099 = arith.truncf %1098 : vector<2x32xf32> to vector<2x32xbf16>
    %cst_320 = arith.constant dense<0.000000e+00> : vector<2x128xf32>
    %1100 = tpu.matmul %1099, %2, %cst_320 {dimension_numbers = #tpu.dot_dimension_numbers<[1], [0], [0], [1], [0, 0, 1, 1], [], []>} : vector<2x32xbf16>, vector<32x128xbf16>, vector<2x128xf32> -> vector<2x128xf32>
    %1101 = vector.broadcast %3 : vector<1x128xf32> to vector<2x128xf32>
    %1102 = arith.addf %1100, %1101 : vector<2x128xf32>
    %1103 = vector.extract_strided_slice %1102 {offsets = [0, 0], sizes = [2, 22], strides = [1, 1]} : vector<2x128xf32> to vector<2x22xf32>
    %c0_321 = arith.constant 0 : index
    %c0_322 = arith.constant 0 : index
    %1104 = vector.load %arg21[%c0_321, %c0_322] : memref<4x22xf32, #tpu.memory_space<vmem>>, vector<2x22xf32>
    tpu.vector_store %arg21[%c0_321, %c0_322], %1103 {strides = array<i32>} : memref<4x22xf32, #tpu.memory_space<vmem>>, vector<2x22xf32>,
    %1105 = vector.extract_strided_slice %1102 {offsets = [0, 32], sizes = [2, 22], strides = [1, 1]} : vector<2x128xf32> to vector<2x22xf32>
    %c2_323 = arith.constant 2 : index
    %c0_324 = arith.constant 0 : index
    %1106 = vector.load %arg21[%c2_323, %c0_324] : memref<4x22xf32, #tpu.memory_space<vmem>>, vector<2x22xf32>
    tpu.vector_store %arg21[%c2_323, %c0_324], %1105 {strides = array<i32>} : memref<4x22xf32, #tpu.memory_space<vmem>>, vector<2x22xf32>,
    %c0_325 = arith.constant 0 : index
    %c0_326 = arith.constant 0 : index
    %1107 = vector.load %arg21[%c0_325, %c0_326] : memref<4x22xf32, #tpu.memory_space<vmem>>, vector<4x22xf32>
    %1108 = vector.extract_strided_slice %1107 {offsets = [0, 0], sizes = [4, 16], strides = [1, 1]} : vector<4x22xf32> to vector<4x16xf32>
    %1109 = vector.extract_strided_slice %1107 {offsets = [0, 16], sizes = [4, 6], strides = [1, 1]} : vector<4x22xf32> to vector<4x6xf32>
    %cst_327 = arith.constant 0.000000e+00 : f32
    %1110 = vector.broadcast %cst_327 : f32 to vector<4x6xf32>
    %1111 = arith.maximumf %1109, %1110 : vector<4x6xf32>
    %1112 = math.absf %1109 : vector<4x6xf32>
    %cst_328 = arith.constant 0.000000e+00 : f32
    %1113 = vector.broadcast %cst_328 : f32 to vector<4x6xf32>
    %1114 = arith.subf %1113, %1112 : vector<4x6xf32>
    %1115 = math.exp %1114 : vector<4x6xf32>
    %cst_329 = arith.constant 1.000000e+00 : f32
    %1116 = vector.broadcast %cst_329 : f32 to vector<4x6xf32>
    %1117 = arith.addf %1116, %1115 : vector<4x6xf32>
    %1118 = math.log %1117 : vector<4x6xf32>
    %1119 = arith.addf %1111, %1118 : vector<4x6xf32>
    %1120 = vector.extract_strided_slice %1119 {offsets = [0, 0], sizes = [4, 1], strides = [1, 1]} : vector<4x6xf32> to vector<4x1xf32>
    %1121 = vector.extract_strided_slice %1119 {offsets = [0, 5], sizes = [4, 1], strides = [1, 1]} : vector<4x6xf32> to vector<4x1xf32>
    %cst_330 = arith.constant 1.000000e+00 : f32
    %1122 = vector.broadcast %cst_330 : f32 to vector<4x1xf32>
    %1123 = arith.addf %1122, %1121 : vector<4x1xf32>
    %1124 = vector.extract_strided_slice %1107 {offsets = [0, 17], sizes = [4, 1], strides = [1, 1]} : vector<4x22xf32> to vector<4x1xf32>
    %cst_331 = arith.constant 5.000000e-01 : f32
    %1125 = vector.broadcast %cst_331 : f32 to vector<4x1xf32>
    %1126 = arith.mulf %1125, %1124 : vector<4x1xf32>
    %1127 = math.tanh %1126 : vector<4x1xf32>
    %cst_332 = arith.constant 1.000000e+00 : f32
    %1128 = vector.broadcast %cst_332 : f32 to vector<4x1xf32>
    %1129 = arith.addf %1128, %1127 : vector<4x1xf32>
    %cst_333 = arith.constant 5.000000e-01 : f32
    %1130 = vector.broadcast %cst_333 : f32 to vector<4x1xf32>
    %1131 = arith.mulf %1130, %1129 : vector<4x1xf32>
    %1132 = vector.extract_strided_slice %1107 {offsets = [0, 18], sizes = [4, 3], strides = [1, 1]} : vector<4x22xf32> to vector<4x3xf32>
    %cst_334 = arith.constant dense<0xFF800000> : vector<4xf32>
    %1133 = vector.multi_reduction <maximumf>, %1132, %cst_334 [1] : vector<4x3xf32> to vector<4xf32>
    %1134 = vector.shape_cast %1133 : vector<4xf32> to vector<4x1xf32>
    %1135 = vector.broadcast %1134 : vector<4x1xf32> to vector<4x3xf32>
    %1136 = arith.subf %1132, %1135 : vector<4x3xf32>
    %1137 = math.exp %1136 : vector<4x3xf32>
    %cst_335 = arith.constant dense<0.000000e+00> : vector<4xf32>
    %1138 = vector.multi_reduction <add>, %1137, %cst_335 [1] : vector<4x3xf32> to vector<4xf32>
    %1139 = vector.shape_cast %1138 : vector<4xf32> to vector<4x1xf32>
    %1140 = vector.broadcast %1139 : vector<4x1xf32> to vector<4x3xf32>
    %1141 = arith.divf %1137, %1140 : vector<4x3xf32>
    %cst_336 = arith.constant 1.000000e-16 : f32
    %1142 = vector.broadcast %cst_336 : f32 to vector<2x16x16xf32>
    %1143 = arith.addf %1060, %1142 : vector<2x16x16xf32>
    %1144 = arith.mulf %1143, %1143 : vector<2x16x16xf32>
    %cst_337 = arith.constant dense<0.000000e+00> : vector<2x16xf32>
    %1145 = vector.multi_reduction <add>, %1144, %cst_337 [2] : vector<2x16x16xf32> to vector<2x16xf32>
    %cst_338 = arith.constant 1.000000e-16 : f32
    %1146 = vector.broadcast %cst_338 : f32 to vector<2x16xf32>
    %1147 = arith.maximumf %1145, %1146 : vector<2x16xf32>
    %1148 = math.rsqrt %1147 : vector<2x16xf32>
    %1149 = vector.shape_cast %1148 : vector<2x16xf32> to vector<2x16x1xf32>
    %1150 = vector.broadcast %1149 : vector<2x16x1xf32> to vector<2x16x16xf32>
    %1151 = arith.mulf %1143, %1150 : vector<2x16x16xf32>
    %1152 = tpu.concatenate %1151, %1151 in 0 : vector<2x16x16xf32>, vector<2x16x16xf32> -> vector<4x16x16xf32>
    %cst_339 = arith.constant 1.000000e-16 : f32
    %1153 = vector.broadcast %cst_339 : f32 to vector<4x16xf32>
    %1154 = arith.addf %1108, %1153 : vector<4x16xf32>
    %1155 = arith.mulf %1154, %1154 : vector<4x16xf32>
    %cst_340 = arith.constant dense<0.000000e+00> : vector<4xf32>
    %1156 = vector.multi_reduction <add>, %1155, %cst_340 [1] : vector<4x16xf32> to vector<4xf32>
    %1157 = vector.shape_cast %1156 : vector<4xf32> to vector<4x1xf32>
    %cst_341 = arith.constant 1.000000e-16 : f32
    %1158 = vector.broadcast %cst_341 : f32 to vector<4x1xf32>
    %1159 = arith.maximumf %1157, %1158 : vector<4x1xf32>
    %1160 = math.rsqrt %1159 : vector<4x1xf32>
    %1161 = vector.shape_cast %1154 : vector<4x16xf32> to vector<4x1x16xf32>
    %1162 = vector.broadcast %1161 : vector<4x1x16xf32> to vector<4x16x16xf32>
    %1163 = arith.mulf %1152, %1162 : vector<4x16x16xf32>
    %cst_342 = arith.constant dense<0.000000e+00> : vector<4x16xf32>
    %1164 = vector.multi_reduction <add>, %1163, %cst_342 [2] : vector<4x16x16xf32> to vector<4x16xf32>
    %1165 = vector.broadcast %1160 : vector<4x1xf32> to vector<4x16xf32>
    %1166 = arith.mulf %1164, %1165 : vector<4x16xf32>
    %1167 = vector.broadcast %1120 : vector<4x1xf32> to vector<4x16xf32>
    %1168 = arith.mulf %1167, %1166 : vector<4x16xf32>
    %cst_343 = arith.constant dense<0xFF800000> : vector<4xf32>
    %1169 = vector.multi_reduction <maximumf>, %1168, %cst_343 [1] : vector<4x16xf32> to vector<4xf32>
    %1170 = vector.shape_cast %1169 : vector<4xf32> to vector<4x1xf32>
    %1171 = vector.broadcast %1170 : vector<4x1xf32> to vector<4x16xf32>
    %1172 = arith.subf %1168, %1171 : vector<4x16xf32>
    %1173 = math.exp %1172 : vector<4x16xf32>
    %cst_344 = arith.constant dense<0.000000e+00> : vector<4xf32>
    %1174 = vector.multi_reduction <add>, %1173, %cst_344 [1] : vector<4x16xf32> to vector<4xf32>
    %1175 = vector.shape_cast %1174 : vector<4xf32> to vector<4x1xf32>
    %1176 = vector.broadcast %1175 : vector<4x1xf32> to vector<4x16xf32>
    %1177 = arith.divf %1173, %1176 : vector<4x16xf32>
    %1178 = vector.broadcast %1131 : vector<4x1xf32> to vector<4x16xf32>
    %1179 = arith.mulf %1178, %1177 : vector<4x16xf32>
    %cst_345 = arith.constant 1.000000e+00 : f32
    %1180 = vector.broadcast %cst_345 : f32 to vector<4x1xf32>
    %1181 = arith.subf %1180, %1131 : vector<4x1xf32>
    %1182 = vector.broadcast %1181 : vector<4x1xf32> to vector<4x16xf32>
    %1183 = arith.mulf %1182, %1033 : vector<4x16xf32>
    %1184 = arith.addf %1179, %1183 : vector<4x16xf32>
    %cst_346 = arith.constant dense<0.000000e+00> : vector<4x32xf32>
    %1185 = tpu.matmul %1184, %7, %cst_346 {dimension_numbers = #tpu.dot_dimension_numbers<[1], [0], [0], [1], [0, 0, 1, 1], [], []>} : vector<4x16xf32>, vector<16x32xf32>, vector<4x32xf32> -> vector<4x32xf32>
    %1186 = vector.extract_strided_slice %1185 {offsets = [0, 0], sizes = [4, 16], strides = [1, 1]} : vector<4x32xf32> to vector<4x16xf32>
    %1187 = vector.extract_strided_slice %1141 {offsets = [0, 0], sizes = [4, 1], strides = [1, 1]} : vector<4x3xf32> to vector<4x1xf32>
    %1188 = vector.broadcast %1187 : vector<4x1xf32> to vector<4x16xf32>
    %1189 = arith.mulf %1186, %1188 : vector<4x16xf32>
    %1190 = vector.extract_strided_slice %1141 {offsets = [0, 1], sizes = [4, 1], strides = [1, 1]} : vector<4x3xf32> to vector<4x1xf32>
    %1191 = vector.broadcast %1190 : vector<4x1xf32> to vector<4x16xf32>
    %1192 = arith.mulf %1184, %1191 : vector<4x16xf32>
    %1193 = arith.addf %1189, %1192 : vector<4x16xf32>
    %1194 = vector.extract_strided_slice %1185 {offsets = [0, 16], sizes = [4, 16], strides = [1, 1]} : vector<4x32xf32> to vector<4x16xf32>
    %1195 = vector.extract_strided_slice %1141 {offsets = [0, 2], sizes = [4, 1], strides = [1, 1]} : vector<4x3xf32> to vector<4x1xf32>
    %1196 = vector.broadcast %1195 : vector<4x1xf32> to vector<4x16xf32>
    %1197 = arith.mulf %1194, %1196 : vector<4x16xf32>
    %1198 = arith.addf %1193, %1197 : vector<4x16xf32>
    %cst_347 = arith.constant 1.000000e-30 : f32
    %1199 = vector.broadcast %cst_347 : f32 to vector<4x16xf32>
    %1200 = arith.maximumf %1198, %1199 : vector<4x16xf32>
    %1201 = math.log %1200 : vector<4x16xf32>
    %1202 = vector.broadcast %1123 : vector<4x1xf32> to vector<4x16xf32>
    %1203 = arith.mulf %1202, %1201 : vector<4x16xf32>
    %1204 = math.exp %1203 : vector<4x16xf32>
    %cst_348 = arith.constant dense<0.000000e+00> : vector<4xf32>
    %1205 = vector.multi_reduction <add>, %1204, %cst_348 [1] : vector<4x16xf32> to vector<4xf32>
    %1206 = vector.shape_cast %1205 : vector<4xf32> to vector<4x1xf32>
    %cst_349 = arith.constant 1.000000e-16 : f32
    %1207 = vector.broadcast %cst_349 : f32 to vector<4x1xf32>
    %1208 = arith.addf %1206, %1207 : vector<4x1xf32>
    %1209 = vector.broadcast %1208 : vector<4x1xf32> to vector<4x16xf32>
    %1210 = arith.divf %1204, %1209 : vector<4x16xf32>
    %1211 = vector.shape_cast %1210 : vector<4x16xf32> to vector<4x16x1xf32>
    %1212 = vector.extract_strided_slice %1211 {offsets = [0, 0, 0], sizes = [2, 16, 1], strides = [1, 1, 1]} : vector<4x16x1xf32> to vector<2x16x1xf32>
    %1213 = vector.broadcast %1212 : vector<2x16x1xf32> to vector<2x16x16xf32>
    %1214 = arith.mulf %1213, %1060 : vector<2x16x16xf32>
    %cst_350 = arith.constant dense<0.000000e+00> : vector<2x16xf32>
    %1215 = vector.multi_reduction <add>, %1214, %cst_350 [1] : vector<2x16x16xf32> to vector<2x16xf32>
    %1216 = vector.extract_strided_slice %1102 {offsets = [0, 54], sizes = [2, 16], strides = [1, 1]} : vector<2x128xf32> to vector<2x16xf32>
    %cst_351 = arith.constant 5.000000e-01 : f32
    %1217 = vector.broadcast %cst_351 : f32 to vector<2x16xf32>
    %1218 = arith.mulf %1217, %1216 : vector<2x16xf32>
    %1219 = math.tanh %1218 : vector<2x16xf32>
    %cst_352 = arith.constant 1.000000e+00 : f32
    %1220 = vector.broadcast %cst_352 : f32 to vector<2x16xf32>
    %1221 = arith.addf %1220, %1219 : vector<2x16xf32>
    %cst_353 = arith.constant 5.000000e-01 : f32
    %1222 = vector.broadcast %cst_353 : f32 to vector<2x16xf32>
    %1223 = arith.mulf %1222, %1221 : vector<2x16xf32>
    %1224 = vector.extract_strided_slice %1102 {offsets = [0, 70], sizes = [2, 16], strides = [1, 1]} : vector<2x128xf32> to vector<2x16xf32>
    %1225 = vector.extract_strided_slice %1211 {offsets = [2, 0, 0], sizes = [2, 16, 1], strides = [1, 1, 1]} : vector<4x16x1xf32> to vector<2x16x1xf32>
    %1226 = vector.shape_cast %1223 : vector<2x16xf32> to vector<2x1x16xf32>
    %1227 = vector.broadcast %1225 : vector<2x16x1xf32> to vector<2x16x16xf32>
    %1228 = vector.broadcast %1226 : vector<2x1x16xf32> to vector<2x16x16xf32>
    %1229 = arith.mulf %1227, %1228 : vector<2x16x16xf32>
    %cst_354 = arith.constant 1.000000e+00 : f32
    %1230 = vector.broadcast %cst_354 : f32 to vector<2x16x16xf32>
    %1231 = arith.subf %1230, %1229 : vector<2x16x16xf32>
    %1232 = arith.mulf %1060, %1231 : vector<2x16x16xf32>
    %1233 = vector.shape_cast %1224 : vector<2x16xf32> to vector<2x1x16xf32>
    %1234 = vector.broadcast %1225 : vector<2x16x1xf32> to vector<2x16x16xf32>
    %1235 = vector.broadcast %1233 : vector<2x1x16xf32> to vector<2x16x16xf32>
    %1236 = arith.mulf %1234, %1235 : vector<2x16x16xf32>
    %1237 = arith.addf %1232, %1236 : vector<2x16x16xf32>
    %cst_355 = arith.constant dense<0.000000e+00> : vector<2x128xf32>
    %1238 = tpu.matmul %1099, %4, %cst_355 {dimension_numbers = #tpu.dot_dimension_numbers<[1], [0], [0], [1], [0, 0, 1, 1], [], []>} : vector<2x32xbf16>, vector<32x128xbf16>, vector<2x128xf32> -> vector<2x128xf32>
    %1239 = arith.truncf %1215 : vector<2x16xf32> to vector<2x16xbf16>
    %cst_356 = arith.constant dense<0.000000e+00> : vector<2x128xf32>
    %1240 = tpu.matmul %1239, %5, %cst_356 {dimension_numbers = #tpu.dot_dimension_numbers<[1], [0], [0], [1], [0, 0, 1, 1], [], []>} : vector<2x16xbf16>, vector<16x128xbf16>, vector<2x128xf32> -> vector<2x128xf32>
    %1241 = arith.addf %1238, %1240 : vector<2x128xf32>
    %1242 = vector.broadcast %6 : vector<1x128xf32> to vector<2x128xf32>
    %1243 = arith.addf %1241, %1242 : vector<2x128xf32>
    %cst_357 = arith.constant 5.000000e-01 : f32
    %1244 = vector.broadcast %cst_357 : f32 to vector<2x128xf32>
    %1245 = arith.mulf %1244, %1243 : vector<2x128xf32>
    %1246 = math.tanh %1245 : vector<2x128xf32>
    %cst_358 = arith.constant 1.000000e+00 : f32
    %1247 = vector.broadcast %cst_358 : f32 to vector<2x128xf32>
    %1248 = arith.addf %1247, %1246 : vector<2x128xf32>
    %cst_359 = arith.constant 5.000000e-01 : f32
    %1249 = vector.broadcast %cst_359 : f32 to vector<2x128xf32>
    %1250 = arith.mulf %1249, %1248 : vector<2x128xf32>
    %c12_360 = arith.constant 12 : index
    %c0_361 = arith.constant 0 : index
    %1251 = vector.load %arg14[%c12_360, %c0_361] : memref<16x128xf32, #tpu.memory_space<vmem>>, vector<2x128xf32>
    tpu.vector_store %arg14[%c12_360, %c0_361], %1250 {strides = array<i32>} : memref<16x128xf32, #tpu.memory_space<vmem>>, vector<2x128xf32>,
    %c14 = arith.constant 14 : index
    %c0_362 = arith.constant 0 : index
    %1252 = vector.load %arg0[%c14, %c0_362] : memref<16x128xf32, #tpu.memory_space<vmem>>, vector<2x128xf32>
    %1253 = arith.truncf %1215 : vector<2x16xf32> to vector<2x16xbf16>
    %cst_363 = arith.constant dense<0.000000e+00> : vector<2x128xf32>
    %1254 = tpu.matmul %1253, %0, %cst_363 {dimension_numbers = #tpu.dot_dimension_numbers<[1], [0], [0], [1], [0, 0, 1, 1], [], []>} : vector<2x16xbf16>, vector<16x128xbf16>, vector<2x128xf32> -> vector<2x128xf32>
    %1255 = arith.addf %1252, %1254 : vector<2x128xf32>
    %1256 = arith.truncf %1098 : vector<2x32xf32> to vector<2x32xbf16>
    %cst_364 = arith.constant dense<0.000000e+00> : vector<2x128xf32>
    %1257 = tpu.matmul %1256, %1, %cst_364 {dimension_numbers = #tpu.dot_dimension_numbers<[1], [0], [0], [1], [0, 0, 1, 1], [], []>} : vector<2x32xbf16>, vector<32x128xbf16>, vector<2x128xf32> -> vector<2x128xf32>
    %1258 = arith.addf %1255, %1257 : vector<2x128xf32>
    %cst_365 = arith.constant 5.000000e-01 : f32
    %1259 = vector.broadcast %cst_365 : f32 to vector<2x128xf32>
    %1260 = arith.mulf %1259, %1258 : vector<2x128xf32>
    %1261 = math.tanh %1260 : vector<2x128xf32>
    %cst_366 = arith.constant 1.000000e+00 : f32
    %1262 = vector.broadcast %cst_366 : f32 to vector<2x128xf32>
    %1263 = arith.addf %1262, %1261 : vector<2x128xf32>
    %cst_367 = arith.constant 5.000000e-01 : f32
    %1264 = vector.broadcast %cst_367 : f32 to vector<2x128xf32>
    %1265 = arith.mulf %1264, %1263 : vector<2x128xf32>
    %1266 = math.tanh %1258 : vector<2x128xf32>
    %1267 = vector.extract_strided_slice %1265 {offsets = [0, 0], sizes = [2, 32], strides = [1, 1]} : vector<2x128xf32> to vector<2x32xf32>
    %1268 = vector.extract_strided_slice %1265 {offsets = [0, 32], sizes = [2, 32], strides = [1, 1]} : vector<2x128xf32> to vector<2x32xf32>
    %1269 = vector.extract_strided_slice %1266 {offsets = [0, 64], sizes = [2, 32], strides = [1, 1]} : vector<2x128xf32> to vector<2x32xf32>
    %1270 = vector.extract_strided_slice %1265 {offsets = [0, 96], sizes = [2, 32], strides = [1, 1]} : vector<2x128xf32> to vector<2x32xf32>
    %1271 = arith.mulf %1268, %1096 : vector<2x32xf32>
    %1272 = arith.mulf %1267, %1269 : vector<2x32xf32>
    %1273 = arith.addf %1271, %1272 : vector<2x32xf32>
    %1274 = math.tanh %1273 : vector<2x32xf32>
    %1275 = arith.mulf %1270, %1274 : vector<2x32xf32>
    %1276 = arith.truncf %1275 : vector<2x32xf32> to vector<2x32xbf16>
    %cst_368 = arith.constant dense<0.000000e+00> : vector<2x128xf32>
    %1277 = tpu.matmul %1276, %2, %cst_368 {dimension_numbers = #tpu.dot_dimension_numbers<[1], [0], [0], [1], [0, 0, 1, 1], [], []>} : vector<2x32xbf16>, vector<32x128xbf16>, vector<2x128xf32> -> vector<2x128xf32>
    %1278 = vector.broadcast %3 : vector<1x128xf32> to vector<2x128xf32>
    %1279 = arith.addf %1277, %1278 : vector<2x128xf32>
    %1280 = vector.extract_strided_slice %1279 {offsets = [0, 0], sizes = [2, 22], strides = [1, 1]} : vector<2x128xf32> to vector<2x22xf32>
    %c0_369 = arith.constant 0 : index
    %c0_370 = arith.constant 0 : index
    %1281 = vector.load %arg21[%c0_369, %c0_370] : memref<4x22xf32, #tpu.memory_space<vmem>>, vector<2x22xf32>
    tpu.vector_store %arg21[%c0_369, %c0_370], %1280 {strides = array<i32>} : memref<4x22xf32, #tpu.memory_space<vmem>>, vector<2x22xf32>,
    %1282 = vector.extract_strided_slice %1279 {offsets = [0, 32], sizes = [2, 22], strides = [1, 1]} : vector<2x128xf32> to vector<2x22xf32>
    %c2_371 = arith.constant 2 : index
    %c0_372 = arith.constant 0 : index
    %1283 = vector.load %arg21[%c2_371, %c0_372] : memref<4x22xf32, #tpu.memory_space<vmem>>, vector<2x22xf32>
    tpu.vector_store %arg21[%c2_371, %c0_372], %1282 {strides = array<i32>} : memref<4x22xf32, #tpu.memory_space<vmem>>, vector<2x22xf32>,
    %c0_373 = arith.constant 0 : index
    %c0_374 = arith.constant 0 : index
    %1284 = vector.load %arg21[%c0_373, %c0_374] : memref<4x22xf32, #tpu.memory_space<vmem>>, vector<4x22xf32>
    %1285 = vector.extract_strided_slice %1284 {offsets = [0, 0], sizes = [4, 16], strides = [1, 1]} : vector<4x22xf32> to vector<4x16xf32>
    %1286 = vector.extract_strided_slice %1284 {offsets = [0, 16], sizes = [4, 6], strides = [1, 1]} : vector<4x22xf32> to vector<4x6xf32>
    %cst_375 = arith.constant 0.000000e+00 : f32
    %1287 = vector.broadcast %cst_375 : f32 to vector<4x6xf32>
    %1288 = arith.maximumf %1286, %1287 : vector<4x6xf32>
    %1289 = math.absf %1286 : vector<4x6xf32>
    %cst_376 = arith.constant 0.000000e+00 : f32
    %1290 = vector.broadcast %cst_376 : f32 to vector<4x6xf32>
    %1291 = arith.subf %1290, %1289 : vector<4x6xf32>
    %1292 = math.exp %1291 : vector<4x6xf32>
    %cst_377 = arith.constant 1.000000e+00 : f32
    %1293 = vector.broadcast %cst_377 : f32 to vector<4x6xf32>
    %1294 = arith.addf %1293, %1292 : vector<4x6xf32>
    %1295 = math.log %1294 : vector<4x6xf32>
    %1296 = arith.addf %1288, %1295 : vector<4x6xf32>
    %1297 = vector.extract_strided_slice %1296 {offsets = [0, 0], sizes = [4, 1], strides = [1, 1]} : vector<4x6xf32> to vector<4x1xf32>
    %1298 = vector.extract_strided_slice %1296 {offsets = [0, 5], sizes = [4, 1], strides = [1, 1]} : vector<4x6xf32> to vector<4x1xf32>
    %cst_378 = arith.constant 1.000000e+00 : f32
    %1299 = vector.broadcast %cst_378 : f32 to vector<4x1xf32>
    %1300 = arith.addf %1299, %1298 : vector<4x1xf32>
    %1301 = vector.extract_strided_slice %1284 {offsets = [0, 17], sizes = [4, 1], strides = [1, 1]} : vector<4x22xf32> to vector<4x1xf32>
    %cst_379 = arith.constant 5.000000e-01 : f32
    %1302 = vector.broadcast %cst_379 : f32 to vector<4x1xf32>
    %1303 = arith.mulf %1302, %1301 : vector<4x1xf32>
    %1304 = math.tanh %1303 : vector<4x1xf32>
    %cst_380 = arith.constant 1.000000e+00 : f32
    %1305 = vector.broadcast %cst_380 : f32 to vector<4x1xf32>
    %1306 = arith.addf %1305, %1304 : vector<4x1xf32>
    %cst_381 = arith.constant 5.000000e-01 : f32
    %1307 = vector.broadcast %cst_381 : f32 to vector<4x1xf32>
    %1308 = arith.mulf %1307, %1306 : vector<4x1xf32>
    %1309 = vector.extract_strided_slice %1284 {offsets = [0, 18], sizes = [4, 3], strides = [1, 1]} : vector<4x22xf32> to vector<4x3xf32>
    %cst_382 = arith.constant dense<0xFF800000> : vector<4xf32>
    %1310 = vector.multi_reduction <maximumf>, %1309, %cst_382 [1] : vector<4x3xf32> to vector<4xf32>
    %1311 = vector.shape_cast %1310 : vector<4xf32> to vector<4x1xf32>
    %1312 = vector.broadcast %1311 : vector<4x1xf32> to vector<4x3xf32>
    %1313 = arith.subf %1309, %1312 : vector<4x3xf32>
    %1314 = math.exp %1313 : vector<4x3xf32>
    %cst_383 = arith.constant dense<0.000000e+00> : vector<4xf32>
    %1315 = vector.multi_reduction <add>, %1314, %cst_383 [1] : vector<4x3xf32> to vector<4xf32>
    %1316 = vector.shape_cast %1315 : vector<4xf32> to vector<4x1xf32>
    %1317 = vector.broadcast %1316 : vector<4x1xf32> to vector<4x3xf32>
    %1318 = arith.divf %1314, %1317 : vector<4x3xf32>
    %cst_384 = arith.constant 1.000000e-16 : f32
    %1319 = vector.broadcast %cst_384 : f32 to vector<2x16x16xf32>
    %1320 = arith.addf %1237, %1319 : vector<2x16x16xf32>
    %1321 = arith.mulf %1320, %1320 : vector<2x16x16xf32>
    %cst_385 = arith.constant dense<0.000000e+00> : vector<2x16xf32>
    %1322 = vector.multi_reduction <add>, %1321, %cst_385 [2] : vector<2x16x16xf32> to vector<2x16xf32>
    %cst_386 = arith.constant 1.000000e-16 : f32
    %1323 = vector.broadcast %cst_386 : f32 to vector<2x16xf32>
    %1324 = arith.maximumf %1322, %1323 : vector<2x16xf32>
    %1325 = math.rsqrt %1324 : vector<2x16xf32>
    %1326 = vector.shape_cast %1325 : vector<2x16xf32> to vector<2x16x1xf32>
    %1327 = vector.broadcast %1326 : vector<2x16x1xf32> to vector<2x16x16xf32>
    %1328 = arith.mulf %1320, %1327 : vector<2x16x16xf32>
    %1329 = tpu.concatenate %1328, %1328 in 0 : vector<2x16x16xf32>, vector<2x16x16xf32> -> vector<4x16x16xf32>
    %cst_387 = arith.constant 1.000000e-16 : f32
    %1330 = vector.broadcast %cst_387 : f32 to vector<4x16xf32>
    %1331 = arith.addf %1285, %1330 : vector<4x16xf32>
    %1332 = arith.mulf %1331, %1331 : vector<4x16xf32>
    %cst_388 = arith.constant dense<0.000000e+00> : vector<4xf32>
    %1333 = vector.multi_reduction <add>, %1332, %cst_388 [1] : vector<4x16xf32> to vector<4xf32>
    %1334 = vector.shape_cast %1333 : vector<4xf32> to vector<4x1xf32>
    %cst_389 = arith.constant 1.000000e-16 : f32
    %1335 = vector.broadcast %cst_389 : f32 to vector<4x1xf32>
    %1336 = arith.maximumf %1334, %1335 : vector<4x1xf32>
    %1337 = math.rsqrt %1336 : vector<4x1xf32>
    %1338 = vector.shape_cast %1331 : vector<4x16xf32> to vector<4x1x16xf32>
    %1339 = vector.broadcast %1338 : vector<4x1x16xf32> to vector<4x16x16xf32>
    %1340 = arith.mulf %1329, %1339 : vector<4x16x16xf32>
    %cst_390 = arith.constant dense<0.000000e+00> : vector<4x16xf32>
    %1341 = vector.multi_reduction <add>, %1340, %cst_390 [2] : vector<4x16x16xf32> to vector<4x16xf32>
    %1342 = vector.broadcast %1337 : vector<4x1xf32> to vector<4x16xf32>
    %1343 = arith.mulf %1341, %1342 : vector<4x16xf32>
    %1344 = vector.broadcast %1297 : vector<4x1xf32> to vector<4x16xf32>
    %1345 = arith.mulf %1344, %1343 : vector<4x16xf32>
    %cst_391 = arith.constant dense<0xFF800000> : vector<4xf32>
    %1346 = vector.multi_reduction <maximumf>, %1345, %cst_391 [1] : vector<4x16xf32> to vector<4xf32>
    %1347 = vector.shape_cast %1346 : vector<4xf32> to vector<4x1xf32>
    %1348 = vector.broadcast %1347 : vector<4x1xf32> to vector<4x16xf32>
    %1349 = arith.subf %1345, %1348 : vector<4x16xf32>
    %1350 = math.exp %1349 : vector<4x16xf32>
    %cst_392 = arith.constant dense<0.000000e+00> : vector<4xf32>
    %1351 = vector.multi_reduction <add>, %1350, %cst_392 [1] : vector<4x16xf32> to vector<4xf32>
    %1352 = vector.shape_cast %1351 : vector<4xf32> to vector<4x1xf32>
    %1353 = vector.broadcast %1352 : vector<4x1xf32> to vector<4x16xf32>
    %1354 = arith.divf %1350, %1353 : vector<4x16xf32>
    %1355 = vector.broadcast %1308 : vector<4x1xf32> to vector<4x16xf32>
    %1356 = arith.mulf %1355, %1354 : vector<4x16xf32>
    %cst_393 = arith.constant 1.000000e+00 : f32
    %1357 = vector.broadcast %cst_393 : f32 to vector<4x1xf32>
    %1358 = arith.subf %1357, %1308 : vector<4x1xf32>
    %1359 = vector.broadcast %1358 : vector<4x1xf32> to vector<4x16xf32>
    %1360 = arith.mulf %1359, %1210 : vector<4x16xf32>
    %1361 = arith.addf %1356, %1360 : vector<4x16xf32>
    %cst_394 = arith.constant dense<0.000000e+00> : vector<4x32xf32>
    %1362 = tpu.matmul %1361, %7, %cst_394 {dimension_numbers = #tpu.dot_dimension_numbers<[1], [0], [0], [1], [0, 0, 1, 1], [], []>} : vector<4x16xf32>, vector<16x32xf32>, vector<4x32xf32> -> vector<4x32xf32>
    %1363 = vector.extract_strided_slice %1362 {offsets = [0, 0], sizes = [4, 16], strides = [1, 1]} : vector<4x32xf32> to vector<4x16xf32>
    %1364 = vector.extract_strided_slice %1318 {offsets = [0, 0], sizes = [4, 1], strides = [1, 1]} : vector<4x3xf32> to vector<4x1xf32>
    %1365 = vector.broadcast %1364 : vector<4x1xf32> to vector<4x16xf32>
    %1366 = arith.mulf %1363, %1365 : vector<4x16xf32>
    %1367 = vector.extract_strided_slice %1318 {offsets = [0, 1], sizes = [4, 1], strides = [1, 1]} : vector<4x3xf32> to vector<4x1xf32>
    %1368 = vector.broadcast %1367 : vector<4x1xf32> to vector<4x16xf32>
    %1369 = arith.mulf %1361, %1368 : vector<4x16xf32>
    %1370 = arith.addf %1366, %1369 : vector<4x16xf32>
    %1371 = vector.extract_strided_slice %1362 {offsets = [0, 16], sizes = [4, 16], strides = [1, 1]} : vector<4x32xf32> to vector<4x16xf32>
    %1372 = vector.extract_strided_slice %1318 {offsets = [0, 2], sizes = [4, 1], strides = [1, 1]} : vector<4x3xf32> to vector<4x1xf32>
    %1373 = vector.broadcast %1372 : vector<4x1xf32> to vector<4x16xf32>
    %1374 = arith.mulf %1371, %1373 : vector<4x16xf32>
    %1375 = arith.addf %1370, %1374 : vector<4x16xf32>
    %cst_395 = arith.constant 1.000000e-30 : f32
    %1376 = vector.broadcast %cst_395 : f32 to vector<4x16xf32>
    %1377 = arith.maximumf %1375, %1376 : vector<4x16xf32>
    %1378 = math.log %1377 : vector<4x16xf32>
    %1379 = vector.broadcast %1300 : vector<4x1xf32> to vector<4x16xf32>
    %1380 = arith.mulf %1379, %1378 : vector<4x16xf32>
    %1381 = math.exp %1380 : vector<4x16xf32>
    %cst_396 = arith.constant dense<0.000000e+00> : vector<4xf32>
    %1382 = vector.multi_reduction <add>, %1381, %cst_396 [1] : vector<4x16xf32> to vector<4xf32>
    %1383 = vector.shape_cast %1382 : vector<4xf32> to vector<4x1xf32>
    %cst_397 = arith.constant 1.000000e-16 : f32
    %1384 = vector.broadcast %cst_397 : f32 to vector<4x1xf32>
    %1385 = arith.addf %1383, %1384 : vector<4x1xf32>
    %1386 = vector.broadcast %1385 : vector<4x1xf32> to vector<4x16xf32>
    %1387 = arith.divf %1381, %1386 : vector<4x16xf32>
    %1388 = vector.shape_cast %1387 : vector<4x16xf32> to vector<4x16x1xf32>
    %1389 = vector.extract_strided_slice %1388 {offsets = [0, 0, 0], sizes = [2, 16, 1], strides = [1, 1, 1]} : vector<4x16x1xf32> to vector<2x16x1xf32>
    %1390 = vector.broadcast %1389 : vector<2x16x1xf32> to vector<2x16x16xf32>
    %1391 = arith.mulf %1390, %1237 : vector<2x16x16xf32>
    %cst_398 = arith.constant dense<0.000000e+00> : vector<2x16xf32>
    %1392 = vector.multi_reduction <add>, %1391, %cst_398 [1] : vector<2x16x16xf32> to vector<2x16xf32>
    %1393 = vector.extract_strided_slice %1279 {offsets = [0, 54], sizes = [2, 16], strides = [1, 1]} : vector<2x128xf32> to vector<2x16xf32>
    %cst_399 = arith.constant 5.000000e-01 : f32
    %1394 = vector.broadcast %cst_399 : f32 to vector<2x16xf32>
    %1395 = arith.mulf %1394, %1393 : vector<2x16xf32>
    %1396 = math.tanh %1395 : vector<2x16xf32>
    %cst_400 = arith.constant 1.000000e+00 : f32
    %1397 = vector.broadcast %cst_400 : f32 to vector<2x16xf32>
    %1398 = arith.addf %1397, %1396 : vector<2x16xf32>
    %cst_401 = arith.constant 5.000000e-01 : f32
    %1399 = vector.broadcast %cst_401 : f32 to vector<2x16xf32>
    %1400 = arith.mulf %1399, %1398 : vector<2x16xf32>
    %1401 = vector.extract_strided_slice %1279 {offsets = [0, 70], sizes = [2, 16], strides = [1, 1]} : vector<2x128xf32> to vector<2x16xf32>
    %1402 = vector.extract_strided_slice %1388 {offsets = [2, 0, 0], sizes = [2, 16, 1], strides = [1, 1, 1]} : vector<4x16x1xf32> to vector<2x16x1xf32>
    %1403 = vector.shape_cast %1400 : vector<2x16xf32> to vector<2x1x16xf32>
    %1404 = vector.broadcast %1402 : vector<2x16x1xf32> to vector<2x16x16xf32>
    %1405 = vector.broadcast %1403 : vector<2x1x16xf32> to vector<2x16x16xf32>
    %1406 = arith.mulf %1404, %1405 : vector<2x16x16xf32>
    %cst_402 = arith.constant 1.000000e+00 : f32
    %1407 = vector.broadcast %cst_402 : f32 to vector<2x16x16xf32>
    %1408 = arith.subf %1407, %1406 : vector<2x16x16xf32>
    %1409 = arith.mulf %1237, %1408 : vector<2x16x16xf32>
    %1410 = vector.shape_cast %1401 : vector<2x16xf32> to vector<2x1x16xf32>
    %1411 = vector.broadcast %1402 : vector<2x16x1xf32> to vector<2x16x16xf32>
    %1412 = vector.broadcast %1410 : vector<2x1x16xf32> to vector<2x16x16xf32>
    %1413 = arith.mulf %1411, %1412 : vector<2x16x16xf32>
    %1414 = arith.addf %1409, %1413 : vector<2x16x16xf32>
    %cst_403 = arith.constant dense<0.000000e+00> : vector<2x128xf32>
    %1415 = tpu.matmul %1276, %4, %cst_403 {dimension_numbers = #tpu.dot_dimension_numbers<[1], [0], [0], [1], [0, 0, 1, 1], [], []>} : vector<2x32xbf16>, vector<32x128xbf16>, vector<2x128xf32> -> vector<2x128xf32>
    %1416 = arith.truncf %1392 : vector<2x16xf32> to vector<2x16xbf16>
    %cst_404 = arith.constant dense<0.000000e+00> : vector<2x128xf32>
    %1417 = tpu.matmul %1416, %5, %cst_404 {dimension_numbers = #tpu.dot_dimension_numbers<[1], [0], [0], [1], [0, 0, 1, 1], [], []>} : vector<2x16xbf16>, vector<16x128xbf16>, vector<2x128xf32> -> vector<2x128xf32>
    %1418 = arith.addf %1415, %1417 : vector<2x128xf32>
    %1419 = vector.broadcast %6 : vector<1x128xf32> to vector<2x128xf32>
    %1420 = arith.addf %1418, %1419 : vector<2x128xf32>
    %cst_405 = arith.constant 5.000000e-01 : f32
    %1421 = vector.broadcast %cst_405 : f32 to vector<2x128xf32>
    %1422 = arith.mulf %1421, %1420 : vector<2x128xf32>
    %1423 = math.tanh %1422 : vector<2x128xf32>
    %cst_406 = arith.constant 1.000000e+00 : f32
    %1424 = vector.broadcast %cst_406 : f32 to vector<2x128xf32>
    %1425 = arith.addf %1424, %1423 : vector<2x128xf32>
    %cst_407 = arith.constant 5.000000e-01 : f32
    %1426 = vector.broadcast %cst_407 : f32 to vector<2x128xf32>
    %1427 = arith.mulf %1426, %1425 : vector<2x128xf32>
    %c14_408 = arith.constant 14 : index
    %c0_409 = arith.constant 0 : index
    %1428 = vector.load %arg14[%c14_408, %c0_409] : memref<16x128xf32, #tpu.memory_space<vmem>>, vector<2x128xf32>
    tpu.vector_store %arg14[%c14_408, %c0_409], %1427 {strides = array<i32>} : memref<16x128xf32, #tpu.memory_space<vmem>>, vector<2x128xf32>,
    %c0_410 = arith.constant 0 : index
    %c0_411 = arith.constant 0 : index
    %1429 = vector.load %arg16[%c0_410, %c0_411] : memref<2x32xf32, #tpu.memory_space<vmem>>, vector<2x32xf32>
    tpu.vector_store %arg16[%c0_410, %c0_411], %1275 {strides = array<i32>} : memref<2x32xf32, #tpu.memory_space<vmem>>, vector<2x32xf32>,
    %c0_412 = arith.constant 0 : index
    %c0_413 = arith.constant 0 : index
    %1430 = vector.load %arg17[%c0_412, %c0_413] : memref<2x32xf32, #tpu.memory_space<vmem>>, vector<2x32xf32>
    tpu.vector_store %arg17[%c0_412, %c0_413], %1273 {strides = array<i32>} : memref<2x32xf32, #tpu.memory_space<vmem>>, vector<2x32xf32>,
    %c0_414 = arith.constant 0 : index
    %c0_415 = arith.constant 0 : index
    %1431 = vector.load %arg15[%c0_414, %c0_415] : memref<2x16xf32, #tpu.memory_space<vmem>>, vector<2x16xf32>
    tpu.vector_store %arg15[%c0_414, %c0_415], %1392 {strides = array<i32>} : memref<2x16xf32, #tpu.memory_space<vmem>>, vector<2x16xf32>,
    %1432 = vector.extract_strided_slice %1387 {offsets = [0, 0], sizes = [2, 16], strides = [1, 1]} : vector<4x16xf32> to vector<2x16xf32>
    %c0_416 = arith.constant 0 : index
    %c0_417 = arith.constant 0 : index
    %1433 = vector.load %arg18[%c0_416, %c0_417] : memref<2x16xf32, #tpu.memory_space<vmem>>, vector<2x16xf32>
    tpu.vector_store %arg18[%c0_416, %c0_417], %1432 {strides = array<i32>} : memref<2x16xf32, #tpu.memory_space<vmem>>, vector<2x16xf32>,
    %1434 = vector.extract_strided_slice %1387 {offsets = [2, 0], sizes = [2, 16], strides = [1, 1]} : vector<4x16xf32> to vector<2x16xf32>
    %c0_418 = arith.constant 0 : index
    %c0_419 = arith.constant 0 : index
    %1435 = vector.load %arg19[%c0_418, %c0_419] : memref<2x16xf32, #tpu.memory_space<vmem>>, vector<2x16xf32>
    tpu.vector_store %arg19[%c0_418, %c0_419], %1434 {strides = array<i32>} : memref<2x16xf32, #tpu.memory_space<vmem>>, vector<2x16xf32>,
    %c0_420 = arith.constant 0 : index
    %c0_421 = arith.constant 0 : index
    %c0_422 = arith.constant 0 : index
    %1436 = vector.load %arg20[%c0_420, %c0_421, %c0_422] : memref<2x16x16xf32, #tpu.memory_space<vmem>>, vector<2x16x16xf32>
    tpu.vector_store %arg20[%c0_420, %c0_421, %c0_422], %1414 {strides = array<i32>} : memref<2x16x16xf32, #tpu.memory_space<vmem>>, vector<2x16x16xf32>,
    return
  }
}

</mosaic_0001>

<bundles_post_ra>
// kernel: ntm_unroll.1
= control target key start
LH: loop header
LB: loop body
LE: loop exit
PB: predicated region body
PF: predicated region fallthrough
CT: control target
= control target key end

     0   :  { %s10179_s0 = inlined_call_operand.vmem [shape: f32[16,128], index: 0, kind: input, shape index: {}]   ;;  %s10180_s1 = inlined_call_operand.vmem [shape: f32[2,16], index: 1, kind: input, shape index: {}]   ;;  %s10181_s2 = inlined_call_operand.vmem [shape: f32[2,32], index: 2, kind: input, shape index: {}]   ;;  %s10182_s3 = inlined_call_operand.vmem [shape: f32[2,32], index: 3, kind: input, shape index: {}]   ;;  %s10183_s4 = inlined_call_operand.vmem [shape: f32[4,16], index: 4, kind: input, shape index: {}]   ;;  %s10184_s5 = inlined_call_operand.vmem [shape: f32[2,16,16], index: 5, kind: input, shape index: {}]   ;;  %s10185_s6 = inlined_call_operand.vmem [shape: bf16[16,128], index: 6, kind: input, shape index: {}]   ;;  %s10186_s7 = inlined_call_operand.vmem [shape: bf16[32,128], index: 7, kind: input, shape index: {}]   ;;  %s10187_s8 = inlined_call_operand.vmem [shape: bf16[32,128], index: 8, kind: input, shape index: {}]   ;;  %s10188_s9 = inlined_call_operand.vmem [shape: f32[1,128], index: 9, kind: input, shape index: {}]   ;;  %s10189_s10 = inlined_call_operand.vmem [shape: bf16[32,128], index: 10, kind: input, shape index: {}]   ;;  %s10190_s11 = inlined_call_operand.vmem [shape: bf16[16,128], index: 11, kind: input, shape index: {}]   ;;  %s10191_s12 = inlined_call_operand.vmem [shape: f32[1,128], index: 12, kind: input, shape index: {}]   ;;  %s10192_s13 = inlined_call_operand.vmem [shape: f32[16,32], index: 13, kind: input, shape index: {}]   ;;  %s10193_s14 = inlined_call_operand.hbm [shape: f32[16,128], index: 14, kind: output, shape index: {0}]   ;;  %s10194_s15 = inlined_call_operand.hbm [shape: f32[2,16], index: 15, kind: output, shape index: {1}]   ;;  %s10195_s16 = inlined_call_operand.hbm [shape: f32[2,32], index: 16, kind: output, shape index: {2}]   ;;  %s10196_s17 = inlined_call_operand.hbm [shape: f32[2,32], index: 17, kind: output, shape index: {3}]   ;;  %s10197_s18 = inlined_call_operand.hbm [shape: f32[2,16], index: 18, kind: output, shape index: {4}]   ;;  %s10198_s19 = inlined_call_operand.hbm [shape: f32[2,16], index: 19, kind: output, shape index: {5}]   ;;  %s10199_s20 = inlined_call_operand.hbm [shape: f32[2,16,16], index: 20, kind: output, shape index: {6}]  }
   0x1   :  { %10201 = sst [smem:[#allocation18_spill]] %s10179_s0 }
   0x2   :  { %10202 = sst [smem:[#allocation19_spill]] %s10180_s1 }
   0x3   :  { %10203 = sst [smem:[#allocation20_spill]] %s10181_s2 }
   0x4   :  { %10204 = sst [smem:[#allocation21_spill]] %s10182_s3 }
   0x5   :  { %10205 = sst [smem:[#allocation22_spill]] %s10183_s4 }
   0x6   :  { %26 = vsyncpa [#allocation4], 0 }
   0x7   :  { %27 = vsyncpa [#allocation6], 0 }
   0x8   :  { %28 = vsyncpa [#allocation9], 0  ;;  %v8300_v0 = vld [vmem:[%s10185_s6] sm:$0xff]   ;;  %v8165_v1 = vmov 0.0   ;;  %s10206_s2 = sld [smem:[#allocation19_spill]]  ;;  %vm8166_vm0 = vmmov 0  }
   0x9   :  { %7137 = vmatprep.subr.bf16.mxu0 %v8165_v1  ;;  %7151 = vmatprep.subr.bf16.mxu1 %v8165_v1  ;;  %vm95_vm1 = vcmask 130048   ;;  %v8313_v4 = vld [vmem:[%s10186_s7] sm:$0xff]   ;;  %v8321_v5 = vld [vmem:[%s10186_s7 + $0x8] sm:$0xff]  }
   0xa   :  { %7138 = vmatpush3.bf16.msra.mxu0 %v8300_v0  ;;  %7139 = vmatprep.mubr.msk.bf16.mxu0 %vm8166_vm0, %v8165_v1 }
   0xb   :  { %7143 = vmatprep.subr.bf16.mxu0 %v8165_v1  ;;  %7155 = vmatprep.mubr.msk.bf16.mxu1 %vm8166_vm0, %v8165_v1 }
   0xe   :  { %v81_v2 = vld [vmem:[%s10206_s2] sm:$0x3] }
   0xf   :  { %v88_v3 = vpack.c.bf16 %v81_v2, %v81_v2 }
  0x11   :  { %7140 = vmatmul.mubr.msk.bf16.vlgmr.msra.gmra.mrb[0].mxu0 %vm95_vm1, %v88_v3 }
  0x12   :  { %7144 = vmatpush3.bf16.msra.mxu0 %v8313_v4  ;;  %7147 = vmatprep.mubr.msk.bf16.mxu0 %vm8166_vm0, %v8165_v1 }
  0x13   :  { %7145 = vmatprep.subr.bf16.mxu0 %v8165_v1 }
  0x14   :  { %29 = vsyncpa [#allocation12], 0  ;;  %s10207_s29 = sld [smem:[#allocation20_spill]]  ;;  %vm153_vm2 = vcmask 261120   ;;  %s10208_s21 = sld [smem:[#allocation18_spill]]  ;;  %v8351_v26 = vld [vmem:[%s10187_s8] sm:$0xff]   ;;  %v372_v63 = vlaneseq }
  0x15   :  { %s8167_s1 = smov 64   ;;  %s10209_s24 = sld [smem:[#allocation21_spill]]  ;;  %7152 = vmatpush3.bf16.msra.mxu1 %v8351_v26  ;;  %v8357_v27 = vld [vmem:[%s10187_s8 + $0x8] sm:$0xff]   ;;  %v8365_v29 = vld [vmem:[%s10184_s5] sm:$0xff]  ;;  %v8373_v31 = vld [vmem:[%s10184_s5 + $0x18] sm:$0xff]  ;;  %vm289_vm3 = vcmask 173056  }
  0x16   :  { %7146 = vmatpush3.bf16.msra.mxu0 %v8321_v5  ;;  %s8168_s2 = smov 32   ;;  %7153 = vmatprep.subr.bf16.mxu1 %v8165_v1  ;;  %v8368_v30 = vadd.f32 1e-16, %v8365_v29  ;;  %v8378_v33 = vadd.f32 1e-16, %v8373_v31  ;;  %v8388_v40 = vld [vmem:[%s10184_s5 + $0x8] sm:$0xff] }
  0x17   :  { %7166 = vmatprep.subr.bf16.mxu0 %v8165_v1  ;;  %v329_v41 = vadd.f32 1e-16, %v8388_v40  ;;  %v8394_v42 = vld [vmem:[%s10184_s5 + $0x10] sm:$0xff]  ;;  %v8412_v49 = vld [vmem:[%s10188_s9] ss:$0 sm:$0xff]  ;;  %s8169_s3 = smov 96  }
  0x18   :  { %v332_v32 = vmul.f32 %v8368_v30, %v8368_v30  ;;  %v335_v35 = vmul.f32 %v8378_v33, %v8378_v33  ;;  %v8397_v44 = vadd.f32 1e-16, %v8394_v42  ;;  %v8170_v61 = vmov 1966171168   ;;  %s8174_s26 = smov 110   ;;  %s10210_s0 = sld [smem:[#allocation22_spill]] }
  0x19   :  { %7154 = vmatpush3.bf16.msra.mxu1 %v8357_v27  ;;  %v333_v43 = vmul.f32 %v329_v41, %v329_v41  ;;  %v370_v62 = vunpack.c.l.s4 %v8170_v61  ;;  %vm362_vm4 = vcmask 125952   ;;  %vm522_vm5 = vcmask 130112   ;;  %s8180_s25 = smov 112   ;;  %s8182_s22 = smov 58  }
  0x1a   :  { %v79_v6 = vld [vmem:[%s10207_s29] sm:$0x3]  ;;  %v336_v34 = vsel %vm95_vm1, %v332_v32, 0.0  ;;  %v345_v36 = vsel %vm95_vm1, %v335_v35, 0.0  ;;  %v334_v46 = vmul.f32 %v8397_v44, %v8397_v44  ;;  %vm551_vm6 = vcmask 1041409  }
  0x1b   :  { %v140_v7 = vpack.c.bf16 %v79_v6, %v79_v6  ;;  %v87_v8 = vld [vmem:[%s10208_s21] sm:$0x3]  ;;  %v339_v45 = vsel %vm95_vm1, %v333_v43, 0.0  ;;  %v371_v6 = vunpack.c.0.s8 %v370_v62  ;;  %vm553_vm7 = vcmask 1042434  }
  0x1c   :  { %v80_v15 = vld [vmem:[%s10209_s24] sm:$0x3]  ;;  %v342_v47 = vsel %vm95_vm1, %v334_v46, 0.0  ;;  %vm555_vm8 = vcmask 1043459   ;;  %vm311_vm9 = vcmask 167056   ;;  %vm322_vm10 = vcmask 19456  }
  0x1d   :  { %7148 = vmatmul.mubr.msk.bf16.vlgmr.msra.gmra.mrb[0].mxu0 %vm153_vm2, %v140_v7  ;;  %v8423_v7 = vshrl.u32 %v372_v63, 7  ;;  %vm6843_vm11 = vcmask 123904   ;;  %vm6846_vm12 = vcmask 125954   ;;  %vm6832_vm13 = vcmask 254976  }
  0x1e   :  { %7168 = vmatprep.mubr.msk.bf16.mxu0 %vm8166_vm0, %v8165_v1 }
  0xf0   :  { %v191_v9 = vpop.f32.mrb[0].mxu0 }
  0xf1   :  { %v7505_v10 = vadd.f32 %v191_v9, %v87_v8  ;;  %v7149_v11 = vpop.f32.mrb[1].mxu0 }
  0xf2   :  { %v194_v12 = vpop.f32.mrb[2].mxu0 }
  0xf3   :  { %7653 = vtanh.f32 %v7505_v10  ;;  %v7150_v13 = vpop.f32.mrb[3].mxu0  ;;  %v198_v16 = vmul.f32 0.5, %v7505_v10  ;;  %v8428_v10 = vsub.s32 %v371_v6, %v8423_v7 }
  0xf5   :  { %7655 = vtanh.f32 %v198_v16 }
  0xfd   :  { %v7654_v14 = vpop.eup %7653 }
  0xfe   :  { %209 = vrot.lane.b32.xlu0 %v7654_v14, %s8167_s1 }
  0xff   :  { %v7656_v17 = vpop.eup %7655 }
 0x100   :  { %v200_v18 = vadd.f32 1.0, %v7656_v17 }
 0x102   :  { %204 = vrot.lane.b32.xlu0 %v80_v15, %s8168_s2  ;;  %v201_v19 = vmul.f32 0.5, %v200_v18  ;;  %v8433_v15 = vsub.s32 0, %v8423_v7 }
 0x170   :  { %v210_v20 = vpop.permute.xlu0 %209 }
 0x171   :  { %v212_v21 = vmul.f32 %v210_v20, %v201_v19 }
 0x173   :  { %214 = vrot.lane.b32.xlu1 %v212_v21, %s8168_s2 }
 0x174   :  { %v205_v22 = vpop.permute.xlu0 %204 }
 0x175   :  { %v207_v23 = vmul.f32 %v205_v22, %v201_v19 }
 0x1e5   :  { %v215_v24 = vpop.permute.xlu1 %214 }
 0x1e6   :  { %v8345_v25 = vadd.f32 %v215_v24, %v207_v23 }
 0x1e8   :  { %7657 = vtanh.f32 %v8345_v25 }
 0x1f2   :  { %v7658_v28 = vpop.eup %7657 }
 0x1f3   :  { %220 = vrot.lane.b32.xlu1 %v7658_v28, %s8167_s1 }
 0x217   :  { %337 = vadd.xlane.f32.xlu1 %v336_v34 }
 0x21b   :  { %346 = vadd.xlane.f32.xlu1 %v345_v36 }
 0x265   :  { %v221_v37 = vpop.permute.xlu1 %220 }
 0x266   :  { %v223_v38 = vmul.f32 %v221_v37, %v201_v19 }
 0x268   :  { %v224_v39 = vpack.c.bf16 %v223_v38, %v223_v38 }
 0x26a   :  { %232 = vrot.lane.b32.xlu0 %v224_v39, %s8168_s2 }
 0x289   :  { %340 = vadd.xlane.f32.xlu0 %v339_v45 }
 0x28d   :  { %343 = vadd.xlane.f32.xlu0 %v342_v47 }
 0x2a4   :  { %v338_v57 = vpop.xlane.xlu1 %337 }
 0x2a5   :  { %v348_v58 = vmax.f32 %v338_v57, 1e-16 }
 0x2a7   :  { %7659 = vrsqrt.f32 %v348_v58 }
 0x2a8   :  { %v347_v2 = vpop.xlane.xlu1 %346 }
 0x2a9   :  { %v351_v8 = vmax.f32 %v347_v2, 1e-16 }
 0x2b1   :  { %v7660_v12 = vpop.eup %7659 }
 0x2b2   :  { %v356_v17 = vmul.f32 %v7660_v12, %v8368_v30 }
 0x2dc   :  { %v8403_v48 = vpop.permute.xlu0 %232 }
 0x2dd   :  { %7156 = vmatmul.mubr.msk.bf16.vlgmr.msra.gmra.mrb[0].mxu1 %vm153_vm2, %v8403_v48 }
 0x2de   :  { %7163 = vmatprep.mubr.msk.f32.mxu1 %vm8166_vm0, %v8165_v1 }
 0x316   :  { %v341_v55 = vpop.xlane.xlu0 %340 }
 0x317   :  { %v349_v59 = vmax.f32 %v341_v55, 1e-16 }
 0x319   :  { %7661 = vrsqrt.f32 %v349_v59  ;;  %v8171_v59 = vmov 0  }
 0x31a   :  { %v344_v56 = vpop.xlane.xlu0 %343  ;;  %7573 = vset.pattern.permute.xlu0 %v8171_v59  ;;  %7572 = vset.pattern.permute.xlu1 %v8171_v59 }
 0x31b   :  { %v350_v3 = vmax.f32 %v344_v56, 1e-16 }
 0x31d   :  { %7663 = vrsqrt.f32 %v350_v3 }
 0x31e   :  { %7665 = vrsqrt.f32 %v351_v8 }
 0x323   :  { %v7662_v20 = vpop.eup %7661 }
 0x324   :  { %v357_v28 = vmul.f32 %v7662_v20, %v329_v41 }
 0x327   :  { %v7664_v34 = vpop.eup %7663 }
 0x328   :  { %v7666_v38 = vpop.eup %7665  ;;  %v358_v43 = vmul.f32 %v7664_v34, %v8397_v44 }
 0x329   :  { %v359_v41 = vmul.f32 %v7666_v38, %v8378_v33 }
 0x3b0   :  { %v283_v50 = vpop.f32.mrb[0].mxu1 }
 0x3b1   :  { %v8415_v51 = vadd.f32 %v8412_v49, %v283_v50  ;;  %v7157_v52 = vpop.f32.mrb[1].mxu1 }
 0x3b2   :  { %v286_v53 = vpop.f32.mrb[2].mxu1 }
 0x3b3   :  { %290 = vst.msk [vmem:[#allocation2] sm:$0x3] %vm289_vm3, %v8415_v51  ;;  %292 = vrot.lane.b32.xlu0 %v8415_v51, %s8169_s3  ;;  %v7158_v54 = vpop.f32.mrb[3].mxu1 }
 0x425   :  { %v293_v60 = vpop.permute.xlu0 %292 }
 0x426   :  { %295 = vst.msk [vmem:[#allocation2 + $0x2] sm:$0x3] %vm289_vm3, %v293_v60 }
 0x42d   :  { %v8425_v9 = vld [vmem:[#allocation2] sm:$0xf] }
 0x42e   :  { %v360_v11 = vadd.f32 1e-16, %v8425_v9  ;;  %v298_v60 = vand.u32 2147483647, %v8425_v9 }
 0x430   :  { %v361_v13 = vmul.f32 %v360_v11, %v360_v11  ;;  %v375_v14 = vrot.slane %v360_v11, %v8428_v10  ;;  %v299_v2 = vsub.f32 0.0, %v298_v60  ;;  %v8457_v11 = vsub.s32 1, %v8423_v7 }
 0x432   :  { %v363_v16 = vsel %vm362_vm4, %v361_v13, 0.0  ;;  %v383_v18 = vrot.slane %v375_v14, %v8428_v10  ;;  %v376_v19 = vcombine.high %v375_v14, %v375_v14  ;;  %v300_v6 = vmul.f32 1.442695, %v299_v2 }
 0x433   :  { %364 = vadd.xlane.f32.xlu1 %v363_v16 }
 0x434   :  { %v396_v21 = vrot.slane %v383_v18, %v8433_v15  ;;  %v391_v22 = vcombine.high %v383_v18, %v383_v18  ;;  %v390_v23 = vrot.slane %v376_v19, %v8428_v10 }
 0x436   :  { %v413_v24 = vmul.f32 %v396_v21, %v356_v17  ;;  %v404_v32 = vrot.slane %v391_v22, %v8433_v15  ;;  %v414_v37 = vmul.f32 %v396_v21, %v357_v28  ;;  %v400_v30 = vrot.slane %v390_v23, %v8433_v15 }
 0x437   :  { %v392_v52 = vcombine.high %v390_v23, %v390_v23  ;;  %v8462_v22 = vsub.s32 2, %v8423_v7 }
 0x438   :  { %v421_v35 = vsel %vm95_vm1, %v413_v24, 0.0  ;;  %v418_v36 = vmul.f32 %v404_v32, %v357_v28  ;;  %v424_v45 = vsel %vm95_vm1, %v414_v37, 0.0  ;;  %v415_v46 = vmul.f32 %v400_v30, %v358_v43 }
 0x439   :  { %422 = vadd.xlane.f32.xlu1 %v421_v35  ;;  %v416_v50 = vmul.f32 %v400_v30, %v359_v41  ;;  %v417_v54 = vmul.f32 %v404_v32, %v356_v17  ;;  %v408_v55 = vrot.slane %v392_v52, %v8433_v15  ;;  %v8466_v35 = vsub.s32 3, %v8423_v7 }
 0x43a   :  { %v436_v39 = vsel %vm95_vm1, %v418_v36, 0.0  ;;  %v427_v47 = vsel %vm95_vm1, %v415_v46, 0.0  ;;  %v8172_v52 = vmov 16  }
 0x43b   :  { %437 = vadd.xlane.f32.xlu0 %v436_v39  ;;  %v430_v53 = vsel %vm95_vm1, %v416_v50, 0.0  ;;  %v433_v44 = vsel %vm95_vm1, %v417_v54, 0.0  ;;  %v419_v56 = vmul.f32 %v408_v55, %v358_v43  ;;  %v420_v58 = vmul.f32 %v408_v55, %v359_v41 }
 0x43d   :  { %425 = vadd.xlane.f32.xlu1 %v424_v45  ;;  %v439_v57 = vsel %vm95_vm1, %v419_v56, 0.0  ;;  %v442_v33 = vsel %vm95_vm1, %v420_v58, 0.0  ;;  %v512_v56 = vand.u32 127, %v372_v63 }
 0x43f   :  { %v517_v58 = vadd.s32 4294967288, %v512_v56  ;;  %v8478_v60 = vsub.s32 %v512_v56, %v8423_v7 }
 0x441   :  { %428 = vadd.xlane.f32.xlu1 %v427_v47  ;;  %v297_v47 = vmax.f32 %v8425_v9, 0.0 }
 0x445   :  { %431 = vadd.xlane.f32.xlu1 %v430_v53  ;;  %v8173_v53 = vmov 17  }
 0x449   :  { %434 = vadd.xlane.f32.xlu1 %v433_v44 }
 0x44d   :  { %440 = vadd.xlane.f32.xlu1 %v439_v57 }
 0x451   :  { %443 = vadd.xlane.f32.xlu1 %v442_v33 }
 0x4c0   :  { %v365_v61 = vpop.xlane.xlu1 %364 }
 0x4c1   :  { %v366_v62 = vmax.f32 %v365_v61, 1e-16  ;;  %v8481_v61 = vsub.s32 %v517_v58, %v8423_v7  ;;  %v77_v58 = vld [vmem:[%s10192_s13] sm:$0xff] }
 0x4c3   :  { %7667 = vrsqrt.f32 %v366_v62 }
 0x4c4   :  { %7669 = vpow2.f32 %v300_v6 }
 0x4c6   :  { %v423_v3 = vpop.xlane.xlu1 %422 }
 0x4c8   :  { %v438_v36 = vpop.xlane.xlu0 %437 }
 0x4ca   :  { %v426_v8 = vpop.xlane.xlu1 %425 }
 0x4cd   :  { %v7668_v12 = vpop.eup %7667 }
 0x4ce   :  { %v449_v13 = vrot.slane %v7668_v12, %v8433_v15  ;;  %v453_v14 = vrot.slane %v7668_v12, %v8457_v11  ;;  %v429_v16 = vpop.xlane.xlu1 %428  ;;  %v7670_v21 = vpop.eup %7669  ;;  %v457_v32 = vrot.slane %v7668_v12, %v8462_v22  ;;  %v461_v38 = vrot.slane %v7668_v12, %v8466_v35 }
 0x4cf   :  { %v302_v24 = vadd.f32 1.0, %v7670_v21 }
 0x4d0   :  { %v466_v17 = vmul.f32 %v449_v13, %v423_v3  ;;  %v468_v18 = vmul.f32 %v453_v14, %v429_v16  ;;  %v467_v20 = vmul.f32 %v449_v13, %v426_v8  ;;  %v471_v30 = vmul.f32 %v457_v32, %v438_v36 }
 0x4d1   :  { %7671 = vlog2.f32 %v302_v24 }
 0x4d2   :  { %488 = vperm.xlu1 %7572, %v466_v17   ;;  %494 = vperm.xlu0 %7573, %v468_v18   ;;  %v432_v19 = vpop.xlane.xlu1 %431 }
 0x4d3   :  { %v469_v23 = vmul.f32 %v453_v14, %v432_v19 }
 0x4d6   :  { %491 = vperm.xlu1 %7572, %v467_v20   ;;  %v435_v28 = vpop.xlane.xlu1 %434  ;;  %7576 = vset.pattern.permute.xlu0 %v8173_v53 }
 0x4d7   :  { %v470_v34 = vmul.f32 %v457_v32, %v435_v28 }
 0x4da   :  { %497 = vperm.xlu1 %7572, %v469_v23   ;;  %v441_v37 = vpop.xlane.xlu1 %440 }
 0x4db   :  { %v472_v39 = vmul.f32 %v461_v38, %v441_v37  ;;  %v7672_v45 = vpop.eup %7671  ;;  %v312_v37 = vsel %vm311_vm9, %v8425_v9, -inf }
 0x4dc   :  { %v304_v41 = vmul.f32 0.6931472, %v7672_v45 }
 0x4de   :  { %500 = vperm.xlu1 %7572, %v470_v34   ;;  %v444_v43 = vpop.xlane.xlu1 %443  ;;  %v8470_v50 = vadd.f32 %v304_v41, %v297_v47  ;;  %v307_v34 = vmul.f32 0.5, %v8425_v9 }
 0x4df   :  { %v473_v46 = vmul.f32 %v461_v38, %v444_v43 }
 0x4e0   :  { %7673 = vtanh.f32 %v307_v34 }
 0x4e2   :  { %503 = vperm.xlu1 %7572, %v471_v30  }
 0x4e6   :  { %506 = vperm.xlu1 %7572, %v472_v39  }
 0x4ea   :  { %509 = vperm.xlu1 %7572, %v473_v46   ;;  %v7674_v30 = vpop.eup %7673 }
 0x4eb   :  { %v309_v38 = vadd.f32 1.0, %v7674_v30 }
 0x4ed   :  { %v310_v39 = vmul.f32 0.5, %v309_v38 }
 0x4ee   :  { %7574 = vset.pattern.permute.xlu1 %v8172_v52 }
 0x4ef   :  { %476 = vperm.xlu1 %7574, %v8470_v50  }
 0x4f3   :  { %7575 = vset.pattern.permute.xlu1 %v8173_v53 }
 0x551   :  { %v489_v54 = vpop.permute.xlu1 %488  ;;  %v495_v62 = vpop.permute.xlu0 %494 }
 0x552   :  { %v527_v8 = vrot.slane %v495_v62, %v8478_v60  ;;  %v516_v13 = vrot.slane %v489_v54, %v8478_v60  ;;  %v8175_v62 = vmov 0.0|0.0  }
 0x553   :  { %7481 = vmatprep.subr.bf16.mxu1 %v8175_v62 }
 0x555   :  { %v492_v55 = vpop.permute.xlu1 %491 }
 0x556   :  { %v521_v12 = vrot.slane %v492_v55, %v8481_v61 }
 0x558   :  { %v523_v17 = vsel %vm522_vm5, %v521_v12, %v516_v13  ;;  %v8177_v12 = vmov 20  }
 0x559   :  { %v498_v44 = vpop.permute.xlu1 %497 }
 0x55a   :  { %v531_v2 = vrot.slane %v498_v44, %v8481_v61 }
 0x55c   :  { %v532_v14 = vsel %vm522_vm5, %v531_v2, %v527_v8  ;;  %v8176_v8 = vmov 18  }
 0x55d   :  { %v501_v57 = vpop.permute.xlu1 %500  ;;  %v552_v20 = vsel %vm551_vm6, %v532_v14, %v523_v17  ;;  %v82_v14 = vld [vmem:[%s10210_s0] sm:$0xf]  ;;  %s8181_s0 = smov 74  }
 0x55e   :  { %v536_v63 = vrot.slane %v501_v57, %v8478_v60  ;;  %v576_v57 = vsub.f32 1.0, %v310_v39 }
 0x561   :  { %v504_v33 = vpop.permute.xlu1 %503 }
 0x562   :  { %v540_v3 = vrot.slane %v504_v33, %v8481_v61 }
 0x564   :  { %v541_v7 = vsel %vm522_vm5, %v540_v3, %v536_v63 }
 0x565   :  { %v507_v6 = vpop.permute.xlu1 %506  ;;  %v554_v23 = vsel %vm553_vm7, %v541_v7, %v552_v20 }
 0x566   :  { %v545_v18 = vrot.slane %v507_v6, %v8478_v60 }
 0x569   :  { %v510_v16 = vpop.permute.xlu1 %509 }
 0x56a   :  { %v549_v19 = vrot.slane %v510_v16, %v8481_v61 }
 0x56c   :  { %v550_v21 = vsel %vm522_vm5, %v549_v19, %v545_v18  ;;  %v8525_v19 = vld [vmem:[%s10189_s10] sm:$0xff]  }
 0x56d   :  { %v556_v24 = vsel %vm555_vm8, %v550_v21, %v554_v23  ;;  %v8532_v21 = vld [vmem:[%s10189_s10 + $0x8] sm:$0xff]  }
 0x56e   :  { %v477_v28 = vpop.permute.xlu1 %476 }
 0x56f   :  { %v558_v32 = vmul.f32 %v556_v24, %v477_v28 }
 0x571   :  { %v559_v36 = vsel %vm362_vm4, %v558_v32, -inf }
 0x572   :  { %560 = vmax.xlane.f32.xlu1 %v559_v36 }
 0x576   :  { %313 = vmax.xlane.f32.xlu1 %v312_v37 }
 0x587   :  { %572 = vperm.xlu1 %7575, %v310_v39  }
 0x58b   :  { %7578 = vset.pattern.permute.xlu1 %v8176_v8 }
 0x5ff   :  { %v561_v43 = vpop.xlane.xlu1 %560 }
 0x600   :  { %v562_v45 = vsub.f32 %v558_v32, %v561_v43  ;;  %v8178_v32 = vmov 19  }
 0x602   :  { %v563_v46 = vmul.f32 1.442695, %v562_v45  ;;  %v306_v45 = vadd.f32 1.0, %v8470_v50 }
 0x603   :  { %v314_v41 = vpop.xlane.xlu1 %313 }
 0x604   :  { %7675 = vpow2.f32 %v563_v46  ;;  %v315_v47 = vsub.f32 %v8425_v9, %v314_v41  ;;  %v78_v9 = vld [vmem:[%s10192_s13 + $0x8] sm:$0xff] }
 0x605   :  { %v8511_v33 = vpack.c.bf16 %v78_v9, %v77_v58 }
 0x606   :  { %v316_v54 = vmul.f32 1.442695, %v315_v47 }
 0x607   :  { %7483 = vmatpush3.bf16.msra.mxu1 %v8511_v33  ;;  %v573_v2 = vpop.permute.xlu1 %572 }
 0x608   :  { %7677 = vpow2.f32 %v316_v54  ;;  %7172 = vmatprep.subr.bf16.mxu1 %v8165_v1 }
 0x60e   :  { %v7676_v55 = vpop.eup %7675 }
 0x60f   :  { %v565_v44 = vsel %vm362_vm4, %v7676_v55, 0.0 }
 0x610   :  { %566 = vadd.xlane.f32.xlu0 %v565_v44 }
 0x612   :  { %v7678_v56 = vpop.eup %7677 }
 0x613   :  { %319 = vrot.lane.b32.xlu1 %v7678_v56, %s8174_s26 }
 0x626   :  { %579 = vperm.xlu0 %7576, %v576_v57  }
 0x62a   :  { %7577 = vset.pattern.permute.xlu0 %v8177_v12 }
 0x685   :  { %v320_v3 = vpop.permute.xlu1 %319 }
 0x686   :  { %v323_v6 = vsel %vm322_vm10, %v320_v3, 0.0 }
 0x687   :  { %324 = vadd.xlane.f32.xlu1 %v323_v6 }
 0x69d   :  { %v567_v63 = vpop.xlane.xlu0 %566 }
 0x69e   :  { %7679 = vrcp.f32 %v567_v63 }
 0x6a5   :  { %v580_v7 = vpop.permute.xlu0 %579 }
 0x6a6   :  { %v582_v18 = vmul.f32 %v580_v7, %v82_v14 }
 0x6a8   :  { %v7680_v13 = vpop.eup %7679 }
 0x6a9   :  { %v569_v16 = vmul.f32 %v7680_v13, %v7676_v55 }
 0x6ab   :  { %v575_v17 = vmul.f32 %v573_v2, %v569_v16 }
 0x6ad   :  { %v583_v20 = vadd.f32 %v582_v18, %v575_v17 }
 0x6af   :  { %7164 = vmatmul.mubr.msk.f32.vlgmr.msra.gmra.mrb[4].mxu1 %vm95_vm1, %v583_v20 }
 0x6b0   :  { %7173 = vmatpush3.bf16.msra.mxu1 %v8525_v19  ;;  %7176 = vmatprep.mubr.msk.bf16.mxu1 %vm8166_vm0, %v8165_v1 }
 0x6b1   :  { %7174 = vmatprep.subr.bf16.mxu1 %v8165_v1 }
 0x6b4   :  { %7175 = vmatpush3.bf16.msra.mxu1 %v8532_v21 }
 0x6b5   :  { %7194 = vmatprep.subr.bf16.mxu1 %v8165_v1 }
 0x6b7   :  { %7177 = vmatmul.mubr.msk.bf16.vlgmr.msra.gmra.mrb[8].mxu1 %vm153_vm2, %v8403_v48 }
 0x6b8   :  { %7195 = vmatpush3.bf16.msra.mxu1 %v8351_v26  ;;  %7198 = vmatprep.mubr.msk.bf16.mxu1 %vm8166_vm0, %v8165_v1  ;;  %v8179_v26 = vmov 21  }
 0x6b9   :  { %7196 = vmatprep.subr.bf16.mxu1 %v8165_v1 }
 0x6bc   :  { %7197 = vmatpush3.bf16.msra.mxu1 %v8357_v27 }
 0x6bd   :  { %7484 = vmatprep.subr.bf16.mxu1 %v8175_v62 }
 0x714   :  { %v325_v23 = vpop.xlane.xlu1 %324 }
 0x715   :  { %7681 = vrcp.f32 %v325_v23  ;;  %v8570_v23 = vld [vmem:[%s10190_s11] sm:$0xff]  }
 0x716   :  { %7167 = vmatpush3.bf16.msra.mxu0 %v8570_v23 }
 0x717   :  { %7180 = vmatprep.subr.bf16.mxu0 %v8165_v1 }
 0x71f   :  { %v7682_v24 = vpop.eup %7681 }
 0x720   :  { %v327_v28 = vmul.f32 %v7682_v24, %v7678_v56 }
 0x722   :  { %659 = vperm.xlu1 %7578, %v327_v28   ;;  %670 = vperm.xlu0 %7577, %v327_v28  }
 0x726   :  { %7579 = vset.pattern.permute.xlu0 %v8178_v32  ;;  %7582 = vset.pattern.permute.xlu1 %v8171_v59 }
 0x727   :  { %664 = vperm.xlu0 %7579, %v327_v28  }
 0x72b   :  { %7580 = vset.pattern.permute.xlu0 %v8179_v26 }
 0x782   :  { %v653_v34 = vpop.f32.mrb[4].mxu1 }
 0x783   :  { %v7165_v36 = vpop.f32.mrb[5].mxu1 }
 0x78a   :  { %v8550_v27 = vpop.f32.mrb[8].mxu1 }
 0x78b   :  { %v7178_v37 = vpop.f32.mrb[9].mxu1 }
 0x78c   :  { %v989_v30 = vpop.f32.mrb[10].mxu1 }
 0x78d   :  { %v7179_v38 = vpop.f32.mrb[11].mxu1 }
 0x7a1   :  { %v671_v39 = vpop.permute.xlu0 %670  ;;  %v660_v41 = vpop.permute.xlu1 %659 }
 0x7a2   :  { %v673_v43 = vmul.f32 %v671_v39, %v653_v34  ;;  %v662_v54 = vmul.f32 %v660_v41, %v653_v34 }
 0x7a4   :  { %675 = vrot.lane.b32.xlu0 %v673_v43, %s8180_s25 }
 0x7a6   :  { %v665_v46 = vpop.permute.xlu0 %664 }
 0x7a7   :  { %v667_v47 = vmul.f32 %v665_v46, %v583_v20 }
 0x7a8   :  { %684 = vperm.xlu0 %7580, %v306_v45  }
 0x7a9   :  { %v668_v55 = vadd.f32 %v667_v47, %v662_v54 }
 0x7ac   :  { %7581 = vset.pattern.permute.xlu0 %v8171_v59 }
 0x816   :  { %v676_v44 = vpop.permute.xlu0 %675 }
 0x817   :  { %v678_v56 = vadd.f32 %v676_v44, %v668_v55 }
 0x819   :  { %v679_v57 = vmax.f32 %v678_v56, 1e-30 }
 0x81b   :  { %7683 = vlog2.f32 %v679_v57 }
 0x825   :  { %v7684_v58 = vpop.eup %7683 }
 0x826   :  { %v681_v9 = vmul.f32 0.6931472, %v7684_v58 }
 0x827   :  { %v685_v2 = vpop.permute.xlu0 %684 }
 0x828   :  { %v687_v3 = vmul.f32 %v685_v2, %v681_v9 }
 0x82a   :  { %v688_v6 = vmul.f32 1.442695, %v687_v3 }
 0x82c   :  { %7685 = vpow2.f32 %v688_v6 }
 0x836   :  { %v7686_v63 = vpop.eup %7685 }
 0x837   :  { %v690_v50 = vsel %vm362_vm4, %v7686_v63, 0.0 }
 0x838   :  { %691 = vadd.xlane.f32.xlu1 %v690_v50 }
 0x8c5   :  { %v692_v13 = vpop.xlane.xlu1 %691 }
 0x8c6   :  { %v693_v14 = vadd.f32 1e-16, %v692_v13 }
 0x8c8   :  { %7687 = vrcp.f32 %v693_v14 }
 0x8d2   :  { %v7688_v7 = vpop.eup %7687 }
 0x8d3   :  { %v8556_v16 = vmul.f32 %v7688_v7, %v7686_v63 }
 0x8d5   :  { %v8560_v17 = vrot.slane %v8556_v16, %v8462_v22  ;;  %v699_v18 = vrot.slane %v8556_v16, %v8433_v15  ;;  %v710_v20 = vrot.slane %v8556_v16, %v8457_v11 }
 0x8d7   :  { %723 = vbcast.lane.b32.xlu1 %v8560_v17, 256  ;;  %701 = vbcast.lane.b32.xlu0 %v699_v18, 256 }
 0x8db   :  { %705 = vbcast.lane.b32.xlu0 %v699_v18, 264 }
 0x8df   :  { %712 = vbcast.lane.b32.xlu0 %v710_v20, 256 }
 0x8e3   :  { %716 = vbcast.lane.b32.xlu0 %v710_v20, 264 }
 0x949   :  { %v702_v24 = vpop.permute.xlu0 %701 }
 0x94a   :  { %v740_v28 = vmul.f32 %v702_v24, %v8365_v29 }
 0x94c   :  { %v744_v37 = vsel %vm95_vm1, %v740_v28, 0.0 }
 0x94d   :  { %v706_v34 = vpop.permute.xlu0 %705 }
 0x94e   :  { %v741_v36 = vmul.f32 %v706_v34, %v8388_v40 }
 0x950   :  { %v745_v30 = vsel %vm95_vm1, %v741_v36, 0.0 }
 0x951   :  { %v746_v38 = vadd.f32 %v745_v30, %v744_v37  ;;  %v713_v39 = vpop.permute.xlu0 %712 }
 0x952   :  { %v742_v45 = vmul.f32 %v713_v39, %v8394_v42 }
 0x953   :  { %v747_v43 = vrot.slane %v746_v38, 4 }
 0x954   :  { %v753_v55 = vsel %vm95_vm1, %v742_v45, 0.0 }
 0x955   :  { %v748_v46 = vadd.f32 %v747_v43, %v746_v38  ;;  %v717_v41 = vpop.permute.xlu0 %716  ;;  %v1004_v43 = vld [vmem:[%s10208_s21 + $0x2] sm:$0x3] }
 0x956   :  { %v743_v47 = vmul.f32 %v717_v41, %v8373_v31 }
 0x957   :  { %v749_v54 = vrot.slane %v748_v46, 2 }
 0x958   :  { %v754_v44 = vsel %vm95_vm1, %v743_v47, 0.0 }
 0x959   :  { %v750_v56 = vadd.f32 %v749_v54, %v748_v46  ;;  %v755_v57 = vadd.f32 %v754_v44, %v753_v55 }
 0x95b   :  { %v756_v58 = vrot.slane %v755_v57, 4  ;;  %v751_v9 = vrot.slane %v750_v56, 1 }
 0x95d   :  { %v757_v2 = vadd.f32 %v756_v58, %v755_v57  ;;  %v752_v6 = vadd.f32 %v751_v9, %v750_v56 }
 0x95f   :  { %v758_v3 = vrot.slane %v757_v2, 2  ;;  %v883_v13 = vpack.c.bf16 %v752_v6, %v752_v6 }
 0x961   :  { %v759_v63 = vadd.f32 %v758_v3, %v757_v2  ;;  %v887_v18 = vunpack.c.l.b16 %v883_v13  ;;  %v762_v13 = vmul.f32 0.5, %v8415_v51 }
 0x963   :  { %v760_v50 = vrot.slane %v759_v63, 1 }
 0x965   :  { %v761_v14 = vadd.f32 %v760_v50, %v759_v63 }
 0x967   :  { %v884_v7 = vpack.c.bf16 %v761_v14, %v761_v14 }
 0x969   :  { %v888_v20 = vunpack.c.l.b16 %v884_v7 }
 0x96b   :  { %v889_v24 = vsel %vm551_vm6, %v888_v20, %v887_v18 }
 0x96c   :  { %v890_v28 = vpack.c.b16 %v889_v24, %v889_v24 }
 0x96e   :  { %7169 = vmatmul.mubr.msk.bf16.vlgmr.msra.gmra.mrb[4].mxu0 %vm95_vm1, %v890_v28 }
 0x96f   :  { %7181 = vmatpush3.bf16.msra.mxu0 %v8300_v0  ;;  %7182 = vmatprep.mubr.msk.bf16.mxu0 %vm8166_vm0, %v8165_v1  ;;  %v8604_v0 = vld [vmem:[%s10191_s12] ss:$0 sm:$0xff] }
 0x970   :  { %7186 = vmatprep.subr.bf16.mxu0 %v8165_v1 }
 0x976   :  { %7183 = vmatmul.mubr.msk.bf16.vlgmr.msra.gmra.mrb[8].mxu0 %vm95_vm1, %v890_v28 }
 0x977   :  { %7187 = vmatpush3.bf16.msra.mxu0 %v8313_v4  ;;  %7190 = vmatprep.mubr.msk.bf16.mxu0 %vm8166_vm0, %v8165_v1 }
 0x978   :  { %7188 = vmatprep.subr.bf16.mxu0 %v8165_v1 }
 0x97b   :  { %7189 = vmatpush3.bf16.msra.mxu0 %v8321_v5 }
 0x97c   :  { %7209 = vmatprep.subr.bf16.mxu0 %v8165_v1 }
 0x982   :  { %7191 = vmatmul.mubr.msk.bf16.vlgmr.msra.gmra.mrb[8].mxu0 %vm153_vm2, %v8403_v48 }
 0x983   :  { %7210 = vmatpush3.bf16.msra.mxu0 %v8570_v23  ;;  %7211 = vmatprep.mubr.msk.bf16.mxu0 %vm8166_vm0, %v8165_v1 }
 0x984   :  { %7223 = vmatprep.subr.bf16.mxu0 %v8165_v1 }
 0xa41   :  { %v934_v4 = vpop.f32.mrb[4].mxu0 }
 0xa42   :  { %v987_v5 = vadd.f32 %v8550_v27, %v934_v4  ;;  %v7170_v34 = vpop.f32.mrb[5].mxu0 }
 0xa43   :  { %v937_v36 = vpop.f32.mrb[6].mxu0  ;;  %v724_v34 = vpop.permute.xlu1 %723 }
 0xa44   :  { %v998_v37 = vadd.f32 %v8604_v0, %v987_v5  ;;  %v7171_v48 = vpop.f32.mrb[7].mxu0  ;;  %v732_v5 = vrot.slane %v8556_v16, %v8466_v35 }
 0xa46   :  { %v999_v30 = vmul.f32 0.5, %v998_v37 }
 0xa48   :  { %7689 = vtanh.f32 %v999_v30 }
 0xa52   :  { %v7690_v38 = vpop.eup %7689 }
 0xa53   :  { %v1001_v39 = vadd.f32 1.0, %v7690_v38 }
 0xa55   :  { %v1002_v45 = vmul.f32 0.5, %v1001_v39  ;;  %v1080_v46 = vpop.f32.mrb[8].mxu0 }
 0xa56   :  { %v7506_v41 = vadd.f32 %v1080_v46, %v1004_v43  ;;  %v7192_v47 = vpop.f32.mrb[9].mxu0  ;;  %v833_v43 = vrot.slane %v8415_v51, %v8428_v10 }
 0xa57   :  { %1003 = vst [vmem:[#allocation3] sm:$0x3] %v1002_v45  ;;  %v1083_v54 = vpop.f32.mrb[10].mxu0 }
 0xa58   :  { %7691 = vtanh.f32 %v7506_v41  ;;  %v7193_v27 = vpop.f32.mrb[11].mxu0  ;;  %v1087_v44 = vmul.f32 0.5, %v7506_v41  ;;  %v841_v54 = vrot.slane %v833_v43, %v8428_v10 }
 0xa59   :  { %v834_v27 = vcombine.high %v833_v43, %v833_v43 }
 0xa5a   :  { %7693 = vtanh.f32 %v1087_v44 }
 0xa62   :  { %v7692_v55 = vpop.eup %7691 }
 0xa63   :  { %1094 = vrot.lane.b32.xlu0 %v7692_v55, %s8167_s1 }
 0xa64   :  { %v7694_v56 = vpop.eup %7693 }
 0xa65   :  { %v1089_v57 = vadd.f32 1.0, %v7694_v56 }
 0xa67   :  { %v1090_v58 = vmul.f32 0.5, %v1089_v57  ;;  %v852_v57 = vrot.slane %v841_v54, %v8433_v15 }
 0xa69   :  { %v1092_v3 = vmul.f32 %v1090_v58, %v8345_v25  ;;  %v859_v51 = vmul.f32 %v852_v57, %v724_v34 }
 0xad5   :  { %v1095_v9 = vpop.permute.xlu0 %1094 }
 0xad6   :  { %v1097_v2 = vmul.f32 %v1095_v9, %v1090_v58 }
 0xad8   :  { %1099 = vrot.lane.b32.xlu0 %v1097_v2, %s8168_s2 }
 0xb4a   :  { %v1100_v6 = vpop.permute.xlu0 %1099 }
 0xb4b   :  { %v8614_v63 = vadd.f32 %v1100_v6, %v1092_v3 }
 0xb4d   :  { %7695 = vtanh.f32 %v8614_v63 }
 0xb4e   :  { %7697 = vtanh.f32 %v762_v13 }
 0xb57   :  { %v7696_v50 = vpop.eup %7695 }
 0xb58   :  { %1105 = vrot.lane.b32.xlu0 %v7696_v50, %s8167_s1  ;;  %v7698_v14 = vpop.eup %7697 }
 0xb59   :  { %v764_v7 = vadd.f32 1.0, %v7698_v14 }
 0xb5b   :  { %v765_v20 = vmul.f32 0.5, %v764_v7 }
 0xb5d   :  { %v773_v4 = vrot.slane %v765_v20, %v8428_v10 }
 0xb5f   :  { %v781_v25 = vrot.slane %v773_v4, %v8428_v10  ;;  %v774_v30 = vcombine.high %v773_v4, %v773_v4 }
 0xb61   :  { %v792_v36 = vrot.slane %v781_v25, %v8433_v15 }
 0xb63   :  { %v799_v37 = vmul.f32 %v792_v36, %v724_v34 }
 0xb65   :  { %v803_v48 = vsub.f32 1.0, %v799_v37 }
 0xbca   :  { %v1106_v18 = vpop.permute.xlu0 %1105 }
 0xbcb   :  { %v1108_v24 = vmul.f32 %v1106_v18, %v1090_v58  ;;  %v848_v58 = vrot.slane %v834_v27, %v8428_v10 }
 0xbcd   :  { %v1109_v28 = vpack.c.bf16 %v1108_v24, %v1108_v24  ;;  %v856_v3 = vrot.slane %v848_v58, %v8433_v15 }
 0xbcf   :  { %1111 = vrot.lane.b32.xlu0 %v1109_v28, %s8168_s2 }
 0xbd3   :  { %727 = vbcast.lane.b32.xlu0 %v8560_v17, 264  ;;  %v788_v17 = vrot.slane %v774_v30, %v8428_v10 }
 0xbd5   :  { %v796_v46 = vrot.slane %v788_v17, %v8433_v15 }
 0xbd7   :  { %734 = vbcast.lane.b32.xlu0 %v732_v5, 256 }
 0xbdb   :  { %738 = vbcast.lane.b32.xlu0 %v732_v5, 264 }
 0xbdf   :  { %811 = vrot.lane.b32.xlu0 %v803_v48, %s8181_s0 }
 0xc41   :  { %v8627_v38 = vpop.permute.xlu0 %1111 }
 0xc42   :  { %7199 = vmatmul.mubr.msk.bf16.vlgmr.msra.gmra.mrb[12].mxu1 %vm153_vm2, %v8627_v38 }
 0xc43   :  { %7486 = vmatpush3.bf16.msra.mxu1 %v8511_v33  ;;  %7206 = vmatprep.mubr.msk.f32.mxu1 %vm8166_vm0, %v8165_v1 }
 0xc44   :  { %7215 = vmatprep.subr.bf16.mxu1 %v8165_v1 }
 0xc45   :  { %v728_v39 = vpop.permute.xlu0 %727 }
 0xc46   :  { %v800_v45 = vmul.f32 %v792_v36, %v728_v39  ;;  %v860_v6 = vmul.f32 %v852_v57, %v728_v39 }
 0xc48   :  { %v804_v41 = vsub.f32 1.0, %v800_v45 }
 0xc49   :  { %v735_v47 = vpop.permute.xlu0 %734 }
 0xc4a   :  { %v801_v55 = vmul.f32 %v796_v46, %v735_v47  ;;  %813 = vrot.lane.b32.xlu1 %v804_v41, %s8181_s0  ;;  %v861_v50 = vmul.f32 %v856_v3, %v735_v47 }
 0xc4c   :  { %v805_v44 = vsub.f32 1.0, %v801_v55 }
 0xc4d   :  { %v739_v56 = vpop.permute.xlu0 %738 }
 0xc4e   :  { %v802_v9 = vmul.f32 %v796_v46, %v739_v56  ;;  %815 = vrot.lane.b32.xlu0 %v805_v44, %s8181_s0  ;;  %v862_v13 = vmul.f32 %v856_v3, %v739_v56 }
 0xc50   :  { %v806_v2 = vsub.f32 1.0, %v802_v9 }
 0xc51   :  { %v812_v14 = vpop.permute.xlu0 %811 }
 0xc52   :  { %867 = vrot.lane.b32.xlu0 %v859_v51, %s8182_s22  ;;  %817 = vrot.lane.b32.xlu1 %v806_v2, %s8181_s0  ;;  %v823_v20 = vmul.f32 %v812_v14, %v8365_v29 }
 0xc56   :  { %871 = vrot.lane.b32.xlu0 %v861_v50, %s8182_s22  ;;  %869 = vrot.lane.b32.xlu1 %v860_v6, %s8182_s22 }
 0xc5a   :  { %873 = vrot.lane.b32.xlu1 %v862_v13, %s8182_s22 }
 0xcbc   :  { %v814_v7 = vpop.permute.xlu1 %813 }
 0xcbd   :  { %v824_v25 = vmul.f32 %v814_v7, %v8388_v40 }
 0xcc0   :  { %v816_v18 = vpop.permute.xlu0 %815 }
 0xcc1   :  { %v825_v5 = vmul.f32 %v816_v18, %v8394_v42 }
 0xcc4   :  { %v818_v24 = vpop.permute.xlu1 %817  ;;  %v868_v28 = vpop.permute.xlu0 %867 }
 0xcc5   :  { %v8651_v4 = vadd.f32 %v868_v28, %v823_v20  ;;  %v826_v39 = vmul.f32 %v818_v24, %v8373_v31 }
 0xcc7   :  { %v1192_v34 = vadd.f32 1e-16, %v8651_v4 }
 0xcc8   :  { %v870_v36 = vpop.permute.xlu1 %869  ;;  %v872_v37 = vpop.permute.xlu0 %871 }
 0xcc9   :  { %v8656_v48 = vadd.f32 %v870_v36, %v824_v25  ;;  %v8658_v30 = vadd.f32 %v872_v37, %v825_v5  ;;  %v1196_v17 = vmul.f32 %v1192_v34, %v1192_v34 }
 0xccb   :  { %v1200_v29 = vsel %vm95_vm1, %v1196_v17, 0.0  ;;  %v1193_v43 = vadd.f32 1e-16, %v8656_v48  ;;  %v1194_v45 = vadd.f32 1e-16, %v8658_v30 }
 0xccc   :  { %v874_v40 = vpop.permute.xlu1 %873  ;;  %1201 = vadd.xlane.f32.xlu0 %v1200_v29 }
 0xccd   :  { %v8664_v42 = vadd.f32 %v874_v40, %v826_v39  ;;  %v1197_v46 = vmul.f32 %v1193_v43, %v1193_v43  ;;  %v1198_v41 = vmul.f32 %v1194_v45, %v1194_v45 }
 0xccf   :  { %v1203_v47 = vsel %vm95_vm1, %v1197_v46, 0.0  ;;  %v1206_v54 = vsel %vm95_vm1, %v1198_v41, 0.0  ;;  %v1195_v27 = vadd.f32 1e-16, %v8664_v42 }
 0xcd0   :  { %1204 = vadd.xlane.f32.xlu1 %v1203_v47  ;;  %1207 = vadd.xlane.f32.xlu0 %v1206_v54 }
 0xcd1   :  { %v1199_v31 = vmul.f32 %v1195_v27, %v1195_v27 }
 0xcd3   :  { %v1209_v55 = vsel %vm95_vm1, %v1199_v31, 0.0 }
 0xcd4   :  { %1210 = vadd.xlane.f32.xlu0 %v1209_v55 }
 0xd15   :  { %v1150_v44 = vpop.f32.mrb[12].mxu1 }
 0xd16   :  { %v8671_v56 = vadd.f32 %v8412_v49, %v1150_v44  ;;  %v7200_v57 = vpop.f32.mrb[13].mxu1 }
 0xd17   :  { %v1153_v58 = vpop.f32.mrb[14].mxu1 }
 0xd18   :  { %1156 = vst.msk [vmem:[#allocation2] sm:$0x3] %vm289_vm3, %v8671_v56  ;;  %v7201_v9 = vpop.f32.mrb[15].mxu1  ;;  %1158 = vrot.lane.b32.xlu1 %v8671_v56, %s8169_s3 }
 0xd59   :  { %v1202_v51 = vpop.xlane.xlu0 %1201 }
 0xd5a   :  { %v1212_v50 = vmax.f32 %v1202_v51, 1e-16 }
 0xd5c   :  { %7699 = vrsqrt.f32 %v1212_v50 }
 0xd5d   :  { %v1208_v2 = vpop.xlane.xlu0 %1207  ;;  %v1205_v3 = vpop.xlane.xlu1 %1204 }
 0xd5e   :  { %v1213_v13 = vmax.f32 %v1205_v3, 1e-16  ;;  %v1214_v49 = vmax.f32 %v1208_v2, 1e-16 }
 0xd60   :  { %7701 = vrsqrt.f32 %v1213_v13 }
 0xd61   :  { %v1211_v6 = vpop.xlane.xlu0 %1210 }
 0xd62   :  { %v1215_v14 = vmax.f32 %v1211_v6, 1e-16 }
 0xd64   :  { %7703 = vrsqrt.f32 %v1215_v14 }
 0xd65   :  { %7705 = vrsqrt.f32 %v1214_v49 }
 0xd66   :  { %v7700_v25 = vpop.eup %7699 }
 0xd67   :  { %v1220_v29 = vmul.f32 %v7700_v25, %v1192_v34 }
 0xd6a   :  { %v7702_v5 = vpop.eup %7701 }
 0xd6b   :  { %v1221_v31 = vmul.f32 %v7702_v5, %v1193_v43 }
 0xd6e   :  { %v7704_v39 = vpop.eup %7703 }
 0xd6f   :  { %v1223_v47 = vmul.f32 %v7704_v39, %v1195_v27  ;;  %v7706_v55 = vpop.eup %7705 }
 0xd70   :  { %v1222_v2 = vmul.f32 %v7706_v55, %v1194_v45 }
 0xd8a   :  { %v1159_v7 = vpop.permute.xlu1 %1158 }
 0xd8b   :  { %1161 = vst.msk [vmem:[#allocation2 + $0x2] sm:$0x3] %vm289_vm3, %v1159_v7 }
 0xd92   :  { %v8678_v18 = vld [vmem:[#allocation2] sm:$0xf] }
 0xd93   :  { %v1224_v20 = vadd.f32 1e-16, %v8678_v18  ;;  %v1164_v25 = vand.u32 2147483647, %v8678_v18 }
 0xd95   :  { %v1225_v24 = vmul.f32 %v1224_v20, %v1224_v20  ;;  %v1238_v28 = vrot.slane %v1224_v20, %v8428_v10  ;;  %v1165_v5 = vsub.f32 0.0, %v1164_v25 }
 0xd97   :  { %v1226_v36 = vsel %vm362_vm4, %v1225_v24, 0.0  ;;  %v1246_v37 = vrot.slane %v1238_v28, %v8428_v10  ;;  %v1239_v17 = vcombine.high %v1238_v28, %v1238_v28 }
 0xd98   :  { %1227 = vadd.xlane.f32.xlu0 %v1226_v36  ;;  %v1166_v36 = vmul.f32 1.442695, %v1165_v5 }
 0xd99   :  { %v1259_v40 = vrot.slane %v1246_v37, %v8433_v15  ;;  %v1253_v46 = vrot.slane %v1239_v17, %v8428_v10  ;;  %v1254_v9 = vcombine.high %v1246_v37, %v1246_v37 }
 0xd9a   :  { %7707 = vpow2.f32 %v1166_v36 }
 0xd9b   :  { %v1276_v41 = vmul.f32 %v1259_v40, %v1220_v29  ;;  %v1263_v54 = vrot.slane %v1253_v46, %v8433_v15  ;;  %v1277_v58 = vmul.f32 %v1259_v40, %v1221_v31  ;;  %v1267_v6 = vrot.slane %v1254_v9, %v8433_v15 }
 0xd9c   :  { %v1255_v50 = vcombine.high %v1253_v46, %v1253_v46 }
 0xd9d   :  { %v1284_v44 = vsel %vm95_vm1, %v1276_v41, 0.0  ;;  %v1279_v57 = vmul.f32 %v1263_v54, %v1223_v47  ;;  %v1287_v34 = vsel %vm95_vm1, %v1277_v58, 0.0  ;;  %v1278_v3 = vmul.f32 %v1263_v54, %v1222_v2 }
 0xd9e   :  { %1285 = vadd.xlane.f32.xlu0 %v1284_v44  ;;  %v1280_v43 = vmul.f32 %v1267_v6, %v1220_v29  ;;  %v1281_v14 = vmul.f32 %v1267_v6, %v1221_v31  ;;  %v1271_v7 = vrot.slane %v1255_v50, %v8433_v15 }
 0xd9f   :  { %v1293_v51 = vsel %vm95_vm1, %v1279_v57, 0.0  ;;  %v1290_v27 = vsel %vm95_vm1, %v1278_v3, 0.0 }
 0xda0   :  { %1294 = vadd.xlane.f32.xlu1 %v1293_v51  ;;  %v1296_v13 = vsel %vm95_vm1, %v1280_v43, 0.0  ;;  %v1299_v45 = vsel %vm95_vm1, %v1281_v14, 0.0  ;;  %v1282_v49 = vmul.f32 %v1271_v7, %v1222_v2  ;;  %v1283_v24 = vmul.f32 %v1271_v7, %v1223_v47 }
 0xda2   :  { %1288 = vadd.xlane.f32.xlu0 %v1287_v34  ;;  %v1302_v20 = vsel %vm95_vm1, %v1282_v49, 0.0  ;;  %v1305_v28 = vsel %vm95_vm1, %v1283_v24, 0.0 }
 0xda4   :  { %v7708_v29 = vpop.eup %7707 }
 0xda5   :  { %v1168_v46 = vadd.f32 1.0, %v7708_v29 }
 0xda6   :  { %1291 = vadd.xlane.f32.xlu0 %v1290_v27 }
 0xdaa   :  { %1297 = vadd.xlane.f32.xlu0 %v1296_v13 }
 0xdae   :  { %1300 = vadd.xlane.f32.xlu0 %v1299_v45  ;;  %v1163_v45 = vmax.f32 %v8678_v18, 0.0 }
 0xdb2   :  { %1303 = vadd.xlane.f32.xlu0 %v1302_v20 }
 0xdb6   :  { %1306 = vadd.xlane.f32.xlu0 %v1305_v28 }
 0xe25   :  { %v1228_v37 = vpop.xlane.xlu0 %1227 }
 0xe26   :  { %v1229_v17 = vmax.f32 %v1228_v37, 1e-16 }
 0xe28   :  { %7709 = vrsqrt.f32 %v1229_v17 }
 0xe29   :  { %7711 = vlog2.f32 %v1168_v46 }
 0xe2b   :  { %v1286_v39 = vpop.xlane.xlu0 %1285 }
 0xe2d   :  { %v1295_v34 = vpop.xlane.xlu1 %1294 }
 0xe2f   :  { %v1289_v40 = vpop.xlane.xlu0 %1288 }
 0xe32   :  { %v7710_v41 = vpop.eup %7709 }
 0xe33   :  { %v1312_v54 = vrot.slane %v7710_v41, %v8433_v15  ;;  %v1292_v47 = vpop.xlane.xlu0 %1291  ;;  %v1316_v55 = vrot.slane %v7710_v41, %v8457_v11  ;;  %v1320_v57 = vrot.slane %v7710_v41, %v8462_v22  ;;  %v7712_v6 = vpop.eup %7711  ;;  %v1324_v27 = vrot.slane %v7710_v41, %v8466_v35 }
 0xe34   :  { %v1170_v14 = vmul.f32 0.6931472, %v7712_v6 }
 0xe35   :  { %v1329_v31 = vmul.f32 %v1312_v54, %v1286_v39  ;;  %v1330_v44 = vmul.f32 %v1312_v54, %v1289_v40  ;;  %v1331_v51 = vmul.f32 %v1316_v55, %v1292_v47  ;;  %v1332_v3 = vmul.f32 %v1316_v55, %v1295_v34 }
 0xe36   :  { %v8703_v20 = vadd.f32 %v1170_v14, %v1163_v45 }
 0xe37   :  { %1351 = vperm.xlu0 %7581, %v1329_v31   ;;  %1354 = vperm.xlu1 %7582, %v1330_v44   ;;  %v1298_v58 = vpop.xlane.xlu0 %1297 }
 0xe38   :  { %v1333_v9 = vmul.f32 %v1320_v57, %v1298_v58 }
 0xe3b   :  { %1357 = vperm.xlu1 %7582, %v1331_v51   ;;  %1363 = vperm.xlu0 %7581, %v1333_v9   ;;  %v1301_v2 = vpop.xlane.xlu0 %1300  ;;  %v1173_v51 = vmul.f32 0.5, %v8678_v18 }
 0xe3c   :  { %v1334_v13 = vmul.f32 %v1320_v57, %v1301_v2 }
 0xe3d   :  { %7713 = vtanh.f32 %v1173_v51 }
 0xe3f   :  { %1360 = vperm.xlu1 %7582, %v1332_v3   ;;  %v1304_v43 = vpop.xlane.xlu0 %1303 }
 0xe40   :  { %v1335_v50 = vmul.f32 %v1324_v27, %v1304_v43 }
 0xe42   :  { %1369 = vperm.xlu0 %7581, %v1335_v50   ;;  %v1177_v50 = vsel %vm311_vm9, %v8678_v18, -inf }
 0xe43   :  { %1366 = vperm.xlu1 %7582, %v1334_v13   ;;  %v1307_v7 = vpop.xlane.xlu0 %1306 }
 0xe44   :  { %v1336_v49 = vmul.f32 %v1324_v27, %v1307_v7 }
 0xe46   :  { %7583 = vset.pattern.permute.xlu0 %v8172_v52 }
 0xe47   :  { %1339 = vperm.xlu0 %7583, %v8703_v20   ;;  %1372 = vperm.xlu1 %7582, %v1336_v49   ;;  %v7714_v13 = vpop.eup %7713 }
 0xe48   :  { %v1175_v14 = vadd.f32 1.0, %v7714_v13 }
 0xe4a   :  { %v1176_v7 = vmul.f32 0.5, %v1175_v14 }
 0xe4b   :  { %7585 = vset.pattern.permute.xlu1 %v8173_v53  ;;  %7584 = vset.pattern.permute.xlu0 %v8173_v53 }
 0xe4c   :  { %v1432_v45 = vsub.f32 1.0, %v1176_v7 }
 0xeb6   :  { %v1355_v24 = vpop.permute.xlu1 %1354  ;;  %v1352_v28 = vpop.permute.xlu0 %1351 }
 0xeb7   :  { %v1381_v39 = vrot.slane %v1355_v24, %v8481_v61  ;;  %v1377_v29 = vrot.slane %v1352_v28, %v8478_v60 }
 0xeb9   :  { %v1382_v44 = vsel %vm522_vm5, %v1381_v39, %v1377_v29 }
 0xeba   :  { %v1358_v25 = vpop.permute.xlu1 %1357  ;;  %v1364_v36 = vpop.permute.xlu0 %1363 }
 0xebb   :  { %v1386_v40 = vrot.slane %v1358_v25, %v8478_v60  ;;  %v1395_v41 = vrot.slane %v1364_v36, %v8478_v60 }
 0xebe   :  { %v1361_v5 = vpop.permute.xlu1 %1360 }
 0xebf   :  { %v1390_v37 = vrot.slane %v1361_v5, %v8481_v61 }
 0xec1   :  { %v1370_v54 = vpop.permute.xlu0 %1369  ;;  %v1391_v47 = vsel %vm522_vm5, %v1390_v37, %v1386_v40 }
 0xec2   :  { %v1367_v17 = vpop.permute.xlu1 %1366  ;;  %v1404_v57 = vrot.slane %v1370_v54, %v8478_v60  ;;  %v1410_v9 = vsel %vm551_vm6, %v1391_v47, %v1382_v44 }
 0xec3   :  { %v1399_v46 = vrot.slane %v1367_v17, %v8481_v61 }
 0xec5   :  { %v1400_v31 = vsel %vm522_vm5, %v1399_v46, %v1395_v41 }
 0xec6   :  { %v1373_v55 = vpop.permute.xlu1 %1372  ;;  %v1411_v34 = vsel %vm553_vm7, %v1400_v31, %v1410_v9  ;;  %v1340_v6 = vpop.permute.xlu0 %1339 }
 0xec7   :  { %v1408_v58 = vrot.slane %v1373_v55, %v8481_v61 }
 0xec9   :  { %v1409_v2 = vsel %vm522_vm5, %v1408_v58, %v1404_v57 }
 0xeca   :  { %v1412_v3 = vsel %vm555_vm8, %v1409_v2, %v1411_v34 }
 0xecb   :  { %v1414_v27 = vmul.f32 %v1412_v3, %v1340_v6 }
 0xecd   :  { %v1415_v43 = vsel %vm362_vm4, %v1414_v27, -inf }
 0xece   :  { %1416 = vmax.xlane.f32.xlu1 %v1415_v43 }
 0xed2   :  { %1178 = vmax.xlane.f32.xlu1 %v1177_v50  ;;  %v1172_v50 = vadd.f32 1.0, %v8703_v20 }
 0xee3   :  { %1435 = vperm.xlu1 %7585, %v1432_v45  }
 0xee7   :  { %7588 = vset.pattern.permute.xlu1 %v8178_v32 }
 0xf5b   :  { %v1417_v49 = vpop.xlane.xlu1 %1416 }
 0xf5c   :  { %v1418_v24 = vsub.f32 %v1414_v27, %v1417_v49 }
 0xf5e   :  { %v1419_v28 = vmul.f32 1.442695, %v1418_v24 }
 0xf5f   :  { %v1179_v25 = vpop.xlane.xlu1 %1178 }
 0xf60   :  { %7715 = vpow2.f32 %v1419_v28  ;;  %v1180_v5 = vsub.f32 %v8678_v18, %v1179_v25 }
 0xf62   :  { %v1181_v36 = vmul.f32 1.442695, %v1180_v5 }
 0xf63   :  { %v1436_v29 = vpop.permute.xlu1 %1435 }
 0xf64   :  { %7717 = vpow2.f32 %v1181_v36  ;;  %v1438_v31 = vmul.f32 %v1436_v29, %v8556_v16  ;;  %v8747_v16 = vld [vmem:[%s10187_s8] sm:$0xff]  }
 0xf6a   :  { %v7716_v37 = vpop.eup %7715 }
 0xf6b   :  { %v1421_v17 = vsel %vm362_vm4, %v7716_v37, 0.0 }
 0xf6c   :  { %1422 = vadd.xlane.f32.xlu0 %v1421_v17 }
 0xf6e   :  { %v7718_v39 = vpop.eup %7717 }
 0xf6f   :  { %1184 = vrot.lane.b32.xlu1 %v7718_v39, %s8174_s26 }
 0xf82   :  { %1428 = vperm.xlu0 %7584, %v1176_v7  }
 0xf86   :  { %7586 = vset.pattern.permute.xlu0 %v8177_v12 }
 0xfe1   :  { %v1185_v40 = vpop.permute.xlu1 %1184 }
 0xfe2   :  { %v1187_v46 = vsel %vm322_vm10, %v1185_v40, 0.0 }
 0xfe3   :  { %1188 = vadd.xlane.f32.xlu1 %v1187_v46 }
 0xff9   :  { %v1423_v41 = vpop.xlane.xlu0 %1422 }
 0xffa   :  { %7719 = vrcp.f32 %v1423_v41 }
0x1001   :  { %v1429_v47 = vpop.permute.xlu0 %1428 }
0x1004   :  { %v7720_v18 = vpop.eup %7719 }
0x1005   :  { %v1425_v54 = vmul.f32 %v7720_v18, %v7716_v37 }
0x1007   :  { %v1431_v55 = vmul.f32 %v1429_v47, %v1425_v54 }
0x1009   :  { %v1439_v44 = vadd.f32 %v1438_v31, %v1431_v55 }
0x100b   :  { %7207 = vmatmul.mubr.msk.f32.vlgmr.msra.gmra.mrb[6].mxu1 %vm95_vm1, %v1439_v44 }
0x100c   :  { %7216 = vmatpush3.bf16.msra.mxu1 %v8525_v19  ;;  %7219 = vmatprep.mubr.msk.bf16.mxu1 %vm8166_vm0, %v8165_v1  ;;  %v8756_v19 = vld [vmem:[%s10187_s8 + $0x8] sm:$0xff]  }
0x100d   :  { %7217 = vmatprep.subr.bf16.mxu1 %v8165_v1 }
0x1010   :  { %7218 = vmatpush3.bf16.msra.mxu1 %v8532_v21 }
0x1011   :  { %7237 = vmatprep.subr.bf16.mxu1 %v8165_v1 }
0x1013   :  { %7220 = vmatmul.mubr.msk.bf16.vlgmr.msra.gmra.mrb[16].mxu1 %vm153_vm2, %v8627_v38 }
0x1014   :  { %7238 = vmatpush3.bf16.msra.mxu1 %v8747_v16  ;;  %7241 = vmatprep.mubr.msk.bf16.mxu1 %vm8166_vm0, %v8165_v1 }
0x1015   :  { %7239 = vmatprep.subr.bf16.mxu1 %v8165_v1 }
0x1018   :  { %7240 = vmatpush3.bf16.msra.mxu1 %v8756_v19 }
0x1019   :  { %7487 = vmatprep.subr.bf16.mxu1 %v8175_v62 }
0x1070   :  { %v1189_v21 = vpop.xlane.xlu1 %1188 }
0x1071   :  { %7721 = vrcp.f32 %v1189_v21 }
0x107b   :  { %v7722_v57 = vpop.eup %7721 }
0x107c   :  { %v1191_v58 = vmul.f32 %v7722_v57, %v7718_v39 }
0x107e   :  { %1520 = vperm.xlu1 %7588, %v1191_v58   ;;  %1526 = vperm.xlu0 %7586, %v1191_v58  }
0x1082   :  { %7587 = vset.pattern.permute.xlu0 %v8176_v8  ;;  %7591 = vset.pattern.permute.xlu1 %v8171_v59 }
0x1083   :  { %1515 = vperm.xlu0 %7587, %v1191_v58  }
0x1087   :  { %7589 = vset.pattern.permute.xlu0 %v8179_v26 }
0x10de   :  { %v1509_v9 = vpop.f32.mrb[6].mxu1 }
0x10df   :  { %v7208_v51 = vpop.f32.mrb[7].mxu1 }
0x10e6   :  { %v8763_v2 = vpop.f32.mrb[16].mxu1 }
0x10e7   :  { %v7221_v34 = vpop.f32.mrb[17].mxu1 }
0x10e8   :  { %v1827_v3 = vpop.f32.mrb[18].mxu1 }
0x10e9   :  { %v7222_v6 = vpop.f32.mrb[19].mxu1 }
0x10fd   :  { %v1527_v27 = vpop.permute.xlu0 %1526  ;;  %v1521_v14 = vpop.permute.xlu1 %1520 }
0x10fe   :  { %v1529_v43 = vmul.f32 %v1527_v27, %v1509_v9  ;;  %v1523_v45 = vmul.f32 %v1521_v14, %v1439_v44 }
0x1100   :  { %1531 = vrot.lane.b32.xlu0 %v1529_v43, %s8180_s25 }
0x1102   :  { %v1516_v13 = vpop.permute.xlu0 %1515 }
0x1103   :  { %v1518_v7 = vmul.f32 %v1516_v13, %v1509_v9 }
0x1104   :  { %1540 = vperm.xlu0 %7589, %v1172_v50  }
0x1105   :  { %v1524_v49 = vadd.f32 %v1523_v45, %v1518_v7 }
0x1108   :  { %7590 = vset.pattern.permute.xlu0 %v8171_v59 }
0x1172   :  { %v1532_v24 = vpop.permute.xlu0 %1531 }
0x1173   :  { %v1534_v28 = vadd.f32 %v1532_v24, %v1524_v49 }
0x1175   :  { %v1535_v25 = vmax.f32 %v1534_v28, 1e-30 }
0x1177   :  { %7723 = vlog2.f32 %v1535_v25 }
0x1181   :  { %v7724_v5 = vpop.eup %7723 }
0x1182   :  { %v1537_v36 = vmul.f32 0.6931472, %v7724_v5 }
0x1183   :  { %v1541_v37 = vpop.permute.xlu0 %1540 }
0x1184   :  { %v1543_v17 = vmul.f32 %v1541_v37, %v1537_v36 }
0x1186   :  { %v1544_v39 = vmul.f32 1.442695, %v1543_v17 }
0x1188   :  { %7725 = vpow2.f32 %v1544_v39 }
0x1192   :  { %v7726_v29 = vpop.eup %7725 }
0x1193   :  { %v1546_v20 = vsel %vm362_vm4, %v7726_v29, 0.0 }
0x1194   :  { %1547 = vadd.xlane.f32.xlu0 %v1546_v20 }
0x1221   :  { %v1548_v40 = vpop.xlane.xlu0 %1547 }
0x1222   :  { %v1549_v46 = vadd.f32 1e-16, %v1548_v40 }
0x1224   :  { %7727 = vrcp.f32 %v1549_v46 }
0x122e   :  { %v7728_v41 = vpop.eup %7727 }
0x122f   :  { %v8769_v18 = vmul.f32 %v7728_v41, %v7726_v29 }
0x1231   :  { %v1555_v54 = vrot.slane %v8769_v18, %v8433_v15  ;;  %v1566_v47 = vrot.slane %v8769_v18, %v8457_v11 }
0x1233   :  { %1557 = vbcast.lane.b32.xlu1 %v1555_v54, 256 }
0x1237   :  { %1561 = vbcast.lane.b32.xlu1 %v1555_v54, 264  ;;  %v8788_v54 = vld [vmem:[%s10185_s6] sm:$0xff]  }
0x123b   :  { %1568 = vbcast.lane.b32.xlu1 %v1566_v47, 256 }
0x123f   :  { %1572 = vbcast.lane.b32.xlu1 %v1566_v47, 264  ;;  %v8798_v47 = vld [vmem:[%s10186_s7] sm:$0xff]  }
0x12a5   :  { %v1558_v31 = vpop.permute.xlu1 %1557 }
0x12a6   :  { %v1596_v55 = vmul.f32 %v1558_v31, %v8651_v4  ;;  %v8807_v31 = vld [vmem:[%s10186_s7 + $0x8] sm:$0xff]  }
0x12a8   :  { %v1600_v57 = vsel %vm95_vm1, %v1596_v55, 0.0 }
0x12a9   :  { %v1562_v44 = vpop.permute.xlu1 %1561 }
0x12aa   :  { %v1597_v21 = vmul.f32 %v1562_v44, %v8656_v48 }
0x12ac   :  { %v1601_v58 = vsel %vm95_vm1, %v1597_v21, 0.0 }
0x12ad   :  { %v1602_v9 = vadd.f32 %v1601_v58, %v1600_v57  ;;  %v1569_v51 = vpop.permute.xlu1 %1568 }
0x12ae   :  { %v1598_v3 = vmul.f32 %v1569_v51, %v8658_v30 }
0x12af   :  { %v1603_v34 = vrot.slane %v1602_v9, 4 }
0x12b0   :  { %v1609_v13 = vsel %vm95_vm1, %v1598_v3, 0.0 }
0x12b1   :  { %v1604_v6 = vadd.f32 %v1603_v34, %v1602_v9  ;;  %v1573_v27 = vpop.permute.xlu1 %1572 }
0x12b2   :  { %v1599_v43 = vmul.f32 %v1573_v27, %v8664_v42 }
0x12b3   :  { %v1605_v50 = vrot.slane %v1604_v6, 2 }
0x12b4   :  { %v1610_v14 = vsel %vm95_vm1, %v1599_v43, 0.0 }
0x12b5   :  { %v1606_v7 = vadd.f32 %v1605_v50, %v1604_v6  ;;  %v1611_v45 = vadd.f32 %v1610_v14, %v1609_v13 }
0x12b7   :  { %v1612_v49 = vrot.slane %v1611_v45, 4  ;;  %v1607_v24 = vrot.slane %v1606_v7, 1 }
0x12b9   :  { %v1613_v28 = vadd.f32 %v1612_v49, %v1611_v45  ;;  %v1608_v5 = vadd.f32 %v1607_v24, %v1606_v7 }
0x12bb   :  { %v1614_v25 = vrot.slane %v1613_v28, 2  ;;  %v1739_v17 = vpack.c.bf16 %v1608_v5, %v1608_v5 }
0x12bd   :  { %v1615_v36 = vadd.f32 %v1614_v25, %v1613_v28  ;;  %v1743_v20 = vunpack.c.l.b16 %v1739_v17  ;;  %v1588_v17 = vrot.slane %v8769_v18, %v8466_v35 }
0x12bf   :  { %v1616_v37 = vrot.slane %v1615_v36, 1 }
0x12c1   :  { %v1617_v39 = vadd.f32 %v1616_v37, %v1615_v36  ;;  %v1577_v37 = vrot.slane %v8769_v18, %v8462_v22 }
0x12c3   :  { %v1740_v29 = vpack.c.bf16 %v1617_v39, %v1617_v39 }
0x12c5   :  { %v1744_v40 = vunpack.c.l.b16 %v1740_v29 }
0x12c7   :  { %v1745_v46 = vsel %vm551_vm6, %v1744_v40, %v1743_v20 }
0x12c8   :  { %v1746_v41 = vpack.c.b16 %v1745_v46, %v1745_v46 }
0x12ca   :  { %7212 = vmatmul.mubr.msk.bf16.vlgmr.msra.gmra.mrb[12].mxu0 %vm95_vm1, %v1746_v41 }
0x12cb   :  { %7224 = vmatpush3.bf16.msra.mxu0 %v8788_v54  ;;  %7225 = vmatprep.mubr.msk.bf16.mxu0 %vm8166_vm0, %v8165_v1 }
0x12cc   :  { %7229 = vmatprep.subr.bf16.mxu0 %v8165_v1 }
0x12d2   :  { %7226 = vmatmul.mubr.msk.bf16.vlgmr.msra.gmra.mrb[16].mxu0 %vm95_vm1, %v1746_v41 }
0x12d3   :  { %7230 = vmatpush3.bf16.msra.mxu0 %v8798_v47  ;;  %7233 = vmatprep.mubr.msk.bf16.mxu0 %vm8166_vm0, %v8165_v1 }
0x12d4   :  { %7231 = vmatprep.subr.bf16.mxu0 %v8165_v1 }
0x12d7   :  { %7232 = vmatpush3.bf16.msra.mxu0 %v8807_v31 }
0x12d8   :  { %7252 = vmatprep.subr.bf16.mxu0 %v8165_v1 }
0x12de   :  { %7234 = vmatmul.mubr.msk.bf16.vlgmr.msra.gmra.mrb[16].mxu0 %vm153_vm2, %v8627_v38 }
0x12df   :  { %7253 = vmatpush3.bf16.msra.mxu0 %v8570_v23  ;;  %7254 = vmatprep.mubr.msk.bf16.mxu0 %vm8166_vm0, %v8165_v1  ;;  %v1836_v23 = vld [vmem:[%s10208_s21 + $0x4] sm:$0x3] }
0x12e0   :  { %7266 = vmatprep.subr.bf16.mxu0 %v8165_v1 }
0x139d   :  { %v1784_v55 = vpop.f32.mrb[12].mxu0 }
0x139e   :  { %v1825_v44 = vadd.f32 %v8763_v2, %v1784_v55  ;;  %v7213_v21 = vpop.f32.mrb[13].mxu0 }
0x139f   :  { %v1787_v57 = vpop.f32.mrb[14].mxu0 }
0x13a0   :  { %v1830_v58 = vadd.f32 %v8604_v0, %v1825_v44  ;;  %v7214_v9 = vpop.f32.mrb[15].mxu0 }
0x13a2   :  { %v1831_v51 = vmul.f32 0.5, %v1830_v58 }
0x13a4   :  { %7729 = vtanh.f32 %v1831_v51 }
0x13ae   :  { %v7730_v34 = vpop.eup %7729 }
0x13af   :  { %v1833_v3 = vadd.f32 1.0, %v7730_v34 }
0x13b1   :  { %v1834_v38 = vmul.f32 0.5, %v1833_v3  ;;  %v1912_v6 = vpop.f32.mrb[16].mxu0 }
0x13b2   :  { %v7507_v27 = vadd.f32 %v1912_v6, %v1836_v23  ;;  %v7235_v43 = vpop.f32.mrb[17].mxu0  ;;  %v1689_v23 = vrot.slane %v8671_v56, %v8428_v10 }
0x13b3   :  { %1835 = vst [vmem:[#allocation3 + $0x2] sm:$0x3] %v1834_v38  ;;  %v1915_v50 = vpop.f32.mrb[18].mxu0 }
0x13b4   :  { %7731 = vtanh.f32 %v7507_v27  ;;  %v7236_v2 = vpop.f32.mrb[19].mxu0  ;;  %v1919_v0 = vmul.f32 0.5, %v7507_v27  ;;  %v1697_v50 = vrot.slane %v1689_v23, %v8428_v10 }
0x13b5   :  { %v1690_v2 = vcombine.high %v1689_v23, %v1689_v23 }
0x13b6   :  { %7733 = vtanh.f32 %v1919_v0 }
0x13be   :  { %v7732_v13 = vpop.eup %7731 }
0x13bf   :  { %1926 = vrot.lane.b32.xlu1 %v7732_v13, %s8167_s1 }
0x13c0   :  { %v7734_v14 = vpop.eup %7733 }
0x13c1   :  { %v1921_v7 = vadd.f32 1.0, %v7734_v14 }
0x13c3   :  { %v1922_v45 = vmul.f32 0.5, %v1921_v7  ;;  %v1708_v7 = vrot.slane %v1697_v50, %v8433_v15 }
0x13c5   :  { %v1924_v28 = vmul.f32 %v1922_v45, %v8614_v63  ;;  %v1618_v63 = vmul.f32 0.5, %v8671_v56 }
0x1431   :  { %v1927_v49 = vpop.permute.xlu1 %1926 }
0x1432   :  { %v1929_v24 = vmul.f32 %v1927_v49, %v1922_v45 }
0x1434   :  { %1931 = vrot.lane.b32.xlu1 %v1929_v24, %s8168_s2 }
0x14a6   :  { %v1932_v25 = vpop.permute.xlu1 %1931 }
0x14a7   :  { %v8825_v5 = vadd.f32 %v1932_v25, %v1924_v28 }
0x14a9   :  { %7735 = vtanh.f32 %v8825_v5 }
0x14aa   :  { %7737 = vtanh.f32 %v1618_v63 }
0x14b3   :  { %v7736_v36 = vpop.eup %7735 }
0x14b4   :  { %1937 = vrot.lane.b32.xlu1 %v7736_v36, %s8167_s1  ;;  %v7738_v39 = vpop.eup %7737 }
0x14b5   :  { %v1620_v29 = vadd.f32 1.0, %v7738_v39 }
0x14b7   :  { %v1621_v20 = vmul.f32 0.5, %v1620_v29 }
0x14b8   :  { %1579 = vbcast.lane.b32.xlu1 %v1577_v37, 256 }
0x14b9   :  { %v1629_v40 = vrot.slane %v1621_v20, %v8428_v10 }
0x14bb   :  { %v1637_v46 = vrot.slane %v1629_v40, %v8428_v10  ;;  %v1630_v57 = vcombine.high %v1629_v40, %v1629_v40 }
0x14bc   :  { %1583 = vbcast.lane.b32.xlu1 %v1577_v37, 264 }
0x14bd   :  { %v1648_v21 = vrot.slane %v1637_v46, %v8433_v15  ;;  %v1644_v34 = vrot.slane %v1630_v57, %v8428_v10 }
0x14bf   :  { %v1652_v27 = vrot.slane %v1644_v34, %v8433_v15 }
0x14c0   :  { %1590 = vbcast.lane.b32.xlu1 %v1588_v17, 256 }
0x14c4   :  { %1594 = vbcast.lane.b32.xlu1 %v1588_v17, 264 }
0x1526   :  { %v1938_v41 = vpop.permute.xlu1 %1937 }
0x1527   :  { %v1940_v55 = vmul.f32 %v1938_v41, %v1922_v45  ;;  %v1704_v45 = vrot.slane %v1690_v2, %v8428_v10 }
0x1529   :  { %v1941_v44 = vpack.c.bf16 %v1940_v55, %v1940_v55  ;;  %v1712_v28 = vrot.slane %v1704_v45, %v8433_v15 }
0x152a   :  { %v1580_v58 = vpop.permute.xlu1 %1579 }
0x152b   :  { %v1655_v9 = vmul.f32 %v1648_v21, %v1580_v58  ;;  %1943 = vrot.lane.b32.xlu0 %v1941_v44, %s8168_s2  ;;  %v1715_v49 = vmul.f32 %v1708_v7, %v1580_v58 }
0x152d   :  { %v1659_v51 = vsub.f32 1.0, %v1655_v9 }
0x152e   :  { %v1584_v3 = vpop.permute.xlu1 %1583 }
0x152f   :  { %v1656_v38 = vmul.f32 %v1648_v21, %v1584_v3  ;;  %1667 = vrot.lane.b32.xlu1 %v1659_v51, %s8181_s0  ;;  %v1716_v25 = vmul.f32 %v1708_v7, %v1584_v3 }
0x1531   :  { %v1660_v6 = vsub.f32 1.0, %v1656_v38 }
0x1532   :  { %v1591_v43 = vpop.permute.xlu1 %1590 }
0x1533   :  { %v1657_v13 = vmul.f32 %v1652_v27, %v1591_v43  ;;  %1669 = vrot.lane.b32.xlu1 %v1660_v6, %s8181_s0  ;;  %v1717_v36 = vmul.f32 %v1712_v28, %v1591_v43 }
0x1535   :  { %v1661_v0 = vsub.f32 1.0, %v1657_v13 }
0x1536   :  { %v1595_v14 = vpop.permute.xlu1 %1594 }
0x1537   :  { %v1658_v56 = vmul.f32 %v1652_v27, %v1595_v14  ;;  %1671 = vrot.lane.b32.xlu0 %v1661_v0, %s8181_s0  ;;  %v1718_v37 = vmul.f32 %v1712_v28, %v1595_v14  ;;  %v8885_v14 = vld [vmem:[%s10188_s9] ss:$0 sm:$0xff] }
0x1539   :  { %v1662_v24 = vsub.f32 1.0, %v1658_v56 }
0x153b   :  { %1723 = vrot.lane.b32.xlu0 %v1715_v49, %s8182_s22  ;;  %1673 = vrot.lane.b32.xlu1 %v1662_v24, %s8181_s0 }
0x153f   :  { %1727 = vrot.lane.b32.xlu0 %v1717_v36, %s8182_s22  ;;  %1725 = vrot.lane.b32.xlu1 %v1716_v25, %s8182_s22 }
0x1543   :  { %1729 = vrot.lane.b32.xlu1 %v1718_v37, %s8182_s22 }
0x159d   :  { %v8854_v17 = vpop.permute.xlu0 %1943 }
0x159e   :  { %7242 = vmatmul.mubr.msk.bf16.vlgmr.msra.gmra.mrb[20].mxu1 %vm153_vm2, %v8854_v17 }
0x159f   :  { %7489 = vmatpush3.bf16.msra.mxu1 %v8511_v33  ;;  %7249 = vmatprep.mubr.msk.f32.mxu1 %vm8166_vm0, %v8165_v1 }
0x15a0   :  { %7258 = vmatprep.subr.bf16.mxu1 %v8165_v1 }
0x15a1   :  { %v1668_v63 = vpop.permute.xlu1 %1667 }
0x15a2   :  { %v1679_v20 = vmul.f32 %v1668_v63, %v8651_v4 }
0x15a5   :  { %v1670_v39 = vpop.permute.xlu1 %1669 }
0x15a6   :  { %v1680_v55 = vmul.f32 %v1670_v39, %v8656_v48 }
0x15a9   :  { %v1672_v29 = vpop.permute.xlu0 %1671 }
0x15aa   :  { %v1681_v44 = vmul.f32 %v1672_v29, %v8658_v30 }
0x15ad   :  { %v1724_v40 = vpop.permute.xlu0 %1723  ;;  %v1674_v46 = vpop.permute.xlu1 %1673 }
0x15ae   :  { %v8863_v41 = vadd.f32 %v1724_v40, %v1679_v20  ;;  %v1682_v3 = vmul.f32 %v1674_v46, %v8664_v42 }
0x15b0   :  { %v2024_v21 = vadd.f32 1e-16, %v8863_v41 }
0x15b1   :  { %v1728_v57 = vpop.permute.xlu0 %1727  ;;  %v1726_v58 = vpop.permute.xlu1 %1725 }
0x15b2   :  { %v8868_v9 = vadd.f32 %v1728_v57, %v1681_v44  ;;  %v8870_v51 = vadd.f32 %v1726_v58, %v1680_v55  ;;  %v2028_v34 = vmul.f32 %v2024_v21, %v2024_v21 }
0x15b4   :  { %v2032_v4 = vsel %vm95_vm1, %v2028_v34, 0.0  ;;  %v2026_v23 = vadd.f32 1e-16, %v8868_v9  ;;  %v2025_v38 = vadd.f32 1e-16, %v8870_v51 }
0x15b5   :  { %2033 = vadd.xlane.f32.xlu0 %v2032_v4  ;;  %v1730_v48 = vpop.permute.xlu1 %1729 }
0x15b6   :  { %v8876_v30 = vadd.f32 %v1730_v48, %v1682_v3  ;;  %v2030_v6 = vmul.f32 %v2026_v23, %v2026_v23  ;;  %v2029_v27 = vmul.f32 %v2025_v38, %v2025_v38 }
0x15b8   :  { %v2038_v43 = vsel %vm95_vm1, %v2030_v6, 0.0  ;;  %v2035_v50 = vsel %vm95_vm1, %v2029_v27, 0.0  ;;  %v2027_v2 = vadd.f32 1e-16, %v8876_v30 }
0x15b9   :  { %2039 = vadd.xlane.f32.xlu0 %v2038_v43  ;;  %2036 = vadd.xlane.f32.xlu1 %v2035_v50 }
0x15ba   :  { %v2031_v42 = vmul.f32 %v2027_v2, %v2027_v2 }
0x15bc   :  { %v2041_v13 = vsel %vm95_vm1, %v2031_v42, 0.0 }
0x15bd   :  { %2042 = vadd.xlane.f32.xlu0 %v2041_v13 }
0x1642   :  { %v2034_v24 = vpop.xlane.xlu0 %2033 }
0x1643   :  { %v2044_v25 = vmax.f32 %v2034_v24, 1e-16 }
0x1645   :  { %7739 = vrsqrt.f32 %v2044_v25 }
0x1646   :  { %v2037_v28 = vpop.xlane.xlu1 %2036  ;;  %v2040_v36 = vpop.xlane.xlu0 %2039 }
0x1647   :  { %v2045_v37 = vmax.f32 %v2037_v28, 1e-16  ;;  %v2046_v39 = vmax.f32 %v2040_v36, 1e-16 }
0x1649   :  { %7741 = vrsqrt.f32 %v2045_v37 }
0x164a   :  { %v2043_v29 = vpop.xlane.xlu0 %2042  ;;  %7743 = vrsqrt.f32 %v2046_v39 }
0x164b   :  { %v2047_v20 = vmax.f32 %v2043_v29, 1e-16 }
0x164d   :  { %7745 = vrsqrt.f32 %v2047_v20 }
0x164f   :  { %v7740_v57 = vpop.eup %7739 }
0x1650   :  { %v2052_v48 = vmul.f32 %v7740_v57, %v2024_v21 }
0x1653   :  { %v7742_v4 = vpop.eup %7741 }
0x1654   :  { %v2053_v13 = vmul.f32 %v7742_v4, %v2025_v38 }
0x1671   :  { %v1982_v0 = vpop.f32.mrb[20].mxu1 }
0x1672   :  { %v8888_v7 = vadd.f32 %v8885_v14, %v1982_v0  ;;  %v7243_v45 = vpop.f32.mrb[21].mxu1  ;;  %v7744_v0 = vpop.eup %7743 }
0x1673   :  { %v1985_v56 = vpop.f32.mrb[22].mxu1  ;;  %v2054_v21 = vmul.f32 %v7744_v0, %v2026_v23  ;;  %v7746_v25 = vpop.eup %7745 }
0x1674   :  { %1988 = vst.msk [vmem:[#allocation2] sm:$0x3] %vm289_vm3, %v8888_v7  ;;  %v7244_v49 = vpop.f32.mrb[23].mxu1  ;;  %1990 = vrot.lane.b32.xlu1 %v8888_v7, %s8169_s3 }
0x16e6   :  { %v1991_v63 = vpop.permute.xlu1 %1990 }
0x16e7   :  { %1993 = vst.msk [vmem:[#allocation2 + $0x2] sm:$0x3] %vm289_vm3, %v1991_v63  ;;  %v2055_v63 = vmul.f32 %v7746_v25, %v2027_v2 }
0x16ee   :  { %v8895_v40 = vld [vmem:[#allocation2] sm:$0xf] }
0x16ef   :  { %v2056_v46 = vadd.f32 1e-16, %v8895_v40 }
0x16f1   :  { %v2057_v55 = vmul.f32 %v2056_v46, %v2056_v46  ;;  %v2070_v44 = vrot.slane %v2056_v46, %v8428_v10 }
0x16f3   :  { %v2058_v58 = vsel %vm362_vm4, %v2057_v55, 0.0  ;;  %v2078_v34 = vrot.slane %v2070_v44, %v8428_v10  ;;  %v2071_v3 = vcombine.high %v2070_v44, %v2070_v44 }
0x16f4   :  { %2059 = vadd.xlane.f32.xlu0 %v2058_v58 }
0x16f5   :  { %v2091_v6 = vrot.slane %v2078_v34, %v8433_v15  ;;  %v2086_v27 = vcombine.high %v2078_v34, %v2078_v34  ;;  %v2085_v43 = vrot.slane %v2071_v3, %v8428_v10  ;;  %v1996_v34 = vand.u32 2147483647, %v8895_v40 }
0x16f7   :  { %v2108_v50 = vmul.f32 %v2091_v6, %v2052_v48  ;;  %v2099_v42 = vrot.slane %v2086_v27, %v8433_v15  ;;  %v2109_v49 = vmul.f32 %v2091_v6, %v2053_v13  ;;  %v2095_v24 = vrot.slane %v2085_v43, %v8433_v15 }
0x16f8   :  { %v2087_v29 = vcombine.high %v2085_v43, %v2085_v43  ;;  %v1997_v3 = vsub.f32 0.0, %v1996_v34 }
0x16f9   :  { %v2116_v45 = vsel %vm95_vm1, %v2108_v50, 0.0  ;;  %v2112_v56 = vmul.f32 %v2099_v42, %v2052_v48  ;;  %v2119_v36 = vsel %vm95_vm1, %v2109_v49, 0.0  ;;  %v2110_v37 = vmul.f32 %v2095_v24, %v2054_v21 }
0x16fa   :  { %2117 = vadd.xlane.f32.xlu0 %v2116_v45  ;;  %v2111_v39 = vmul.f32 %v2095_v24, %v2055_v63  ;;  %v2113_v46 = vmul.f32 %v2099_v42, %v2053_v13  ;;  %v2103_v55 = vrot.slane %v2087_v29, %v8433_v15  ;;  %v1998_v4 = vmul.f32 1.442695, %v1997_v3 }
0x16fb   :  { %v2128_v28 = vsel %vm95_vm1, %v2112_v56, 0.0  ;;  %v2122_v38 = vsel %vm95_vm1, %v2110_v37, 0.0 }
0x16fc   :  { %2129 = vadd.xlane.f32.xlu1 %v2128_v28  ;;  %v2125_v20 = vsel %vm95_vm1, %v2111_v39, 0.0  ;;  %v2131_v23 = vsel %vm95_vm1, %v2113_v46, 0.0  ;;  %v2114_v44 = vmul.f32 %v2103_v55, %v2054_v21  ;;  %v2115_v58 = vmul.f32 %v2103_v55, %v2055_v63 }
0x16fd   :  { %7747 = vpow2.f32 %v1998_v4 }
0x16fe   :  { %2120 = vadd.xlane.f32.xlu0 %v2119_v36  ;;  %v2134_v57 = vsel %vm95_vm1, %v2114_v44, 0.0  ;;  %v2137_v2 = vsel %vm95_vm1, %v2115_v58, 0.0 }
0x1702   :  { %2123 = vadd.xlane.f32.xlu0 %v2122_v38 }
0x1706   :  { %2126 = vadd.xlane.f32.xlu0 %v2125_v20 }
0x1707   :  { %v7748_v43 = vpop.eup %7747 }
0x1708   :  { %v2000_v42 = vadd.f32 1.0, %v7748_v43 }
0x170a   :  { %2132 = vadd.xlane.f32.xlu0 %v2131_v23 }
0x170e   :  { %2135 = vadd.xlane.f32.xlu0 %v2134_v57  ;;  %v1995_v57 = vmax.f32 %v8895_v40, 0.0 }
0x1712   :  { %2138 = vadd.xlane.f32.xlu0 %v2137_v2 }
0x1781   :  { %v2060_v48 = vpop.xlane.xlu0 %2059 }
0x1782   :  { %v2061_v6 = vmax.f32 %v2060_v48, 1e-16 }
0x1784   :  { %7749 = vrsqrt.f32 %v2061_v6 }
0x1785   :  { %7751 = vlog2.f32 %v2000_v42 }
0x1787   :  { %v2118_v27 = vpop.xlane.xlu0 %2117 }
0x1789   :  { %v2130_v25 = vpop.xlane.xlu1 %2129 }
0x178b   :  { %v2121_v50 = vpop.xlane.xlu0 %2120 }
0x178e   :  { %v7750_v13 = vpop.eup %7749 }
0x178f   :  { %v2144_v0 = vrot.slane %v7750_v13, %v8433_v15  ;;  %v2124_v45 = vpop.xlane.xlu0 %2123  ;;  %v2152_v49 = vrot.slane %v7750_v13, %v8462_v22  ;;  %v2148_v28 = vrot.slane %v7750_v13, %v8457_v11  ;;  %v7752_v39 = vpop.eup %7751  ;;  %v2156_v29 = vrot.slane %v7750_v13, %v8466_v35 }
0x1790   :  { %v2002_v23 = vmul.f32 0.6931472, %v7752_v39 }
0x1791   :  { %v2161_v56 = vmul.f32 %v2144_v0, %v2118_v27  ;;  %v2162_v24 = vmul.f32 %v2144_v0, %v2121_v50  ;;  %v2165_v36 = vmul.f32 %v2152_v49, %v2130_v25  ;;  %v2163_v37 = vmul.f32 %v2148_v28, %v2124_v45 }
0x1792   :  { %v8920_v2 = vadd.f32 %v2002_v23, %v1995_v57  ;;  %v2009_v23 = vsel %vm311_vm9, %v8895_v40, -inf }
0x1793   :  { %2183 = vperm.xlu0 %7590, %v2161_v56   ;;  %2186 = vperm.xlu1 %7591, %v2162_v24   ;;  %v2127_v21 = vpop.xlane.xlu0 %2126 }
0x1794   :  { %v2164_v38 = vmul.f32 %v2148_v28, %v2127_v21 }
0x1797   :  { %2195 = vperm.xlu0 %7590, %v2165_v36   ;;  %2189 = vperm.xlu1 %7591, %v2163_v37   ;;  %v2133_v63 = vpop.xlane.xlu0 %2132 }
0x1798   :  { %v2166_v55 = vmul.f32 %v2152_v49, %v2133_v63  ;;  %v2005_v63 = vmul.f32 0.5, %v8895_v40 }
0x179a   :  { %7753 = vtanh.f32 %v2005_v63 }
0x179b   :  { %2192 = vperm.xlu1 %7591, %v2164_v38   ;;  %v2136_v20 = vpop.xlane.xlu0 %2135 }
0x179c   :  { %v2167_v46 = vmul.f32 %v2156_v29, %v2136_v20 }
0x179e   :  { %2201 = vperm.xlu0 %7590, %v2167_v46  }
0x179f   :  { %2198 = vperm.xlu1 %7591, %v2166_v55   ;;  %v2139_v44 = vpop.xlane.xlu0 %2138 }
0x17a0   :  { %v2168_v58 = vmul.f32 %v2156_v29, %v2139_v44 }
0x17a2   :  { %7592 = vset.pattern.permute.xlu0 %v8172_v52 }
0x17a3   :  { %2204 = vperm.xlu1 %7591, %v2168_v58   ;;  %2171 = vperm.xlu0 %7592, %v8920_v2  }
0x17a4   :  { %v7754_v44 = vpop.eup %7753 }
0x17a5   :  { %v2007_v57 = vadd.f32 1.0, %v7754_v44 }
0x17a7   :  { %7594 = vset.pattern.permute.xlu1 %v8173_v53  ;;  %7593 = vset.pattern.permute.xlu0 %v8173_v53  ;;  %v2008_v58 = vmul.f32 0.5, %v2007_v57  ;;  %v2004_v57 = vadd.f32 1.0, %v8920_v2 }
0x1812   :  { %v2187_v34 = vpop.permute.xlu1 %2186  ;;  %v2184_v3 = vpop.permute.xlu0 %2183 }
0x1813   :  { %v2213_v50 = vrot.slane %v2187_v34, %v8481_v61  ;;  %v2209_v42 = vrot.slane %v2184_v3, %v8478_v60  ;;  %v2264_v34 = vsub.f32 1.0, %v2008_v58 }
0x1815   :  { %v2214_v21 = vsel %vm522_vm5, %v2213_v50, %v2209_v42 }
0x1816   :  { %v2190_v4 = vpop.permute.xlu1 %2189  ;;  %v2196_v6 = vpop.permute.xlu0 %2195 }
0x1817   :  { %v2218_v13 = vrot.slane %v2190_v4, %v8478_v60  ;;  %v2227_v45 = vrot.slane %v2196_v6, %v8478_v60 }
0x181a   :  { %v2193_v48 = vpop.permute.xlu1 %2192 }
0x181b   :  { %v2222_v27 = vrot.slane %v2193_v48, %v8481_v61 }
0x181d   :  { %v2202_v56 = vpop.permute.xlu0 %2201  ;;  %v2223_v49 = vsel %vm522_vm5, %v2222_v27, %v2218_v13 }
0x181e   :  { %v2199_v43 = vpop.permute.xlu1 %2198  ;;  %v2236_v25 = vrot.slane %v2202_v56, %v8478_v60  ;;  %v2242_v37 = vsel %vm551_vm6, %v2223_v49, %v2214_v21 }
0x181f   :  { %v2231_v0 = vrot.slane %v2199_v43, %v8481_v61 }
0x1821   :  { %v2232_v24 = vsel %vm522_vm5, %v2231_v0, %v2227_v45 }
0x1822   :  { %v2205_v28 = vpop.permute.xlu1 %2204  ;;  %v2243_v39 = vsel %vm553_vm7, %v2232_v24, %v2242_v37  ;;  %v2172_v20 = vpop.permute.xlu0 %2171  ;;  %v8956_v37 = vld [vmem:[%s10189_s10] sm:$0xff]  }
0x1823   :  { %v2240_v36 = vrot.slane %v2205_v28, %v8481_v61 }
0x1825   :  { %v2241_v38 = vsel %vm522_vm5, %v2240_v36, %v2236_v25 }
0x1826   :  { %v2244_v29 = vsel %vm555_vm8, %v2241_v38, %v2243_v39 }
0x1827   :  { %v2246_v46 = vmul.f32 %v2244_v29, %v2172_v20 }
0x1829   :  { %v2247_v55 = vsel %vm362_vm4, %v2246_v46, -inf }
0x182a   :  { %2248 = vmax.xlane.f32.xlu1 %v2247_v55 }
0x182e   :  { %2010 = vmax.xlane.f32.xlu1 %v2009_v23 }
0x183f   :  { %2267 = vperm.xlu1 %7594, %v2264_v34  }
0x1843   :  { %7597 = vset.pattern.permute.xlu1 %v8178_v32 }
0x18b7   :  { %v2249_v3 = vpop.xlane.xlu1 %2248 }
0x18b8   :  { %v2250_v4 = vsub.f32 %v2246_v46, %v2249_v3 }
0x18ba   :  { %v2251_v48 = vmul.f32 1.442695, %v2250_v4 }
0x18bb   :  { %v2011_v6 = vpop.xlane.xlu1 %2010 }
0x18bc   :  { %7755 = vpow2.f32 %v2251_v48  ;;  %v2012_v27 = vsub.f32 %v8895_v40, %v2011_v6 }
0x18be   :  { %v2013_v43 = vmul.f32 1.442695, %v2012_v27 }
0x18bf   :  { %v2268_v0 = vpop.permute.xlu1 %2267 }
0x18c0   :  { %7757 = vpow2.f32 %v2013_v43  ;;  %v2270_v21 = vmul.f32 %v2268_v0, %v8769_v18  ;;  %v8965_v18 = vld [vmem:[%s10189_s10 + $0x8] sm:$0xff]  }
0x18c6   :  { %v7756_v50 = vpop.eup %7755 }
0x18c7   :  { %v2253_v42 = vsel %vm362_vm4, %v7756_v50, 0.0 }
0x18c8   :  { %2254 = vadd.xlane.f32.xlu0 %v2253_v42 }
0x18ca   :  { %v7758_v13 = vpop.eup %7757 }
0x18cb   :  { %2016 = vrot.lane.b32.xlu1 %v7758_v13, %s8174_s26 }
0x18de   :  { %2260 = vperm.xlu0 %7593, %v2008_v58  }
0x18e2   :  { %7595 = vset.pattern.permute.xlu0 %v8177_v12 }
0x193d   :  { %v2017_v45 = vpop.permute.xlu1 %2016 }
0x193e   :  { %v2019_v56 = vsel %vm322_vm10, %v2017_v45, 0.0 }
0x193f   :  { %2020 = vadd.xlane.f32.xlu1 %v2019_v56 }
0x1955   :  { %v2255_v49 = vpop.xlane.xlu0 %2254 }
0x1956   :  { %7759 = vrcp.f32 %v2255_v49 }
0x195d   :  { %v2261_v28 = vpop.permute.xlu0 %2260 }
0x1960   :  { %v7760_v40 = vpop.eup %7759 }
0x1961   :  { %v2257_v24 = vmul.f32 %v7760_v40, %v7756_v50 }
0x1963   :  { %v2263_v25 = vmul.f32 %v2261_v28, %v2257_v24 }
0x1965   :  { %v2271_v36 = vadd.f32 %v2270_v21, %v2263_v25 }
0x1967   :  { %7250 = vmatmul.mubr.msk.f32.vlgmr.msra.gmra.mrb[24].mxu1 %vm95_vm1, %v2271_v36 }
0x1968   :  { %7259 = vmatpush3.bf16.msra.mxu1 %v8956_v37  ;;  %7262 = vmatprep.mubr.msk.bf16.mxu1 %vm8166_vm0, %v8165_v1 }
0x1969   :  { %7260 = vmatprep.subr.bf16.mxu1 %v8165_v1 }
0x196c   :  { %7261 = vmatpush3.bf16.msra.mxu1 %v8965_v18 }
0x196d   :  { %7280 = vmatprep.subr.bf16.mxu1 %v8165_v1 }
0x196f   :  { %7263 = vmatmul.mubr.msk.bf16.vlgmr.msra.gmra.mrb[28].mxu1 %vm153_vm2, %v8854_v17 }
0x1970   :  { %7281 = vmatpush3.bf16.msra.mxu1 %v8747_v16  ;;  %7284 = vmatprep.mubr.msk.bf16.mxu1 %vm8166_vm0, %v8165_v1 }
0x1971   :  { %7282 = vmatprep.subr.bf16.mxu1 %v8165_v1 }
0x1974   :  { %7283 = vmatpush3.bf16.msra.mxu1 %v8756_v19 }
0x1975   :  { %7490 = vmatprep.subr.bf16.mxu1 %v8175_v62 }
0x19cc   :  { %v2021_v63 = vpop.xlane.xlu1 %2020 }
0x19cd   :  { %7761 = vrcp.f32 %v2021_v63 }
0x19d7   :  { %v7762_v38 = vpop.eup %7761 }
0x19d8   :  { %v2023_v39 = vmul.f32 %v7762_v38, %v7758_v13 }
0x19da   :  { %2352 = vperm.xlu1 %7597, %v2023_v39   ;;  %2358 = vperm.xlu0 %7595, %v2023_v39  }
0x19de   :  { %7596 = vset.pattern.permute.xlu0 %v8176_v8  ;;  %7599 = vset.pattern.permute.xlu1 %v8171_v59 }
0x19df   :  { %2347 = vperm.xlu0 %7596, %v2023_v39  }
0x19e3   :  { %7598 = vset.pattern.permute.xlu0 %v8179_v26 }
0x1a3a   :  { %v2341_v16 = vpop.f32.mrb[24].mxu1 }
0x1a3b   :  { %v7251_v29 = vpop.f32.mrb[25].mxu1 }
0x1a42   :  { %v8980_v20 = vpop.f32.mrb[28].mxu1 }
0x1a43   :  { %v7264_v19 = vpop.f32.mrb[29].mxu1 }
0x1a44   :  { %v2659_v46 = vpop.f32.mrb[30].mxu1 }
0x1a45   :  { %v7265_v55 = vpop.f32.mrb[31].mxu1 }
0x1a59   :  { %v2359_v23 = vpop.permute.xlu0 %2358  ;;  %v2353_v34 = vpop.permute.xlu1 %2352 }
0x1a5a   :  { %v2361_v44 = vmul.f32 %v2359_v23, %v2341_v16  ;;  %v2355_v4 = vmul.f32 %v2353_v34, %v2271_v36 }
0x1a5c   :  { %2363 = vrot.lane.b32.xlu0 %v2361_v44, %s8180_s25 }
0x1a5e   :  { %v2348_v58 = vpop.permute.xlu0 %2347 }
0x1a5f   :  { %v2350_v3 = vmul.f32 %v2348_v58, %v2341_v16 }
0x1a60   :  { %2372 = vperm.xlu0 %7598, %v2004_v57  }
0x1a61   :  { %v2356_v48 = vadd.f32 %v2355_v4, %v2350_v3 }
0x1a64   :  { %7600 = vset.pattern.permute.xlu0 %v8171_v59 }
0x1ace   :  { %v2364_v6 = vpop.permute.xlu0 %2363 }
0x1acf   :  { %v2366_v27 = vadd.f32 %v2364_v6, %v2356_v48 }
0x1ad1   :  { %v2367_v43 = vmax.f32 %v2366_v27, 1e-30 }
0x1ad3   :  { %7763 = vlog2.f32 %v2367_v43 }
0x1add   :  { %v7764_v50 = vpop.eup %7763 }
0x1ade   :  { %v2369_v42 = vmul.f32 0.6931472, %v7764_v50 }
0x1adf   :  { %v2373_v13 = vpop.permute.xlu0 %2372 }
0x1ae0   :  { %v2375_v0 = vmul.f32 %v2373_v13, %v2369_v42 }
0x1ae2   :  { %v2376_v45 = vmul.f32 1.442695, %v2375_v0 }
0x1ae4   :  { %7765 = vpow2.f32 %v2376_v45 }
0x1aee   :  { %v7766_v56 = vpop.eup %7765 }
0x1aef   :  { %v2378_v2 = vsel %vm362_vm4, %v7766_v56, 0.0 }
0x1af0   :  { %2379 = vadd.xlane.f32.xlu0 %v2378_v2 }
0x1b7d   :  { %v2380_v49 = vpop.xlane.xlu0 %2379 }
0x1b7e   :  { %v2381_v40 = vadd.f32 1e-16, %v2380_v49 }
0x1b80   :  { %7767 = vrcp.f32 %v2381_v40 }
0x1b8a   :  { %v7768_v24 = vpop.eup %7767 }
0x1b8b   :  { %v8986_v28 = vmul.f32 %v7768_v24, %v7766_v56 }
0x1b8d   :  { %v2387_v21 = vrot.slane %v8986_v28, %v8433_v15  ;;  %v2398_v25 = vrot.slane %v8986_v28, %v8457_v11 }
0x1b8f   :  { %2389 = vbcast.lane.b32.xlu1 %v2387_v21, 256 }
0x1b93   :  { %2393 = vbcast.lane.b32.xlu1 %v2387_v21, 264 }
0x1b97   :  { %2400 = vbcast.lane.b32.xlu1 %v2398_v25, 256 }
0x1b9b   :  { %2404 = vbcast.lane.b32.xlu1 %v2398_v25, 264 }
0x1c01   :  { %v2390_v36 = vpop.permute.xlu1 %2389 }
0x1c02   :  { %v2428_v63 = vmul.f32 %v2390_v36, %v8863_v41 }
0x1c04   :  { %v2432_v16 = vsel %vm95_vm1, %v2428_v63, 0.0 }
0x1c05   :  { %v2394_v38 = vpop.permute.xlu1 %2393 }
0x1c06   :  { %v2429_v39 = vmul.f32 %v2394_v38, %v8870_v51 }
0x1c08   :  { %v2433_v29 = vsel %vm95_vm1, %v2429_v39, 0.0 }
0x1c09   :  { %v2434_v19 = vadd.f32 %v2433_v29, %v2432_v16  ;;  %v2401_v46 = vpop.permute.xlu1 %2400 }
0x1c0a   :  { %v2430_v23 = vmul.f32 %v2401_v46, %v8868_v9  ;;  %v2668_v46 = vld [vmem:[%s10208_s21 + $0x6] sm:$0x3] }
0x1c0b   :  { %v2435_v55 = vrot.slane %v2434_v19, 4 }
0x1c0c   :  { %v2441_v3 = vsel %vm95_vm1, %v2430_v23, 0.0 }
0x1c0d   :  { %v2436_v44 = vadd.f32 %v2435_v55, %v2434_v19  ;;  %v2405_v57 = vpop.permute.xlu1 %2404 }
0x1c0e   :  { %v2431_v58 = vmul.f32 %v2405_v57, %v8876_v30 }
0x1c0f   :  { %v2437_v34 = vrot.slane %v2436_v44, 2 }
0x1c10   :  { %v2442_v4 = vsel %vm95_vm1, %v2431_v58, 0.0 }
0x1c11   :  { %v2438_v48 = vadd.f32 %v2437_v34, %v2436_v44  ;;  %v2443_v6 = vadd.f32 %v2442_v4, %v2441_v3 }
0x1c13   :  { %v2444_v27 = vrot.slane %v2443_v6, 4  ;;  %v2439_v43 = vrot.slane %v2438_v48, 1 }
0x1c15   :  { %v2445_v50 = vadd.f32 %v2444_v27, %v2443_v6  ;;  %v2440_v13 = vadd.f32 %v2439_v43, %v2438_v48 }
0x1c17   :  { %v2446_v42 = vrot.slane %v2445_v50, 2  ;;  %v2571_v56 = vpack.c.bf16 %v2440_v13, %v2440_v13 }
0x1c19   :  { %v2447_v0 = vadd.f32 %v2446_v42, %v2445_v50  ;;  %v2575_v40 = vunpack.c.l.b16 %v2571_v56  ;;  %v2420_v56 = vrot.slane %v8986_v28, %v8466_v35 }
0x1c1b   :  { %v2448_v45 = vrot.slane %v2447_v0, 1 }
0x1c1d   :  { %v2449_v2 = vadd.f32 %v2448_v45, %v2447_v0  ;;  %v2409_v45 = vrot.slane %v8986_v28, %v8462_v22 }
0x1c1f   :  { %v2572_v49 = vpack.c.bf16 %v2449_v2, %v2449_v2 }
0x1c21   :  { %v2576_v24 = vunpack.c.l.b16 %v2572_v49 }
0x1c23   :  { %v2577_v21 = vsel %vm551_vm6, %v2576_v24, %v2575_v40 }
0x1c24   :  { %v2578_v25 = vpack.c.b16 %v2577_v21, %v2577_v21 }
0x1c26   :  { %7255 = vmatmul.mubr.msk.bf16.vlgmr.msra.gmra.mrb[20].mxu0 %vm95_vm1, %v2578_v25 }
0x1c27   :  { %7267 = vmatpush3.bf16.msra.mxu0 %v8788_v54  ;;  %7268 = vmatprep.mubr.msk.bf16.mxu0 %vm8166_vm0, %v8165_v1  ;;  %v9018_v54 = vld [vmem:[%s10190_s11] sm:$0xff]  }
0x1c28   :  { %7272 = vmatprep.subr.bf16.mxu0 %v8165_v1 }
0x1c2e   :  { %7269 = vmatmul.mubr.msk.bf16.vlgmr.msra.gmra.mrb[24].mxu0 %vm95_vm1, %v2578_v25 }
0x1c2f   :  { %7273 = vmatpush3.bf16.msra.mxu0 %v8798_v47  ;;  %7276 = vmatprep.mubr.msk.bf16.mxu0 %vm8166_vm0, %v8165_v1 }
0x1c30   :  { %7274 = vmatprep.subr.bf16.mxu0 %v8165_v1 }
0x1c33   :  { %7275 = vmatpush3.bf16.msra.mxu0 %v8807_v31 }
0x1c34   :  { %7295 = vmatprep.subr.bf16.mxu0 %v8165_v1 }
0x1c3a   :  { %7277 = vmatmul.mubr.msk.bf16.vlgmr.msra.gmra.mrb[24].mxu0 %vm153_vm2, %v8854_v17  ;;  %v9028_v17 = vld [vmem:[%s10191_s12] ss:$0 sm:$0xff] }
0x1c3b   :  { %7296 = vmatpush3.bf16.msra.mxu0 %v9018_v54  ;;  %7297 = vmatprep.mubr.msk.bf16.mxu0 %vm8166_vm0, %v8165_v1 }
0x1c3c   :  { %7309 = vmatprep.subr.bf16.mxu0 %v8165_v1 }
0x1cf9   :  { %v2616_v47 = vpop.f32.mrb[20].mxu0 }
0x1cfa   :  { %v2657_v31 = vadd.f32 %v8980_v20, %v2616_v47  ;;  %v7256_v36 = vpop.f32.mrb[21].mxu0 }
0x1cfb   :  { %v2619_v63 = vpop.f32.mrb[22].mxu0 }
0x1cfc   :  { %v2662_v38 = vadd.f32 %v9028_v17, %v2657_v31  ;;  %v7257_v39 = vpop.f32.mrb[23].mxu0 }
0x1cfe   :  { %v2663_v16 = vmul.f32 0.5, %v2662_v38 }
0x1d00   :  { %7769 = vtanh.f32 %v2663_v16 }
0x1d0a   :  { %v7770_v29 = vpop.eup %7769 }
0x1d0b   :  { %v2665_v19 = vadd.f32 1.0, %v7770_v29 }
0x1d0d   :  { %v2666_v55 = vmul.f32 0.5, %v2665_v19  ;;  %v2744_v20 = vpop.f32.mrb[24].mxu0 }
0x1d0e   :  { %v7508_v23 = vadd.f32 %v2744_v20, %v2668_v46  ;;  %v7278_v44 = vpop.f32.mrb[25].mxu0  ;;  %v2521_v46 = vrot.slane %v8888_v7, %v8428_v10 }
0x1d0f   :  { %2667 = vst [vmem:[#allocation3 + $0x4] sm:$0x3] %v2666_v55  ;;  %v2747_v57 = vpop.f32.mrb[26].mxu0 }
0x1d10   :  { %7771 = vtanh.f32 %v7508_v23  ;;  %v7279_v58 = vpop.f32.mrb[27].mxu0  ;;  %v2751_v3 = vmul.f32 0.5, %v7508_v23  ;;  %v2529_v57 = vrot.slane %v2521_v46, %v8428_v10 }
0x1d11   :  { %v2522_v58 = vcombine.high %v2521_v46, %v2521_v46 }
0x1d12   :  { %7773 = vtanh.f32 %v2751_v3 }
0x1d1a   :  { %v7772_v34 = vpop.eup %7771 }
0x1d1b   :  { %2758 = vrot.lane.b32.xlu1 %v7772_v34, %s8167_s1 }
0x1d1c   :  { %v7774_v4 = vpop.eup %7773 }
0x1d1d   :  { %v2753_v48 = vadd.f32 1.0, %v7774_v4 }
0x1d1f   :  { %v2754_v6 = vmul.f32 0.5, %v2753_v48  ;;  %v2540_v48 = vrot.slane %v2529_v57, %v8433_v15 }
0x1d21   :  { %v2756_v50 = vmul.f32 %v2754_v6, %v8825_v5  ;;  %v2450_v5 = vmul.f32 0.5, %v8888_v7 }
0x1d8d   :  { %v2759_v27 = vpop.permute.xlu1 %2758 }
0x1d8e   :  { %v2761_v43 = vmul.f32 %v2759_v27, %v2754_v6 }
0x1d90   :  { %2763 = vrot.lane.b32.xlu1 %v2761_v43, %s8168_s2 }
0x1e02   :  { %v2764_v42 = vpop.permute.xlu1 %2763 }
0x1e03   :  { %v9037_v13 = vadd.f32 %v2764_v42, %v2756_v50 }
0x1e05   :  { %7775 = vtanh.f32 %v9037_v13 }
0x1e06   :  { %7777 = vtanh.f32 %v2450_v5 }
0x1e0f   :  { %v7776_v0 = vpop.eup %7775 }
0x1e10   :  { %2769 = vrot.lane.b32.xlu1 %v7776_v0, %s8167_s1  ;;  %v7778_v2 = vpop.eup %7777 }
0x1e11   :  { %v2452_v49 = vadd.f32 1.0, %v7778_v2 }
0x1e13   :  { %v2453_v40 = vmul.f32 0.5, %v2452_v49 }
0x1e14   :  { %2411 = vbcast.lane.b32.xlu1 %v2409_v45, 256 }
0x1e15   :  { %v2461_v24 = vrot.slane %v2453_v40, %v8428_v10 }
0x1e17   :  { %v2469_v21 = vrot.slane %v2461_v24, %v8428_v10  ;;  %v2462_v63 = vcombine.high %v2461_v24, %v2461_v24 }
0x1e18   :  { %2415 = vbcast.lane.b32.xlu1 %v2409_v45, 264 }
0x1e19   :  { %v2480_v36 = vrot.slane %v2469_v21, %v8433_v15  ;;  %v2476_v29 = vrot.slane %v2462_v63, %v8428_v10 }
0x1e1b   :  { %v2484_v23 = vrot.slane %v2476_v29, %v8433_v15 }
0x1e1c   :  { %2422 = vbcast.lane.b32.xlu1 %v2420_v56, 256 }
0x1e20   :  { %2426 = vbcast.lane.b32.xlu1 %v2420_v56, 264 }
0x1e82   :  { %v2770_v25 = vpop.permute.xlu1 %2769 }
0x1e83   :  { %v2772_v47 = vmul.f32 %v2770_v25, %v2754_v6  ;;  %v2536_v6 = vrot.slane %v2522_v58, %v8428_v10 }
0x1e85   :  { %v2773_v31 = vpack.c.bf16 %v2772_v47, %v2772_v47  ;;  %v2544_v50 = vrot.slane %v2536_v6, %v8433_v15 }
0x1e86   :  { %v2412_v38 = vpop.permute.xlu1 %2411 }
0x1e87   :  { %v2487_v39 = vmul.f32 %v2480_v36, %v2412_v38  ;;  %2775 = vrot.lane.b32.xlu0 %v2773_v31, %s8168_s2  ;;  %v2547_v27 = vmul.f32 %v2540_v48, %v2412_v38 }
0x1e89   :  { %v2491_v16 = vsub.f32 1.0, %v2487_v39 }
0x1e8a   :  { %v2416_v19 = vpop.permute.xlu1 %2415 }
0x1e8b   :  { %v2488_v55 = vmul.f32 %v2480_v36, %v2416_v19  ;;  %2499 = vrot.lane.b32.xlu1 %v2491_v16, %s8181_s0  ;;  %v2548_v42 = vmul.f32 %v2540_v48, %v2416_v19 }
0x1e8d   :  { %v2492_v20 = vsub.f32 1.0, %v2488_v55 }
0x1e8e   :  { %v2423_v44 = vpop.permute.xlu1 %2422 }
0x1e8f   :  { %v2489_v34 = vmul.f32 %v2484_v23, %v2423_v44  ;;  %2501 = vrot.lane.b32.xlu1 %v2492_v20, %s8181_s0  ;;  %v2549_v0 = vmul.f32 %v2544_v50, %v2423_v44 }
0x1e91   :  { %v2493_v3 = vsub.f32 1.0, %v2489_v34 }
0x1e92   :  { %v2427_v4 = vpop.permute.xlu1 %2426 }
0x1e93   :  { %v2490_v7 = vmul.f32 %v2484_v23, %v2427_v4  ;;  %2503 = vrot.lane.b32.xlu0 %v2493_v3, %s8181_s0  ;;  %v2550_v45 = vmul.f32 %v2544_v50, %v2427_v4 }
0x1e95   :  { %v2494_v43 = vsub.f32 1.0, %v2490_v7 }
0x1e97   :  { %2555 = vrot.lane.b32.xlu0 %v2547_v27, %s8182_s22  ;;  %2505 = vrot.lane.b32.xlu1 %v2494_v43, %s8181_s0 }
0x1e9b   :  { %2559 = vrot.lane.b32.xlu0 %v2549_v0, %s8182_s22  ;;  %2557 = vrot.lane.b32.xlu1 %v2548_v42, %s8182_s22 }
0x1e9f   :  { %2561 = vrot.lane.b32.xlu1 %v2550_v45, %s8182_s22 }
0x1ef9   :  { %v9066_v56 = vpop.permute.xlu0 %2775 }
0x1efa   :  { %7285 = vmatmul.mubr.msk.bf16.vlgmr.msra.gmra.mrb[32].mxu1 %vm153_vm2, %v9066_v56 }
0x1efb   :  { %7492 = vmatpush3.bf16.msra.mxu1 %v8511_v33  ;;  %7292 = vmatprep.mubr.msk.f32.mxu1 %vm8166_vm0, %v8165_v1 }
0x1efc   :  { %7301 = vmatprep.subr.bf16.mxu1 %v8165_v1 }
0x1efd   :  { %v2500_v5 = vpop.permute.xlu1 %2499 }
0x1efe   :  { %v2511_v40 = vmul.f32 %v2500_v5, %v8863_v41 }
0x1f01   :  { %v2502_v2 = vpop.permute.xlu1 %2501 }
0x1f02   :  { %v2512_v47 = vmul.f32 %v2502_v2, %v8870_v51 }
0x1f05   :  { %v2504_v49 = vpop.permute.xlu0 %2503 }
0x1f06   :  { %v2513_v31 = vmul.f32 %v2504_v49, %v8868_v9 }
0x1f09   :  { %v2556_v24 = vpop.permute.xlu0 %2555  ;;  %v2506_v21 = vpop.permute.xlu1 %2505 }
0x1f0a   :  { %v9075_v25 = vadd.f32 %v2556_v24, %v2511_v40  ;;  %v2514_v19 = vmul.f32 %v2506_v21, %v8876_v30 }
0x1f0c   :  { %v2856_v36 = vadd.f32 1e-16, %v9075_v25 }
0x1f0d   :  { %v2560_v63 = vpop.permute.xlu0 %2559  ;;  %v2558_v38 = vpop.permute.xlu1 %2557 }
0x1f0e   :  { %v9080_v39 = vadd.f32 %v2560_v63, %v2513_v31  ;;  %v9082_v16 = vadd.f32 %v2558_v38, %v2512_v47  ;;  %v2860_v29 = vmul.f32 %v2856_v36, %v2856_v36 }
0x1f10   :  { %v2864_v41 = vsel %vm95_vm1, %v2860_v29, 0.0  ;;  %v2858_v46 = vadd.f32 1e-16, %v9080_v39  ;;  %v2857_v55 = vadd.f32 1e-16, %v9082_v16 }
0x1f11   :  { %2865 = vadd.xlane.f32.xlu0 %v2864_v41  ;;  %v2562_v51 = vpop.permute.xlu1 %2561 }
0x1f12   :  { %v9088_v9 = vadd.f32 %v2562_v51, %v2514_v19  ;;  %v2862_v20 = vmul.f32 %v2858_v46, %v2858_v46  ;;  %v2861_v23 = vmul.f32 %v2857_v55, %v2857_v55 }
0x1f14   :  { %v2870_v44 = vsel %vm95_vm1, %v2862_v20, 0.0  ;;  %v2867_v57 = vsel %vm95_vm1, %v2861_v23, 0.0  ;;  %v2859_v58 = vadd.f32 1e-16, %v9088_v9 }
0x1f15   :  { %2871 = vadd.xlane.f32.xlu0 %v2870_v44  ;;  %2868 = vadd.xlane.f32.xlu1 %v2867_v57 }
0x1f16   :  { %v2863_v30 = vmul.f32 %v2859_v58, %v2859_v58 }
0x1f18   :  { %v2873_v34 = vsel %vm95_vm1, %v2863_v30, 0.0 }
0x1f19   :  { %2874 = vadd.xlane.f32.xlu0 %v2873_v34 }
0x1f9e   :  { %v2866_v27 = vpop.xlane.xlu0 %2865 }
0x1f9f   :  { %v2876_v0 = vmax.f32 %v2866_v27, 1e-16 }
0x1fa1   :  { %7779 = vrsqrt.f32 %v2876_v0 }
0x1fa2   :  { %v2872_v43 = vpop.xlane.xlu0 %2871  ;;  %v2869_v42 = vpop.xlane.xlu1 %2868 }
0x1fa3   :  { %v2877_v45 = vmax.f32 %v2869_v42, 1e-16 }
0x1fa5   :  { %7781 = vrsqrt.f32 %v2877_v45 }
0x1fa6   :  { %v2875_v50 = vpop.xlane.xlu0 %2874 }
0x1fa7   :  { %v2879_v2 = vmax.f32 %v2875_v50, 1e-16 }
0x1fab   :  { %v7780_v47 = vpop.eup %7779 }
0x1fac   :  { %v2884_v19 = vmul.f32 %v7780_v47, %v2856_v36 }
0x1faf   :  { %v7782_v29 = vpop.eup %7781 }
0x1fb0   :  { %v2885_v44 = vmul.f32 %v7782_v29, %v2857_v55 }
0x1fcd   :  { %v2814_v3 = vpop.f32.mrb[32].mxu1 }
0x1fce   :  { %v9095_v4 = vadd.f32 %v8885_v14, %v2814_v3  ;;  %v7286_v48 = vpop.f32.mrb[33].mxu1  ;;  %v2878_v14 = vmax.f32 %v2872_v43, 1e-16 }
0x1fcf   :  { %v2817_v6 = vpop.f32.mrb[34].mxu1 }
0x1fd0   :  { %2820 = vst.msk [vmem:[#allocation2] sm:$0x3] %vm289_vm3, %v9095_v4  ;;  %v7287_v7 = vpop.f32.mrb[35].mxu1  ;;  %2822 = vrot.lane.b32.xlu0 %v9095_v4, %s8169_s3  ;;  %7783 = vrsqrt.f32 %v2878_v14 }
0x1fd1   :  { %7785 = vrsqrt.f32 %v2879_v2 }
0x1fda   :  { %v7784_v30 = vpop.eup %7783 }
0x1fdb   :  { %v2886_v36 = vmul.f32 %v7784_v30, %v2858_v46  ;;  %v7786_v27 = vpop.eup %7785 }
0x1fdc   :  { %v2887_v55 = vmul.f32 %v7786_v27, %v2859_v58 }
0x2042   :  { %v2823_v5 = vpop.permute.xlu0 %2822 }
0x2043   :  { %2825 = vst.msk [vmem:[#allocation2 + $0x2] sm:$0x3] %vm289_vm3, %v2823_v5 }
0x204a   :  { %v9102_v49 = vld [vmem:[#allocation2] sm:$0xf] }
0x204b   :  { %v2888_v40 = vadd.f32 1e-16, %v9102_v49  ;;  %v2828_v47 = vand.u32 2147483647, %v9102_v49 }
0x204d   :  { %v2889_v24 = vmul.f32 %v2888_v40, %v2888_v40  ;;  %v2902_v21 = vrot.slane %v2888_v40, %v8428_v10 }
0x204f   :  { %v2890_v31 = vsel %vm362_vm4, %v2889_v24, 0.0  ;;  %v2910_v63 = vrot.slane %v2902_v21, %v8428_v10  ;;  %v2903_v38 = vcombine.high %v2902_v21, %v2902_v21 }
0x2050   :  { %2891 = vadd.xlane.f32.xlu1 %v2890_v31 }
0x2051   :  { %v2923_v41 = vrot.slane %v2910_v63, %v8433_v15  ;;  %v2918_v51 = vcombine.high %v2910_v63, %v2910_v63  ;;  %v2917_v20 = vrot.slane %v2903_v38, %v8428_v10  ;;  %v2829_v38 = vsub.f32 0.0, %v2828_v47 }
0x2053   :  { %v2940_v23 = vmul.f32 %v2923_v41, %v2884_v19  ;;  %v2931_v57 = vrot.slane %v2918_v51, %v8433_v15  ;;  %v2941_v48 = vmul.f32 %v2923_v41, %v2885_v44  ;;  %v2927_v6 = vrot.slane %v2917_v20, %v8433_v15 }
0x2054   :  { %v2919_v45 = vcombine.high %v2917_v20, %v2917_v20 }
0x2055   :  { %v2948_v34 = vsel %vm95_vm1, %v2940_v23, 0.0  ;;  %v2945_v3 = vmul.f32 %v2931_v57, %v2885_v44  ;;  %v2951_v43 = vsel %vm95_vm1, %v2941_v48, 0.0  ;;  %v2942_v50 = vmul.f32 %v2927_v6, %v2886_v36 }
0x2056   :  { %2949 = vadd.xlane.f32.xlu1 %v2948_v34  ;;  %v2943_v0 = vmul.f32 %v2927_v6, %v2887_v55  ;;  %v2944_v14 = vmul.f32 %v2931_v57, %v2884_v19  ;;  %v2935_v2 = vrot.slane %v2919_v45, %v8433_v15  ;;  %v2830_v19 = vmul.f32 1.442695, %v2829_v38 }
0x2057   :  { %v2963_v7 = vsel %vm95_vm1, %v2945_v3, 0.0  ;;  %v2954_v42 = vsel %vm95_vm1, %v2942_v50, 0.0 }
0x2058   :  { %2964 = vadd.xlane.f32.xlu0 %v2963_v7  ;;  %v2957_v5 = vsel %vm95_vm1, %v2943_v0, 0.0  ;;  %v2960_v46 = vsel %vm95_vm1, %v2944_v14, 0.0  ;;  %v2946_v40 = vmul.f32 %v2935_v2, %v2886_v36  ;;  %v2947_v21 = vmul.f32 %v2935_v2, %v2887_v55 }
0x205a   :  { %2952 = vadd.xlane.f32.xlu1 %v2951_v43  ;;  %v2966_v24 = vsel %vm95_vm1, %v2946_v40, 0.0  ;;  %v2969_v58 = vsel %vm95_vm1, %v2947_v21, 0.0  ;;  %v2827_v40 = vmax.f32 %v9102_v49, 0.0 }
0x205e   :  { %2955 = vadd.xlane.f32.xlu1 %v2954_v42 }
0x2062   :  { %2958 = vadd.xlane.f32.xlu1 %v2957_v5 }
0x2066   :  { %2961 = vadd.xlane.f32.xlu1 %v2960_v46 }
0x206a   :  { %2967 = vadd.xlane.f32.xlu1 %v2966_v24 }
0x206e   :  { %2970 = vadd.xlane.f32.xlu1 %v2969_v58 }
0x20dd   :  { %v2892_v31 = vpop.xlane.xlu1 %2891 }
0x20de   :  { %v2893_v63 = vmax.f32 %v2892_v31, 1e-16 }
0x20e0   :  { %7787 = vrsqrt.f32 %v2893_v63 }
0x20e1   :  { %7789 = vpow2.f32 %v2830_v19 }
0x20e3   :  { %v2950_v29 = vpop.xlane.xlu1 %2949 }
0x20e5   :  { %v2965_v50 = vpop.xlane.xlu0 %2964 }
0x20e7   :  { %v2953_v41 = vpop.xlane.xlu1 %2952 }
0x20ea   :  { %v7788_v51 = vpop.eup %7787 }
0x20eb   :  { %v2976_v20 = vrot.slane %v7788_v51, %v8433_v15  ;;  %v2980_v23 = vrot.slane %v7788_v51, %v8457_v11  ;;  %v2956_v44 = vpop.xlane.xlu1 %2955  ;;  %v7790_v48 = vpop.eup %7789  ;;  %v2984_v27 = vrot.slane %v7788_v51, %v8462_v22  ;;  %v2988_v0 = vrot.slane %v7788_v51, %v8466_v35 }
0x20ec   :  { %v2832_v7 = vadd.f32 1.0, %v7790_v48 }
0x20ed   :  { %v2993_v57 = vmul.f32 %v2976_v20, %v2950_v29  ;;  %v2995_v30 = vmul.f32 %v2980_v23, %v2956_v44  ;;  %v2994_v3 = vmul.f32 %v2976_v20, %v2953_v41  ;;  %v2998_v42 = vmul.f32 %v2984_v27, %v2965_v50 }
0x20ee   :  { %7791 = vlog2.f32 %v2832_v7 }
0x20ef   :  { %3015 = vperm.xlu1 %7599, %v2993_v57   ;;  %3021 = vperm.xlu0 %7600, %v2995_v30   ;;  %v2959_v34 = vpop.xlane.xlu1 %2958 }
0x20f0   :  { %v2996_v6 = vmul.f32 %v2980_v23, %v2959_v34 }
0x20f3   :  { %3018 = vperm.xlu1 %7599, %v2994_v3   ;;  %7603 = vset.pattern.permute.xlu0 %v8173_v53  ;;  %v2962_v36 = vpop.xlane.xlu1 %2961 }
0x20f4   :  { %v2997_v43 = vmul.f32 %v2984_v27, %v2962_v36 }
0x20f7   :  { %3024 = vperm.xlu1 %7599, %v2996_v6   ;;  %v2968_v55 = vpop.xlane.xlu1 %2967 }
0x20f8   :  { %v2999_v45 = vmul.f32 %v2988_v0, %v2968_v55  ;;  %v7792_v14 = vpop.eup %7791 }
0x20f9   :  { %v2834_v46 = vmul.f32 0.6931472, %v7792_v14 }
0x20fb   :  { %3027 = vperm.xlu1 %7599, %v2997_v43   ;;  %v2971_v5 = vpop.xlane.xlu1 %2970  ;;  %v9128_v24 = vadd.f32 %v2834_v46, %v2827_v40 }
0x20fc   :  { %v3000_v2 = vmul.f32 %v2988_v0, %v2971_v5 }
0x20ff   :  { %3030 = vperm.xlu1 %7599, %v2998_v42   ;;  %v2837_v42 = vmul.f32 0.5, %v9102_v49 }
0x2101   :  { %7793 = vtanh.f32 %v2837_v42 }
0x2103   :  { %3033 = vperm.xlu1 %7599, %v2999_v45   ;;  %v2841_v45 = vsel %vm311_vm9, %v9102_v49, -inf }
0x2107   :  { %3036 = vperm.xlu1 %7599, %v3000_v2  }
0x210b   :  { %7601 = vset.pattern.permute.xlu1 %v8172_v52  ;;  %v7794_v5 = vpop.eup %7793 }
0x210c   :  { %3003 = vperm.xlu1 %7601, %v9128_v24   ;;  %v2839_v14 = vadd.f32 1.0, %v7794_v5 }
0x210e   :  { %v2840_v2 = vmul.f32 0.5, %v2839_v14 }
0x2110   :  { %7602 = vset.pattern.permute.xlu1 %v8173_v53 }
0x216e   :  { %v3016_v21 = vpop.permute.xlu1 %3015  ;;  %v3022_v38 = vpop.permute.xlu0 %3021 }
0x216f   :  { %v3050_v51 = vrot.slane %v3022_v38, %v8478_v60  ;;  %v3041_v44 = vrot.slane %v3016_v21, %v8478_v60 }
0x2172   :  { %v3019_v58 = vpop.permute.xlu1 %3018 }
0x2173   :  { %v3045_v20 = vrot.slane %v3019_v58, %v8481_v61 }
0x2175   :  { %v3046_v3 = vsel %vm522_vm5, %v3045_v20, %v3041_v44 }
0x2176   :  { %v3025_v47 = vpop.permute.xlu1 %3024 }
0x2177   :  { %v3054_v29 = vrot.slane %v3025_v47, %v8481_v61 }
0x2179   :  { %v3055_v57 = vsel %vm522_vm5, %v3054_v29, %v3050_v51 }
0x217a   :  { %v3028_v31 = vpop.permute.xlu1 %3027  ;;  %v3074_v7 = vsel %vm551_vm6, %v3055_v57, %v3046_v3 }
0x217b   :  { %v3059_v23 = vrot.slane %v3028_v31, %v8478_v60 }
0x217e   :  { %v3031_v63 = vpop.permute.xlu1 %3030 }
0x217f   :  { %v3063_v19 = vrot.slane %v3031_v63, %v8481_v61 }
0x2181   :  { %v3064_v30 = vsel %vm522_vm5, %v3063_v19, %v3059_v23  ;;  %v3096_v19 = vsub.f32 1.0, %v2840_v2 }
0x2182   :  { %v3034_v41 = vpop.permute.xlu1 %3033  ;;  %v3075_v27 = vsel %vm553_vm7, %v3064_v30, %v3074_v7  ;;  %v2836_v7 = vadd.f32 1.0, %v9128_v24 }
0x2183   :  { %v3068_v48 = vrot.slane %v3034_v41, %v8478_v60 }
0x2186   :  { %v3037_v34 = vpop.permute.xlu1 %3036 }
0x2187   :  { %v3072_v6 = vrot.slane %v3037_v34, %v8481_v61 }
0x2189   :  { %v3073_v36 = vsel %vm522_vm5, %v3072_v6, %v3068_v48 }
0x218a   :  { %v3076_v43 = vsel %vm555_vm8, %v3073_v36, %v3075_v27 }
0x218b   :  { %v3004_v50 = vpop.permute.xlu1 %3003 }
0x218c   :  { %v3078_v55 = vmul.f32 %v3076_v43, %v3004_v50 }
0x218e   :  { %v3079_v0 = vsel %vm362_vm4, %v3078_v55, -inf }
0x218f   :  { %3080 = vmax.xlane.f32.xlu1 %v3079_v0 }
0x2193   :  { %2842 = vmax.xlane.f32.xlu1 %v2841_v45 }
0x21a4   :  { %3092 = vperm.xlu1 %7602, %v2840_v2  }
0x21a8   :  { %7605 = vset.pattern.permute.xlu1 %v8176_v8 }
0x221c   :  { %v3081_v46 = vpop.xlane.xlu1 %3080 }
0x221d   :  { %v3082_v40 = vsub.f32 %v3078_v55, %v3081_v46 }
0x221f   :  { %v3083_v21 = vmul.f32 1.442695, %v3082_v40 }
0x2220   :  { %v2843_v58 = vpop.xlane.xlu1 %2842 }
0x2221   :  { %7795 = vpow2.f32 %v3083_v21  ;;  %v2844_v47 = vsub.f32 %v9102_v49, %v2843_v58 }
0x2223   :  { %v2845_v31 = vmul.f32 1.442695, %v2844_v47 }
0x2224   :  { %v3093_v41 = vpop.permute.xlu1 %3092 }
0x2225   :  { %7797 = vpow2.f32 %v2845_v31 }
0x222b   :  { %v7796_v63 = vpop.eup %7795 }
0x222c   :  { %v3085_v38 = vsel %vm362_vm4, %v7796_v63, 0.0 }
0x222d   :  { %3086 = vadd.xlane.f32.xlu0 %v3085_v38 }
0x222f   :  { %v7798_v29 = vpop.eup %7797 }
0x2230   :  { %2848 = vrot.lane.b32.xlu1 %v7798_v29, %s8174_s26 }
0x2243   :  { %3099 = vperm.xlu0 %7603, %v3096_v19  }
0x2247   :  { %7604 = vset.pattern.permute.xlu0 %v8177_v12 }
0x22a2   :  { %v2849_v51 = vpop.permute.xlu1 %2848 }
0x22a3   :  { %v2851_v20 = vsel %vm322_vm10, %v2849_v51, 0.0 }
0x22a4   :  { %2852 = vadd.xlane.f32.xlu1 %v2851_v20 }
0x22ba   :  { %v3087_v23 = vpop.xlane.xlu0 %3086 }
0x22bb   :  { %7799 = vrcp.f32 %v3087_v23 }
0x22c2   :  { %v3100_v44 = vpop.permute.xlu0 %3099 }
0x22c3   :  { %v3102_v34 = vmul.f32 %v3100_v44, %v8986_v28  ;;  %v9171_v28 = vld [vmem:[%s10187_s8] sm:$0xff]  }
0x22c5   :  { %v7800_v49 = vpop.eup %7799 }
0x22c6   :  { %v3089_v57 = vmul.f32 %v7800_v49, %v7796_v63 }
0x22c8   :  { %v3095_v30 = vmul.f32 %v3093_v41, %v3089_v57 }
0x22ca   :  { %v3103_v3 = vadd.f32 %v3102_v34, %v3095_v30 }
0x22cc   :  { %7293 = vmatmul.mubr.msk.f32.vlgmr.msra.gmra.mrb[26].mxu1 %vm95_vm1, %v3103_v3 }
0x22cd   :  { %7302 = vmatpush3.bf16.msra.mxu1 %v8956_v37  ;;  %7305 = vmatprep.mubr.msk.bf16.mxu1 %vm8166_vm0, %v8165_v1  ;;  %v9180_v37 = vld [vmem:[%s10187_s8 + $0x8] sm:$0xff]  }
0x22ce   :  { %7303 = vmatprep.subr.bf16.mxu1 %v8165_v1 }
0x22d1   :  { %7304 = vmatpush3.bf16.msra.mxu1 %v8965_v18 }
0x22d2   :  { %7323 = vmatprep.subr.bf16.mxu1 %v8165_v1 }
0x22d4   :  { %7306 = vmatmul.mubr.msk.bf16.vlgmr.msra.gmra.mrb[36].mxu1 %vm153_vm2, %v9066_v56 }
0x22d5   :  { %7324 = vmatpush3.bf16.msra.mxu1 %v9171_v28  ;;  %7327 = vmatprep.mubr.msk.bf16.mxu1 %vm8166_vm0, %v8165_v1 }
0x22d6   :  { %7325 = vmatprep.subr.bf16.mxu1 %v8165_v1 }
0x22d9   :  { %7326 = vmatpush3.bf16.msra.mxu1 %v9180_v37 }
0x22da   :  { %7493 = vmatprep.subr.bf16.mxu1 %v8175_v62 }
0x2331   :  { %v2853_v18 = vpop.xlane.xlu1 %2852 }
0x2332   :  { %7801 = vrcp.f32 %v2853_v18 }
0x233c   :  { %v7802_v48 = vpop.eup %7801 }
0x233d   :  { %v2855_v6 = vmul.f32 %v7802_v48, %v7798_v29 }
0x233f   :  { %3179 = vperm.xlu1 %7605, %v2855_v6   ;;  %3190 = vperm.xlu0 %7604, %v2855_v6  }
0x2343   :  { %7607 = vset.pattern.permute.xlu1 %v8179_v26  ;;  %7606 = vset.pattern.permute.xlu0 %v8178_v32 }
0x2344   :  { %3204 = vperm.xlu1 %7607, %v2836_v7   ;;  %3184 = vperm.xlu0 %7606, %v2855_v6  }
0x2348   :  { %7609 = vset.pattern.permute.xlu1 %v8171_v59  ;;  %7608 = vset.pattern.permute.xlu0 %v8171_v59 }
0x239f   :  { %v3173_v36 = vpop.f32.mrb[26].mxu1 }
0x23a0   :  { %v7294_v27 = vpop.f32.mrb[27].mxu1 }
0x23a7   :  { %v9189_v43 = vpop.f32.mrb[36].mxu1 }
0x23a8   :  { %v7307_v50 = vpop.f32.mrb[37].mxu1 }
0x23a9   :  { %v3491_v55 = vpop.f32.mrb[38].mxu1 }
0x23aa   :  { %v7308_v42 = vpop.f32.mrb[39].mxu1 }
0x23be   :  { %v3191_v0 = vpop.permute.xlu0 %3190  ;;  %v3180_v5 = vpop.permute.xlu1 %3179 }
0x23bf   :  { %v3193_v45 = vmul.f32 %v3191_v0, %v3173_v36  ;;  %v3182_v2 = vmul.f32 %v3180_v5, %v3173_v36 }
0x23c1   :  { %3195 = vrot.lane.b32.xlu0 %v3193_v45, %s8180_s25 }
0x23c3   :  { %v3185_v24 = vpop.permute.xlu0 %3184  ;;  %v3205_v63 = vpop.permute.xlu1 %3204 }
0x23c4   :  { %v3187_v14 = vmul.f32 %v3185_v24, %v3103_v3 }
0x23c6   :  { %v3188_v46 = vadd.f32 %v3187_v14, %v3182_v2 }
0x2433   :  { %v3196_v40 = vpop.permute.xlu0 %3195 }
0x2434   :  { %v3198_v21 = vadd.f32 %v3196_v40, %v3188_v46 }
0x2436   :  { %v3199_v58 = vmax.f32 %v3198_v21, 1e-30 }
0x2438   :  { %7803 = vlog2.f32 %v3199_v58 }
0x2442   :  { %v7804_v47 = vpop.eup %7803 }
0x2443   :  { %v3201_v31 = vmul.f32 0.6931472, %v7804_v47 }
0x2445   :  { %v3207_v38 = vmul.f32 %v3205_v63, %v3201_v31 }
0x2447   :  { %v3208_v29 = vmul.f32 1.442695, %v3207_v38 }
0x2449   :  { %7805 = vpow2.f32 %v3208_v29 }
0x2453   :  { %v7806_v19 = vpop.eup %7805 }
0x2454   :  { %v3210_v41 = vsel %vm362_vm4, %v7806_v19, 0.0 }
0x2455   :  { %3211 = vadd.xlane.f32.xlu0 %v3210_v41 }
0x24e2   :  { %v3212_v51 = vpop.xlane.xlu0 %3211 }
0x24e3   :  { %v3213_v20 = vadd.f32 1e-16, %v3212_v51 }
0x24e5   :  { %7807 = vrcp.f32 %v3213_v20 }
0x24ef   :  { %v7808_v23 = vpop.eup %7807 }
0x24f0   :  { %v9193_v49 = vmul.f32 %v7808_v23, %v7806_v19 }
0x24f2   :  { %v3219_v44 = vrot.slane %v9193_v49, %v8433_v15  ;;  %v3230_v57 = vrot.slane %v9193_v49, %v8457_v11 }
0x24f4   :  { %3221 = vbcast.lane.b32.xlu1 %v3219_v44, 256 }
0x24f8   :  { %3225 = vbcast.lane.b32.xlu1 %v3219_v44, 264  ;;  %v9212_v44 = vld [vmem:[%s10185_s6] sm:$0xff]  }
0x24fc   :  { %3232 = vbcast.lane.b32.xlu1 %v3230_v57, 256 }
0x2500   :  { %3236 = vbcast.lane.b32.xlu1 %v3230_v57, 264  ;;  %v9222_v57 = vld [vmem:[%s10186_s7] sm:$0xff]  }
0x2566   :  { %v3222_v30 = vpop.permute.xlu1 %3221 }
0x2567   :  { %v3260_v34 = vmul.f32 %v3222_v30, %v9075_v25  ;;  %v9231_v30 = vld [vmem:[%s10186_s7 + $0x8] sm:$0xff]  }
0x2569   :  { %v3264_v48 = vsel %vm95_vm1, %v3260_v34, 0.0 }
0x256a   :  { %v3226_v3 = vpop.permute.xlu1 %3225 }
0x256b   :  { %v3261_v18 = vmul.f32 %v3226_v3, %v9082_v16 }
0x256d   :  { %v3265_v6 = vsel %vm95_vm1, %v3261_v18, 0.0 }
0x256e   :  { %v3266_v7 = vadd.f32 %v3265_v6, %v3264_v48  ;;  %v3233_v36 = vpop.permute.xlu1 %3232 }
0x256f   :  { %v3262_v50 = vmul.f32 %v3233_v36, %v9080_v39 }
0x2570   :  { %v3267_v27 = vrot.slane %v3266_v7, 4 }
0x2571   :  { %v3273_v24 = vsel %vm95_vm1, %v3262_v50, 0.0 }
0x2572   :  { %v3268_v55 = vadd.f32 %v3267_v27, %v3266_v7  ;;  %v3237_v42 = vpop.permute.xlu1 %3236 }
0x2573   :  { %v3263_v0 = vmul.f32 %v3237_v42, %v9088_v9 }
0x2574   :  { %v3269_v45 = vrot.slane %v3268_v55, 2 }
0x2575   :  { %v3274_v5 = vsel %vm95_vm1, %v3263_v0, 0.0 }
0x2576   :  { %v3270_v14 = vadd.f32 %v3269_v45, %v3268_v55  ;;  %v3275_v2 = vadd.f32 %v3274_v5, %v3273_v24 }
0x2578   :  { %v3276_v46 = vrot.slane %v3275_v2, 4  ;;  %v3271_v40 = vrot.slane %v3270_v14, 1 }
0x257a   :  { %v3277_v21 = vadd.f32 %v3276_v46, %v3275_v2  ;;  %v3272_v47 = vadd.f32 %v3271_v40, %v3270_v14 }
0x257c   :  { %v3278_v58 = vrot.slane %v3277_v21, 2  ;;  %v3403_v38 = vpack.c.bf16 %v3272_v47, %v3272_v47 }
0x257e   :  { %v3279_v31 = vadd.f32 %v3278_v58, %v3277_v21  ;;  %v3407_v41 = vunpack.c.l.b16 %v3403_v38  ;;  %v3252_v38 = vrot.slane %v9193_v49, %v8466_v35 }
0x2580   :  { %v3280_v63 = vrot.slane %v3279_v31, 1 }
0x2582   :  { %v3281_v29 = vadd.f32 %v3280_v63, %v3279_v31  ;;  %v3241_v63 = vrot.slane %v9193_v49, %v8462_v22 }
0x2584   :  { %v3404_v19 = vpack.c.bf16 %v3281_v29, %v3281_v29 }
0x2586   :  { %v3408_v51 = vunpack.c.l.b16 %v3404_v19 }
0x2588   :  { %v3409_v20 = vsel %vm551_vm6, %v3408_v51, %v3407_v41 }
0x2589   :  { %v3410_v23 = vpack.c.b16 %v3409_v20, %v3409_v20 }
0x258b   :  { %7298 = vmatmul.mubr.msk.bf16.vlgmr.msra.gmra.mrb[28].mxu0 %vm95_vm1, %v3410_v23 }
0x258c   :  { %7310 = vmatpush3.bf16.msra.mxu0 %v9212_v44  ;;  %7311 = vmatprep.mubr.msk.bf16.mxu0 %vm8166_vm0, %v8165_v1 }
0x258d   :  { %7315 = vmatprep.subr.bf16.mxu0 %v8165_v1 }
0x2593   :  { %7312 = vmatmul.mubr.msk.bf16.vlgmr.msra.gmra.mrb[32].mxu0 %vm95_vm1, %v3410_v23 }
0x2594   :  { %7316 = vmatpush3.bf16.msra.mxu0 %v9222_v57  ;;  %7319 = vmatprep.mubr.msk.bf16.mxu0 %vm8166_vm0, %v8165_v1 }
0x2595   :  { %7317 = vmatprep.subr.bf16.mxu0 %v8165_v1 }
0x2598   :  { %7318 = vmatpush3.bf16.msra.mxu0 %v9231_v30 }
0x2599   :  { %7338 = vmatprep.subr.bf16.mxu0 %v8165_v1 }
0x259f   :  { %7320 = vmatmul.mubr.msk.bf16.vlgmr.msra.gmra.mrb[32].mxu0 %vm153_vm2, %v9066_v56 }
0x25a0   :  { %7339 = vmatpush3.bf16.msra.mxu0 %v9018_v54  ;;  %7340 = vmatprep.mubr.msk.bf16.mxu0 %vm8166_vm0, %v8165_v1  ;;  %v3500_v54 = vld [vmem:[%s10208_s21 + $0x8] sm:$0x3] }
0x25a1   :  { %7352 = vmatprep.subr.bf16.mxu0 %v8165_v1 }
0x265e   :  { %v3448_v34 = vpop.f32.mrb[28].mxu0 }
0x265f   :  { %v3489_v3 = vadd.f32 %v9189_v43, %v3448_v34  ;;  %v7299_v18 = vpop.f32.mrb[29].mxu0 }
0x2660   :  { %v3451_v48 = vpop.f32.mrb[30].mxu0 }
0x2661   :  { %v3494_v6 = vadd.f32 %v9028_v17, %v3489_v3  ;;  %v7300_v7 = vpop.f32.mrb[31].mxu0 }
0x2663   :  { %v3495_v36 = vmul.f32 0.5, %v3494_v6 }
0x2665   :  { %7809 = vtanh.f32 %v3495_v36 }
0x266f   :  { %v7810_v27 = vpop.eup %7809 }
0x2670   :  { %v3497_v50 = vadd.f32 1.0, %v7810_v27 }
0x2672   :  { %v3498_v56 = vmul.f32 0.5, %v3497_v50  ;;  %v3576_v55 = vpop.f32.mrb[32].mxu0 }
0x2673   :  { %v7509_v42 = vadd.f32 %v3576_v55, %v3500_v54  ;;  %v7321_v0 = vpop.f32.mrb[33].mxu0  ;;  %v3353_v54 = vrot.slane %v9095_v4, %v8428_v10 }
0x2674   :  { %3499 = vst [vmem:[#allocation3 + $0x6] sm:$0x3] %v3498_v56  ;;  %v3579_v45 = vpop.f32.mrb[34].mxu0 }
0x2675   :  { %7811 = vtanh.f32 %v7509_v42  ;;  %v7322_v43 = vpop.f32.mrb[35].mxu0  ;;  %v3583_v17 = vmul.f32 0.5, %v7509_v42  ;;  %v3361_v45 = vrot.slane %v3353_v54, %v8428_v10 }
0x2676   :  { %v3354_v43 = vcombine.high %v3353_v54, %v3353_v54 }
0x2677   :  { %7813 = vtanh.f32 %v3583_v17 }
0x267f   :  { %v7812_v24 = vpop.eup %7811 }
0x2680   :  { %3590 = vrot.lane.b32.xlu1 %v7812_v24, %s8167_s1 }
0x2681   :  { %v7814_v5 = vpop.eup %7813 }
0x2682   :  { %v3585_v14 = vadd.f32 1.0, %v7814_v5 }
0x2684   :  { %v3586_v2 = vmul.f32 0.5, %v3585_v14  ;;  %v3372_v14 = vrot.slane %v3361_v45, %v8433_v15 }
0x2686   :  { %v3588_v21 = vmul.f32 %v3586_v2, %v9037_v13  ;;  %v3282_v13 = vmul.f32 0.5, %v9095_v4 }
0x26f2   :  { %v3591_v46 = vpop.permute.xlu1 %3590 }
0x26f3   :  { %v3593_v40 = vmul.f32 %v3591_v46, %v3586_v2 }
0x26f5   :  { %3595 = vrot.lane.b32.xlu1 %v3593_v40, %s8168_s2 }
0x2767   :  { %v3596_v58 = vpop.permute.xlu1 %3595 }
0x2768   :  { %v9249_v47 = vadd.f32 %v3596_v58, %v3588_v21 }
0x276a   :  { %7815 = vtanh.f32 %v9249_v47 }
0x276b   :  { %7817 = vtanh.f32 %v3282_v13 }
0x2774   :  { %v7816_v31 = vpop.eup %7815 }
0x2775   :  { %3601 = vrot.lane.b32.xlu1 %v7816_v31, %s8167_s1  ;;  %v7818_v29 = vpop.eup %7817 }
0x2776   :  { %v3284_v19 = vadd.f32 1.0, %v7818_v29 }
0x2778   :  { %v3285_v41 = vmul.f32 0.5, %v3284_v19 }
0x2779   :  { %3243 = vbcast.lane.b32.xlu1 %v3241_v63, 256 }
0x277a   :  { %v3293_v51 = vrot.slane %v3285_v41, %v8428_v10 }
0x277c   :  { %v3301_v20 = vrot.slane %v3293_v51, %v8428_v10  ;;  %v3294_v48 = vcombine.high %v3293_v51, %v3293_v51 }
0x277d   :  { %3247 = vbcast.lane.b32.xlu1 %v3241_v63, 264 }
0x277e   :  { %v3312_v18 = vrot.slane %v3301_v20, %v8433_v15  ;;  %v3308_v27 = vrot.slane %v3294_v48, %v8428_v10 }
0x2780   :  { %v3316_v42 = vrot.slane %v3308_v27, %v8433_v15 }
0x2781   :  { %3254 = vbcast.lane.b32.xlu1 %v3252_v38, 256 }
0x2785   :  { %3258 = vbcast.lane.b32.xlu1 %v3252_v38, 264 }
0x27e7   :  { %v3602_v23 = vpop.permute.xlu1 %3601 }
0x27e8   :  { %v3604_v34 = vmul.f32 %v3602_v23, %v3586_v2  ;;  %v3368_v2 = vrot.slane %v3354_v43, %v8428_v10 }
0x27ea   :  { %v3605_v3 = vpack.c.bf16 %v3604_v34, %v3604_v34  ;;  %v3376_v21 = vrot.slane %v3368_v2, %v8433_v15 }
0x27eb   :  { %v3244_v6 = vpop.permute.xlu1 %3243 }
0x27ec   :  { %v3319_v7 = vmul.f32 %v3312_v18, %v3244_v6  ;;  %3607 = vrot.lane.b32.xlu0 %v3605_v3, %s8168_s2  ;;  %v3379_v46 = vmul.f32 %v3372_v14, %v3244_v6 }
0x27ee   :  { %v3323_v36 = vsub.f32 1.0, %v3319_v7 }
0x27ef   :  { %v3248_v50 = vpop.permute.xlu1 %3247 }
0x27f0   :  { %v3320_v56 = vmul.f32 %v3312_v18, %v3248_v50  ;;  %3331 = vrot.lane.b32.xlu1 %v3323_v36, %s8181_s0  ;;  %v3380_v58 = vmul.f32 %v3372_v14, %v3248_v50 }
0x27f2   :  { %v3324_v55 = vsub.f32 1.0, %v3320_v56 }
0x27f3   :  { %v3255_v0 = vpop.permute.xlu1 %3254 }
0x27f4   :  { %v3321_v24 = vmul.f32 %v3316_v42, %v3255_v0  ;;  %3333 = vrot.lane.b32.xlu1 %v3324_v55, %s8181_s0  ;;  %v3381_v31 = vmul.f32 %v3376_v21, %v3255_v0 }
0x27f6   :  { %v3325_v17 = vsub.f32 1.0, %v3321_v24 }
0x27f7   :  { %v3259_v5 = vpop.permute.xlu1 %3258 }
0x27f8   :  { %v3322_v4 = vmul.f32 %v3316_v42, %v3259_v5  ;;  %3335 = vrot.lane.b32.xlu0 %v3325_v17, %s8181_s0  ;;  %v3382_v63 = vmul.f32 %v3376_v21, %v3259_v5  ;;  %v9309_v5 = vld [vmem:[%s10188_s9] ss:$0 sm:$0xff] }
0x27fa   :  { %v3326_v40 = vsub.f32 1.0, %v3322_v4 }
0x27fc   :  { %3387 = vrot.lane.b32.xlu0 %v3379_v46, %s8182_s22  ;;  %3337 = vrot.lane.b32.xlu1 %v3326_v40, %s8181_s0 }
0x2800   :  { %3391 = vrot.lane.b32.xlu0 %v3381_v31, %s8182_s22  ;;  %3389 = vrot.lane.b32.xlu1 %v3380_v58, %s8182_s22 }
0x2804   :  { %3393 = vrot.lane.b32.xlu1 %v3382_v63, %s8182_s22 }
0x285e   :  { %v9278_v38 = vpop.permute.xlu0 %3607 }
0x285f   :  { %7328 = vmatmul.mubr.msk.bf16.vlgmr.msra.gmra.mrb[40].mxu1 %vm153_vm2, %v9278_v38 }
0x2860   :  { %7495 = vmatpush3.bf16.msra.mxu1 %v8511_v33  ;;  %7335 = vmatprep.mubr.msk.f32.mxu1 %vm8166_vm0, %v8165_v1 }
0x2861   :  { %7344 = vmatprep.subr.bf16.mxu1 %v8165_v1 }
0x2862   :  { %v3332_v13 = vpop.permute.xlu1 %3331 }
0x2863   :  { %v3343_v41 = vmul.f32 %v3332_v13, %v9075_v25 }
0x2866   :  { %v3334_v29 = vpop.permute.xlu1 %3333 }
0x2867   :  { %v3344_v34 = vmul.f32 %v3334_v29, %v9082_v16 }
0x286a   :  { %v3336_v19 = vpop.permute.xlu0 %3335 }
0x286b   :  { %v3345_v3 = vmul.f32 %v3336_v19, %v9080_v39 }
0x286e   :  { %v3388_v51 = vpop.permute.xlu0 %3387  ;;  %v3338_v20 = vpop.permute.xlu1 %3337 }
0x286f   :  { %v9287_v23 = vadd.f32 %v3388_v51, %v3343_v41  ;;  %v3346_v50 = vmul.f32 %v3338_v20, %v9088_v9 }
0x2871   :  { %v3688_v18 = vadd.f32 1e-16, %v9287_v23 }
0x2872   :  { %v3392_v48 = vpop.permute.xlu0 %3391  ;;  %v3390_v6 = vpop.permute.xlu1 %3389 }
0x2873   :  { %v9292_v7 = vadd.f32 %v3392_v48, %v3345_v3  ;;  %v9294_v36 = vadd.f32 %v3390_v6, %v3344_v34  ;;  %v3692_v27 = vmul.f32 %v3688_v18, %v3688_v18 }
0x2875   :  { %v3696_v25 = vsel %vm95_vm1, %v3692_v27, 0.0  ;;  %v3690_v54 = vadd.f32 1e-16, %v9292_v7  ;;  %v3689_v56 = vadd.f32 1e-16, %v9294_v36 }
0x2876   :  { %3697 = vadd.xlane.f32.xlu0 %v3696_v25  ;;  %v3394_v16 = vpop.permute.xlu1 %3393 }
0x2877   :  { %v9300_v39 = vadd.f32 %v3394_v16, %v3346_v50  ;;  %v3694_v55 = vmul.f32 %v3690_v54, %v3690_v54  ;;  %v3693_v42 = vmul.f32 %v3689_v56, %v3689_v56 }
0x2879   :  { %v3702_v0 = vsel %vm95_vm1, %v3694_v55, 0.0  ;;  %v3699_v45 = vsel %vm95_vm1, %v3693_v42, 0.0  ;;  %v3691_v43 = vadd.f32 1e-16, %v9300_v39 }
0x287a   :  { %3703 = vadd.xlane.f32.xlu0 %v3702_v0  ;;  %3700 = vadd.xlane.f32.xlu1 %v3699_v45 }
0x287b   :  { %v3695_v9 = vmul.f32 %v3691_v43, %v3691_v43 }
0x287d   :  { %v3705_v24 = vsel %vm95_vm1, %v3695_v9, 0.0 }
0x287e   :  { %3706 = vadd.xlane.f32.xlu0 %v3705_v24 }
0x2903   :  { %v3698_v40 = vpop.xlane.xlu0 %3697 }
0x2904   :  { %v3708_v58 = vmax.f32 %v3698_v40, 1e-16 }
0x2906   :  { %7819 = vrsqrt.f32 %v3708_v58 }
0x2907   :  { %v3701_v21 = vpop.xlane.xlu1 %3700  ;;  %v3704_v31 = vpop.xlane.xlu0 %3703 }
0x2908   :  { %v3709_v63 = vmax.f32 %v3701_v21, 1e-16  ;;  %v3710_v29 = vmax.f32 %v3704_v31, 1e-16 }
0x290a   :  { %7821 = vrsqrt.f32 %v3709_v63 }
0x290b   :  { %v3707_v19 = vpop.xlane.xlu0 %3706  ;;  %7823 = vrsqrt.f32 %v3710_v29 }
0x290c   :  { %v3711_v41 = vmax.f32 %v3707_v19, 1e-16 }
0x290e   :  { %7825 = vrsqrt.f32 %v3711_v41 }
0x2910   :  { %v7820_v48 = vpop.eup %7819 }
0x2911   :  { %v3716_v16 = vmul.f32 %v7820_v48, %v3688_v18 }
0x2914   :  { %v7822_v25 = vpop.eup %7821 }
0x2915   :  { %v3717_v24 = vmul.f32 %v7822_v25, %v3689_v56 }
0x2932   :  { %v3646_v17 = vpop.f32.mrb[40].mxu1 }
0x2933   :  { %v9312_v14 = vadd.f32 %v9309_v5, %v3646_v17  ;;  %v7329_v2 = vpop.f32.mrb[41].mxu1  ;;  %v7824_v17 = vpop.eup %7823 }
0x2934   :  { %v3649_v4 = vpop.f32.mrb[42].mxu1  ;;  %v3718_v18 = vmul.f32 %v7824_v17, %v3690_v54  ;;  %v7826_v58 = vpop.eup %7825 }
0x2935   :  { %3652 = vst.msk [vmem:[#allocation2] sm:$0x3] %vm289_vm3, %v9312_v14  ;;  %v7330_v46 = vpop.f32.mrb[43].mxu1  ;;  %3654 = vrot.lane.b32.xlu1 %v9312_v14, %s8169_s3 }
0x29a7   :  { %v3655_v13 = vpop.permute.xlu1 %3654 }
0x29a8   :  { %3657 = vst.msk [vmem:[#allocation2 + $0x2] sm:$0x3] %vm289_vm3, %v3655_v13  ;;  %v3719_v13 = vmul.f32 %v7826_v58, %v3691_v43 }
0x29af   :  { %v9319_v51 = vld [vmem:[#allocation2] sm:$0xf] }
0x29b0   :  { %v3720_v20 = vadd.f32 1e-16, %v9319_v51 }
0x29b2   :  { %v3721_v34 = vmul.f32 %v3720_v20, %v3720_v20  ;;  %v3734_v3 = vrot.slane %v3720_v20, %v8428_v10 }
0x29b4   :  { %v3722_v6 = vsel %vm362_vm4, %v3721_v34, 0.0  ;;  %v3742_v27 = vrot.slane %v3734_v3, %v8428_v10  ;;  %v3735_v50 = vcombine.high %v3734_v3, %v3734_v3 }
0x29b5   :  { %3723 = vadd.xlane.f32.xlu0 %v3722_v6 }
0x29b6   :  { %v3755_v55 = vrot.slane %v3742_v27, %v8433_v15  ;;  %v3750_v42 = vcombine.high %v3742_v27, %v3742_v27  ;;  %v3749_v0 = vrot.slane %v3735_v50, %v8428_v10  ;;  %v3660_v27 = vand.u32 2147483647, %v9319_v51 }
0x29b8   :  { %v3772_v45 = vmul.f32 %v3755_v55, %v3716_v16  ;;  %v3763_v9 = vrot.slane %v3750_v42, %v8433_v15  ;;  %v3773_v46 = vmul.f32 %v3755_v55, %v3717_v24  ;;  %v3759_v40 = vrot.slane %v3749_v0, %v8433_v15 }
0x29b9   :  { %v3751_v19 = vcombine.high %v3749_v0, %v3749_v0  ;;  %v3661_v50 = vsub.f32 0.0, %v3660_v27 }
0x29ba   :  { %v3780_v2 = vsel %vm95_vm1, %v3772_v45, 0.0  ;;  %v3776_v4 = vmul.f32 %v3763_v9, %v3716_v16  ;;  %v3783_v31 = vsel %vm95_vm1, %v3773_v46, 0.0  ;;  %v3774_v63 = vmul.f32 %v3759_v40, %v3718_v18 }
0x29bb   :  { %3781 = vadd.xlane.f32.xlu0 %v3780_v2  ;;  %v3775_v29 = vmul.f32 %v3759_v40, %v3719_v13  ;;  %v3777_v20 = vmul.f32 %v3763_v9, %v3717_v24  ;;  %v3767_v34 = vrot.slane %v3751_v19, %v8433_v15  ;;  %v3662_v25 = vmul.f32 1.442695, %v3661_v50 }
0x29bc   :  { %v3792_v21 = vsel %vm95_vm1, %v3776_v4, 0.0  ;;  %v3786_v56 = vsel %vm95_vm1, %v3774_v63, 0.0 }
0x29bd   :  { %3793 = vadd.xlane.f32.xlu1 %v3792_v21  ;;  %v3789_v41 = vsel %vm95_vm1, %v3775_v29, 0.0  ;;  %v3795_v54 = vsel %vm95_vm1, %v3777_v20, 0.0  ;;  %v3778_v3 = vmul.f32 %v3767_v34, %v3718_v18  ;;  %v3779_v6 = vmul.f32 %v3767_v34, %v3719_v13 }
0x29be   :  { %7827 = vpow2.f32 %v3662_v25 }
0x29bf   :  { %3784 = vadd.xlane.f32.xlu0 %v3783_v31  ;;  %v3798_v48 = vsel %vm95_vm1, %v3778_v3, 0.0  ;;  %v3801_v43 = vsel %vm95_vm1, %v3779_v6, 0.0 }
0x29c3   :  { %3787 = vadd.xlane.f32.xlu0 %v3786_v56 }
0x29c7   :  { %3790 = vadd.xlane.f32.xlu0 %v3789_v41 }
0x29c8   :  { %v7828_v0 = vpop.eup %7827 }
0x29c9   :  { %v3664_v9 = vadd.f32 1.0, %v7828_v0 }
0x29cb   :  { %3796 = vadd.xlane.f32.xlu0 %v3795_v54 }
0x29cf   :  { %3799 = vadd.xlane.f32.xlu0 %v3798_v48  ;;  %v3659_v48 = vmax.f32 %v9319_v51, 0.0 }
0x29d3   :  { %3802 = vadd.xlane.f32.xlu0 %v3801_v43 }
0x2a42   :  { %v3724_v16 = vpop.xlane.xlu0 %3723 }
0x2a43   :  { %v3725_v55 = vmax.f32 %v3724_v16, 1e-16 }
0x2a45   :  { %7829 = vrsqrt.f32 %v3725_v55 }
0x2a46   :  { %7831 = vlog2.f32 %v3664_v9 }
0x2a48   :  { %v3782_v42 = vpop.xlane.xlu0 %3781 }
0x2a4a   :  { %v3794_v58 = vpop.xlane.xlu1 %3793 }
0x2a4c   :  { %v3785_v45 = vpop.xlane.xlu0 %3784 }
0x2a4f   :  { %v7830_v24 = vpop.eup %7829 }
0x2a50   :  { %v3808_v17 = vrot.slane %v7830_v24, %v8433_v15  ;;  %v3788_v2 = vpop.xlane.xlu0 %3787  ;;  %v3816_v46 = vrot.slane %v7830_v24, %v8462_v22  ;;  %v3812_v21 = vrot.slane %v7830_v24, %v8457_v11  ;;  %v7832_v29 = vpop.eup %7831  ;;  %v3820_v19 = vrot.slane %v7830_v24, %v8466_v35 }
0x2a51   :  { %v3666_v54 = vmul.f32 0.6931472, %v7832_v29 }
0x2a52   :  { %v3825_v4 = vmul.f32 %v3808_v17, %v3782_v42  ;;  %v3826_v40 = vmul.f32 %v3808_v17, %v3785_v45  ;;  %v3829_v31 = vmul.f32 %v3816_v46, %v3794_v58  ;;  %v3827_v63 = vmul.f32 %v3812_v21, %v3788_v2 }
0x2a53   :  { %v9344_v43 = vadd.f32 %v3666_v54, %v3659_v48  ;;  %v3673_v54 = vsel %vm311_vm9, %v9319_v51, -inf }
0x2a54   :  { %3847 = vperm.xlu0 %7608, %v3825_v4   ;;  %3850 = vperm.xlu1 %7609, %v3826_v40   ;;  %v3791_v18 = vpop.xlane.xlu0 %3790 }
0x2a55   :  { %v3828_v56 = vmul.f32 %v3812_v21, %v3791_v18 }
0x2a58   :  { %3859 = vperm.xlu0 %7608, %v3829_v31   ;;  %3853 = vperm.xlu1 %7609, %v3827_v63   ;;  %v3797_v13 = vpop.xlane.xlu0 %3796 }
0x2a59   :  { %v3830_v34 = vmul.f32 %v3816_v46, %v3797_v13  ;;  %v3669_v13 = vmul.f32 0.5, %v9319_v51 }
0x2a5b   :  { %7833 = vtanh.f32 %v3669_v13 }
0x2a5c   :  { %3856 = vperm.xlu1 %7609, %v3828_v56   ;;  %v3800_v41 = vpop.xlane.xlu0 %3799 }
0x2a5d   :  { %v3831_v20 = vmul.f32 %v3820_v19, %v3800_v41 }
0x2a5f   :  { %3865 = vperm.xlu0 %7608, %v3831_v20  }
0x2a60   :  { %3862 = vperm.xlu1 %7609, %v3830_v34   ;;  %v3803_v3 = vpop.xlane.xlu0 %3802 }
0x2a61   :  { %v3832_v6 = vmul.f32 %v3820_v19, %v3803_v3 }
0x2a63   :  { %7610 = vset.pattern.permute.xlu0 %v8172_v52 }
0x2a64   :  { %3868 = vperm.xlu1 %7609, %v3832_v6   ;;  %3835 = vperm.xlu0 %7610, %v9344_v43  }
0x2a65   :  { %v7834_v3 = vpop.eup %7833 }
0x2a66   :  { %v3671_v48 = vadd.f32 1.0, %v7834_v3 }
0x2a68   :  { %7612 = vset.pattern.permute.xlu1 %v8173_v53  ;;  %7611 = vset.pattern.permute.xlu0 %v8173_v53  ;;  %v3672_v6 = vmul.f32 0.5, %v3671_v48  ;;  %v3668_v48 = vadd.f32 1.0, %v9344_v43 }
0x2ad3   :  { %v3851_v27 = vpop.permute.xlu1 %3850  ;;  %v3848_v50 = vpop.permute.xlu0 %3847 }
0x2ad4   :  { %v3877_v45 = vrot.slane %v3851_v27, %v8481_v61  ;;  %v3873_v9 = vrot.slane %v3848_v50, %v8478_v60  ;;  %v3928_v27 = vsub.f32 1.0, %v3672_v6 }
0x2ad6   :  { %v3878_v18 = vsel %vm522_vm5, %v3877_v45, %v3873_v9 }
0x2ad7   :  { %v3854_v25 = vpop.permute.xlu1 %3853  ;;  %v3860_v55 = vpop.permute.xlu0 %3859 }
0x2ad8   :  { %v3882_v24 = vrot.slane %v3854_v25, %v8478_v60  ;;  %v3891_v2 = vrot.slane %v3860_v55, %v8478_v60 }
0x2adb   :  { %v3857_v16 = vpop.permute.xlu1 %3856 }
0x2adc   :  { %v3886_v42 = vrot.slane %v3857_v16, %v8481_v61 }
0x2ade   :  { %v3866_v4 = vpop.permute.xlu0 %3865  ;;  %v3887_v46 = vsel %vm522_vm5, %v3886_v42, %v3882_v24 }
0x2adf   :  { %v3863_v0 = vpop.permute.xlu1 %3862  ;;  %v3900_v58 = vrot.slane %v3866_v4, %v8478_v60  ;;  %v3906_v63 = vsel %vm551_vm6, %v3887_v46, %v3878_v18 }
0x2ae0   :  { %v3895_v17 = vrot.slane %v3863_v0, %v8481_v61 }
0x2ae2   :  { %v3896_v40 = vsel %vm522_vm5, %v3895_v17, %v3891_v2 }
0x2ae3   :  { %v3869_v21 = vpop.permute.xlu1 %3868  ;;  %v3907_v29 = vsel %vm553_vm7, %v3896_v40, %v3906_v63  ;;  %v3836_v41 = vpop.permute.xlu0 %3835  ;;  %v9380_v63 = vld [vmem:[%s10189_s10] sm:$0xff]  }
0x2ae4   :  { %v3904_v31 = vrot.slane %v3869_v21, %v8481_v61 }
0x2ae6   :  { %v3905_v56 = vsel %vm522_vm5, %v3904_v31, %v3900_v58 }
0x2ae7   :  { %v3908_v19 = vsel %vm555_vm8, %v3905_v56, %v3907_v29 }
0x2ae8   :  { %v3910_v20 = vmul.f32 %v3908_v19, %v3836_v41 }
0x2aea   :  { %v3911_v34 = vsel %vm362_vm4, %v3910_v20, -inf }
0x2aeb   :  { %3912 = vmax.xlane.f32.xlu1 %v3911_v34 }
0x2aef   :  { %3674 = vmax.xlane.f32.xlu1 %v3673_v54 }
0x2b00   :  { %3931 = vperm.xlu1 %7612, %v3928_v27  }
0x2b04   :  { %7615 = vset.pattern.permute.xlu1 %v8178_v32 }
0x2b78   :  { %v3913_v50 = vpop.xlane.xlu1 %3912 }
0x2b79   :  { %v3914_v25 = vsub.f32 %v3910_v20, %v3913_v50 }
0x2b7b   :  { %v3915_v16 = vmul.f32 1.442695, %v3914_v25 }
0x2b7c   :  { %v3675_v55 = vpop.xlane.xlu1 %3674 }
0x2b7d   :  { %7835 = vpow2.f32 %v3915_v16  ;;  %v3676_v42 = vsub.f32 %v9319_v51, %v3675_v55 }
0x2b7f   :  { %v3677_v0 = vmul.f32 1.442695, %v3676_v42 }
0x2b80   :  { %v3932_v17 = vpop.permute.xlu1 %3931 }
0x2b81   :  { %7837 = vpow2.f32 %v3677_v0  ;;  %v3934_v18 = vmul.f32 %v3932_v17, %v9193_v49  ;;  %v9389_v49 = vld [vmem:[%s10189_s10 + $0x8] sm:$0xff]  }
0x2b87   :  { %v7836_v45 = vpop.eup %7835 }
0x2b88   :  { %v3917_v9 = vsel %vm362_vm4, %v7836_v45, 0.0 }
0x2b89   :  { %3918 = vadd.xlane.f32.xlu0 %v3917_v9 }
0x2b8b   :  { %v7838_v24 = vpop.eup %7837 }
0x2b8c   :  { %3680 = vrot.lane.b32.xlu1 %v7838_v24, %s8174_s26 }
0x2b9f   :  { %3924 = vperm.xlu0 %7611, %v3672_v6  }
0x2ba3   :  { %7613 = vset.pattern.permute.xlu0 %v8177_v12 }
0x2bfe   :  { %v3681_v2 = vpop.permute.xlu1 %3680 }
0x2bff   :  { %v3683_v4 = vsel %vm322_vm10, %v3681_v2, 0.0 }
0x2c00   :  { %3684 = vadd.xlane.f32.xlu1 %v3683_v4 }
0x2c16   :  { %v3919_v46 = vpop.xlane.xlu0 %3918 }
0x2c17   :  { %7839 = vrcp.f32 %v3919_v46 }
0x2c1e   :  { %v3925_v21 = vpop.permute.xlu0 %3924 }
0x2c21   :  { %v7840_v51 = vpop.eup %7839 }
0x2c22   :  { %v3921_v40 = vmul.f32 %v7840_v51, %v7836_v45 }
0x2c24   :  { %v3927_v58 = vmul.f32 %v3925_v21, %v3921_v40 }
0x2c26   :  { %v3935_v31 = vadd.f32 %v3934_v18, %v3927_v58 }
0x2c28   :  { %7336 = vmatmul.mubr.msk.f32.vlgmr.msra.gmra.mrb[44].mxu1 %vm95_vm1, %v3935_v31 }
0x2c29   :  { %7345 = vmatpush3.bf16.msra.mxu1 %v9380_v63  ;;  %7348 = vmatprep.mubr.msk.bf16.mxu1 %vm8166_vm0, %v8165_v1 }
0x2c2a   :  { %7346 = vmatprep.subr.bf16.mxu1 %v8165_v1 }
0x2c2d   :  { %7347 = vmatpush3.bf16.msra.mxu1 %v9389_v49 }
0x2c2e   :  { %7366 = vmatprep.subr.bf16.mxu1 %v8165_v1 }
0x2c30   :  { %7349 = vmatmul.mubr.msk.bf16.vlgmr.msra.gmra.mrb[48].mxu1 %vm153_vm2, %v9278_v38 }
0x2c31   :  { %7367 = vmatpush3.bf16.msra.mxu1 %v9171_v28  ;;  %7370 = vmatprep.mubr.msk.bf16.mxu1 %vm8166_vm0, %v8165_v1 }
0x2c32   :  { %7368 = vmatprep.subr.bf16.mxu1 %v8165_v1 }
0x2c35   :  { %7369 = vmatpush3.bf16.msra.mxu1 %v9180_v37 }
0x2c36   :  { %7496 = vmatprep.subr.bf16.mxu1 %v8175_v62 }
0x2c8d   :  { %v3685_v13 = vpop.xlane.xlu1 %3684 }
0x2c8e   :  { %7841 = vrcp.f32 %v3685_v13 }
0x2c98   :  { %v7842_v56 = vpop.eup %7841 }
0x2c99   :  { %v3687_v29 = vmul.f32 %v7842_v56, %v7838_v24 }
0x2c9b   :  { %4016 = vperm.xlu1 %7615, %v3687_v29   ;;  %4022 = vperm.xlu0 %7613, %v3687_v29  }
0x2c9f   :  { %7614 = vset.pattern.permute.xlu0 %v8176_v8  ;;  %7617 = vset.pattern.permute.xlu1 %v8171_v59 }
0x2ca0   :  { %4011 = vperm.xlu0 %7614, %v3687_v29  }
0x2ca4   :  { %7616 = vset.pattern.permute.xlu0 %v8179_v26 }
0x2cfb   :  { %v4005_v28 = vpop.f32.mrb[44].mxu1 }
0x2cfc   :  { %v7337_v19 = vpop.f32.mrb[45].mxu1 }
0x2d03   :  { %v9404_v41 = vpop.f32.mrb[48].mxu1 }
0x2d04   :  { %v7350_v37 = vpop.f32.mrb[49].mxu1 }
0x2d05   :  { %v4323_v20 = vpop.f32.mrb[50].mxu1 }
0x2d06   :  { %v7351_v34 = vpop.f32.mrb[51].mxu1 }
0x2d1a   :  { %v4023_v54 = vpop.permute.xlu0 %4022  ;;  %v4017_v27 = vpop.permute.xlu1 %4016 }
0x2d1b   :  { %v4025_v3 = vmul.f32 %v4023_v54, %v4005_v28  ;;  %v4019_v25 = vmul.f32 %v4017_v27, %v3935_v31 }
0x2d1d   :  { %4027 = vrot.lane.b32.xlu0 %v4025_v3, %s8180_s25 }
0x2d1f   :  { %v4012_v6 = vpop.permute.xlu0 %4011 }
0x2d20   :  { %v4014_v50 = vmul.f32 %v4012_v6, %v4005_v28 }
0x2d21   :  { %4036 = vperm.xlu0 %7616, %v3668_v48  }
0x2d22   :  { %v4020_v16 = vadd.f32 %v4019_v25, %v4014_v50 }
0x2d25   :  { %7618 = vset.pattern.permute.xlu0 %v8171_v59 }
0x2d8f   :  { %v4028_v55 = vpop.permute.xlu0 %4027 }
0x2d90   :  { %v4030_v42 = vadd.f32 %v4028_v55, %v4020_v16 }
0x2d92   :  { %v4031_v0 = vmax.f32 %v4030_v42, 1e-30 }
0x2d94   :  { %7843 = vlog2.f32 %v4031_v0 }
0x2d9e   :  { %v7844_v45 = vpop.eup %7843 }
0x2d9f   :  { %v4033_v9 = vmul.f32 0.6931472, %v7844_v45 }
0x2da0   :  { %v4037_v24 = vpop.permute.xlu0 %4036 }
0x2da1   :  { %v4039_v17 = vmul.f32 %v4037_v24, %v4033_v9 }
0x2da3   :  { %v4040_v2 = vmul.f32 1.442695, %v4039_v17 }
0x2da5   :  { %7845 = vpow2.f32 %v4040_v2 }
0x2daf   :  { %v7846_v4 = vpop.eup %7845 }
0x2db0   :  { %v4042_v43 = vsel %vm362_vm4, %v7846_v4, 0.0 }
0x2db1   :  { %4043 = vadd.xlane.f32.xlu0 %v4042_v43 }
0x2e3e   :  { %v4044_v46 = vpop.xlane.xlu0 %4043 }
0x2e3f   :  { %v4045_v51 = vadd.f32 1e-16, %v4044_v46 }
0x2e41   :  { %7847 = vrcp.f32 %v4045_v51 }
0x2e4b   :  { %v7848_v40 = vpop.eup %7847 }
0x2e4c   :  { %v9410_v21 = vmul.f32 %v7848_v40, %v7846_v4 }
0x2e4e   :  { %v4051_v18 = vrot.slane %v9410_v21, %v8433_v15  ;;  %v4062_v58 = vrot.slane %v9410_v21, %v8457_v11 }
0x2e50   :  { %4053 = vbcast.lane.b32.xlu1 %v4051_v18, 256 }
0x2e54   :  { %4057 = vbcast.lane.b32.xlu1 %v4051_v18, 264 }
0x2e58   :  { %4064 = vbcast.lane.b32.xlu1 %v4062_v58, 256 }
0x2e5c   :  { %4068 = vbcast.lane.b32.xlu1 %v4062_v58, 264 }
0x2ec2   :  { %v4054_v31 = vpop.permute.xlu1 %4053 }
0x2ec3   :  { %v4092_v13 = vmul.f32 %v4054_v31, %v9287_v23 }
0x2ec5   :  { %v4096_v28 = vsel %vm95_vm1, %v4092_v13, 0.0 }
0x2ec6   :  { %v4058_v56 = vpop.permute.xlu1 %4057 }
0x2ec7   :  { %v4093_v29 = vmul.f32 %v4058_v56, %v9294_v36 }
0x2ec9   :  { %v4097_v19 = vsel %vm95_vm1, %v4093_v29, 0.0 }
0x2eca   :  { %v4098_v37 = vadd.f32 %v4097_v19, %v4096_v28  ;;  %v4065_v20 = vpop.permute.xlu1 %4064 }
0x2ecb   :  { %v4094_v54 = vmul.f32 %v4065_v20, %v9292_v7  ;;  %v4332_v20 = vld [vmem:[%s10208_s21 + $0xa] sm:$0x3] }
0x2ecc   :  { %v4099_v34 = vrot.slane %v4098_v37, 4 }
0x2ecd   :  { %v4105_v50 = vsel %vm95_vm1, %v4094_v54, 0.0 }
0x2ece   :  { %v4100_v3 = vadd.f32 %v4099_v34, %v4098_v37  ;;  %v4069_v48 = vpop.permute.xlu1 %4068 }
0x2ecf   :  { %v4095_v6 = vmul.f32 %v4069_v48, %v9300_v39 }
0x2ed0   :  { %v4101_v27 = vrot.slane %v4100_v3, 2 }
0x2ed1   :  { %v4106_v25 = vsel %vm95_vm1, %v4095_v6, 0.0 }
0x2ed2   :  { %v4102_v16 = vadd.f32 %v4101_v27, %v4100_v3  ;;  %v4107_v55 = vadd.f32 %v4106_v25, %v4105_v50 }
0x2ed4   :  { %v4108_v42 = vrot.slane %v4107_v55, 4  ;;  %v4103_v0 = vrot.slane %v4102_v16, 1 }
0x2ed6   :  { %v4109_v45 = vadd.f32 %v4108_v42, %v4107_v55  ;;  %v4104_v24 = vadd.f32 %v4103_v0, %v4102_v16 }
0x2ed8   :  { %v4110_v9 = vrot.slane %v4109_v45, 2  ;;  %v4235_v4 = vpack.c.bf16 %v4104_v24, %v4104_v24 }
0x2eda   :  { %v4111_v17 = vadd.f32 %v4110_v9, %v4109_v45  ;;  %v4239_v51 = vunpack.c.l.b16 %v4235_v4  ;;  %v4084_v4 = vrot.slane %v9410_v21, %v8466_v35 }
0x2edc   :  { %v4112_v2 = vrot.slane %v4111_v17, 1 }
0x2ede   :  { %v4113_v43 = vadd.f32 %v4112_v2, %v4111_v17  ;;  %v4073_v2 = vrot.slane %v9410_v21, %v8462_v22 }
0x2ee0   :  { %v4236_v46 = vpack.c.bf16 %v4113_v43, %v4113_v43 }
0x2ee2   :  { %v4240_v40 = vunpack.c.l.b16 %v4236_v46 }
0x2ee4   :  { %v4241_v18 = vsel %vm551_vm6, %v4240_v40, %v4239_v51 }
0x2ee5   :  { %v4242_v58 = vpack.c.b16 %v4241_v18, %v4241_v18 }
0x2ee7   :  { %7341 = vmatmul.mubr.msk.bf16.vlgmr.msra.gmra.mrb[36].mxu0 %vm95_vm1, %v4242_v58 }
0x2ee8   :  { %7353 = vmatpush3.bf16.msra.mxu0 %v9212_v44  ;;  %7354 = vmatprep.mubr.msk.bf16.mxu0 %vm8166_vm0, %v8165_v1  ;;  %v9442_v44 = vld [vmem:[%s10190_s11] sm:$0xff]  }
0x2ee9   :  { %7358 = vmatprep.subr.bf16.mxu0 %v8165_v1 }
0x2eef   :  { %7355 = vmatmul.mubr.msk.bf16.vlgmr.msra.gmra.mrb[40].mxu0 %vm95_vm1, %v4242_v58 }
0x2ef0   :  { %7359 = vmatpush3.bf16.msra.mxu0 %v9222_v57  ;;  %7362 = vmatprep.mubr.msk.bf16.mxu0 %vm8166_vm0, %v8165_v1 }
0x2ef1   :  { %7360 = vmatprep.subr.bf16.mxu0 %v8165_v1 }
0x2ef4   :  { %7361 = vmatpush3.bf16.msra.mxu0 %v9231_v30 }
0x2ef5   :  { %7381 = vmatprep.subr.bf16.mxu0 %v8165_v1 }
0x2efb   :  { %7363 = vmatmul.mubr.msk.bf16.vlgmr.msra.gmra.mrb[40].mxu0 %vm153_vm2, %v9278_v38  ;;  %v9452_v38 = vld [vmem:[%s10191_s12] ss:$0 sm:$0xff] }
0x2efc   :  { %7382 = vmatpush3.bf16.msra.mxu0 %v9442_v44  ;;  %7383 = vmatprep.mubr.msk.bf16.mxu0 %vm8166_vm0, %v8165_v1 }
0x2efd   :  { %7395 = vmatprep.subr.bf16.mxu0 %v8165_v1 }
0x2fba   :  { %v4280_v57 = vpop.f32.mrb[36].mxu0 }
0x2fbb   :  { %v4321_v30 = vadd.f32 %v9404_v41, %v4280_v57  ;;  %v7342_v31 = vpop.f32.mrb[37].mxu0 }
0x2fbc   :  { %v4283_v13 = vpop.f32.mrb[38].mxu0 }
0x2fbd   :  { %v4326_v56 = vadd.f32 %v9452_v38, %v4321_v30  ;;  %v7343_v29 = vpop.f32.mrb[39].mxu0 }
0x2fbf   :  { %v4327_v28 = vmul.f32 0.5, %v4326_v56 }
0x2fc1   :  { %7849 = vtanh.f32 %v4327_v28 }
0x2fcb   :  { %v7850_v19 = vpop.eup %7849 }
0x2fcc   :  { %v4329_v37 = vadd.f32 1.0, %v7850_v19 }
0x2fce   :  { %v4330_v34 = vmul.f32 0.5, %v4329_v37  ;;  %v4408_v41 = vpop.f32.mrb[40].mxu0 }
0x2fcf   :  { %v7510_v54 = vadd.f32 %v4408_v41, %v4332_v20  ;;  %v7364_v3 = vpop.f32.mrb[41].mxu0  ;;  %v4185_v20 = vrot.slane %v9312_v14, %v8428_v10 }
0x2fd0   :  { %4331 = vst [vmem:[#allocation3 + $0x8] sm:$0x3] %v4330_v34  ;;  %v4411_v48 = vpop.f32.mrb[42].mxu0 }
0x2fd1   :  { %7851 = vtanh.f32 %v7510_v54  ;;  %v7365_v6 = vpop.f32.mrb[43].mxu0  ;;  %v4415_v50 = vmul.f32 0.5, %v7510_v54  ;;  %v4193_v48 = vrot.slane %v4185_v20, %v8428_v10 }
0x2fd2   :  { %v4186_v6 = vcombine.high %v4185_v20, %v4185_v20 }
0x2fd3   :  { %7853 = vtanh.f32 %v4415_v50 }
0x2fdb   :  { %v7852_v27 = vpop.eup %7851 }
0x2fdc   :  { %4422 = vrot.lane.b32.xlu1 %v7852_v27, %s8167_s1 }
0x2fdd   :  { %v7854_v25 = vpop.eup %7853 }
0x2fde   :  { %v4417_v16 = vadd.f32 1.0, %v7854_v25 }
0x2fe0   :  { %v4418_v55 = vmul.f32 0.5, %v4417_v16  ;;  %v4204_v16 = vrot.slane %v4193_v48, %v8433_v15 }
0x2fe2   :  { %v4420_v45 = vmul.f32 %v4418_v55, %v9249_v47  ;;  %v4114_v47 = vmul.f32 0.5, %v9312_v14 }
0x304e   :  { %v4423_v42 = vpop.permute.xlu1 %4422 }
0x304f   :  { %v4425_v0 = vmul.f32 %v4423_v42, %v4418_v55 }
0x3051   :  { %4427 = vrot.lane.b32.xlu1 %v4425_v0, %s8168_s2 }
0x30c3   :  { %v4428_v9 = vpop.permute.xlu1 %4427 }
0x30c4   :  { %v9461_v24 = vadd.f32 %v4428_v9, %v4420_v45 }
0x30c6   :  { %7855 = vtanh.f32 %v9461_v24 }
0x30c7   :  { %7857 = vtanh.f32 %v4114_v47 }
0x30d0   :  { %v7856_v17 = vpop.eup %7855 }
0x30d1   :  { %4433 = vrot.lane.b32.xlu1 %v7856_v17, %s8167_s1  ;;  %v7858_v43 = vpop.eup %7857 }
0x30d2   :  { %v4116_v46 = vadd.f32 1.0, %v7858_v43 }
0x30d4   :  { %v4117_v51 = vmul.f32 0.5, %v4116_v46 }
0x30d5   :  { %4075 = vbcast.lane.b32.xlu1 %v4073_v2, 256 }
0x30d6   :  { %v4125_v40 = vrot.slane %v4117_v51, %v8428_v10 }
0x30d8   :  { %v4133_v18 = vrot.slane %v4125_v40, %v8428_v10  ;;  %v4126_v13 = vcombine.high %v4125_v40, %v4125_v40 }
0x30d9   :  { %4079 = vbcast.lane.b32.xlu1 %v4073_v2, 264 }
0x30da   :  { %v4144_v31 = vrot.slane %v4133_v18, %v8433_v15  ;;  %v4140_v19 = vrot.slane %v4126_v13, %v8428_v10 }
0x30dc   :  { %v4148_v54 = vrot.slane %v4140_v19, %v8433_v15 }
0x30dd   :  { %4086 = vbcast.lane.b32.xlu1 %v4084_v4, 256 }
0x30e1   :  { %4090 = vbcast.lane.b32.xlu1 %v4084_v4, 264 }
0x3143   :  { %v4434_v58 = vpop.permute.xlu1 %4433 }
0x3144   :  { %v4436_v57 = vmul.f32 %v4434_v58, %v4418_v55  ;;  %v4200_v55 = vrot.slane %v4186_v6, %v8428_v10 }
0x3146   :  { %v4437_v30 = vpack.c.bf16 %v4436_v57, %v4436_v57  ;;  %v4208_v45 = vrot.slane %v4200_v55, %v8433_v15 }
0x3147   :  { %v4076_v56 = vpop.permute.xlu1 %4075 }
0x3148   :  { %v4151_v29 = vmul.f32 %v4144_v31, %v4076_v56  ;;  %4439 = vrot.lane.b32.xlu0 %v4437_v30, %s8168_s2  ;;  %v4211_v42 = vmul.f32 %v4204_v16, %v4076_v56 }
0x314a   :  { %v4155_v28 = vsub.f32 1.0, %v4151_v29 }
0x314b   :  { %v4080_v37 = vpop.permute.xlu1 %4079 }
0x314c   :  { %v4152_v34 = vmul.f32 %v4144_v31, %v4080_v37  ;;  %4163 = vrot.lane.b32.xlu1 %v4155_v28, %s8181_s0  ;;  %v4212_v9 = vmul.f32 %v4204_v16, %v4080_v37 }
0x314e   :  { %v4156_v41 = vsub.f32 1.0, %v4152_v34 }
0x314f   :  { %v4087_v3 = vpop.permute.xlu1 %4086 }
0x3150   :  { %v4153_v27 = vmul.f32 %v4148_v54, %v4087_v3  ;;  %4165 = vrot.lane.b32.xlu1 %v4156_v41, %s8181_s0  ;;  %v4213_v17 = vmul.f32 %v4208_v45, %v4087_v3 }
0x3152   :  { %v4157_v50 = vsub.f32 1.0, %v4153_v27 }
0x3153   :  { %v4091_v25 = vpop.permute.xlu1 %4090 }
0x3154   :  { %v4154_v14 = vmul.f32 %v4148_v54, %v4091_v25  ;;  %4167 = vrot.lane.b32.xlu0 %v4157_v50, %s8181_s0  ;;  %v4214_v2 = vmul.f32 %v4208_v45, %v4091_v25 }
0x3156   :  { %v4158_v0 = vsub.f32 1.0, %v4154_v14 }
0x3158   :  { %4219 = vrot.lane.b32.xlu0 %v4211_v42, %s8182_s22  ;;  %4169 = vrot.lane.b32.xlu1 %v4158_v0, %s8181_s0 }
0x315c   :  { %4223 = vrot.lane.b32.xlu0 %v4213_v17, %s8182_s22  ;;  %4221 = vrot.lane.b32.xlu1 %v4212_v9, %s8182_s22 }
0x3160   :  { %4225 = vrot.lane.b32.xlu1 %v4214_v2, %s8182_s22 }
0x31ba   :  { %v9490_v4 = vpop.permute.xlu0 %4439 }
0x31bb   :  { %7371 = vmatmul.mubr.msk.bf16.vlgmr.msra.gmra.mrb[52].mxu1 %vm153_vm2, %v9490_v4 }
0x31bc   :  { %7498 = vmatpush3.bf16.msra.mxu1 %v8511_v33  ;;  %7378 = vmatprep.mubr.msk.f32.mxu1 %vm8166_vm0, %v8165_v1 }
0x31bd   :  { %7387 = vmatprep.subr.bf16.mxu1 %v8165_v1 }
0x31be   :  { %v4164_v47 = vpop.permute.xlu1 %4163 }
0x31bf   :  { %v4175_v51 = vmul.f32 %v4164_v47, %v9287_v23 }
0x31c2   :  { %v4166_v43 = vpop.permute.xlu1 %4165 }
0x31c3   :  { %v4176_v57 = vmul.f32 %v4166_v43, %v9294_v36 }
0x31c6   :  { %v4168_v46 = vpop.permute.xlu0 %4167 }
0x31c7   :  { %v4177_v30 = vmul.f32 %v4168_v46, %v9292_v7 }
0x31ca   :  { %v4220_v40 = vpop.permute.xlu0 %4219  ;;  %v4170_v18 = vpop.permute.xlu1 %4169 }
0x31cb   :  { %v9499_v58 = vadd.f32 %v4220_v40, %v4175_v51  ;;  %v4178_v37 = vmul.f32 %v4170_v18, %v9300_v39 }
0x31cd   :  { %v4520_v31 = vadd.f32 1e-16, %v9499_v58 }
0x31ce   :  { %v4224_v13 = vpop.permute.xlu0 %4223  ;;  %v4222_v56 = vpop.permute.xlu1 %4221 }
0x31cf   :  { %v9504_v29 = vadd.f32 %v4224_v13, %v4177_v30  ;;  %v9506_v28 = vadd.f32 %v4222_v56, %v4176_v57  ;;  %v4524_v19 = vmul.f32 %v4520_v31, %v4520_v31 }
0x31d1   :  { %v4528_v23 = vsel %vm95_vm1, %v4524_v19, 0.0  ;;  %v4522_v20 = vadd.f32 1e-16, %v9504_v29  ;;  %v4521_v34 = vadd.f32 1e-16, %v9506_v28 }
0x31d2   :  { %4529 = vadd.xlane.f32.xlu0 %v4528_v23  ;;  %v4226_v36 = vpop.permute.xlu1 %4225 }
0x31d3   :  { %v9512_v7 = vadd.f32 %v4226_v36, %v4178_v37  ;;  %v4526_v41 = vmul.f32 %v4522_v20, %v4522_v20  ;;  %v4525_v54 = vmul.f32 %v4521_v34, %v4521_v34 }
0x31d5   :  { %v4534_v3 = vsel %vm95_vm1, %v4526_v41, 0.0  ;;  %v4531_v48 = vsel %vm95_vm1, %v4525_v54, 0.0  ;;  %v4523_v6 = vadd.f32 1e-16, %v9512_v7 }
0x31d6   :  { %4535 = vadd.xlane.f32.xlu0 %v4534_v3  ;;  %4532 = vadd.xlane.f32.xlu1 %v4531_v48 }
0x31d7   :  { %v4527_v39 = vmul.f32 %v4523_v6, %v4523_v6 }
0x31d9   :  { %v4537_v27 = vsel %vm95_vm1, %v4527_v39, 0.0 }
0x31da   :  { %4538 = vadd.xlane.f32.xlu0 %v4537_v27 }
0x325f   :  { %v4530_v42 = vpop.xlane.xlu0 %4529 }
0x3260   :  { %v4540_v17 = vmax.f32 %v4530_v42, 1e-16 }
0x3262   :  { %7859 = vrsqrt.f32 %v4540_v17 }
0x3263   :  { %v4536_v0 = vpop.xlane.xlu0 %4535  ;;  %v4533_v9 = vpop.xlane.xlu1 %4532 }
0x3264   :  { %v4541_v2 = vmax.f32 %v4533_v9, 1e-16 }
0x3266   :  { %7861 = vrsqrt.f32 %v4541_v2 }
0x3267   :  { %v4539_v45 = vpop.xlane.xlu0 %4538 }
0x3268   :  { %v4543_v43 = vmax.f32 %v4539_v45, 1e-16 }
0x326c   :  { %v7860_v57 = vpop.eup %7859 }
0x326d   :  { %v4548_v37 = vmul.f32 %v7860_v57, %v4520_v31 }
0x3270   :  { %v7862_v19 = vpop.eup %7861 }
0x3271   :  { %v4549_v3 = vmul.f32 %v7862_v19, %v4521_v34 }
0x328e   :  { %v4478_v50 = vpop.f32.mrb[52].mxu1 }
0x328f   :  { %v9519_v25 = vadd.f32 %v9309_v5, %v4478_v50  ;;  %v7372_v16 = vpop.f32.mrb[53].mxu1  ;;  %v4542_v5 = vmax.f32 %v4536_v0, 1e-16 }
0x3290   :  { %v4481_v55 = vpop.f32.mrb[54].mxu1 }
0x3291   :  { %4484 = vst.msk [vmem:[#allocation2] sm:$0x3] %vm289_vm3, %v9519_v25  ;;  %v7373_v14 = vpop.f32.mrb[55].mxu1  ;;  %4486 = vrot.lane.b32.xlu0 %v9519_v25, %s8169_s3  ;;  %7863 = vrsqrt.f32 %v4542_v5 }
0x3292   :  { %7865 = vrsqrt.f32 %v4543_v43 }
0x329b   :  { %v7864_v39 = vpop.eup %7863 }
0x329c   :  { %v4550_v31 = vmul.f32 %v7864_v39, %v4522_v20  ;;  %v7866_v42 = vpop.eup %7865 }
0x329d   :  { %v4551_v34 = vmul.f32 %v7866_v42, %v4523_v6 }
0x3303   :  { %v4487_v47 = vpop.permute.xlu0 %4486 }
0x3304   :  { %4489 = vst.msk [vmem:[#allocation2 + $0x2] sm:$0x3] %vm289_vm3, %v4487_v47 }
0x330b   :  { %v9526_v46 = vld [vmem:[#allocation2] sm:$0xf] }
0x330c   :  { %v4552_v51 = vadd.f32 1e-16, %v9526_v46  ;;  %v4492_v57 = vand.u32 2147483647, %v9526_v46 }
0x330e   :  { %v4553_v40 = vmul.f32 %v4552_v51, %v4552_v51  ;;  %v4566_v18 = vrot.slane %v4552_v51, %v8428_v10 }
0x3310   :  { %v4554_v30 = vsel %vm362_vm4, %v4553_v40, 0.0  ;;  %v4574_v13 = vrot.slane %v4566_v18, %v8428_v10  ;;  %v4567_v56 = vcombine.high %v4566_v18, %v4566_v18 }
0x3311   :  { %4555 = vadd.xlane.f32.xlu1 %v4554_v30 }
0x3312   :  { %v4587_v23 = vrot.slane %v4574_v13, %v8433_v15  ;;  %v4582_v36 = vcombine.high %v4574_v13, %v4574_v13  ;;  %v4581_v41 = vrot.slane %v4567_v56, %v8428_v10  ;;  %v4493_v56 = vsub.f32 0.0, %v4492_v57 }
0x3314   :  { %v4604_v54 = vmul.f32 %v4587_v23, %v4548_v37  ;;  %v4595_v48 = vrot.slane %v4582_v36, %v8433_v15  ;;  %v4605_v16 = vmul.f32 %v4587_v23, %v4549_v3  ;;  %v4591_v55 = vrot.slane %v4581_v41, %v8433_v15 }
0x3315   :  { %v4583_v2 = vcombine.high %v4581_v41, %v4581_v41 }
0x3316   :  { %v4612_v27 = vsel %vm95_vm1, %v4604_v54, 0.0  ;;  %v4609_v50 = vmul.f32 %v4595_v48, %v4549_v3  ;;  %v4615_v0 = vsel %vm95_vm1, %v4605_v16, 0.0  ;;  %v4606_v45 = vmul.f32 %v4591_v55, %v4550_v31 }
0x3317   :  { %4613 = vadd.xlane.f32.xlu1 %v4612_v27  ;;  %v4607_v17 = vmul.f32 %v4591_v55, %v4551_v34  ;;  %v4608_v5 = vmul.f32 %v4595_v48, %v4548_v37  ;;  %v4599_v43 = vrot.slane %v4583_v2, %v8433_v15  ;;  %v4494_v37 = vmul.f32 1.442695, %v4493_v56 }
0x3318   :  { %v4627_v14 = vsel %vm95_vm1, %v4609_v50, 0.0  ;;  %v4618_v9 = vsel %vm95_vm1, %v4606_v45, 0.0 }
0x3319   :  { %4628 = vadd.xlane.f32.xlu0 %v4627_v14  ;;  %v4621_v47 = vsel %vm95_vm1, %v4607_v17, 0.0  ;;  %v4624_v20 = vsel %vm95_vm1, %v4608_v5, 0.0  ;;  %v4610_v51 = vmul.f32 %v4599_v43, %v4550_v31  ;;  %v4611_v18 = vmul.f32 %v4599_v43, %v4551_v34 }
0x331b   :  { %4616 = vadd.xlane.f32.xlu1 %v4615_v0  ;;  %v4630_v40 = vsel %vm95_vm1, %v4610_v51, 0.0  ;;  %v4633_v6 = vsel %vm95_vm1, %v4611_v18, 0.0  ;;  %v4491_v51 = vmax.f32 %v9526_v46, 0.0 }
0x331f   :  { %4619 = vadd.xlane.f32.xlu1 %v4618_v9 }
0x3323   :  { %4622 = vadd.xlane.f32.xlu1 %v4621_v47 }
0x3327   :  { %4625 = vadd.xlane.f32.xlu1 %v4624_v20 }
0x332b   :  { %4631 = vadd.xlane.f32.xlu1 %v4630_v40 }
0x332f   :  { %4634 = vadd.xlane.f32.xlu1 %v4633_v6 }
0x339e   :  { %v4556_v30 = vpop.xlane.xlu1 %4555 }
0x339f   :  { %v4557_v13 = vmax.f32 %v4556_v30, 1e-16 }
0x33a1   :  { %7867 = vrsqrt.f32 %v4557_v13 }
0x33a2   :  { %7869 = vpow2.f32 %v4494_v37 }
0x33a4   :  { %v4614_v19 = vpop.xlane.xlu1 %4613 }
0x33a6   :  { %v4629_v45 = vpop.xlane.xlu0 %4628 }
0x33a8   :  { %v4617_v23 = vpop.xlane.xlu1 %4616 }
0x33ab   :  { %v7868_v36 = vpop.eup %7867 }
0x33ac   :  { %v4640_v41 = vrot.slane %v7868_v36, %v8433_v15  ;;  %v4644_v54 = vrot.slane %v7868_v36, %v8457_v11  ;;  %v4620_v3 = vpop.xlane.xlu1 %4619  ;;  %v7870_v16 = vpop.eup %7869  ;;  %v4648_v42 = vrot.slane %v7868_v36, %v8462_v22  ;;  %v4652_v17 = vrot.slane %v7868_v36, %v8466_v35 }
0x33ad   :  { %v4496_v14 = vadd.f32 1.0, %v7870_v16 }
0x33ae   :  { %v4657_v48 = vmul.f32 %v4640_v41, %v4614_v19  ;;  %v4659_v39 = vmul.f32 %v4644_v54, %v4620_v3  ;;  %v4658_v50 = vmul.f32 %v4640_v41, %v4617_v23  ;;  %v4662_v9 = vmul.f32 %v4648_v42, %v4629_v45 }
0x33af   :  { %7871 = vlog2.f32 %v4496_v14 }
0x33b0   :  { %4679 = vperm.xlu1 %7617, %v4657_v48   ;;  %4685 = vperm.xlu0 %7618, %v4659_v39   ;;  %v4623_v27 = vpop.xlane.xlu1 %4622 }
0x33b1   :  { %v4660_v55 = vmul.f32 %v4644_v54, %v4623_v27 }
0x33b4   :  { %4682 = vperm.xlu1 %7617, %v4658_v50   ;;  %7621 = vset.pattern.permute.xlu0 %v8173_v53  ;;  %v4626_v31 = vpop.xlane.xlu1 %4625 }
0x33b5   :  { %v4661_v0 = vmul.f32 %v4648_v42, %v4626_v31 }
0x33b8   :  { %4688 = vperm.xlu1 %7617, %v4660_v55   ;;  %v4632_v34 = vpop.xlane.xlu1 %4631 }
0x33b9   :  { %v4663_v2 = vmul.f32 %v4652_v17, %v4632_v34  ;;  %v7872_v5 = vpop.eup %7871 }
0x33ba   :  { %v4498_v20 = vmul.f32 0.6931472, %v7872_v5 }
0x33bc   :  { %4691 = vperm.xlu1 %7617, %v4661_v0   ;;  %v4635_v47 = vpop.xlane.xlu1 %4634  ;;  %v9552_v40 = vadd.f32 %v4498_v20, %v4491_v51 }
0x33bd   :  { %v4664_v43 = vmul.f32 %v4652_v17, %v4635_v47 }
0x33c0   :  { %4694 = vperm.xlu1 %7617, %v4662_v9   ;;  %v4501_v9 = vmul.f32 0.5, %v9526_v46 }
0x33c2   :  { %7873 = vtanh.f32 %v4501_v9 }
0x33c4   :  { %4697 = vperm.xlu1 %7617, %v4663_v2   ;;  %v4505_v2 = vsel %vm311_vm9, %v9526_v46, -inf }
0x33c8   :  { %4700 = vperm.xlu1 %7617, %v4664_v43  }
0x33cc   :  { %7619 = vset.pattern.permute.xlu1 %v8172_v52  ;;  %v7874_v47 = vpop.eup %7873 }
0x33cd   :  { %4667 = vperm.xlu1 %7619, %v9552_v40   ;;  %v4503_v5 = vadd.f32 1.0, %v7874_v47 }
0x33cf   :  { %v4504_v43 = vmul.f32 0.5, %v4503_v5 }
0x33d1   :  { %7620 = vset.pattern.permute.xlu1 %v8173_v53 }
0x342f   :  { %v4680_v18 = vpop.permute.xlu1 %4679  ;;  %v4686_v56 = vpop.permute.xlu0 %4685 }
0x3430   :  { %v4714_v36 = vrot.slane %v4686_v56, %v8478_v60  ;;  %v4705_v3 = vrot.slane %v4680_v18, %v8478_v60 }
0x3433   :  { %v4683_v6 = vpop.permute.xlu1 %4682 }
0x3434   :  { %v4709_v41 = vrot.slane %v4683_v6, %v8481_v61 }
0x3436   :  { %v4710_v50 = vsel %vm522_vm5, %v4709_v41, %v4705_v3 }
0x3437   :  { %v4689_v57 = vpop.permute.xlu1 %4688 }
0x3438   :  { %v4718_v19 = vrot.slane %v4689_v57, %v8481_v61 }
0x343a   :  { %v4719_v48 = vsel %vm522_vm5, %v4718_v19, %v4714_v36 }
0x343b   :  { %v4692_v30 = vpop.permute.xlu1 %4691  ;;  %v4738_v14 = vsel %vm551_vm6, %v4719_v48, %v4710_v50 }
0x343c   :  { %v4723_v54 = vrot.slane %v4692_v30, %v8478_v60 }
0x343f   :  { %v4695_v13 = vpop.permute.xlu1 %4694 }
0x3440   :  { %v4727_v37 = vrot.slane %v4695_v13, %v8481_v61 }
0x3442   :  { %v4728_v39 = vsel %vm522_vm5, %v4727_v37, %v4723_v54  ;;  %v4760_v37 = vsub.f32 1.0, %v4504_v43 }
0x3443   :  { %v4698_v23 = vpop.permute.xlu1 %4697  ;;  %v4739_v42 = vsel %vm553_vm7, %v4728_v39, %v4738_v14  ;;  %v4500_v14 = vadd.f32 1.0, %v9552_v40 }
0x3444   :  { %v4732_v16 = vrot.slane %v4698_v23, %v8478_v60 }
0x3447   :  { %v4701_v27 = vpop.permute.xlu1 %4700 }
0x3448   :  { %v4736_v55 = vrot.slane %v4701_v27, %v8481_v61 }
0x344a   :  { %v4737_v31 = vsel %vm522_vm5, %v4736_v55, %v4732_v16 }
0x344b   :  { %v4740_v0 = vsel %vm555_vm8, %v4737_v31, %v4739_v42 }
0x344c   :  { %v4668_v45 = vpop.permute.xlu1 %4667 }
0x344d   :  { %v4742_v34 = vmul.f32 %v4740_v0, %v4668_v45 }
0x344f   :  { %v4743_v17 = vsel %vm362_vm4, %v4742_v34, -inf }
0x3450   :  { %4744 = vmax.xlane.f32.xlu1 %v4743_v17 }
0x3454   :  { %4506 = vmax.xlane.f32.xlu1 %v4505_v2 }
0x3465   :  { %4756 = vperm.xlu1 %7620, %v4504_v43  }
0x3469   :  { %7623 = vset.pattern.permute.xlu1 %v8176_v8 }
0x34dd   :  { %v4745_v20 = vpop.xlane.xlu1 %4744 }
0x34de   :  { %v4746_v51 = vsub.f32 %v4742_v34, %v4745_v20 }
0x34e0   :  { %v4747_v18 = vmul.f32 1.442695, %v4746_v51 }
0x34e1   :  { %v4507_v6 = vpop.xlane.xlu1 %4506 }
0x34e2   :  { %7875 = vpow2.f32 %v4747_v18  ;;  %v4508_v57 = vsub.f32 %v9526_v46, %v4507_v6 }
0x34e4   :  { %v4509_v30 = vmul.f32 1.442695, %v4508_v57 }
0x34e5   :  { %v4757_v23 = vpop.permute.xlu1 %4756 }
0x34e6   :  { %7877 = vpow2.f32 %v4509_v30 }
0x34ec   :  { %v7876_v13 = vpop.eup %7875 }
0x34ed   :  { %v4749_v56 = vsel %vm362_vm4, %v7876_v13, 0.0 }
0x34ee   :  { %4750 = vadd.xlane.f32.xlu0 %v4749_v56 }
0x34f0   :  { %v7878_v19 = vpop.eup %7877 }
0x34f1   :  { %4512 = vrot.lane.b32.xlu1 %v7878_v19, %s8174_s26 }
0x3504   :  { %4763 = vperm.xlu0 %7621, %v4760_v37  }
0x3508   :  { %7622 = vset.pattern.permute.xlu0 %v8177_v12 }
0x3563   :  { %v4513_v36 = vpop.permute.xlu1 %4512 }
0x3564   :  { %v4515_v41 = vsel %vm322_vm10, %v4513_v36, 0.0 }
0x3565   :  { %4516 = vadd.xlane.f32.xlu1 %v4515_v41 }
0x357b   :  { %v4751_v54 = vpop.xlane.xlu0 %4750 }
0x357c   :  { %7879 = vrcp.f32 %v4751_v54 }
0x3583   :  { %v4764_v3 = vpop.permute.xlu0 %4763 }
0x3584   :  { %v4766_v27 = vmul.f32 %v4764_v3, %v9410_v21  ;;  %v9595_v21 = vld [vmem:[%s10187_s8] sm:$0xff]  }
0x3586   :  { %v7880_v46 = vpop.eup %7879 }
0x3587   :  { %v4753_v48 = vmul.f32 %v7880_v46, %v7876_v13 }
0x3589   :  { %v4759_v39 = vmul.f32 %v4757_v23, %v4753_v48 }
0x358b   :  { %v4767_v50 = vadd.f32 %v4766_v27, %v4759_v39 }
0x358d   :  { %7379 = vmatmul.mubr.msk.f32.vlgmr.msra.gmra.mrb[46].mxu1 %vm95_vm1, %v4767_v50 }
0x358e   :  { %7388 = vmatpush3.bf16.msra.mxu1 %v9380_v63  ;;  %7391 = vmatprep.mubr.msk.bf16.mxu1 %vm8166_vm0, %v8165_v1  ;;  %v9604_v63 = vld [vmem:[%s10187_s8 + $0x8] sm:$0xff]  }
0x358f   :  { %7389 = vmatprep.subr.bf16.mxu1 %v8165_v1 }
0x3592   :  { %7390 = vmatpush3.bf16.msra.mxu1 %v9389_v49 }
0x3593   :  { %7409 = vmatprep.subr.bf16.mxu1 %v8165_v1 }
0x3595   :  { %7392 = vmatmul.mubr.msk.bf16.vlgmr.msra.gmra.mrb[56].mxu1 %vm153_vm2, %v9490_v4 }
0x3596   :  { %7410 = vmatpush3.bf16.msra.mxu1 %v9595_v21  ;;  %7413 = vmatprep.mubr.msk.bf16.mxu1 %vm8166_vm0, %v8165_v1 }
0x3597   :  { %7411 = vmatprep.subr.bf16.mxu1 %v8165_v1 }
0x359a   :  { %7412 = vmatpush3.bf16.msra.mxu1 %v9604_v63 }
0x359b   :  { %7499 = vmatprep.subr.bf16.mxu1 %v8175_v62 }
0x35f2   :  { %v4517_v49 = vpop.xlane.xlu1 %4516 }
0x35f3   :  { %7881 = vrcp.f32 %v4517_v49 }
0x35fd   :  { %v7882_v16 = vpop.eup %7881 }
0x35fe   :  { %v4519_v55 = vmul.f32 %v7882_v16, %v7878_v19 }
0x3600   :  { %4843 = vperm.xlu1 %7623, %v4519_v55   ;;  %4854 = vperm.xlu0 %7622, %v4519_v55  }
0x3604   :  { %7625 = vset.pattern.permute.xlu1 %v8179_v26  ;;  %7624 = vset.pattern.permute.xlu0 %v8178_v32 }
0x3605   :  { %4868 = vperm.xlu1 %7625, %v4500_v14   ;;  %4848 = vperm.xlu0 %7624, %v4519_v55  }
0x3609   :  { %7627 = vset.pattern.permute.xlu1 %v8171_v59  ;;  %7626 = vset.pattern.permute.xlu0 %v8171_v59 }
0x3660   :  { %v4837_v31 = vpop.f32.mrb[46].mxu1 }
0x3661   :  { %v7380_v42 = vpop.f32.mrb[47].mxu1 }
0x3668   :  { %v9613_v0 = vpop.f32.mrb[56].mxu1 }
0x3669   :  { %v7393_v45 = vpop.f32.mrb[57].mxu1 }
0x366a   :  { %v5155_v34 = vpop.f32.mrb[58].mxu1 }
0x366b   :  { %v7394_v9 = vpop.f32.mrb[59].mxu1 }
0x367f   :  { %v4855_v17 = vpop.permute.xlu0 %4854  ;;  %v4844_v47 = vpop.permute.xlu1 %4843 }
0x3680   :  { %v4857_v2 = vmul.f32 %v4855_v17, %v4837_v31  ;;  %v4846_v43 = vmul.f32 %v4844_v47, %v4837_v31 }
0x3682   :  { %4859 = vrot.lane.b32.xlu0 %v4857_v2, %s8180_s25 }
0x3684   :  { %v4849_v40 = vpop.permute.xlu0 %4848  ;;  %v4869_v13 = vpop.permute.xlu1 %4868 }
0x3685   :  { %v4851_v5 = vmul.f32 %v4849_v40, %v4767_v50 }
0x3687   :  { %v4852_v20 = vadd.f32 %v4851_v5, %v4846_v43 }
0x36f4   :  { %v4860_v51 = vpop.permute.xlu0 %4859 }
0x36f5   :  { %v4862_v18 = vadd.f32 %v4860_v51, %v4852_v20 }
0x36f7   :  { %v4863_v6 = vmax.f32 %v4862_v18, 1e-30 }
0x36f9   :  { %7883 = vlog2.f32 %v4863_v6 }
0x3703   :  { %v7884_v57 = vpop.eup %7883 }
0x3704   :  { %v4865_v30 = vmul.f32 0.6931472, %v7884_v57 }
0x3706   :  { %v4871_v56 = vmul.f32 %v4869_v13, %v4865_v30 }
0x3708   :  { %v4872_v19 = vmul.f32 1.442695, %v4871_v56 }
0x370a   :  { %7885 = vpow2.f32 %v4872_v19 }
0x3714   :  { %v7886_v37 = vpop.eup %7885 }
0x3715   :  { %v4874_v23 = vsel %vm362_vm4, %v7886_v37, 0.0 }
0x3716   :  { %4875 = vadd.xlane.f32.xlu0 %v4874_v23 }
0x37a3   :  { %v4876_v36 = vpop.xlane.xlu0 %4875 }
0x37a4   :  { %v4877_v41 = vadd.f32 1e-16, %v4876_v36 }
0x37a6   :  { %7887 = vrcp.f32 %v4877_v41 }
0x37b0   :  { %v7888_v54 = vpop.eup %7887 }
0x37b1   :  { %v9617_v46 = vmul.f32 %v7888_v54, %v7886_v37 }
0x37b3   :  { %v4883_v3 = vrot.slane %v9617_v46, %v8433_v15  ;;  %v4894_v48 = vrot.slane %v9617_v46, %v8457_v11 }
0x37b5   :  { %4885 = vbcast.lane.b32.xlu1 %v4883_v3, 256 }
0x37b9   :  { %4889 = vbcast.lane.b32.xlu1 %v4883_v3, 264  ;;  %v9636_v3 = vld [vmem:[%s10185_s6] sm:$0xff]  }
0x37bd   :  { %4896 = vbcast.lane.b32.xlu1 %v4894_v48, 256 }
0x37c1   :  { %4900 = vbcast.lane.b32.xlu1 %v4894_v48, 264  ;;  %v9646_v48 = vld [vmem:[%s10186_s7] sm:$0xff]  }
0x3827   :  { %v4886_v39 = vpop.permute.xlu1 %4885 }
0x3828   :  { %v4924_v27 = vmul.f32 %v4886_v39, %v9499_v58  ;;  %v9655_v39 = vld [vmem:[%s10186_s7 + $0x8] sm:$0xff]  }
0x382a   :  { %v4928_v16 = vsel %vm95_vm1, %v4924_v27, 0.0 }
0x382b   :  { %v4890_v50 = vpop.permute.xlu1 %4889 }
0x382c   :  { %v4925_v49 = vmul.f32 %v4890_v50, %v9506_v28 }
0x382e   :  { %v4929_v55 = vsel %vm95_vm1, %v4925_v49, 0.0 }
0x382f   :  { %v4930_v14 = vadd.f32 %v4929_v55, %v4928_v16  ;;  %v4897_v31 = vpop.permute.xlu1 %4896 }
0x3830   :  { %v4926_v45 = vmul.f32 %v4897_v31, %v9504_v29 }
0x3831   :  { %v4931_v42 = vrot.slane %v4930_v14, 4 }
0x3832   :  { %v4937_v40 = vsel %vm95_vm1, %v4926_v45, 0.0 }
0x3833   :  { %v4932_v34 = vadd.f32 %v4931_v42, %v4930_v14  ;;  %v4901_v9 = vpop.permute.xlu1 %4900 }
0x3834   :  { %v4927_v17 = vmul.f32 %v4901_v9, %v9512_v7 }
0x3835   :  { %v4933_v2 = vrot.slane %v4932_v34, 2 }
0x3836   :  { %v4938_v47 = vsel %vm95_vm1, %v4927_v17, 0.0 }
0x3837   :  { %v4934_v5 = vadd.f32 %v4933_v2, %v4932_v34  ;;  %v4939_v43 = vadd.f32 %v4938_v47, %v4937_v40 }
0x3839   :  { %v4940_v20 = vrot.slane %v4939_v43, 4  ;;  %v4935_v51 = vrot.slane %v4934_v5, 1 }
0x383b   :  { %v4941_v18 = vadd.f32 %v4940_v20, %v4939_v43  ;;  %v4936_v57 = vadd.f32 %v4935_v51, %v4934_v5 }
0x383d   :  { %v4942_v6 = vrot.slane %v4941_v18, 2  ;;  %v5067_v56 = vpack.c.bf16 %v4936_v57, %v4936_v57 }
0x383f   :  { %v4943_v30 = vadd.f32 %v4942_v6, %v4941_v18  ;;  %v5071_v23 = vunpack.c.l.b16 %v5067_v56  ;;  %v4916_v56 = vrot.slane %v9617_v46, %v8466_v35 }
0x3841   :  { %v4944_v13 = vrot.slane %v4943_v30, 1 }
0x3843   :  { %v4945_v19 = vadd.f32 %v4944_v13, %v4943_v30  ;;  %v4905_v13 = vrot.slane %v9617_v46, %v8462_v22 }
0x3845   :  { %v5068_v37 = vpack.c.bf16 %v4945_v19, %v4945_v19 }
0x3847   :  { %v5072_v36 = vunpack.c.l.b16 %v5068_v37 }
0x3849   :  { %v5073_v41 = vsel %vm551_vm6, %v5072_v36, %v5071_v23 }
0x384a   :  { %v5074_v54 = vpack.c.b16 %v5073_v41, %v5073_v41 }
0x384c   :  { %7384 = vmatmul.mubr.msk.bf16.vlgmr.msra.gmra.mrb[44].mxu0 %vm95_vm1, %v5074_v54 }
0x384d   :  { %7396 = vmatpush3.bf16.msra.mxu0 %v9636_v3  ;;  %7397 = vmatprep.mubr.msk.bf16.mxu0 %vm8166_vm0, %v8165_v1 }
0x384e   :  { %7401 = vmatprep.subr.bf16.mxu0 %v8165_v1 }
0x3854   :  { %7398 = vmatmul.mubr.msk.bf16.vlgmr.msra.gmra.mrb[48].mxu0 %vm95_vm1, %v5074_v54 }
0x3855   :  { %7402 = vmatpush3.bf16.msra.mxu0 %v9646_v48  ;;  %7405 = vmatprep.mubr.msk.bf16.mxu0 %vm8166_vm0, %v8165_v1 }
0x3856   :  { %7403 = vmatprep.subr.bf16.mxu0 %v8165_v1 }
0x3859   :  { %7404 = vmatpush3.bf16.msra.mxu0 %v9655_v39 }
0x385a   :  { %7424 = vmatprep.subr.bf16.mxu0 %v8165_v1 }
0x3860   :  { %7406 = vmatmul.mubr.msk.bf16.vlgmr.msra.gmra.mrb[48].mxu0 %vm153_vm2, %v9490_v4 }
0x3861   :  { %7425 = vmatpush3.bf16.msra.mxu0 %v9442_v44  ;;  %7426 = vmatprep.mubr.msk.bf16.mxu0 %vm8166_vm0, %v8165_v1  ;;  %v5164_v44 = vld [vmem:[%s10208_s21 + $0xc] sm:$0x3] }
0x3862   :  { %7438 = vmatprep.subr.bf16.mxu0 %v8165_v1 }
0x391f   :  { %v5112_v27 = vpop.f32.mrb[44].mxu0 }
0x3920   :  { %v5153_v50 = vadd.f32 %v9613_v0, %v5112_v27  ;;  %v7385_v49 = vpop.f32.mrb[45].mxu0 }
0x3921   :  { %v5115_v16 = vpop.f32.mrb[46].mxu0 }
0x3922   :  { %v5158_v55 = vadd.f32 %v9452_v38, %v5153_v50  ;;  %v7386_v14 = vpop.f32.mrb[47].mxu0 }
0x3924   :  { %v5159_v31 = vmul.f32 0.5, %v5158_v55 }
0x3926   :  { %7889 = vtanh.f32 %v5159_v31 }
0x3930   :  { %v7890_v42 = vpop.eup %7889 }
0x3931   :  { %v5161_v45 = vadd.f32 1.0, %v7890_v42 }
0x3933   :  { %v5162_v4 = vmul.f32 0.5, %v5161_v45  ;;  %v5240_v34 = vpop.f32.mrb[48].mxu0 }
0x3934   :  { %v7511_v9 = vadd.f32 %v5240_v34, %v5164_v44  ;;  %v7407_v17 = vpop.f32.mrb[49].mxu0  ;;  %v5017_v44 = vrot.slane %v9519_v25, %v8428_v10 }
0x3935   :  { %5163 = vst [vmem:[#allocation3 + $0xa] sm:$0x3] %v5162_v4  ;;  %v5243_v2 = vpop.f32.mrb[50].mxu0 }
0x3936   :  { %7891 = vtanh.f32 %v7511_v9  ;;  %v7408_v0 = vpop.f32.mrb[51].mxu0  ;;  %v5247_v38 = vmul.f32 0.5, %v7511_v9  ;;  %v5025_v2 = vrot.slane %v5017_v44, %v8428_v10 }
0x3937   :  { %v5018_v0 = vcombine.high %v5017_v44, %v5017_v44 }
0x3938   :  { %7893 = vtanh.f32 %v5247_v38 }
0x3940   :  { %v7892_v40 = vpop.eup %7891 }
0x3941   :  { %5254 = vrot.lane.b32.xlu1 %v7892_v40, %s8167_s1 }
0x3942   :  { %v7894_v47 = vpop.eup %7893 }
0x3943   :  { %v5249_v5 = vadd.f32 1.0, %v7894_v47 }
0x3945   :  { %v5250_v43 = vmul.f32 0.5, %v5249_v5  ;;  %v5036_v5 = vrot.slane %v5025_v2, %v8433_v15 }
0x3947   :  { %v5252_v18 = vmul.f32 %v5250_v43, %v9461_v24  ;;  %v4946_v24 = vmul.f32 0.5, %v9519_v25 }
0x39b3   :  { %v5255_v20 = vpop.permute.xlu1 %5254 }
0x39b4   :  { %v5257_v51 = vmul.f32 %v5255_v20, %v5250_v43 }
0x39b6   :  { %5259 = vrot.lane.b32.xlu1 %v5257_v51, %s8168_s2 }
0x3a28   :  { %v5260_v6 = vpop.permute.xlu1 %5259 }
0x3a29   :  { %v9673_v57 = vadd.f32 %v5260_v6, %v5252_v18 }
0x3a2b   :  { %7895 = vtanh.f32 %v9673_v57 }
0x3a2c   :  { %7897 = vtanh.f32 %v4946_v24 }
0x3a35   :  { %v7896_v30 = vpop.eup %7895 }
0x3a36   :  { %5265 = vrot.lane.b32.xlu1 %v7896_v30, %s8167_s1  ;;  %v7898_v19 = vpop.eup %7897 }
0x3a37   :  { %v4948_v37 = vadd.f32 1.0, %v7898_v19 }
0x3a39   :  { %v4949_v23 = vmul.f32 0.5, %v4948_v37 }
0x3a3a   :  { %4907 = vbcast.lane.b32.xlu1 %v4905_v13, 256 }
0x3a3b   :  { %v4957_v36 = vrot.slane %v4949_v23, %v8428_v10 }
0x3a3d   :  { %v4965_v41 = vrot.slane %v4957_v36, %v8428_v10  ;;  %v4958_v16 = vcombine.high %v4957_v36, %v4957_v36 }
0x3a3e   :  { %4911 = vbcast.lane.b32.xlu1 %v4905_v13, 264 }
0x3a3f   :  { %v4976_v49 = vrot.slane %v4965_v41, %v8433_v15  ;;  %v4972_v42 = vrot.slane %v4958_v16, %v8428_v10 }
0x3a41   :  { %v4980_v9 = vrot.slane %v4972_v42, %v8433_v15 }
0x3a42   :  { %4918 = vbcast.lane.b32.xlu1 %v4916_v56, 256 }
0x3a46   :  { %4922 = vbcast.lane.b32.xlu1 %v4916_v56, 264 }
0x3aa8   :  { %v5266_v54 = vpop.permute.xlu1 %5265 }
0x3aa9   :  { %v5268_v27 = vmul.f32 %v5266_v54, %v5250_v43  ;;  %v5032_v43 = vrot.slane %v5018_v0, %v8428_v10 }
0x3aab   :  { %v5269_v50 = vpack.c.bf16 %v5268_v27, %v5268_v27  ;;  %v5040_v18 = vrot.slane %v5032_v43, %v8433_v15 }
0x3aac   :  { %v4908_v55 = vpop.permute.xlu1 %4907 }
0x3aad   :  { %v4983_v14 = vmul.f32 %v4976_v49, %v4908_v55  ;;  %5271 = vrot.lane.b32.xlu0 %v5269_v50, %s8168_s2  ;;  %v5043_v20 = vmul.f32 %v5036_v5, %v4908_v55 }
0x3aaf   :  { %v4987_v31 = vsub.f32 1.0, %v4983_v14 }
0x3ab0   :  { %v4912_v45 = vpop.permute.xlu1 %4911 }
0x3ab1   :  { %v4984_v4 = vmul.f32 %v4976_v49, %v4912_v45  ;;  %4995 = vrot.lane.b32.xlu1 %v4987_v31, %s8181_s0  ;;  %v5044_v6 = vmul.f32 %v5036_v5, %v4912_v45 }
0x3ab3   :  { %v4988_v34 = vsub.f32 1.0, %v4984_v4 }
0x3ab4   :  { %v4919_v17 = vpop.permute.xlu1 %4918 }
0x3ab5   :  { %v4985_v40 = vmul.f32 %v4980_v9, %v4919_v17  ;;  %4997 = vrot.lane.b32.xlu1 %v4988_v34, %s8181_s0  ;;  %v5045_v30 = vmul.f32 %v5040_v18, %v4919_v17 }
0x3ab7   :  { %v4989_v38 = vsub.f32 1.0, %v4985_v40 }
0x3ab8   :  { %v4923_v47 = vpop.permute.xlu1 %4922 }
0x3ab9   :  { %v4986_v25 = vmul.f32 %v4980_v9, %v4923_v47  ;;  %4999 = vrot.lane.b32.xlu0 %v4989_v38, %s8181_s0  ;;  %v5046_v13 = vmul.f32 %v5040_v18, %v4923_v47  ;;  %v9733_v47 = vld [vmem:[%s10188_s9] ss:$0 sm:$0xff] }
0x3abb   :  { %v4990_v51 = vsub.f32 1.0, %v4986_v25 }
0x3abd   :  { %5051 = vrot.lane.b32.xlu0 %v5043_v20, %s8182_s22  ;;  %5001 = vrot.lane.b32.xlu1 %v4990_v51, %s8181_s0 }
0x3ac1   :  { %5055 = vrot.lane.b32.xlu0 %v5045_v30, %s8182_s22  ;;  %5053 = vrot.lane.b32.xlu1 %v5044_v6, %s8182_s22 }
0x3ac5   :  { %5057 = vrot.lane.b32.xlu1 %v5046_v13, %s8182_s22 }
0x3b1f   :  { %v9702_v56 = vpop.permute.xlu0 %5271 }
0x3b20   :  { %7414 = vmatmul.mubr.msk.bf16.vlgmr.msra.gmra.mrb[60].mxu1 %vm153_vm2, %v9702_v56 }
0x3b21   :  { %7501 = vmatpush3.bf16.msra.mxu1 %v8511_v33  ;;  %7421 = vmatprep.mubr.msk.f32.mxu1 %vm8166_vm0, %v8165_v1 }
0x3b22   :  { %7430 = vmatprep.subr.bf16.mxu1 %v8165_v1 }
0x3b23   :  { %v4996_v24 = vpop.permute.xlu1 %4995 }
0x3b24   :  { %v5007_v23 = vmul.f32 %v4996_v24, %v9499_v58 }
0x3b27   :  { %v4998_v19 = vpop.permute.xlu1 %4997 }
0x3b28   :  { %v5008_v27 = vmul.f32 %v4998_v19, %v9506_v28 }
0x3b2b   :  { %v5000_v37 = vpop.permute.xlu0 %4999 }
0x3b2c   :  { %v5009_v50 = vmul.f32 %v5000_v37, %v9504_v29 }
0x3b2f   :  { %v5052_v36 = vpop.permute.xlu0 %5051  ;;  %v5002_v41 = vpop.permute.xlu1 %5001 }
0x3b30   :  { %v9711_v54 = vadd.f32 %v5052_v36, %v5007_v23  ;;  %v5010_v45 = vmul.f32 %v5002_v41, %v9512_v7 }
0x3b32   :  { %v5352_v49 = vadd.f32 1e-16, %v9711_v54 }
0x3b33   :  { %v5056_v16 = vpop.permute.xlu0 %5055  ;;  %v5054_v55 = vpop.permute.xlu1 %5053 }
0x3b34   :  { %v9716_v14 = vadd.f32 %v5056_v16, %v5009_v50  ;;  %v9718_v31 = vadd.f32 %v5054_v55, %v5008_v27  ;;  %v5356_v42 = vmul.f32 %v5352_v49, %v5352_v49 }
0x3b36   :  { %v5354_v58 = vadd.f32 1e-16, %v9716_v14  ;;  %v5360_v44 = vsel %vm95_vm1, %v5356_v42, 0.0  ;;  %v5353_v4 = vadd.f32 1e-16, %v9718_v31 }
0x3b37   :  { %5361 = vadd.xlane.f32.xlu0 %v5360_v44  ;;  %v5058_v28 = vpop.permute.xlu1 %5057 }
0x3b38   :  { %v9724_v29 = vadd.f32 %v5058_v28, %v5010_v45  ;;  %v5358_v34 = vmul.f32 %v5354_v58, %v5354_v58  ;;  %v5357_v9 = vmul.f32 %v5353_v4, %v5353_v4 }
0x3b3a   :  { %v5366_v17 = vsel %vm95_vm1, %v5358_v34, 0.0  ;;  %v5363_v2 = vsel %vm95_vm1, %v5357_v9, 0.0  ;;  %v5355_v0 = vadd.f32 1e-16, %v9724_v29 }
0x3b3b   :  { %5367 = vadd.xlane.f32.xlu0 %v5366_v17  ;;  %5364 = vadd.xlane.f32.xlu1 %v5363_v2 }
0x3b3c   :  { %v5359_v7 = vmul.f32 %v5355_v0, %v5355_v0 }
0x3b3e   :  { %v5369_v40 = vsel %vm95_vm1, %v5359_v7, 0.0 }
0x3b3f   :  { %5370 = vadd.xlane.f32.xlu0 %v5369_v40 }
0x3bc4   :  { %v5362_v51 = vpop.xlane.xlu0 %5361 }
0x3bc5   :  { %v5372_v6 = vmax.f32 %v5362_v51, 1e-16 }
0x3bc7   :  { %7899 = vrsqrt.f32 %v5372_v6 }
0x3bc8   :  { %v5365_v18 = vpop.xlane.xlu1 %5364  ;;  %v5368_v30 = vpop.xlane.xlu0 %5367 }
0x3bc9   :  { %v5373_v13 = vmax.f32 %v5365_v18, 1e-16  ;;  %v5374_v19 = vmax.f32 %v5368_v30, 1e-16 }
0x3bcb   :  { %7901 = vrsqrt.f32 %v5373_v13 }
0x3bcc   :  { %v5371_v37 = vpop.xlane.xlu0 %5370  ;;  %7903 = vrsqrt.f32 %v5374_v19 }
0x3bcd   :  { %v5375_v23 = vmax.f32 %v5371_v37, 1e-16 }
0x3bcf   :  { %7905 = vrsqrt.f32 %v5375_v23 }
0x3bd1   :  { %v7900_v16 = vpop.eup %7899 }
0x3bd2   :  { %v5380_v28 = vmul.f32 %v7900_v16, %v5352_v49 }
0x3bd5   :  { %v7902_v44 = vpop.eup %7901 }
0x3bd6   :  { %v5381_v40 = vmul.f32 %v7902_v44, %v5353_v4 }
0x3bf3   :  { %v5310_v38 = vpop.f32.mrb[60].mxu1 }
0x3bf4   :  { %v9736_v5 = vadd.f32 %v9733_v47, %v5310_v38  ;;  %v7415_v43 = vpop.f32.mrb[61].mxu1  ;;  %v7904_v38 = vpop.eup %7903 }
0x3bf5   :  { %v5313_v25 = vpop.f32.mrb[62].mxu1  ;;  %v5382_v49 = vmul.f32 %v7904_v38, %v5354_v58  ;;  %v7906_v6 = vpop.eup %7905 }
0x3bf6   :  { %5316 = vst.msk [vmem:[#allocation2] sm:$0x3] %vm289_vm3, %v9736_v5  ;;  %v7416_v20 = vpop.f32.mrb[63].mxu1  ;;  %5318 = vrot.lane.b32.xlu1 %v9736_v5, %s8169_s3 }
0x3c68   :  { %v5319_v24 = vpop.permute.xlu1 %5318 }
0x3c69   :  { %5321 = vst.msk [vmem:[#allocation2 + $0x2] sm:$0x3] %vm289_vm3, %v5319_v24  ;;  %v5383_v24 = vmul.f32 %v7906_v6, %v5355_v0 }
0x3c70   :  { %v9743_v36 = vld [vmem:[#allocation2] sm:$0xf] }
0x3c71   :  { %v5384_v41 = vadd.f32 1e-16, %v9743_v36 }
0x3c73   :  { %v5385_v27 = vmul.f32 %v5384_v41, %v5384_v41  ;;  %v5398_v50 = vrot.slane %v5384_v41, %v8428_v10 }
0x3c75   :  { %v5386_v55 = vsel %vm362_vm4, %v5385_v27, 0.0  ;;  %v5406_v42 = vrot.slane %v5398_v50, %v8428_v10  ;;  %v5399_v45 = vcombine.high %v5398_v50, %v5398_v50 }
0x3c76   :  { %5387 = vadd.xlane.f32.xlu0 %v5386_v55 }
0x3c77   :  { %v5419_v34 = vrot.slane %v5406_v42, %v8433_v15  ;;  %v5414_v9 = vcombine.high %v5406_v42, %v5406_v42  ;;  %v5413_v17 = vrot.slane %v5399_v45, %v8428_v10  ;;  %v5324_v42 = vand.u32 2147483647, %v9743_v36 }
0x3c79   :  { %v5436_v2 = vmul.f32 %v5419_v34, %v5380_v28  ;;  %v5427_v7 = vrot.slane %v5414_v9, %v8433_v15  ;;  %v5437_v20 = vmul.f32 %v5419_v34, %v5381_v40  ;;  %v5423_v51 = vrot.slane %v5413_v17, %v8433_v15 }
0x3c7a   :  { %v5415_v37 = vcombine.high %v5413_v17, %v5413_v17  ;;  %v5325_v45 = vsub.f32 0.0, %v5324_v42 }
0x3c7b   :  { %v5444_v43 = vsel %vm95_vm1, %v5436_v2, 0.0  ;;  %v5440_v25 = vmul.f32 %v5427_v7, %v5380_v28  ;;  %v5447_v30 = vsel %vm95_vm1, %v5437_v20, 0.0  ;;  %v5438_v13 = vmul.f32 %v5423_v51, %v5382_v49 }
0x3c7c   :  { %5445 = vadd.xlane.f32.xlu0 %v5444_v43  ;;  %v5439_v19 = vmul.f32 %v5423_v51, %v5383_v24  ;;  %v5441_v41 = vmul.f32 %v5427_v7, %v5381_v40  ;;  %v5431_v27 = vrot.slane %v5415_v37, %v8433_v15  ;;  %v5326_v44 = vmul.f32 1.442695, %v5325_v45 }
0x3c7d   :  { %v5456_v18 = vsel %vm95_vm1, %v5440_v25, 0.0  ;;  %v5450_v4 = vsel %vm95_vm1, %v5438_v13, 0.0 }
0x3c7e   :  { %5457 = vadd.xlane.f32.xlu1 %v5456_v18  ;;  %v5453_v23 = vsel %vm95_vm1, %v5439_v19, 0.0  ;;  %v5459_v58 = vsel %vm95_vm1, %v5441_v41, 0.0  ;;  %v5442_v50 = vmul.f32 %v5431_v27, %v5382_v49  ;;  %v5443_v55 = vmul.f32 %v5431_v27, %v5383_v24 }
0x3c7f   :  { %7907 = vpow2.f32 %v5326_v44 }
0x3c80   :  { %5448 = vadd.xlane.f32.xlu0 %v5447_v30  ;;  %v5462_v16 = vsel %vm95_vm1, %v5442_v50, 0.0  ;;  %v5465_v0 = vsel %vm95_vm1, %v5443_v55, 0.0 }
0x3c84   :  { %5451 = vadd.xlane.f32.xlu0 %v5450_v4 }
0x3c88   :  { %5454 = vadd.xlane.f32.xlu0 %v5453_v23 }
0x3c89   :  { %v7908_v17 = vpop.eup %7907 }
0x3c8a   :  { %v5328_v7 = vadd.f32 1.0, %v7908_v17 }
0x3c8c   :  { %5460 = vadd.xlane.f32.xlu0 %v5459_v58 }
0x3c90   :  { %5463 = vadd.xlane.f32.xlu0 %v5462_v16  ;;  %v5323_v16 = vmax.f32 %v9743_v36, 0.0 }
0x3c94   :  { %5466 = vadd.xlane.f32.xlu0 %v5465_v0 }
0x3d03   :  { %v5388_v28 = vpop.xlane.xlu0 %5387 }
0x3d04   :  { %v5389_v34 = vmax.f32 %v5388_v28, 1e-16 }
0x3d06   :  { %7909 = vrsqrt.f32 %v5389_v34 }
0x3d07   :  { %7911 = vlog2.f32 %v5328_v7 }
0x3d09   :  { %v5446_v9 = vpop.xlane.xlu0 %5445 }
0x3d0b   :  { %v5458_v6 = vpop.xlane.xlu1 %5457 }
0x3d0d   :  { %v5449_v2 = vpop.xlane.xlu0 %5448 }
0x3d10   :  { %v7910_v40 = vpop.eup %7909 }
0x3d11   :  { %v5472_v38 = vrot.slane %v7910_v40, %v8433_v15  ;;  %v5452_v43 = vpop.xlane.xlu0 %5451  ;;  %v5480_v20 = vrot.slane %v7910_v40, %v8462_v22  ;;  %v5476_v18 = vrot.slane %v7910_v40, %v8457_v11  ;;  %v7912_v19 = vpop.eup %7911  ;;  %v5484_v37 = vrot.slane %v7910_v40, %v8466_v35 }
0x3d12   :  { %v5330_v58 = vmul.f32 0.6931472, %v7912_v19 }
0x3d13   :  { %v5489_v25 = vmul.f32 %v5472_v38, %v5446_v9  ;;  %v5490_v51 = vmul.f32 %v5472_v38, %v5449_v2  ;;  %v5493_v30 = vmul.f32 %v5480_v20, %v5458_v6  ;;  %v5491_v13 = vmul.f32 %v5476_v18, %v5452_v43 }
0x3d14   :  { %v9768_v0 = vadd.f32 %v5330_v58, %v5323_v16  ;;  %v5337_v58 = vsel %vm311_vm9, %v9743_v36, -inf }
0x3d15   :  { %5511 = vperm.xlu0 %7626, %v5489_v25   ;;  %5514 = vperm.xlu1 %7627, %v5490_v51   ;;  %v5455_v49 = vpop.xlane.xlu0 %5454 }
0x3d16   :  { %v5492_v4 = vmul.f32 %v5476_v18, %v5455_v49 }
0x3d19   :  { %5523 = vperm.xlu0 %7626, %v5493_v30   ;;  %5517 = vperm.xlu1 %7627, %v5491_v13   ;;  %v5461_v24 = vpop.xlane.xlu0 %5460 }
0x3d1a   :  { %v5494_v27 = vmul.f32 %v5480_v20, %v5461_v24  ;;  %v5333_v24 = vmul.f32 0.5, %v9743_v36 }
0x3d1c   :  { %7913 = vtanh.f32 %v5333_v24 }
0x3d1d   :  { %5520 = vperm.xlu1 %7627, %v5492_v4   ;;  %v5464_v23 = vpop.xlane.xlu0 %5463 }
0x3d1e   :  { %v5495_v41 = vmul.f32 %v5484_v37, %v5464_v23 }
0x3d20   :  { %5529 = vperm.xlu0 %7626, %v5495_v41  }
0x3d21   :  { %5526 = vperm.xlu1 %7627, %v5494_v27   ;;  %v5467_v50 = vpop.xlane.xlu0 %5466 }
0x3d22   :  { %v5496_v55 = vmul.f32 %v5484_v37, %v5467_v50 }
0x3d24   :  { %7628 = vset.pattern.permute.xlu0 %v8172_v52 }
0x3d25   :  { %5532 = vperm.xlu1 %7627, %v5496_v55   ;;  %5499 = vperm.xlu0 %7628, %v9768_v0  }
0x3d26   :  { %v7914_v50 = vpop.eup %7913 }
0x3d27   :  { %v5335_v16 = vadd.f32 1.0, %v7914_v50  ;;  %v5332_v50 = vadd.f32 1.0, %v9768_v0 }
0x3d29   :  { %7630 = vset.pattern.permute.xlu1 %v8173_v53  ;;  %7629 = vset.pattern.permute.xlu0 %v8173_v53  ;;  %v5336_v55 = vmul.f32 0.5, %v5335_v16 }
0x3d94   :  { %v5515_v42 = vpop.permute.xlu1 %5514  ;;  %v5512_v45 = vpop.permute.xlu0 %5511 }
0x3d95   :  { %v5541_v2 = vrot.slane %v5515_v42, %v8481_v61  ;;  %v5537_v7 = vrot.slane %v5512_v45, %v8478_v60  ;;  %v5592_v42 = vsub.f32 1.0, %v5336_v55 }
0x3d97   :  { %v5542_v49 = vsel %vm522_vm5, %v5541_v2, %v5537_v7 }
0x3d98   :  { %v5518_v44 = vpop.permute.xlu1 %5517  ;;  %v5524_v34 = vpop.permute.xlu0 %5523 }
0x3d99   :  { %v5546_v40 = vrot.slane %v5518_v44, %v8478_v60  ;;  %v5555_v43 = vrot.slane %v5524_v34, %v8478_v60 }
0x3d9c   :  { %v5521_v28 = vpop.permute.xlu1 %5520 }
0x3d9d   :  { %v5550_v9 = vrot.slane %v5521_v28, %v8481_v61 }
0x3d9f   :  { %v5530_v25 = vpop.permute.xlu0 %5529  ;;  %v5551_v20 = vsel %vm522_vm5, %v5550_v9, %v5546_v40 }
0x3da0   :  { %v5527_v17 = vpop.permute.xlu1 %5526  ;;  %v5564_v6 = vrot.slane %v5530_v25, %v8478_v60  ;;  %v5570_v13 = vsel %vm551_vm6, %v5551_v20, %v5542_v49 }
0x3da1   :  { %v5559_v38 = vrot.slane %v5527_v17, %v8481_v61 }
0x3da3   :  { %v5560_v18 = vsel %vm522_vm5, %v5559_v38, %v5555_v43 }
0x3da4   :  { %v5533_v51 = vpop.permute.xlu1 %5532  ;;  %v5571_v19 = vsel %vm553_vm7, %v5560_v18, %v5570_v13  ;;  %v5500_v23 = vpop.permute.xlu0 %5499  ;;  %v9804_v13 = vld [vmem:[%s10189_s10] sm:$0xff]  }
0x3da5   :  { %v5568_v30 = vrot.slane %v5533_v51, %v8481_v61 }
0x3da7   :  { %v5569_v4 = vsel %vm522_vm5, %v5568_v30, %v5564_v6 }
0x3da8   :  { %v5572_v37 = vsel %vm555_vm8, %v5569_v4, %v5571_v19 }
0x3da9   :  { %v5574_v41 = vmul.f32 %v5572_v37, %v5500_v23 }
0x3dab   :  { %v5575_v27 = vsel %vm362_vm4, %v5574_v41, -inf }
0x3dac   :  { %5576 = vmax.xlane.f32.xlu1 %v5575_v27 }
0x3db0   :  { %5338 = vmax.xlane.f32.xlu1 %v5337_v58 }
0x3dc1   :  { %5595 = vperm.xlu1 %7630, %v5592_v42  }
0x3dc5   :  { %7633 = vset.pattern.permute.xlu1 %v8178_v32 }
0x3e39   :  { %v5577_v45 = vpop.xlane.xlu1 %5576 }
0x3e3a   :  { %v5578_v44 = vsub.f32 %v5574_v41, %v5577_v45 }
0x3e3c   :  { %v5579_v28 = vmul.f32 1.442695, %v5578_v44 }
0x3e3d   :  { %v5339_v34 = vpop.xlane.xlu1 %5338 }
0x3e3e   :  { %7915 = vpow2.f32 %v5579_v28  ;;  %v5340_v9 = vsub.f32 %v9743_v36, %v5339_v34 }
0x3e40   :  { %v5341_v17 = vmul.f32 1.442695, %v5340_v9 }
0x3e41   :  { %v5596_v38 = vpop.permute.xlu1 %5595 }
0x3e42   :  { %7917 = vpow2.f32 %v5341_v17  ;;  %v5598_v49 = vmul.f32 %v5596_v38, %v9617_v46  ;;  %v9813_v46 = vld [vmem:[%s10189_s10 + $0x8] sm:$0xff]  }
0x3e48   :  { %v7916_v2 = vpop.eup %7915 }
0x3e49   :  { %v5581_v7 = vsel %vm362_vm4, %v7916_v2, 0.0 }
0x3e4a   :  { %5582 = vadd.xlane.f32.xlu0 %v5581_v7 }
0x3e4c   :  { %v7918_v40 = vpop.eup %7917 }
0x3e4d   :  { %5344 = vrot.lane.b32.xlu1 %v7918_v40, %s8174_s26 }
0x3e60   :  { %5588 = vperm.xlu0 %7629, %v5336_v55  }
0x3e64   :  { %7631 = vset.pattern.permute.xlu0 %v8177_v12 }
0x3ebf   :  { %v5345_v43 = vpop.permute.xlu1 %5344 }
0x3ec0   :  { %v5347_v25 = vsel %vm322_vm10, %v5345_v43, 0.0 }
0x3ec1   :  { %5348 = vadd.xlane.f32.xlu1 %v5347_v25 }
0x3ed7   :  { %v5583_v20 = vpop.xlane.xlu0 %5582 }
0x3ed8   :  { %7919 = vrcp.f32 %v5583_v20 }
0x3edf   :  { %v5589_v18 = vpop.permute.xlu0 %5588 }
0x3ee2   :  { %v7920_v36 = vpop.eup %7919 }
0x3ee3   :  { %v5585_v51 = vmul.f32 %v7920_v36, %v7916_v2 }
0x3ee5   :  { %v5591_v6 = vmul.f32 %v5589_v18, %v5585_v51 }
0x3ee7   :  { %v5599_v30 = vadd.f32 %v5598_v49, %v5591_v6 }
0x3ee9   :  { %7422 = vmatmul.mubr.msk.f32.vlgmr.msra.gmra.mrb[64].mxu1 %vm95_vm1, %v5599_v30 }
0x3eea   :  { %7431 = vmatpush3.bf16.msra.mxu1 %v9804_v13  ;;  %7434 = vmatprep.mubr.msk.bf16.mxu1 %vm8166_vm0, %v8165_v1 }
0x3eeb   :  { %7432 = vmatprep.subr.bf16.mxu1 %v8165_v1 }
0x3eee   :  { %7433 = vmatpush3.bf16.msra.mxu1 %v9813_v46 }
0x3eef   :  { %7452 = vmatprep.subr.bf16.mxu1 %v8165_v1 }
0x3ef1   :  { %7435 = vmatmul.mubr.msk.bf16.vlgmr.msra.gmra.mrb[68].mxu1 %vm153_vm2, %v9702_v56 }
0x3ef2   :  { %7453 = vmatpush3.bf16.msra.mxu1 %v9595_v21  ;;  %7456 = vmatprep.mubr.msk.bf16.mxu1 %vm8166_vm0, %v8165_v1 }
0x3ef3   :  { %7454 = vmatprep.subr.bf16.mxu1 %v8165_v1 }
0x3ef6   :  { %7455 = vmatpush3.bf16.msra.mxu1 %v9604_v63 }
0x3ef7   :  { %7502 = vmatprep.subr.bf16.mxu1 %v8175_v62 }
0x3f4e   :  { %v5349_v24 = vpop.xlane.xlu1 %5348 }
0x3f4f   :  { %7921 = vrcp.f32 %v5349_v24 }
0x3f59   :  { %v7922_v4 = vpop.eup %7921 }
0x3f5a   :  { %v5351_v19 = vmul.f32 %v7922_v4, %v7918_v40 }
0x3f5c   :  { %5680 = vperm.xlu1 %7633, %v5351_v19   ;;  %5686 = vperm.xlu0 %7631, %v5351_v19  }
0x3f60   :  { %7632 = vset.pattern.permute.xlu0 %v8176_v8  ;;  %7635 = vset.pattern.permute.xlu1 %v8171_v59 }
0x3f61   :  { %5675 = vperm.xlu0 %7632, %v5351_v19  }
0x3f65   :  { %7634 = vset.pattern.permute.xlu0 %v8179_v26 }
0x3fbc   :  { %v5669_v21 = vpop.f32.mrb[64].mxu1 }
0x3fbd   :  { %v7423_v37 = vpop.f32.mrb[65].mxu1 }
0x3fc4   :  { %v9828_v23 = vpop.f32.mrb[68].mxu1 }
0x3fc5   :  { %v7436_v63 = vpop.f32.mrb[69].mxu1 }
0x3fc6   :  { %v5987_v41 = vpop.f32.mrb[70].mxu1 }
0x3fc7   :  { %v7437_v62 = vpop.f32.mrb[71].mxu1 }
0x3fdb   :  { %v5687_v27 = vpop.permute.xlu0 %5686  ;;  %v5681_v55 = vpop.permute.xlu1 %5680 }
0x3fdc   :  { %v5689_v58 = vmul.f32 %v5687_v27, %v5669_v21  ;;  %v5683_v45 = vmul.f32 %v5681_v55, %v5599_v30 }
0x3fde   :  { %5691 = vrot.lane.b32.xlu0 %v5689_v58, %s8180_s25 }
0x3fe0   :  { %v5676_v16 = vpop.permute.xlu0 %5675 }
0x3fe1   :  { %v5678_v42 = vmul.f32 %v5676_v16, %v5669_v21 }
0x3fe2   :  { %5700 = vperm.xlu0 %7634, %v5332_v50  }
0x3fe3   :  { %v5684_v44 = vadd.f32 %v5683_v45, %v5678_v42 }
0x3fe6   :  { %7636 = vset.pattern.permute.xlu0 %v8171_v59 }
0x4050   :  { %v5692_v28 = vpop.permute.xlu0 %5691 }
0x4051   :  { %v5694_v34 = vadd.f32 %v5692_v28, %v5684_v44 }
0x4053   :  { %v5695_v9 = vmax.f32 %v5694_v34, 1e-30 }
0x4055   :  { %7923 = vlog2.f32 %v5695_v9 }
0x405f   :  { %v7924_v17 = vpop.eup %7923 }
0x4060   :  { %v5697_v2 = vmul.f32 0.6931472, %v7924_v17 }
0x4061   :  { %v5701_v7 = vpop.permute.xlu0 %5700 }
0x4062   :  { %v5703_v40 = vmul.f32 %v5701_v7, %v5697_v2 }
0x4064   :  { %v5704_v38 = vmul.f32 1.442695, %v5703_v40 }
0x4066   :  { %7925 = vpow2.f32 %v5704_v38 }
0x4070   :  { %v7926_v43 = vpop.eup %7925 }
0x4071   :  { %v5706_v0 = vsel %vm362_vm4, %v7926_v43, 0.0 }
0x4072   :  { %5707 = vadd.xlane.f32.xlu0 %v5706_v0 }
0x40ff   :  { %v5708_v59 = vpop.xlane.xlu0 %5707 }
0x4100   :  { %v5709_v25 = vadd.f32 1e-16, %v5708_v59 }
0x4102   :  { %7927 = vrcp.f32 %v5709_v25 }
0x410c   :  { %v7928_v20 = vpop.eup %7927 }
0x410d   :  { %v9834_v36 = vmul.f32 %v7928_v20, %v7926_v43 }
0x410f   :  { %v5715_v51 = vrot.slane %v9834_v36, %v8433_v15  ;;  %v5726_v18 = vrot.slane %v9834_v36, %v8457_v11 }
0x4111   :  { %5717 = vbcast.lane.b32.xlu1 %v5715_v51, 256 }
0x4115   :  { %5721 = vbcast.lane.b32.xlu1 %v5715_v51, 264 }
0x4119   :  { %5728 = vbcast.lane.b32.xlu1 %v5726_v18, 256 }
0x411d   :  { %5732 = vbcast.lane.b32.xlu1 %v5726_v18, 264 }
0x4183   :  { %v5718_v49 = vpop.permute.xlu1 %5717 }
0x4184   :  { %v5756_v6 = vmul.f32 %v5718_v49, %v9711_v54 }
0x4186   :  { %v5760_v4 = vsel %vm95_vm1, %v5756_v6, 0.0 }
0x4187   :  { %v5722_v30 = vpop.permute.xlu1 %5721 }
0x4188   :  { %v5757_v24 = vmul.f32 %v5722_v30, %v9718_v31 }
0x418a   :  { %v5761_v19 = vsel %vm95_vm1, %v5757_v24, 0.0 }
0x418b   :  { %v5762_v21 = vadd.f32 %v5761_v19, %v5760_v4  ;;  %v5729_v37 = vpop.permute.xlu1 %5728  ;;  %v5996_v19 = vld [vmem:[%s10208_s21 + $0xe] sm:$0x3] }
0x418c   :  { %v5758_v41 = vmul.f32 %v5729_v37, %v9716_v14 }
0x418d   :  { %v5763_v63 = vrot.slane %v5762_v21, 4 }
0x418e   :  { %v5769_v16 = vsel %vm95_vm1, %v5758_v41, 0.0 }
0x418f   :  { %v5764_v62 = vadd.f32 %v5763_v63, %v5762_v21  ;;  %v5733_v27 = vpop.permute.xlu1 %5732 }
0x4190   :  { %v5759_v58 = vmul.f32 %v5733_v27, %v9724_v29 }
0x4191   :  { %v5765_v50 = vrot.slane %v5764_v62, 2 }
0x4192   :  { %v5770_v55 = vsel %vm95_vm1, %v5759_v58, 0.0 }
0x4193   :  { %v5766_v42 = vadd.f32 %v5765_v50, %v5764_v62  ;;  %v5771_v45 = vadd.f32 %v5770_v55, %v5769_v16 }
0x4195   :  { %v5772_v44 = vrot.slane %v5771_v45, 4  ;;  %v5767_v28 = vrot.slane %v5766_v42, 1 }
0x4197   :  { %v5773_v34 = vadd.f32 %v5772_v44, %v5771_v45  ;;  %v5768_v17 = vadd.f32 %v5767_v28, %v5766_v42 }
0x4199   :  { %v5774_v9 = vrot.slane %v5773_v34, 2  ;;  %v5899_v40 = vpack.c.bf16 %v5768_v17, %v5768_v17  ;;  %v5737_v17 = vrot.slane %v9834_v36, %v8462_v22 }
0x419b   :  { %v5775_v2 = vadd.f32 %v5774_v9, %v5773_v34  ;;  %v5903_v0 = vunpack.c.l.b16 %v5899_v40 }
0x419d   :  { %v5776_v7 = vrot.slane %v5775_v2, 1 }
0x419f   :  { %v5777_v38 = vadd.f32 %v5776_v7, %v5775_v2  ;;  %v5748_v2 = vrot.slane %v9834_v36, %v8466_v35 }
0x41a1   :  { %v5900_v43 = vpack.c.bf16 %v5777_v38, %v5777_v38 }
0x41a3   :  { %v5904_v59 = vunpack.c.l.b16 %v5900_v43 }
0x41a5   :  { %v5905_v25 = vsel %vm551_vm6, %v5904_v59, %v5903_v0 }
0x41a6   :  { %v5906_v20 = vpack.c.b16 %v5905_v25, %v5905_v25 }
0x41a8   :  { %7427 = vmatmul.mubr.msk.bf16.vlgmr.msra.gmra.mrb[52].mxu0 %vm95_vm1, %v5906_v20 }
0x41a9   :  { %7439 = vmatpush3.bf16.msra.mxu0 %v9636_v3  ;;  %7440 = vmatprep.mubr.msk.bf16.mxu0 %vm8166_vm0, %v8165_v1  ;;  %v8001_v3 = vld [vmem:[%s10190_s11] sm:$0xff]  }
0x41aa   :  { %7444 = vmatprep.subr.bf16.mxu0 %v8165_v1 }
0x41b0   :  { %7441 = vmatmul.mubr.msk.bf16.vlgmr.msra.gmra.mrb[56].mxu0 %vm95_vm1, %v5906_v20 }
0x41b1   :  { %7445 = vmatpush3.bf16.msra.mxu0 %v9646_v48  ;;  %7448 = vmatprep.mubr.msk.bf16.mxu0 %vm8166_vm0, %v8165_v1 }
0x41b2   :  { %7446 = vmatprep.subr.bf16.mxu0 %v8165_v1 }
0x41b5   :  { %7447 = vmatpush3.bf16.msra.mxu0 %v9655_v39  ;;  %v9872_v39 = vld [vmem:[%s10191_s12] ss:$0 sm:$0xff]  ;;  %s8183_s12 = smov [#allocation5]  }
0x41b6   :  { %7467 = vmatprep.subr.bf16.mxu0 %v8165_v1  ;;  %s6870_s21 = sshll.u32 %s8183_s12, 4  ;;  %s6871_s21 = int_to_ptr.vmem [resolvable:$true] %s6870_s21 }
0x41b7   :  { %p8008_p1 = scmp.lt.s32.totalorder %s6871_s21, %s6871_s21 }
0x41bc   :  { %7449 = vmatmul.mubr.msk.bf16.vlgmr.msra.gmra.mrb[56].mxu0 %vm153_vm2, %v9702_v56 }
0x41bd   :  { %7468 = vmatpush3.bf16.msra.mxu0 %v8001_v3  ;;  %7469 = vmatprep.mubr.msk.bf16.mxu0 %vm8166_vm0, %v8165_v1 }
0x427b   :  { %v5944_v48 = vpop.f32.mrb[52].mxu0 }
0x427c   :  { %v5985_v51 = vadd.f32 %v9828_v23, %v5944_v48  ;;  %v7428_v18 = vpop.f32.mrb[53].mxu0 }
0x427d   :  { %v5947_v49 = vpop.f32.mrb[54].mxu0 }
0x427e   :  { %v5990_v56 = vadd.f32 %v9872_v39, %v5985_v51  ;;  %v7429_v6 = vpop.f32.mrb[55].mxu0 }
0x4280   :  { %v5991_v30 = vmul.f32 0.5, %v5990_v56 }
0x4282   :  { %7929 = vtanh.f32 %v5991_v30  ;;  %v5849_v30 = vrot.slane %v9736_v5, %v8428_v10 }
0x428c   :  { %v7930_v24 = vpop.eup %7929 }
0x428d   :  { %v5993_v4 = vadd.f32 1.0, %v7930_v24 }
0x428f   :  { %v5994_v21 = vmul.f32 0.5, %v5993_v4  ;;  %v6072_v23 = vpop.f32.mrb[56].mxu0 }
0x4290   :  { %v7512_v37 = vadd.f32 %v6072_v23, %v5996_v19  ;;  %v7450_v63 = vpop.f32.mrb[57].mxu0  ;;  %v5857_v23 = vrot.slane %v5849_v30, %v8428_v10 }
0x4291   :  { %5995 = vst [vmem:[#allocation3 + $0xc] sm:$0x3] %v5994_v21  ;;  %v6075_v41 = vpop.f32.mrb[58].mxu0 }
0x4292   :  { %7931 = vtanh.f32 %v7512_v37  ;;  %v7451_v62 = vpop.f32.mrb[59].mxu0  ;;  %v6079_v58 = vmul.f32 0.5, %v7512_v37  ;;  %v5850_v37 = vcombine.high %v5849_v30, %v5849_v30 }
0x4294   :  { %7933 = vtanh.f32 %v6079_v58  ;;  %v5864_v58 = vrot.slane %v5850_v37, %v8428_v10 }
0x429c   :  { %v7932_v27 = vpop.eup %7931 }
0x429d   :  { %6086 = vrot.lane.b32.xlu1 %v7932_v27, %s8167_s1  ;;  %v5868_v27 = vrot.slane %v5857_v23, %v8433_v15 }
0x429e   :  { %v7934_v50 = vpop.eup %7933 }
0x429f   :  { %v6081_v16 = vadd.f32 1.0, %v7934_v50 }
0x42a1   :  { %v6082_v55 = vmul.f32 0.5, %v6081_v16 }
0x42a3   :  { %v6084_v44 = vmul.f32 %v6082_v55, %v9673_v57  ;;  %v5778_v57 = vmul.f32 0.5, %v9736_v5 }
0x430f   :  { %v6087_v42 = vpop.permute.xlu1 %6086 }
0x4310   :  { %v6089_v45 = vmul.f32 %v6087_v42, %v6082_v55 }
0x4312   :  { %6091 = vrot.lane.b32.xlu1 %v6089_v45, %s8168_s2 }
0x4384   :  { %v6092_v28 = vpop.permute.xlu1 %6091 }
0x4385   :  { %v9881_v34 = vadd.f32 %v6092_v28, %v6084_v44 }
0x4387   :  { %7935 = vtanh.f32 %v9881_v34 }
0x4388   :  { %7937 = vtanh.f32 %v5778_v57 }
0x4391   :  { %v7936_v9 = vpop.eup %7935 }
0x4392   :  { %6097 = vrot.lane.b32.xlu1 %v7936_v9, %s8167_s1  ;;  %v7938_v7 = vpop.eup %7937  ;;  %s8184_s1 = smov [#allocation8]  }
0x4393   :  { %v5780_v40 = vadd.f32 1.0, %v7938_v7 }
0x4395   :  { %v5781_v38 = vmul.f32 0.5, %v5780_v40 }
0x4396   :  { %5739 = vbcast.lane.b32.xlu1 %v5737_v17, 256 }
0x4397   :  { %v5789_v43 = vrot.slane %v5781_v38, %v8428_v10 }
0x4399   :  { %v5797_v0 = vrot.slane %v5789_v43, %v8428_v10  ;;  %v5790_v48 = vcombine.high %v5789_v43, %v5789_v43 }
0x439a   :  { %5743 = vbcast.lane.b32.xlu1 %v5737_v17, 264 }
0x439b   :  { %v5808_v3 = vrot.slane %v5797_v0, %v8433_v15  ;;  %v5804_v56 = vrot.slane %v5790_v48, %v8428_v10 }
0x439d   :  { %v5812_v19 = vrot.slane %v5804_v56, %v8433_v15 }
0x439e   :  { %5750 = vbcast.lane.b32.xlu1 %v5748_v2, 256 }
0x43a2   :  { %5754 = vbcast.lane.b32.xlu1 %v5748_v2, 264 }
0x4404   :  { %v6098_v59 = vpop.permute.xlu1 %6097 }
0x4405   :  { %v9892_v25 = vmul.f32 %v6098_v59, %v6082_v55  ;;  %v5872_v55 = vrot.slane %v5864_v58, %v8433_v15 }
0x4407   :  { %v6101_v20 = vpack.c.bf16 %v9892_v25, %v9892_v25 }
0x4408   :  { %v5740_v51 = vpop.permute.xlu1 %5739 }
0x4409   :  { %v5815_v18 = vmul.f32 %v5808_v3, %v5740_v51  ;;  %6103 = vrot.lane.b32.xlu0 %v6101_v20, %s8168_s2  ;;  %v5875_v50 = vmul.f32 %v5868_v27, %v5740_v51 }
0x440b   :  { %v5819_v49 = vsub.f32 1.0, %v5815_v18 }
0x440c   :  { %v5744_v6 = vpop.permute.xlu1 %5743 }
0x440d   :  { %v5816_v24 = vmul.f32 %v5808_v3, %v5744_v6  ;;  %5827 = vrot.lane.b32.xlu1 %v5819_v49, %s8181_s0  ;;  %v5876_v42 = vmul.f32 %v5868_v27, %v5744_v6 }
0x440f   :  { %v5820_v4 = vsub.f32 1.0, %v5816_v24 }
0x4410   :  { %v5751_v21 = vpop.permute.xlu1 %5750 }
0x4411   :  { %v5817_v63 = vmul.f32 %v5812_v19, %v5751_v21  ;;  %5829 = vrot.lane.b32.xlu1 %v5820_v4, %s8181_s0  ;;  %v5877_v45 = vmul.f32 %v5872_v55, %v5751_v21 }
0x4413   :  { %v5821_v41 = vsub.f32 1.0, %v5817_v63 }
0x4414   :  { %v5755_v62 = vpop.permute.xlu1 %5754 }
0x4415   :  { %v5818_v5 = vmul.f32 %v5812_v19, %v5755_v62  ;;  %5831 = vrot.lane.b32.xlu0 %v5821_v41, %s8181_s0  ;;  %v5878_v44 = vmul.f32 %v5872_v55, %v5755_v62 }
0x4417   :  { %v5822_v16 = vsub.f32 1.0, %v5818_v5 }
0x4419   :  { %5883 = vrot.lane.b32.xlu0 %v5875_v50, %s8182_s22  ;;  %5833 = vrot.lane.b32.xlu1 %v5822_v16, %s8181_s0 }
0x441d   :  { %5887 = vrot.lane.b32.xlu0 %v5877_v45, %s8182_s22  ;;  %5885 = vrot.lane.b32.xlu1 %v5876_v42, %s8182_s22 }
0x4421   :  { %5889 = vrot.lane.b32.xlu1 %v5878_v44, %s8182_s22 }
0x447b   :  { %v9914_v28 = vpop.permute.xlu0 %6103 }
0x447c   :  { %7457 = vmatmul.mubr.msk.bf16.vlgmr.msra.gmra.mrb[72].mxu1 %vm153_vm2, %v9914_v28 }
0x447d   :  { %7504 = vmatpush3.bf16.msra.mxu1 %v8511_v33  ;;  %7464 = vmatprep.mubr.msk.f32.mxu1 %vm8166_vm0, %v8165_v1 }
0x447e   :  { %7473 = vmatprep.subr.bf16.mxu1 %v8165_v1 }
0x447f   :  { %v5828_v9 = vpop.permute.xlu1 %5827 }
0x4480   :  { %v5839_v57 = vmul.f32 %v5828_v9, %v9711_v54 }
0x4483   :  { %v5830_v17 = vpop.permute.xlu1 %5829 }
0x4484   :  { %v5840_v43 = vmul.f32 %v5830_v17, %v9718_v31 }
0x4487   :  { %v5832_v2 = vpop.permute.xlu0 %5831 }
0x4488   :  { %v5841_v0 = vmul.f32 %v5832_v2, %v9716_v14 }
0x448b   :  { %v5884_v7 = vpop.permute.xlu0 %5883  ;;  %v5834_v40 = vpop.permute.xlu1 %5833 }
0x448c   :  { %v9923_v38 = vadd.f32 %v5884_v7, %v5839_v57  ;;  %v5842_v18 = vmul.f32 %v5834_v40, %v9724_v29 }
0x448e   :  { %v6184_v33 = vadd.f32 1e-16, %v9923_v38 }
0x448f   :  { %v5888_v59 = vpop.permute.xlu0 %5887  ;;  %v5886_v20 = vpop.permute.xlu1 %5885 }
0x4490   :  { %v9928_v3 = vadd.f32 %v5888_v59, %v5841_v0  ;;  %v9930_v48 = vadd.f32 %v5886_v20, %v5840_v43  ;;  %v6188_v51 = vmul.f32 %v6184_v33, %v6184_v33 }
0x4492   :  { %v6186_v54 = vadd.f32 1e-16, %v9928_v3  ;;  %v6185_v49 = vadd.f32 1e-16, %v9930_v48  ;;  %v6192_v56 = vsel %vm95_vm1, %v6188_v51, 0.0 }
0x4493   :  { %6193 = vadd.xlane.f32.xlu0 %v6192_v56  ;;  %v5890_v31 = vpop.permute.xlu1 %5889 }
0x4494   :  { %v9936_v14 = vadd.f32 %v5890_v31, %v5842_v18  ;;  %v6190_v6 = vmul.f32 %v6186_v54, %v6186_v54  ;;  %v6189_v30 = vmul.f32 %v6185_v49, %v6185_v49 }
0x4496   :  { %v6187_v24 = vadd.f32 1e-16, %v9936_v14  ;;  %v6198_v4 = vsel %vm95_vm1, %v6190_v6, 0.0  ;;  %v6195_v19 = vsel %vm95_vm1, %v6189_v30, 0.0 }
0x4497   :  { %6199 = vadd.xlane.f32.xlu0 %v6198_v4  ;;  %6196 = vadd.xlane.f32.xlu1 %v6195_v19 }
0x4498   :  { %v6191_v29 = vmul.f32 %v6187_v24, %v6187_v24 }
0x449a   :  { %v6201_v21 = vsel %vm95_vm1, %v6191_v29, 0.0 }
0x449b   :  { %6202 = vadd.xlane.f32.xlu0 %v6201_v21 }
0x4520   :  { %v6194_v27 = vpop.xlane.xlu0 %6193 }
0x4521   :  { %v6204_v16 = vmax.f32 %v6194_v27, 1e-16 }
0x4523   :  { %7939 = vrsqrt.f32 %v6204_v16 }
0x4524   :  { %v6200_v58 = vpop.xlane.xlu0 %6199  ;;  %v6197_v50 = vpop.xlane.xlu1 %6196 }
0x4525   :  { %v6205_v55 = vmax.f32 %v6197_v50, 1e-16 }
0x4527   :  { %7941 = vrsqrt.f32 %v6205_v55 }
0x4528   :  { %v6203_v5 = vpop.xlane.xlu0 %6202 }
0x4529   :  { %v6207_v45 = vmax.f32 %v6203_v5, 1e-16 }
0x452d   :  { %v7940_v57 = vpop.eup %7939 }
0x452e   :  { %v6212_v59 = vmul.f32 %v7940_v57, %v6184_v33 }
0x4531   :  { %v7942_v0 = vpop.eup %7941 }
0x4532   :  { %v6213_v31 = vmul.f32 %v7942_v0, %v6185_v49 }
0x454f   :  { %v6142_v23 = vpop.f32.mrb[72].mxu1 }
0x4550   :  { %v9943_v37 = vadd.f32 %v9733_v47, %v6142_v23  ;;  %v7458_v63 = vpop.f32.mrb[73].mxu1  ;;  %v6206_v47 = vmax.f32 %v6200_v58, 1e-16 }
0x4551   :  { %v6145_v41 = vpop.f32.mrb[74].mxu1 }
0x4552   :  { %6148 = vst.msk [vmem:[#allocation2] sm:$0x3] %vm289_vm3, %v9943_v37  ;;  %v7459_v62 = vpop.f32.mrb[75].mxu1  ;;  %6150 = vrot.lane.b32.xlu0 %v9943_v37, %s8169_s3  ;;  %7943 = vrsqrt.f32 %v6206_v47 }
0x4553   :  { %7945 = vrsqrt.f32 %v6207_v45 }
0x455c   :  { %v7944_v30 = vpop.eup %7943 }
0x455d   :  { %v6214_v33 = vmul.f32 %v7944_v30, %v6186_v54  ;;  %v7946_v63 = vpop.eup %7945 }
0x455e   :  { %v6215_v49 = vmul.f32 %v7946_v63, %v6187_v24 }
0x45c4   :  { %v6151_v42 = vpop.permute.xlu0 %6150 }
0x45c5   :  { %6153 = vst.msk [vmem:[#allocation2 + $0x2] sm:$0x3] %vm289_vm3, %v6151_v42 }
0x45cc   :  { %v9950_v44 = vld [vmem:[#allocation2] sm:$0xf] }
0x45cd   :  { %v6216_v9 = vadd.f32 1e-16, %v9950_v44 }
0x45cf   :  { %v6217_v17 = vmul.f32 %v6216_v9, %v6216_v9  ;;  %v6230_v2 = vrot.slane %v6216_v9, %v8428_v10  ;;  %v6156_v9 = vand.u32 2147483647, %v9950_v44 }
0x45d1   :  { %v6218_v7 = vsel %vm362_vm4, %v6217_v17, 0.0  ;;  %v6238_v40 = vrot.slane %v6230_v2, %v8428_v10  ;;  %v6231_v43 = vcombine.high %v6230_v2, %v6230_v2  ;;  %v6157_v57 = vsub.f32 0.0, %v6156_v9 }
0x45d2   :  { %6219 = vadd.xlane.f32.xlu1 %v6218_v7 }
0x45d3   :  { %v6251_v20 = vrot.slane %v6238_v40, %v8433_v15  ;;  %v6246_v51 = vcombine.high %v6238_v40, %v6238_v40  ;;  %v6245_v18 = vrot.slane %v6231_v43, %v8428_v10  ;;  %v6158_v40 = vmul.f32 1.442695, %v6157_v57 }
0x45d5   :  { %v6268_v56 = vmul.f32 %v6251_v20, %v6212_v59  ;;  %v6259_v6 = vrot.slane %v6246_v51, %v8433_v15  ;;  %v6269_v29 = vmul.f32 %v6251_v20, %v6213_v31  ;;  %v6255_v21 = vrot.slane %v6245_v18, %v8433_v15 }
0x45d6   :  { %v6247_v5 = vcombine.high %v6245_v18, %v6245_v18 }
0x45d7   :  { %v6276_v4 = vsel %vm95_vm1, %v6268_v56, 0.0  ;;  %v6273_v19 = vmul.f32 %v6259_v6, %v6213_v31  ;;  %v6279_v41 = vsel %vm95_vm1, %v6269_v29, 0.0  ;;  %v6270_v62 = vmul.f32 %v6255_v21, %v6214_v33 }
0x45d8   :  { %6277 = vadd.xlane.f32.xlu1 %v6276_v4  ;;  %v6271_v58 = vmul.f32 %v6255_v21, %v6215_v49  ;;  %v6272_v16 = vmul.f32 %v6259_v6, %v6212_v59  ;;  %v6263_v55 = vrot.slane %v6247_v5, %v8433_v15 }
0x45d9   :  { %v6291_v23 = vsel %vm95_vm1, %v6273_v19, 0.0  ;;  %v6282_v27 = vsel %vm95_vm1, %v6270_v62, 0.0 }
0x45da   :  { %6292 = vadd.xlane.f32.xlu0 %v6291_v23  ;;  %v6285_v50 = vsel %vm95_vm1, %v6271_v58, 0.0  ;;  %v6288_v54 = vsel %vm95_vm1, %v6272_v16, 0.0  ;;  %v6274_v42 = vmul.f32 %v6263_v55, %v6214_v33  ;;  %v6275_v45 = vmul.f32 %v6263_v55, %v6215_v49 }
0x45db   :  { %v6155_v16 = vmax.f32 %v9950_v44, 0.0 }
0x45dc   :  { %6280 = vadd.xlane.f32.xlu1 %v6279_v41  ;;  %v6294_v47 = vsel %vm95_vm1, %v6274_v42, 0.0  ;;  %v6297_v24 = vsel %vm95_vm1, %v6275_v45, 0.0 }
0x45e0   :  { %6283 = vadd.xlane.f32.xlu1 %v6282_v27 }
0x45e4   :  { %6286 = vadd.xlane.f32.xlu1 %v6285_v50 }
0x45e8   :  { %6289 = vadd.xlane.f32.xlu1 %v6288_v54 }
0x45ec   :  { %6295 = vadd.xlane.f32.xlu1 %v6294_v47 }
0x45f0   :  { %6298 = vadd.xlane.f32.xlu1 %v6297_v24 }
0x465f   :  { %v6220_v17 = vpop.xlane.xlu1 %6219 }
0x4660   :  { %v6221_v2 = vmax.f32 %v6220_v17, 1e-16 }
0x4662   :  { %7947 = vrsqrt.f32 %v6221_v2 }
0x4663   :  { %7949 = vpow2.f32 %v6158_v40 }
0x4665   :  { %v6278_v7 = vpop.xlane.xlu1 %6277 }
0x4667   :  { %v6293_v33 = vpop.xlane.xlu0 %6292 }
0x4669   :  { %v6281_v43 = vpop.xlane.xlu1 %6280 }
0x466c   :  { %v7948_v0 = vpop.eup %7947 }
0x466d   :  { %v6304_v59 = vrot.slane %v7948_v0, %v8433_v15  ;;  %v6308_v20 = vrot.slane %v7948_v0, %v8457_v11  ;;  %v6284_v51 = vpop.xlane.xlu1 %6283  ;;  %v7950_v30 = vpop.eup %7949  ;;  %v6312_v21 = vrot.slane %v7948_v0, %v8462_v22  ;;  %v6316_v62 = vrot.slane %v7948_v0, %v8466_v35 }
0x466e   :  { %v6160_v19 = vadd.f32 1.0, %v7950_v30 }
0x466f   :  { %v6321_v18 = vmul.f32 %v6304_v59, %v6278_v7  ;;  %v6323_v56 = vmul.f32 %v6308_v20, %v6284_v51  ;;  %v6322_v6 = vmul.f32 %v6304_v59, %v6281_v43  ;;  %v6326_v41 = vmul.f32 %v6312_v21, %v6293_v33 }
0x4670   :  { %7951 = vlog2.f32 %v6160_v19 }
0x4671   :  { %6343 = vperm.xlu1 %7635, %v6321_v18   ;;  %6349 = vperm.xlu0 %7636, %v6323_v56   ;;  %v6287_v31 = vpop.xlane.xlu1 %6286 }
0x4672   :  { %v6324_v4 = vmul.f32 %v6308_v20, %v6287_v31 }
0x4675   :  { %6346 = vperm.xlu1 %7635, %v6322_v6   ;;  %7639 = vset.pattern.permute.xlu0 %v8173_v53  ;;  %v6290_v29 = vpop.xlane.xlu1 %6289 }
0x4676   :  { %v6325_v23 = vmul.f32 %v6312_v21, %v6290_v29  ;;  %v6165_v29 = vmul.f32 0.5, %v9950_v44 }
0x4678   :  { %7953 = vtanh.f32 %v6165_v29 }
0x4679   :  { %6352 = vperm.xlu1 %7635, %v6324_v4   ;;  %v6296_v63 = vpop.xlane.xlu1 %6295 }
0x467a   :  { %v6327_v49 = vmul.f32 %v6316_v62, %v6296_v63  ;;  %v7952_v58 = vpop.eup %7951 }
0x467b   :  { %v6162_v50 = vmul.f32 0.6931472, %v7952_v58 }
0x467d   :  { %6355 = vperm.xlu1 %7635, %v6325_v23   ;;  %v6299_v27 = vpop.xlane.xlu1 %6298  ;;  %v9976_v55 = vadd.f32 %v6162_v50, %v6155_v16 }
0x467e   :  { %v6328_v5 = vmul.f32 %v6316_v62, %v6299_v27 }
0x4681   :  { %6358 = vperm.xlu1 %7635, %v6326_v41  }
0x4685   :  { %6361 = vperm.xlu1 %7635, %v6327_v49  }
0x4689   :  { %6364 = vperm.xlu1 %7635, %v6328_v5  }
0x468d   :  { %7637 = vset.pattern.permute.xlu1 %v8172_v52 }
0x468e   :  { %6331 = vperm.xlu1 %7637, %v9976_v55  }
0x4692   :  { %7638 = vset.pattern.permute.xlu1 %v8173_v53 }
0x46f0   :  { %v6344_v54 = vpop.permute.xlu1 %6343  ;;  %v6350_v9 = vpop.permute.xlu0 %6349 }
0x46f1   :  { %v6378_v7 = vrot.slane %v6350_v9, %v8478_v60  ;;  %v6369_v43 = vrot.slane %v6344_v54, %v8478_v60 }
0x46f4   :  { %v6347_v42 = vpop.permute.xlu1 %6346 }
0x46f5   :  { %v6373_v40 = vrot.slane %v6347_v42, %v8481_v61 }
0x46f7   :  { %v6374_v20 = vsel %vm522_vm5, %v6373_v40, %v6369_v43 }
0x46f8   :  { %v6353_v47 = vpop.permute.xlu1 %6352 }
0x46f9   :  { %v6382_v17 = vrot.slane %v6353_v47, %v8481_v61 }
0x46fb   :  { %v6383_v53 = vsel %vm522_vm5, %v6382_v17, %v6378_v7 }
0x46fc   :  { %v6356_v45 = vpop.permute.xlu1 %6355  ;;  %v6402_v56 = vsel %vm551_vm6, %v6383_v53, %v6374_v20 }
0x46fd   :  { %v6387_v52 = vrot.slane %v6356_v45, %v8478_v60 }
0x4700   :  { %v6359_v24 = vpop.permute.xlu1 %6358 }
0x4701   :  { %v6391_v2 = vrot.slane %v6359_v24, %v8481_v61 }
0x4703   :  { %v6392_v0 = vsel %vm522_vm5, %v6391_v2, %v6387_v52 }
0x4704   :  { %v6362_v57 = vpop.permute.xlu1 %6361  ;;  %v6403_v6 = vsel %vm553_vm7, %v6392_v0, %v6402_v56 }
0x4705   :  { %v6396_v51 = vrot.slane %v6362_v57, %v8478_v60  ;;  %v6169_v60 = vsel %vm311_vm9, %v9950_v44, -inf }
0x4708   :  { %v6365_v59 = vpop.permute.xlu1 %6364 }
0x4709   :  { %v6400_v18 = vrot.slane %v6365_v59, %v8481_v61  ;;  %v7954_v61 = vpop.eup %7953 }
0x470a   :  { %v6167_v23 = vadd.f32 1.0, %v7954_v61 }
0x470b   :  { %v6401_v31 = vsel %vm522_vm5, %v6400_v18, %v6396_v51 }
0x470c   :  { %v6404_v30 = vsel %vm555_vm8, %v6401_v31, %v6403_v6  ;;  %v6168_v33 = vmul.f32 0.5, %v6167_v23 }
0x470d   :  { %v6332_v4 = vpop.permute.xlu1 %6331 }
0x470e   :  { %v6406_v19 = vmul.f32 %v6404_v30, %v6332_v4  ;;  %v6424_v54 = vsub.f32 1.0, %v6168_v33 }
0x4710   :  { %v6407_v21 = vsel %vm362_vm4, %v6406_v19, -inf }
0x4711   :  { %6408 = vmax.xlane.f32.xlu1 %v6407_v21 }
0x4715   :  { %6170 = vmax.xlane.f32.xlu1 %v6169_v60 }
0x4726   :  { %6420 = vperm.xlu1 %7638, %v6168_v33  }
0x472a   :  { %7641 = vset.pattern.permute.xlu1 %v8176_v8 }
0x479e   :  { %v6409_v63 = vpop.xlane.xlu1 %6408 }
0x479f   :  { %v6410_v41 = vsub.f32 %v6406_v19, %v6409_v63 }
0x47a1   :  { %v6411_v62 = vmul.f32 1.442695, %v6410_v41 }
0x47a2   :  { %v6171_v49 = vpop.xlane.xlu1 %6170 }
0x47a3   :  { %7955 = vpow2.f32 %v6411_v62  ;;  %v6172_v27 = vsub.f32 %v9950_v44, %v6171_v49 }
0x47a5   :  { %v6173_v58 = vmul.f32 1.442695, %v6172_v27  ;;  %v6610_v27 = vmul.f32 0.5, %v9943_v37 }
0x47a6   :  { %v6421_v8 = vpop.permute.xlu1 %6420 }
0x47a7   :  { %7957 = vpow2.f32 %v6173_v58 }
0x47ad   :  { %v7956_v5 = vpop.eup %7955 }
0x47ae   :  { %v6413_v50 = vsel %vm362_vm4, %v7956_v5, 0.0 }
0x47af   :  { %6414 = vadd.xlane.f32.xlu0 %v6413_v50 }
0x47b1   :  { %v7958_v16 = vpop.eup %7957 }
0x47b2   :  { %6176 = vrot.lane.b32.xlu1 %v7958_v16, %s8174_s26  ;;  %s8003_s26 = scalar_lea.vmem %s6871_s21, 32 }
0x47b3   :  { %p8004_p0 = scmp.ne.s32.totalorder %s6871_s21, %s8003_s26  ;;  %p8009_p2 = scmp.lt.s32.totalorder %s8003_s26, %s8003_s26 }
0x47b5   :  { %p8010_p3 = por %p8009_p2, %p8008_p1 }
0x47b7   :  { %p8011_p4 = pnand %p8010_p3, %p8004_p0 }
0x47c5   :  { %6427 = vperm.xlu0 %7639, %v6424_v54  }
0x47c9   :  { %7640 = vset.pattern.permute.xlu0 %v8177_v12 }
0x4824   :  { %v6177_v42 = vpop.permute.xlu1 %6176 }
0x4825   :  { %v6179_v47 = vsel %vm322_vm10, %v6177_v42, 0.0 }
0x4826   :  { %6180 = vadd.xlane.f32.xlu1 %v6179_v47 }
0x483c   :  { %v6415_v45 = vpop.xlane.xlu0 %6414 }
0x483d   :  { %7959 = vrcp.f32 %v6415_v45 }
0x4844   :  { %v6428_v24 = vpop.permute.xlu0 %6427 }
0x4845   :  { %v6430_v2 = vmul.f32 %v6428_v24, %v9834_v36  ;;  %v6164_v36 = vadd.f32 1.0, %v9976_v55 }
0x4847   :  { %v7960_v44 = vpop.eup %7959 }
0x4848   :  { %v6417_v9 = vmul.f32 %v7960_v44, %v7956_v5 }
0x484a   :  { %v6423_v17 = vmul.f32 %v6421_v8, %v6417_v9 }
0x484c   :  { %v6431_v57 = vadd.f32 %v6430_v2, %v6423_v17 }
0x484e   :  { %7465 = vmatmul.mubr.msk.f32.vlgmr.msra.gmra.mrb[66].mxu1 %vm95_vm1, %v6431_v57 }
0x484f   :  { %7474 = vmatpush3.bf16.msra.mxu1 %v9804_v13  ;;  %7477 = vmatprep.mubr.msk.bf16.mxu1 %vm8166_vm0, %v8165_v1 }
0x4850   :  { %7475 = vmatprep.subr.bf16.mxu1 %v8165_v1 }
0x4853   :  { %7476 = vmatpush3.bf16.msra.mxu1 %v9813_v46 }
0x4856   :  { %7478 = vmatmul.mubr.msk.bf16.vlgmr.msra.gmra.mrb[76].mxu1 %vm153_vm2, %v9914_v28 }
0x48b3   :  { %v6181_v12 = vpop.xlane.xlu1 %6180 }
0x48b4   :  { %7961 = vrcp.f32 %v6181_v12 }
0x48be   :  { %v7962_v7 = vpop.eup %7961 }
0x48bf   :  { %v6183_v40 = vmul.f32 %v7962_v7, %v7958_v16 }
0x48c1   :  { %6507 = vperm.xlu1 %7641, %v6183_v40   ;;  %6518 = vperm.xlu0 %7640, %v6183_v40  }
0x48c5   :  { %7643 = vset.pattern.permute.xlu1 %v8179_v26  ;;  %7642 = vset.pattern.permute.xlu0 %v8178_v32 }
0x48c6   :  { %6532 = vperm.xlu1 %7643, %v6164_v36   ;;  %6512 = vperm.xlu0 %7642, %v6183_v40  }
0x48ca   :  { %7644 = vset.pattern.permute.xlu0 %v8179_v26 }
0x4921   :  { %v6501_v1 = vpop.f32.mrb[66].mxu1 }
0x4922   :  { %v7466_v13 = vpop.f32.mrb[67].mxu1 }
0x4929   :  { %v10019_v46 = vpop.f32.mrb[76].mxu1 }
0x492a   :  { %v7479_v28 = vpop.f32.mrb[77].mxu1 }
0x492b   :  { %v6819_v52 = vpop.f32.mrb[78].mxu1 }
0x492c   :  { %v7480_v43 = vpop.f32.mrb[79].mxu1 }
0x4940   :  { %v6519_v53 = vpop.permute.xlu0 %6518  ;;  %v6508_v59 = vpop.permute.xlu1 %6507 }
0x4941   :  { %v6521_v0 = vmul.f32 %v6519_v53, %v6501_v1  ;;  %v6510_v51 = vmul.f32 %v6508_v59, %v6501_v1 }
0x4943   :  { %6523 = vrot.lane.b32.xlu0 %v6521_v0, %s8180_s25 }
0x4945   :  { %v6513_v55 = vpop.permute.xlu0 %6512  ;;  %v6533_v30 = vpop.permute.xlu1 %6532 }
0x4946   :  { %v6515_v20 = vmul.f32 %v6513_v55, %v6431_v57 }
0x4948   :  { %v6516_v32 = vadd.f32 %v6515_v20, %v6510_v51 }
0x49b5   :  { %v6524_v18 = vpop.permute.xlu0 %6523 }
0x49b6   :  { %v6526_v56 = vadd.f32 %v6524_v18, %v6516_v32 }
0x49b8   :  { %v6527_v31 = vmax.f32 %v6526_v56, 1e-30 }
0x49ba   :  { %7963 = vlog2.f32 %v6527_v31 }
0x49c4   :  { %v7964_v26 = vpop.eup %7963 }
0x49c5   :  { %v6529_v6 = vmul.f32 0.6931472, %v7964_v26 }
0x49c7   :  { %v6535_v4 = vmul.f32 %v6533_v30, %v6529_v6 }
0x49c9   :  { %v6536_v19 = vmul.f32 1.442695, %v6535_v4 }
0x49cb   :  { %7965 = vpow2.f32 %v6536_v19 }
0x49d5   :  { %v7966_v29 = vpop.eup %7965 }
0x49d6   :  { %v6538_v21 = vsel %vm362_vm4, %v7966_v29, 0.0 }
0x49d7   :  { %6539 = vadd.xlane.f32.xlu0 %v6538_v21 }
0x4a64   :  { %v6540_v60 = vpop.xlane.xlu0 %6539 }
0x4a65   :  { %v6541_v61 = vadd.f32 1e-16, %v6540_v60 }
0x4a67   :  { %7967 = vrcp.f32 %v6541_v61 }
0x4a68   :  { %7969 = vtanh.f32 %v6610_v27 }
0x4a71   :  { %v7968_v23 = vpop.eup %7967 }
0x4a72   :  { %v6543_v33 = vmul.f32 %v7968_v23, %v7966_v29  ;;  %v7970_v5 = vpop.eup %7969 }
0x4a73   :  { %v6612_v54 = vadd.f32 1.0, %v7970_v5 }
0x4a74   :  { %v6580_v63 = vrot.slane %v6543_v33, %v8466_v35  ;;  %v6547_v41 = vrot.slane %v6543_v33, %v8433_v15  ;;  %6845 = vst.msk [vmem:[#allocation10] sm:$0x3] %vm6843_vm11, %v6543_v33  ;;  %v6558_v62 = vrot.slane %v6543_v33, %v8457_v11  ;;  %v6569_v49 = vrot.slane %v6543_v33, %v8462_v22 }
0x4a75   :  { %6847 = vst.msk [vmem:[#allocation11 - $0x2] sm:$0xc] %vm6846_vm12, %v6543_v33  ;;  %v6681_v11 = vrot.slane %v9943_v37, %v8428_v10  ;;  %v6613_v44 = vmul.f32 0.5, %v6612_v54 }
0x4a76   :  { %6586 = vbcast.lane.b32.xlu0 %v6580_v63, 264  ;;  %6549 = vbcast.lane.b32.xlu1 %v6547_v41, 256 }
0x4a77   :  { %v6689_v9 = vrot.slane %v6681_v11, %v8428_v10  ;;  %v6682_v12 = vcombine.high %v6681_v11, %v6681_v11  ;;  %v6621_v37 = vrot.slane %v6613_v44, %v8428_v10 }
0x4a79   :  { %v6700_v1 = vrot.slane %v6689_v9, %v8433_v15  ;;  %v6696_v0 = vrot.slane %v6682_v12, %v8428_v10  ;;  %v6629_v55 = vrot.slane %v6621_v37, %v8428_v10  ;;  %v6622_v31 = vcombine.high %v6621_v37, %v6621_v37 }
0x4a7a   :  { %6553 = vbcast.lane.b32.xlu1 %v6547_v41, 264 }
0x4a7b   :  { %v6704_v26 = vrot.slane %v6696_v0, %v8433_v15  ;;  %v6640_v6 = vrot.slane %v6629_v55, %v8433_v15  ;;  %v6636_v23 = vrot.slane %v6622_v31, %v8428_v10 }
0x4a7e   :  { %6560 = vbcast.lane.b32.xlu1 %v6558_v62, 256 }
0x4a82   :  { %6564 = vbcast.lane.b32.xlu1 %v6558_v62, 264 }
0x4a86   :  { %6571 = vbcast.lane.b32.xlu1 %v6569_v49, 256 }
0x4a8a   :  { %6575 = vbcast.lane.b32.xlu1 %v6569_v49, 264 }
0x4a8e   :  { %6582 = vbcast.lane.b32.xlu1 %v6580_v63, 256 }
0x4ae8   :  { %v6550_v35 = vpop.permute.xlu1 %6549  ;;  %v6587_v18 = vpop.permute.xlu0 %6586 }
0x4ae9   :  { %v6588_v58 = vmul.f32 %v6550_v35, %v9923_v38  ;;  %v6710_v29 = vmul.f32 %v6704_v26, %v6587_v18  ;;  %v6644_v35 = vrot.slane %v6636_v23, %v8433_v15 }
0x4aeb   :  { %v6592_v8 = vsel %vm95_vm1, %v6588_v58, 0.0  ;;  %v6650_v11 = vmul.f32 %v6644_v35, %v6587_v18 }
0x4aec   :  { %v6554_v50 = vpop.permute.xlu1 %6553 }
0x4aed   :  { %v6589_v16 = vmul.f32 %v6554_v50, %v9930_v48  ;;  %v6654_v15 = vsub.f32 1.0, %v6650_v11 }
0x4aef   :  { %v6593_v22 = vsel %vm95_vm1, %v6589_v16, 0.0 }
0x4af0   :  { %v6594_v42 = vadd.f32 %v6593_v22, %v6592_v8  ;;  %v6561_v47 = vpop.permute.xlu1 %6560 }
0x4af1   :  { %v6590_v24 = vmul.f32 %v6561_v47, %v9928_v3 }
0x4af2   :  { %v6595_v45 = vrot.slane %v6594_v42, 4 }
0x4af3   :  { %v6601_v40 = vsel %vm95_vm1, %v6590_v24, 0.0 }
0x4af4   :  { %v6596_v17 = vadd.f32 %v6595_v45, %v6594_v42  ;;  %v6565_v2 = vpop.permute.xlu1 %6564 }
0x4af5   :  { %v6591_v57 = vmul.f32 %v6565_v2, %v9936_v14 }
0x4af6   :  { %v6597_v7 = vrot.slane %v6596_v17, 2 }
0x4af7   :  { %v6602_v36 = vsel %vm95_vm1, %v6591_v57, 0.0 }
0x4af8   :  { %v6598_v13 = vadd.f32 %v6597_v7, %v6596_v17  ;;  %v6603_v28 = vadd.f32 %v6602_v36, %v6601_v40  ;;  %v6572_v52 = vpop.permute.xlu1 %6571 }
0x4af9   :  { %v6707_v43 = vmul.f32 %v6700_v1, %v6572_v52  ;;  %v6647_v21 = vmul.f32 %v6640_v6, %v6572_v52 }
0x4afa   :  { %v6604_v53 = vrot.slane %v6603_v28, 4  ;;  %v6599_v59 = vrot.slane %v6598_v13, 1 }
0x4afb   :  { %6715 = vrot.lane.b32.xlu1 %v6707_v43, %s8182_s22  ;;  %v6651_v41 = vsub.f32 1.0, %v6647_v21 }
0x4afc   :  { %v6605_v20 = vadd.f32 %v6604_v53, %v6603_v28  ;;  %v6576_v51 = vpop.permute.xlu1 %6575  ;;  %v6600_v30 = vadd.f32 %v6599_v59, %v6598_v13 }
0x4afd   :  { %v6708_v32 = vmul.f32 %v6700_v1, %v6576_v51  ;;  %v6648_v62 = vmul.f32 %v6640_v6, %v6576_v51 }
0x4afe   :  { %v6606_v56 = vrot.slane %v6605_v20, 2  ;;  %v6731_v33 = vpack.c.bf16 %v6600_v30, %v6600_v30 }
0x4aff   :  { %6717 = vrot.lane.b32.xlu1 %v6708_v32, %s8182_s22  ;;  %v6652_v5 = vsub.f32 1.0, %v6648_v62 }
0x4b00   :  { %v6607_v4 = vadd.f32 %v6606_v56, %v6605_v20  ;;  %v6583_v19 = vpop.permute.xlu1 %6582  ;;  %v6735_v10 = vunpack.c.l.b16 %v6731_v33 }
0x4b01   :  { %v6709_v60 = vmul.f32 %v6704_v26, %v6583_v19  ;;  %v6649_v50 = vmul.f32 %v6644_v35, %v6583_v19 }
0x4b02   :  { %v6608_v61 = vrot.slane %v6607_v4, 1 }
0x4b03   :  { %6721 = vrot.lane.b32.xlu1 %v6710_v29, %s8182_s22  ;;  %6719 = vrot.lane.b32.xlu0 %v6709_v60, %s8182_s22  ;;  %v6653_v8 = vsub.f32 1.0, %v6649_v50 }
0x4b04   :  { %v6609_v63 = vadd.f32 %v6608_v61, %v6607_v4 }
0x4b06   :  { %v6732_v49 = vpack.c.bf16 %v6609_v63, %v6609_v63  ;;  %v6841_v27 = vsel %vm551_vm6, %v6609_v63, %v6600_v30 }
0x4b07   :  { %6659 = vrot.lane.b32.xlu1 %v6651_v41, %s8181_s0  ;;  %6835 = vrot.lane.b32.xlu0 %v9881_v34, %s8169_s3  ;;  %6844 = vst.msk [vmem:[#allocation5] sm:$0x3] %vm6843_vm11, %v6841_v27  ;;  %s6890_s3 = sshll.u32 %s8184_s1, 4  ;;  %s6891_s3 = int_to_ptr.vmem [resolvable:$true] %s6890_s3 }
0x4b08   :  { %v6736_v58 = vunpack.c.l.b16 %v6732_v49 }
0x4b0a   :  { %v6737_v16 = vsel %vm551_vm6, %v6736_v58, %v6735_v10 }
0x4b0b   :  { %6661 = vrot.lane.b32.xlu1 %v6652_v5, %s8181_s0  ;;  %v6738_v54 = vpack.c.b16 %v6737_v16, %v6737_v16 }
0x4b0d   :  { %7470 = vmatmul.mubr.msk.bf16.vlgmr.msra.gmra.mrb[60].mxu0 %vm95_vm1, %v6738_v54 }
0x4b0f   :  { %6663 = vrot.lane.b32.xlu1 %v6653_v8, %s8181_s0 }
0x4b13   :  { %6665 = vrot.lane.b32.xlu1 %v6654_v15, %s8181_s0 }
0x4b17   :  { %6829 = vrot.lane.b32.xlu1 %v9892_v25, %s8168_s2 }
0x4b6d   :  { %v6716_v34 = vpop.permute.xlu1 %6715 }
0x4b71   :  { %v6718_v22 = vpop.permute.xlu1 %6717 }
0x4b75   :  { %v10064_v42 = vpop.permute.xlu0 %6719  ;;  %v10066_v47 = vpop.permute.xlu1 %6721 }
0x4b76   :  { %8014 = shalt.err (!%p8011_p4)
}
0x4b77   :  { %s8015_s0 = scalar_lea.hbm %s10194_s15, 32 }
0x4b78   :  { %p8016_p5 = scmp.ne.s32.totalorder %s10194_s15, %s8015_s0  ;;  %p8019_p6 = scmp.lt.u32.totalorder %s8015_s0, %s10194_s15 }
0x4b7a   :  { %p8021_p7 = pnand %p8019_p6, %p8016_p5 }
0x4b7c   :  { %8024 = shalt.err (!%p8021_p7)
}
0x4b7d   :  { %6873 = dma.vmem_to_hbm [thread:$0]  %s6871_s21, 32, %s10194_s15, [#allocation6]   ;;  %v6836_v25 = vpop.permute.xlu0 %6835  ;;  %v6660_v45 = vpop.permute.xlu1 %6659 }
0x4b7e   :  { %s8185_s9 = smov [#allocation11]   ;;  %v6671_v44 = vmul.f32 %v6660_v45, %v9923_v38  ;;  %6838 = vst.msk [vmem:[#allocation8] sm:$0x3] %vm6832_vm13, %v6836_v25  ;;  %s8025_s29 = scalar_lea.vmem %s6891_s3, 32 }
0x4b7f   :  { %s6910_s4 = sshll.u32 %s8185_s9, 4  ;;  %p8026_p8 = scmp.ne.s32.totalorder %s6891_s3, %s8025_s29  ;;  %s6911_s4 = int_to_ptr.vmem [resolvable:$true] %s6910_s4 }
0x4b80   :  { %p8030_p9 = scmp.lt.s32.totalorder %s6891_s3, %s6891_s3  ;;  %p8031_p10 = scmp.lt.s32.totalorder %s8025_s29, %s8025_s29 }
0x4b82   :  { %p8032_p11 = por %p8031_p10, %p8030_p9 }
0x4b84   :  { %p8033_p12 = pnand %p8032_p11, %p8026_p8 }
0x4b86   :  { %8036 = shalt.err (!%p8033_p12)
}
0x4b87   :  { %s8037_s15 = scalar_lea.hbm %s10196_s17, 32 }
0x4b88   :  { %p8038_p13 = scmp.ne.s32.totalorder %s10196_s17, %s8037_s15  ;;  %p8041_p0 = scmp.lt.u32.totalorder %s8037_s15, %s10196_s17 }
0x4b8a   :  { %p8043_p1 = pnand %p8041_p0, %p8038_p13 }
0x4b8c   :  { %8046 = shalt.err (!%p8043_p1)
}
0x4b8d   :  { %6893 = dma.vmem_to_hbm [thread:$0]  %s6891_s3, 32, %s10196_s17, [#allocation9]   ;;  %v6727_v38 = vadd.f32 %v6716_v34, %v6671_v44 }
0x4b8e   :  { %s8047_s21 = scalar_lea.vmem %s6911_s4, 32  ;;  %p8052_p3 = scmp.lt.s32.totalorder %s6911_s4, %s6911_s4 }
0x4b8f   :  { %p8048_p2 = scmp.ne.s32.totalorder %s6911_s4, %s8047_s21  ;;  %p8053_p4 = scmp.lt.s32.totalorder %s8047_s21, %s8047_s21 }
0x4b91   :  { %p8054_p5 = por %p8053_p4, %p8052_p3 }
0x4b93   :  { %p8055_p6 = pnand %p8054_p5, %p8048_p2 }
0x4b95   :  { %8058 = shalt.err (!%p8055_p6)
}
0x4b96   :  { %s8059_s2 = scalar_lea.hbm %s10198_s19, 32 }
0x4b97   :  { %p8060_p7 = scmp.ne.s32.totalorder %s10198_s19, %s8059_s2  ;;  %p8063_p8 = scmp.lt.u32.totalorder %s8059_s2, %s10198_s19 }
0x4b99   :  { %p8065_p9 = pnand %p8063_p8, %p8060_p7 }
0x4b9b   :  { %8068 = shalt.err (!%p8065_p9)
}
0x4b9c   :  { %6913 = dma.vmem_to_hbm [thread:$0]  %s6911_s4, 32, %s10198_s19, [#allocation12]   ;;  %v6662_v24 = vpop.permute.xlu1 %6661  ;;  %6848 = vst.msk [vmem:[#allocation13] sm:$0xff] %vm95_vm1, %v6727_v38 }
0x4b9d   :  { %v6672_v9 = vmul.f32 %v6662_v24, %v9930_v48  ;;  %s8186_s7 = smov [#allocation10]  }
0x4b9e   :  { %s6900_s5 = sshll.u32 %s8186_s7, 4  ;;  %s6901_s5 = int_to_ptr.vmem [resolvable:$true] %s6900_s5 }
0x4b9f   :  { %v6728_v17 = vadd.f32 %v6718_v22, %v6672_v9  ;;  %s8069_s27 = scalar_lea.vmem %s6901_s5, 32  ;;  %p8074_p11 = scmp.lt.s32.totalorder %s6901_s5, %s6901_s5 }
0x4ba0   :  { %v6664_v2 = vpop.permute.xlu1 %6663  ;;  %p8070_p10 = scmp.ne.s32.totalorder %s6901_s5, %s8069_s27  ;;  %p8075_p12 = scmp.lt.s32.totalorder %s8069_s27, %s8069_s27 }
0x4ba2   :  { %p8076_p13 = por %p8075_p12, %p8074_p11 }
0x4ba4   :  { %p8077_p0 = pnand %p8076_p13, %p8070_p10 }
0x4ba6   :  { %8080 = shalt.err (!%p8077_p0)
}
0x4ba7   :  { %s8081_s19 = scalar_lea.hbm %s10197_s18, 32 }
0x4ba8   :  { %p8082_p1 = scmp.ne.s32.totalorder %s10197_s18, %s8081_s19  ;;  %p8085_p2 = scmp.lt.u32.totalorder %s8081_s19, %s10197_s18 }
0x4baa   :  { %p8087_p3 = pnand %p8085_p2, %p8082_p1 }
0x4bac   :  { %8090 = shalt.err (!%p8087_p3)
}
0x4bad   :  { %6903 = dma.vmem_to_hbm [thread:$0]  %s6901_s5, 32, %s10197_s18, [#allocation9]   ;;  %6849 = vst.msk [vmem:[#allocation13 + $0x8] sm:$0xff] %vm95_vm1, %v6728_v17  ;;  %v6673_v48 = vmul.f32 %v6664_v2, %v9928_v3  ;;  %v6666_v12 = vpop.permute.xlu1 %6665 }
0x4bae   :  { %s8187_s30 = smov [#allocation7]   ;;  %v6674_v7 = vmul.f32 %v6666_v12, %v9936_v14  ;;  %s8188_s11 = smov [#allocation13]  }
0x4baf   :  { %v6729_v57 = vadd.f32 %v10064_v42, %v6673_v48  ;;  %s6880_s23 = sshll.u32 %s8187_s30, 4  ;;  %s6919_s6 = sshll.u32 %s8188_s11, 4  ;;  %s6881_s23 = int_to_ptr.vmem [resolvable:$true] %s6880_s23  ;;  %s10126_s6 = int_to_ptr.vmem [resolvable:$true] %s6919_s6 }
0x4bb0   :  { %v6730_v37 = vadd.f32 %v10066_v47, %v6674_v7  ;;  %s8091_s18 = scalar_lea.vmem %s6881_s23, 32  ;;  %p8096_p5 = scmp.lt.s32.totalorder %s6881_s23, %s6881_s23 }
0x4bb1   :  { %6850 = vst.msk [vmem:[#allocation13 + $0x10] sm:$0xff] %vm95_vm1, %v6729_v57  ;;  %v6830_v40 = vpop.permute.xlu1 %6829  ;;  %p8092_p4 = scmp.ne.s32.totalorder %s6881_s23, %s8091_s18  ;;  %p8097_p6 = scmp.lt.s32.totalorder %s8091_s18, %s8091_s18 }
0x4bb2   :  { %6851 = vst.msk [vmem:[#allocation13 + $0x18] sm:$0xff] %vm95_vm1, %v6730_v37 }
0x4bb3   :  { %6833 = vst.msk [vmem:[#allocation7] sm:$0x3] %vm6832_vm13, %v6830_v40  ;;  %p8098_p7 = por %p8097_p6, %p8096_p5 }
0x4bb5   :  { %p8099_p8 = pnand %p8098_p7, %p8092_p4 }
0x4bb7   :  { %8102 = shalt.err (!%p8099_p8)
}
0x4bb8   :  { %s8103_s1 = scalar_lea.hbm %s10195_s16, 32 }
0x4bb9   :  { %p8104_p9 = scmp.ne.s32.totalorder %s10195_s16, %s8103_s1  ;;  %p8107_p10 = scmp.lt.u32.totalorder %s8103_s1, %s10195_s16 }
0x4bbb   :  { %p8109_p11 = pnand %p8107_p10, %p8104_p9 }
0x4bbd   :  { %8112 = shalt.err (!%p8109_p11)
}
0x4bbe   :  { %6883 = dma.vmem_to_hbm [thread:$0]  %s6881_s23, 32, %s10195_s16, [#allocation6]  }
0x4bbf   :  { %s8113_s17 = scalar_lea.vmem %s10126_s6, 512  ;;  %p8118_p13 = scmp.lt.s32.totalorder %s10126_s6, %s10126_s6 }
0x4bc0   :  { %p8114_p12 = scmp.ne.s32.totalorder %s10126_s6, %s8113_s17  ;;  %p8119_p0 = scmp.lt.s32.totalorder %s8113_s17, %s8113_s17 }
0x4bc2   :  { %p8120_p1 = por %p8119_p0, %p8118_p13 }
0x4bc4   :  { %p8121_p2 = pnand %p8120_p1, %p8114_p12 }
0x4bc6   :  { %8124 = shalt.err (!%p8121_p2)
}
0x4bc7   :  { %s8125_s5 = scalar_lea.hbm %s10199_s20, 512 }
0x4bc8   :  { %p8126_p3 = scmp.ne.s32.totalorder %s10199_s20, %s8125_s5  ;;  %p8129_p4 = scmp.lt.u32.totalorder %s8125_s5, %s10199_s20 }
0x4bca   :  { %p8131_p5 = pnand %p8129_p4, %p8126_p3 }
0x4bcc   :  { %8134 = shalt.err (!%p8131_p5)
}
0x4bcd   :  { %s8189_s16 = smov 128   ;;  %s8190_s4 = smov 8  }
0x4bce   :  { %6925 = dma.vmem_to_hbm [thread:$0]  %s10126_s6, 512, %s10199_s20, [#allocation12], %s8189_s16, %s8189_s16, %s8190_s4  }
0x4bcf   :  { %s8191_s10 = smov [#allocation3]  }
0x4bd0   :  { %s6857_s15 = sshll.u32 %s8191_s10, 4  ;;  %s6858_s15 = int_to_ptr.vmem [resolvable:$true] %s6857_s15 }
0x4bd1   :  { %s8135_s13 = scalar_lea.vmem %s6858_s15, 256  ;;  %p8140_p7 = scmp.lt.s32.totalorder %s6858_s15, %s6858_s15 }
0x4bd2   :  { %p8136_p6 = scmp.ne.s32.totalorder %s6858_s15, %s8135_s13  ;;  %p8141_p8 = scmp.lt.s32.totalorder %s8135_s13, %s8135_s13 }
0x4bd4   :  { %p8142_p9 = por %p8141_p8, %p8140_p7 }
0x4bd6   :  { %p8143_p10 = pnand %p8142_p9, %p8136_p6 }
0x4be0   :  { %v6776_v3 = vpop.f32.mrb[60].mxu0 }
0x4be1   :  { %v6817_v14 = vadd.f32 %v10019_v46, %v6776_v3  ;;  %v7471_v36 = vpop.f32.mrb[61].mxu0 }
0x4be2   :  { %v6779_v1 = vpop.f32.mrb[62].mxu0 }
0x4be3   :  { %v6822_v13 = vadd.f32 %v9872_v39, %v6817_v14  ;;  %v7472_v28 = vpop.f32.mrb[63].mxu0 }
0x4be5   :  { %v6823_v52 = vmul.f32 0.5, %v6822_v13 }
0x4be7   :  { %7971 = vtanh.f32 %v6823_v52 }
0x4bf1   :  { %v7972_v43 = vpop.eup %7971 }
0x4bf2   :  { %v6825_v53 = vadd.f32 1.0, %v7972_v43 }
0x4bf4   :  { %v6826_v0 = vmul.f32 0.5, %v6825_v53 }
0x4bf6   :  { %6827 = vst [vmem:[#allocation3 + $0xe] sm:$0x3] %v6826_v0 }
0x4bf7   :  { %8146 = shalt.err (!%p8143_p10)
}
0x4bf8   :  { %s8147_s23 = scalar_lea.hbm %s10193_s14, 256 }
0x4bf9   :  { %p8148_p11 = scmp.ne.s32.totalorder %s10193_s14, %s8147_s23  ;;  %p8151_p12 = scmp.lt.u32.totalorder %s8147_s23, %s10193_s14 }
0x4bfb   :  { %p8153_p13 = pnand %p8151_p12, %p8148_p11 }
0x4bfd   :  { %8156 = shalt.err (!%p8153_p13)
}
0x4bfe   :  { %6863 = dma.vmem_to_hbm [thread:$0]  %s6858_s15, 256, %s10193_s14, [#allocation4], %s8189_s16, %s8189_s16, %s8190_s4  }
0x4bff   :  { %8157 = dma.done.wait [#allocation4], 256  }
0x4c00   :  { %8158 = vsyncadd [#allocation4], 4294967040 }
0x4c01   :  { %8159 = dma.done.wait [#allocation6], 64  }
0x4c02   :  { %8160 = vsyncadd [#allocation6], 4294967232 }
0x4c03   :  { %8161 = dma.done.wait [#allocation9], 64  }
0x4c04   :  { %8162 = vsyncadd [#allocation9], 4294967232 }
0x4c05   :  { %8163 = dma.done.wait [#allocation12], 544  }
0x4c06   :  { %8164 = vsyncadd [#allocation12], 4294966752 }
0x4c07   :  { %6947 = vsyncpa [#allocation4], 1 }
0x4c08   :  { %6948 = vsyncpa [#allocation6], 1 }
0x4c09   :  { %6949 = vsyncpa [#allocation9], 1 }
0x4c0a   :  { %6950 = vsyncpa [#allocation12], 1 }

</bundles_post_ra>
